<compile_context>
chip_gen: v6e
topology: v6e:2x2x1
jax: 0.10.0
libtpu: 0.0.40
codegen_flags: <defaults>
</compile_context>

<pallas_src>
import jax
import jax.numpy as jnp
from jax.experimental import pallas as pl
from jax.experimental.pallas import tpu as pltpu


# ---------------------------------------------------------------------------
# Pallas kernels
# ---------------------------------------------------------------------------

def _make_conv_kernel(K, Wp, Lout, Cout):
    """KxK same-padding conv as K*K shifted matmuls on a flattened padded plane."""
    taps = [dy * Wp + dx for dy in range(K) for dx in range(K)]

    def kernel(x_ref, w_ref, b_ref, o_ref):
        # x_ref: (1, Hp*Wp, Cin)  padded + flattened plane for one batch element
        # w_ref: (K*K, Cin, Cout)   b_ref: (1, Cout)   o_ref: (1, Lout, Cout)
        acc = jnp.zeros((Lout, Cout), jnp.float32)
        for t, off in enumerate(taps):            # static, fully unrolled
            win = x_ref[0, pl.ds(off, Lout), :]   # (Lout, Cin) sublane window
            acc = acc + jnp.dot(win, w_ref[t],
                                preferred_element_type=jnp.float32)
        o_ref[0] = (acc + b_ref[...].astype(jnp.float32)).astype(o_ref.dtype)

    return kernel


def _conv2d_same_pallas(x, w, b, K):
    """Stride-1, pad=K//2 conv. x: (N,H,W,Cin) NHWC, w: (K*K,Cin,Cout), b: (Cout,)."""
    N, H, W, Cin = x.shape
    Cout = w.shape[-1]
    P = K // 2
    Hp, Wp = H + 2 * P, W + 2 * P
    # Flattened-plane trick:  out[h*Wp + w] = sum_t x_flat[h*Wp + w + tap_t] @ w_t
    # is exact for w < W; the per-row tail columns (w >= W) are garbage and are
    # sliced off in the wrapper.  Lout is chosen so the last tap stays in bounds.
    Lout = (H - 1) * Wp + W

    xp = jnp.pad(x, ((0, 0), (P, P), (P, P), (0, 0))).reshape(N, Hp * Wp, Cin)
    b2 = b.reshape(1, Cout)

    out_flat = pl.pallas_call(
        _make_conv_kernel(K, Wp, Lout, Cout),
        out_shape=jax.ShapeDtypeStruct((N, Lout, Cout), x.dtype),
        grid_spec=pltpu.PrefetchScalarGridSpec(
            num_scalar_prefetch=0,
            grid=(N,),
            in_specs=[
                pl.BlockSpec((1, Hp * Wp, Cin), lambda n: (n, 0, 0)),   # x plane
                pl.BlockSpec((K * K, Cin, Cout), lambda n: (0, 0, 0)),  # weights
                pl.BlockSpec((1, Cout), lambda n: (0, 0)),              # bias
            ],
            out_specs=pl.BlockSpec((1, Lout, Cout), lambda n: (n, 0, 0)),
        ),
        compiler_params=pltpu.CompilerParams(dimension_semantics=("parallel",)),
    )(xp, w, b2)

    tail = H * Wp - Lout                       # == 2*P row-tail padding columns
    if tail:
        out_flat = jnp.pad(out_flat, ((0, 0), (0, tail), (0, 0)))
    return out_flat.reshape(N, H, Wp, Cout)[:, :, :W, :]


def _fuse_kernel(up_ref, x1_ref, gp_ref, o_ref):
    # Single streaming pass: out = upsample(xup1) * conv1(x) + broadcast(gp)
    up = up_ref[0].astype(jnp.float32)
    x1 = x1_ref[0].astype(jnp.float32)
    gp = gp_ref[0].astype(jnp.float32)             # (1, Co) broadcasts over rows
    o_ref[0] = (up * x1 + gp).astype(o_ref.dtype)


def _fuse_pallas(up, x1, gp):
    """up, x1: (N,H,W,Co); gp: (N,Co). Returns up * x1 + gp broadcast."""
    N, H, W, Co = up.shape
    HW = H * W
    out = pl.pallas_call(
        _fuse_kernel,
        out_shape=jax.ShapeDtypeStruct((N, HW, Co), x1.dtype),
        grid_spec=pltpu.PrefetchScalarGridSpec(
            num_scalar_prefetch=0,
            grid=(N,),
            in_specs=[
                pl.BlockSpec((1, HW, Co), lambda n: (n, 0, 0)),
                pl.BlockSpec((1, HW, Co), lambda n: (n, 0, 0)),
                pl.BlockSpec((1, 1, Co), lambda n: (n, 0, 0)),
            ],
            out_specs=pl.BlockSpec((1, HW, Co), lambda n: (n, 0, 0)),
        ),
        compiler_params=pltpu.CompilerParams(dimension_semantics=("parallel",)),
    )(up.reshape(N, HW, Co), x1.reshape(N, HW, Co), gp.reshape(N, 1, Co))
    return out.reshape(N, H, W, Co)


# ---------------------------------------------------------------------------
# Thin plain-JAX glue (layout / interpolation only).
# TODO(synk): the 2x2 avg-pool and align_corners=True bilinear resizes are kept
# as small plain-JAX helpers; for production shapes they could be folded into
# the neighbouring Pallas conv / fuse kernels to save extra HBM passes.
# ---------------------------------------------------------------------------

def _avg_pool2(x):
    N, H, W, C = x.shape
    return x.reshape(N, H // 2, 2, W // 2, 2, C).mean(axis=(2, 4))


def _bilinear_matrix(n_in, n_out):
    if n_in == 1:
        return jnp.ones((n_out, 1), jnp.float32)
    src = jnp.arange(n_out, dtype=jnp.float32) * (n_in - 1) / (n_out - 1)
    lo = jnp.clip(jnp.floor(src).astype(jnp.int32), 0, n_in - 2)
    frac = src - lo.astype(jnp.float32)
    rows = jnp.arange(n_out)
    m = jnp.zeros((n_out, n_in), jnp.float32)
    m = m.at[rows, lo].set(1.0 - frac)
    m = m.at[rows, lo + 1].add(frac)
    return m


def _bilinear_up_ac(x, out_h, out_w):
    """Bilinear resize with align_corners=True semantics (NHWC)."""
    _, H, W, _ = x.shape
    Ah = _bilinear_matrix(H, out_h)
    Aw = _bilinear_matrix(W, out_w)
    hi = jax.lax.Precision.HIGHEST
    y = jnp.einsum("oh,nhwc->nowc", Ah, x, precision=hi)
    return jnp.einsum("pw,nowc->nopc", Aw, y, precision=hi)


# ---------------------------------------------------------------------------
# Forward pass (shared skeleton so the Pallas and reference paths differ only
# in the conv / fuse implementations).
# ---------------------------------------------------------------------------

def _forward(x_nchw, params, conv_fn, fuse_fn, mode="std"):
    if mode != "std":
        # TODO(synk): 'reduced'/'extended' only change the first pooling and
        # the last upsampling factor; only the default 'std' path is built.
        raise NotImplementedError(mode)
    p = params
    N, C, H, W = x_nchw.shape
    x = jnp.transpose(x_nchw, (0, 2, 3, 1))        # single NCHW->NHWC transpose

    xup1 = conv_fn(_avg_pool2(x), p["w7a"], p["b7a"], 7)       # H/2
    xup2 = conv_fn(_avg_pool2(xup1), p["w5a"], p["b5a"], 5)    # H/4
    xup3 = conv_fn(_avg_pool2(xup2), p["w3a"], p["b3a"], 3)    # H/8

    x1 = conv_fn(x, p["w1"], p["b1"], 1)                       # H, 1x1
    xup1 = conv_fn(xup1, p["w7b"], p["b7b"], 7)
    xup2 = conv_fn(xup2, p["w5b"], p["b5b"], 5)
    xup3 = conv_fn(xup3, p["w3b"], p["b3b"], 3)

    xup2 = _bilinear_up_ac(xup3, xup2.shape[1], xup2.shape[2]) + xup2
    xup1 = _bilinear_up_ac(xup2, xup1.shape[1], xup1.shape[2]) + xup1

    # Global-pool branch: GPool -> 1x1 conv -> bilinear upsample of a 1x1 map
    # (constant broadcast). One batched (N,C)@(C,Co) matmul for the whole batch.
    gp = x.mean(axis=(1, 2)) @ p["w1p"] + p["b1p"]             # (N, Co)

    up1 = _bilinear_up_ac(xup1, H, W)
    out = fuse_fn(up1, x1, gp)                                 # up1 * x1 + gp
    return jnp.transpose(out, (0, 3, 1, 2))                    # back to NCHW


def fpa_forward_pallas(x_nchw, params):
    return _forward(x_nchw, params, _conv2d_same_pallas, _fuse_pallas)


# --------------------------- pure-JAX reference -----------------------------

def _conv2d_same_ref(x, w, b, K):
    w4 = w.reshape(K, K, w.shape[-2], w.shape[-1])
    y = jax.lax.conv_general_dilated(
        x, w4, window_strides=(1, 1), padding="SAME",
        dimension_numbers=("NHWC", "HWIO", "NHWC"),
        precision=jax.lax.Precision.HIGHEST)
    return y + b


def _fuse_ref(up, x1, gp):
    return up * x1 + gp[:, None, None, :]


def fpa_forward_reference(x_nchw, params):
    return _forward(x_nchw, params, _conv2d_same_ref, _fuse_ref)


# ---------------------------------------------------------------------------
# Parameters
# ---------------------------------------------------------------------------

def init_params(key, channels, out_channels=None, dtype=jnp.float32):
    if out_channels is None:
        out_channels = channels
    C, Co = channels, out_channels
    ks = iter(jax.random.split(key, 20))

    def conv(K, cin, cout):
        scale = 1.0 / float(K * K * cin) ** 0.5
        w = jax.random.normal(next(ks), (K * K, cin, cout), dtype) * scale
        b = jax.random.normal(next(ks), (cout,), dtype) * 0.05
        return w, b

    p = {}
    p["w1"], p["b1"] = conv(1, C, Co)
    p["w7a"], p["b7a"] = conv(7, C, Co)
    p["w7b"], p["b7b"] = conv(7, Co, Co)
    p["w5a"], p["b5a"] = conv(5, Co, Co)
    p["w5b"], p["b5b"] = conv(5, Co, Co)
    p["w3a"], p["b3a"] = conv(3, Co, Co)
    p["w3b"], p["b3b"] = conv(3, Co, Co)
    w1p, b1p = conv(1, C, Co)
    p["w1p"] = w1p.reshape(C, Co)     # global-pool 1x1 conv stored as a matmul
    p["b1p"] = b1p
    return p


# ---------------------------------------------------------------------------

if __name__ == "__main__":
    key = jax.random.PRNGKey(0)
    k_x, k_p = jax.random.split(key)

    N, C, H, W = 2, 8, 16, 16          # H, W divisible by 8 (three 2x downsamples)
    x = jax.random.normal(k_x, (N, C, H, W), jnp.float32)
    params = init_params(k_p, C)

    out = jax.jit(fpa_forward_pallas)(x, params)
    out = jax.block_until_ready(out)

    ref = fpa_forward_reference(x, params)
    assert out.shape == (N, C, H, W)
    max_err = float(jnp.max(jnp.abs(out - ref)))
    # Tolerance allows for MXU fp32-pass rounding vs the HIGHEST-precision XLA
    # convolution reference; genuine indexing/bias bugs produce O(0.1-1) errors.
    assert jnp.allclose(out, ref, atol=2e-2, rtol=2e-2), (
        f"mismatch vs reference, max abs err = {max_err}")
    print("KERNEL_OK")
</pallas_src>

<mosaic_0001>
module attributes {stable_mosaic.version = 11 : i64} {
  func.func private @main(%arg0: i32) attributes {dimension_semantics = [#tpu.dimension_semantics<core_parallel>], iteration_bounds = array<i64: 2>, tpu.core_type = #tpu.core_type<sc_scalar_subcore>, window_params = []} {
    return
  }
}

module attributes {stable_mosaic.version = 11 : i64} {
  func.func private @main(%arg0: i32) attributes {dimension_semantics = [#tpu.dimension_semantics<core_parallel>], iteration_bounds = array<i64: 2>, tpu.core_type = #tpu.core_type<sc_scalar_subcore>, window_params = []} {
    return
  }
}

module attributes {stable_mosaic.version = 11 : i64} {
  func.func @kernel(%arg0: i32, %arg1: memref<1x196x8xf32, #tpu.memory_space<vmem>>, %arg2: memref<49x8x8xf32, #tpu.memory_space<vmem>>, %arg3: memref<1x8xf32, #tpu.memory_space<vmem>>, %arg4: memref<1x106x8xf32, #tpu.memory_space<vmem>>) attributes {dimension_semantics = [#tpu.dimension_semantics<parallel>], iteration_bounds = array<i64: 2>, scalar_prefetch = 0 : i64, scratch_operands = 0 : i64, tpu.core_type = #tpu.core_type<tc>, window_params = [{transform_indices = @transform_0, window_bounds = array<i64: 1, 196, 8>}, {pipeline_mode = #tpu.pipeline_mode<synchronous>, transform_indices = @transform_1, window_bounds = array<i64: 49, 8, 8>}, {pipeline_mode = #tpu.pipeline_mode<synchronous>, transform_indices = @transform_2, window_bounds = array<i64: 1, 8>}, {transform_indices = @transform_3, window_bounds = array<i64: 1, 106, 8>}]} {
    %cst = arith.constant 0.000000e+00 : f32
    %0 = vector.broadcast %cst : f32 to vector<106x8xf32>
    %c0 = arith.constant 0 : index
    %c0_0 = arith.constant 0 : index
    %c0_1 = arith.constant 0 : index
    %1 = vector.load %arg1[%c0, %c0_0, %c0_1] : memref<1x196x8xf32, #tpu.memory_space<vmem>>, vector<1x106x8xf32>
    %2 = vector.shape_cast %1 : vector<1x106x8xf32> to vector<106x8xf32>
    %c0_2 = arith.constant 0 : index
    %c0_3 = arith.constant 0 : index
    %c0_4 = arith.constant 0 : index
    %3 = vector.load %arg2[%c0_2, %c0_3, %c0_4] : memref<49x8x8xf32, #tpu.memory_space<vmem>>, vector<1x8x8xf32>
    %4 = vector.shape_cast %3 : vector<1x8x8xf32> to vector<8x8xf32>
    %cst_5 = arith.constant dense<0.000000e+00> : vector<106x8xf32>
    %5 = tpu.matmul %2, %4, %cst_5 {dimension_numbers = #tpu.dot_dimension_numbers<[1], [0], [0], [1], [0, 0, 1, 1], [], []>} : vector<106x8xf32>, vector<8x8xf32>, vector<106x8xf32> -> vector<106x8xf32>
    %6 = arith.addf %0, %5 : vector<106x8xf32>
    %c0_6 = arith.constant 0 : index
    %c1 = arith.constant 1 : index
    %c0_7 = arith.constant 0 : index
    %7 = vector.load %arg1[%c0_6, %c1, %c0_7] : memref<1x196x8xf32, #tpu.memory_space<vmem>>, vector<1x106x8xf32>
    %8 = vector.shape_cast %7 : vector<1x106x8xf32> to vector<106x8xf32>
    %c1_8 = arith.constant 1 : index
    %c0_9 = arith.constant 0 : index
    %c0_10 = arith.constant 0 : index
    %9 = vector.load %arg2[%c1_8, %c0_9, %c0_10] : memref<49x8x8xf32, #tpu.memory_space<vmem>>, vector<1x8x8xf32>
    %10 = vector.shape_cast %9 : vector<1x8x8xf32> to vector<8x8xf32>
    %cst_11 = arith.constant dense<0.000000e+00> : vector<106x8xf32>
    %11 = tpu.matmul %8, %10, %cst_11 {dimension_numbers = #tpu.dot_dimension_numbers<[1], [0], [0], [1], [0, 0, 1, 1], [], []>} : vector<106x8xf32>, vector<8x8xf32>, vector<106x8xf32> -> vector<106x8xf32>
    %12 = arith.addf %6, %11 : vector<106x8xf32>
    %c0_12 = arith.constant 0 : index
    %c2 = arith.constant 2 : index
    %c0_13 = arith.constant 0 : index
    %13 = vector.load %arg1[%c0_12, %c2, %c0_13] : memref<1x196x8xf32, #tpu.memory_space<vmem>>, vector<1x106x8xf32>
    %14 = vector.shape_cast %13 : vector<1x106x8xf32> to vector<106x8xf32>
    %c2_14 = arith.constant 2 : index
    %c0_15 = arith.constant 0 : index
    %c0_16 = arith.constant 0 : index
    %15 = vector.load %arg2[%c2_14, %c0_15, %c0_16] : memref<49x8x8xf32, #tpu.memory_space<vmem>>, vector<1x8x8xf32>
    %16 = vector.shape_cast %15 : vector<1x8x8xf32> to vector<8x8xf32>
    %cst_17 = arith.constant dense<0.000000e+00> : vector<106x8xf32>
    %17 = tpu.matmul %14, %16, %cst_17 {dimension_numbers = #tpu.dot_dimension_numbers<[1], [0], [0], [1], [0, 0, 1, 1], [], []>} : vector<106x8xf32>, vector<8x8xf32>, vector<106x8xf32> -> vector<106x8xf32>
    %18 = arith.addf %12, %17 : vector<106x8xf32>
    %c0_18 = arith.constant 0 : index
    %c3 = arith.constant 3 : index
    %c0_19 = arith.constant 0 : index
    %19 = vector.load %arg1[%c0_18, %c3, %c0_19] : memref<1x196x8xf32, #tpu.memory_space<vmem>>, vector<1x106x8xf32>
    %20 = vector.shape_cast %19 : vector<1x106x8xf32> to vector<106x8xf32>
    %c3_20 = arith.constant 3 : index
    %c0_21 = arith.constant 0 : index
    %c0_22 = arith.constant 0 : index
    %21 = vector.load %arg2[%c3_20, %c0_21, %c0_22] : memref<49x8x8xf32, #tpu.memory_space<vmem>>, vector<1x8x8xf32>
    %22 = vector.shape_cast %21 : vector<1x8x8xf32> to vector<8x8xf32>
    %cst_23 = arith.constant dense<0.000000e+00> : vector<106x8xf32>
    %23 = tpu.matmul %20, %22, %cst_23 {dimension_numbers = #tpu.dot_dimension_numbers<[1], [0], [0], [1], [0, 0, 1, 1], [], []>} : vector<106x8xf32>, vector<8x8xf32>, vector<106x8xf32> -> vector<106x8xf32>
    %24 = arith.addf %18, %23 : vector<106x8xf32>
    %c0_24 = arith.constant 0 : index
    %c4 = arith.constant 4 : index
    %c0_25 = arith.constant 0 : index
    %25 = vector.load %arg1[%c0_24, %c4, %c0_25] : memref<1x196x8xf32, #tpu.memory_space<vmem>>, vector<1x106x8xf32>
    %26 = vector.shape_cast %25 : vector<1x106x8xf32> to vector<106x8xf32>
    %c4_26 = arith.constant 4 : index
    %c0_27 = arith.constant 0 : index
    %c0_28 = arith.constant 0 : index
    %27 = vector.load %arg2[%c4_26, %c0_27, %c0_28] : memref<49x8x8xf32, #tpu.memory_space<vmem>>, vector<1x8x8xf32>
    %28 = vector.shape_cast %27 : vector<1x8x8xf32> to vector<8x8xf32>
    %cst_29 = arith.constant dense<0.000000e+00> : vector<106x8xf32>
    %29 = tpu.matmul %26, %28, %cst_29 {dimension_numbers = #tpu.dot_dimension_numbers<[1], [0], [0], [1], [0, 0, 1, 1], [], []>} : vector<106x8xf32>, vector<8x8xf32>, vector<106x8xf32> -> vector<106x8xf32>
    %30 = arith.addf %24, %29 : vector<106x8xf32>
    %c0_30 = arith.constant 0 : index
    %c5 = arith.constant 5 : index
    %c0_31 = arith.constant 0 : index
    %31 = vector.load %arg1[%c0_30, %c5, %c0_31] : memref<1x196x8xf32, #tpu.memory_space<vmem>>, vector<1x106x8xf32>
    %32 = vector.shape_cast %31 : vector<1x106x8xf32> to vector<106x8xf32>
    %c5_32 = arith.constant 5 : index
    %c0_33 = arith.constant 0 : index
    %c0_34 = arith.constant 0 : index
    %33 = vector.load %arg2[%c5_32, %c0_33, %c0_34] : memref<49x8x8xf32, #tpu.memory_space<vmem>>, vector<1x8x8xf32>
    %34 = vector.shape_cast %33 : vector<1x8x8xf32> to vector<8x8xf32>
    %cst_35 = arith.constant dense<0.000000e+00> : vector<106x8xf32>
    %35 = tpu.matmul %32, %34, %cst_35 {dimension_numbers = #tpu.dot_dimension_numbers<[1], [0], [0], [1], [0, 0, 1, 1], [], []>} : vector<106x8xf32>, vector<8x8xf32>, vector<106x8xf32> -> vector<106x8xf32>
    %36 = arith.addf %30, %35 : vector<106x8xf32>
    %c0_36 = arith.constant 0 : index
    %c6 = arith.constant 6 : index
    %c0_37 = arith.constant 0 : index
    %37 = vector.load %arg1[%c0_36, %c6, %c0_37] : memref<1x196x8xf32, #tpu.memory_space<vmem>>, vector<1x106x8xf32>
    %38 = vector.shape_cast %37 : vector<1x106x8xf32> to vector<106x8xf32>
    %c6_38 = arith.constant 6 : index
    %c0_39 = arith.constant 0 : index
    %c0_40 = arith.constant 0 : index
    %39 = vector.load %arg2[%c6_38, %c0_39, %c0_40] : memref<49x8x8xf32, #tpu.memory_space<vmem>>, vector<1x8x8xf32>
    %40 = vector.shape_cast %39 : vector<1x8x8xf32> to vector<8x8xf32>
    %cst_41 = arith.constant dense<0.000000e+00> : vector<106x8xf32>
    %41 = tpu.matmul %38, %40, %cst_41 {dimension_numbers = #tpu.dot_dimension_numbers<[1], [0], [0], [1], [0, 0, 1, 1], [], []>} : vector<106x8xf32>, vector<8x8xf32>, vector<106x8xf32> -> vector<106x8xf32>
    %42 = arith.addf %36, %41 : vector<106x8xf32>
    %c0_42 = arith.constant 0 : index
    %c14 = arith.constant 14 : index
    %c0_43 = arith.constant 0 : index
    %43 = vector.load %arg1[%c0_42, %c14, %c0_43] : memref<1x196x8xf32, #tpu.memory_space<vmem>>, vector<1x106x8xf32>
    %44 = vector.shape_cast %43 : vector<1x106x8xf32> to vector<106x8xf32>
    %c7 = arith.constant 7 : index
    %c0_44 = arith.constant 0 : index
    %c0_45 = arith.constant 0 : index
    %45 = vector.load %arg2[%c7, %c0_44, %c0_45] : memref<49x8x8xf32, #tpu.memory_space<vmem>>, vector<1x8x8xf32>
    %46 = vector.shape_cast %45 : vector<1x8x8xf32> to vector<8x8xf32>
    %cst_46 = arith.constant dense<0.000000e+00> : vector<106x8xf32>
    %47 = tpu.matmul %44, %46, %cst_46 {dimension_numbers = #tpu.dot_dimension_numbers<[1], [0], [0], [1], [0, 0, 1, 1], [], []>} : vector<106x8xf32>, vector<8x8xf32>, vector<106x8xf32> -> vector<106x8xf32>
    %48 = arith.addf %42, %47 : vector<106x8xf32>
    %c0_47 = arith.constant 0 : index
    %c15 = arith.constant 15 : index
    %c0_48 = arith.constant 0 : index
    %49 = vector.load %arg1[%c0_47, %c15, %c0_48] : memref<1x196x8xf32, #tpu.memory_space<vmem>>, vector<1x106x8xf32>
    %50 = vector.shape_cast %49 : vector<1x106x8xf32> to vector<106x8xf32>
    %c8 = arith.constant 8 : index
    %c0_49 = arith.constant 0 : index
    %c0_50 = arith.constant 0 : index
    %51 = vector.load %arg2[%c8, %c0_49, %c0_50] : memref<49x8x8xf32, #tpu.memory_space<vmem>>, vector<1x8x8xf32>
    %52 = vector.shape_cast %51 : vector<1x8x8xf32> to vector<8x8xf32>
    %cst_51 = arith.constant dense<0.000000e+00> : vector<106x8xf32>
    %53 = tpu.matmul %50, %52, %cst_51 {dimension_numbers = #tpu.dot_dimension_numbers<[1], [0], [0], [1], [0, 0, 1, 1], [], []>} : vector<106x8xf32>, vector<8x8xf32>, vector<106x8xf32> -> vector<106x8xf32>
    %54 = arith.addf %48, %53 : vector<106x8xf32>
    %c0_52 = arith.constant 0 : index
    %c16 = arith.constant 16 : index
    %c0_53 = arith.constant 0 : index
    %55 = vector.load %arg1[%c0_52, %c16, %c0_53] : memref<1x196x8xf32, #tpu.memory_space<vmem>>, vector<1x106x8xf32>
    %56 = vector.shape_cast %55 : vector<1x106x8xf32> to vector<106x8xf32>
    %c9 = arith.constant 9 : index
    %c0_54 = arith.constant 0 : index
    %c0_55 = arith.constant 0 : index
    %57 = vector.load %arg2[%c9, %c0_54, %c0_55] : memref<49x8x8xf32, #tpu.memory_space<vmem>>, vector<1x8x8xf32>
    %58 = vector.shape_cast %57 : vector<1x8x8xf32> to vector<8x8xf32>
    %cst_56 = arith.constant dense<0.000000e+00> : vector<106x8xf32>
    %59 = tpu.matmul %56, %58, %cst_56 {dimension_numbers = #tpu.dot_dimension_numbers<[1], [0], [0], [1], [0, 0, 1, 1], [], []>} : vector<106x8xf32>, vector<8x8xf32>, vector<106x8xf32> -> vector<106x8xf32>
    %60 = arith.addf %54, %59 : vector<106x8xf32>
    %c0_57 = arith.constant 0 : index
    %c17 = arith.constant 17 : index
    %c0_58 = arith.constant 0 : index
    %61 = vector.load %arg1[%c0_57, %c17, %c0_58] : memref<1x196x8xf32, #tpu.memory_space<vmem>>, vector<1x106x8xf32>
    %62 = vector.shape_cast %61 : vector<1x106x8xf32> to vector<106x8xf32>
    %c10 = arith.constant 10 : index
    %c0_59 = arith.constant 0 : index
    %c0_60 = arith.constant 0 : index
    %63 = vector.load %arg2[%c10, %c0_59, %c0_60] : memref<49x8x8xf32, #tpu.memory_space<vmem>>, vector<1x8x8xf32>
    %64 = vector.shape_cast %63 : vector<1x8x8xf32> to vector<8x8xf32>
    %cst_61 = arith.constant dense<0.000000e+00> : vector<106x8xf32>
    %65 = tpu.matmul %62, %64, %cst_61 {dimension_numbers = #tpu.dot_dimension_numbers<[1], [0], [0], [1], [0, 0, 1, 1], [], []>} : vector<106x8xf32>, vector<8x8xf32>, vector<106x8xf32> -> vector<106x8xf32>
    %66 = arith.addf %60, %65 : vector<106x8xf32>
    %c0_62 = arith.constant 0 : index
    %c18 = arith.constant 18 : index
    %c0_63 = arith.constant 0 : index
    %67 = vector.load %arg1[%c0_62, %c18, %c0_63] : memref<1x196x8xf32, #tpu.memory_space<vmem>>, vector<1x106x8xf32>
    %68 = vector.shape_cast %67 : vector<1x106x8xf32> to vector<106x8xf32>
    %c11 = arith.constant 11 : index
    %c0_64 = arith.constant 0 : index
    %c0_65 = arith.constant 0 : index
    %69 = vector.load %arg2[%c11, %c0_64, %c0_65] : memref<49x8x8xf32, #tpu.memory_space<vmem>>, vector<1x8x8xf32>
    %70 = vector.shape_cast %69 : vector<1x8x8xf32> to vector<8x8xf32>
    %cst_66 = arith.constant dense<0.000000e+00> : vector<106x8xf32>
    %71 = tpu.matmul %68, %70, %cst_66 {dimension_numbers = #tpu.dot_dimension_numbers<[1], [0], [0], [1], [0, 0, 1, 1], [], []>} : vector<106x8xf32>, vector<8x8xf32>, vector<106x8xf32> -> vector<106x8xf32>
    %72 = arith.addf %66, %71 : vector<106x8xf32>
    %c0_67 = arith.constant 0 : index
    %c19 = arith.constant 19 : index
    %c0_68 = arith.constant 0 : index
    %73 = vector.load %arg1[%c0_67, %c19, %c0_68] : memref<1x196x8xf32, #tpu.memory_space<vmem>>, vector<1x106x8xf32>
    %74 = vector.shape_cast %73 : vector<1x106x8xf32> to vector<106x8xf32>
    %c12 = arith.constant 12 : index
    %c0_69 = arith.constant 0 : index
    %c0_70 = arith.constant 0 : index
    %75 = vector.load %arg2[%c12, %c0_69, %c0_70] : memref<49x8x8xf32, #tpu.memory_space<vmem>>, vector<1x8x8xf32>
    %76 = vector.shape_cast %75 : vector<1x8x8xf32> to vector<8x8xf32>
    %cst_71 = arith.constant dense<0.000000e+00> : vector<106x8xf32>
    %77 = tpu.matmul %74, %76, %cst_71 {dimension_numbers = #tpu.dot_dimension_numbers<[1], [0], [0], [1], [0, 0, 1, 1], [], []>} : vector<106x8xf32>, vector<8x8xf32>, vector<106x8xf32> -> vector<106x8xf32>
    %78 = arith.addf %72, %77 : vector<106x8xf32>
    %c0_72 = arith.constant 0 : index
    %c20 = arith.constant 20 : index
    %c0_73 = arith.constant 0 : index
    %79 = vector.load %arg1[%c0_72, %c20, %c0_73] : memref<1x196x8xf32, #tpu.memory_space<vmem>>, vector<1x106x8xf32>
    %80 = vector.shape_cast %79 : vector<1x106x8xf32> to vector<106x8xf32>
    %c13 = arith.constant 13 : index
    %c0_74 = arith.constant 0 : index
    %c0_75 = arith.constant 0 : index
    %81 = vector.load %arg2[%c13, %c0_74, %c0_75] : memref<49x8x8xf32, #tpu.memory_space<vmem>>, vector<1x8x8xf32>
    %82 = vector.shape_cast %81 : vector<1x8x8xf32> to vector<8x8xf32>
    %cst_76 = arith.constant dense<0.000000e+00> : vector<106x8xf32>
    %83 = tpu.matmul %80, %82, %cst_76 {dimension_numbers = #tpu.dot_dimension_numbers<[1], [0], [0], [1], [0, 0, 1, 1], [], []>} : vector<106x8xf32>, vector<8x8xf32>, vector<106x8xf32> -> vector<106x8xf32>
    %84 = arith.addf %78, %83 : vector<106x8xf32>
    %c0_77 = arith.constant 0 : index
    %c28 = arith.constant 28 : index
    %c0_78 = arith.constant 0 : index
    %85 = vector.load %arg1[%c0_77, %c28, %c0_78] : memref<1x196x8xf32, #tpu.memory_space<vmem>>, vector<1x106x8xf32>
    %86 = vector.shape_cast %85 : vector<1x106x8xf32> to vector<106x8xf32>
    %c14_79 = arith.constant 14 : index
    %c0_80 = arith.constant 0 : index
    %c0_81 = arith.constant 0 : index
    %87 = vector.load %arg2[%c14_79, %c0_80, %c0_81] : memref<49x8x8xf32, #tpu.memory_space<vmem>>, vector<1x8x8xf32>
    %88 = vector.shape_cast %87 : vector<1x8x8xf32> to vector<8x8xf32>
    %cst_82 = arith.constant dense<0.000000e+00> : vector<106x8xf32>
    %89 = tpu.matmul %86, %88, %cst_82 {dimension_numbers = #tpu.dot_dimension_numbers<[1], [0], [0], [1], [0, 0, 1, 1], [], []>} : vector<106x8xf32>, vector<8x8xf32>, vector<106x8xf32> -> vector<106x8xf32>
    %90 = arith.addf %84, %89 : vector<106x8xf32>
    %c0_83 = arith.constant 0 : index
    %c29 = arith.constant 29 : index
    %c0_84 = arith.constant 0 : index
    %91 = vector.load %arg1[%c0_83, %c29, %c0_84] : memref<1x196x8xf32, #tpu.memory_space<vmem>>, vector<1x106x8xf32>
    %92 = vector.shape_cast %91 : vector<1x106x8xf32> to vector<106x8xf32>
    %c15_85 = arith.constant 15 : index
    %c0_86 = arith.constant 0 : index
    %c0_87 = arith.constant 0 : index
    %93 = vector.load %arg2[%c15_85, %c0_86, %c0_87] : memref<49x8x8xf32, #tpu.memory_space<vmem>>, vector<1x8x8xf32>
    %94 = vector.shape_cast %93 : vector<1x8x8xf32> to vector<8x8xf32>
    %cst_88 = arith.constant dense<0.000000e+00> : vector<106x8xf32>
    %95 = tpu.matmul %92, %94, %cst_88 {dimension_numbers = #tpu.dot_dimension_numbers<[1], [0], [0], [1], [0, 0, 1, 1], [], []>} : vector<106x8xf32>, vector<8x8xf32>, vector<106x8xf32> -> vector<106x8xf32>
    %96 = arith.addf %90, %95 : vector<106x8xf32>
    %c0_89 = arith.constant 0 : index
    %c30 = arith.constant 30 : index
    %c0_90 = arith.constant 0 : index
    %97 = vector.load %arg1[%c0_89, %c30, %c0_90] : memref<1x196x8xf32, #tpu.memory_space<vmem>>, vector<1x106x8xf32>
    %98 = vector.shape_cast %97 : vector<1x106x8xf32> to vector<106x8xf32>
    %c16_91 = arith.constant 16 : index
    %c0_92 = arith.constant 0 : index
    %c0_93 = arith.constant 0 : index
    %99 = vector.load %arg2[%c16_91, %c0_92, %c0_93] : memref<49x8x8xf32, #tpu.memory_space<vmem>>, vector<1x8x8xf32>
    %100 = vector.shape_cast %99 : vector<1x8x8xf32> to vector<8x8xf32>
    %cst_94 = arith.constant dense<0.000000e+00> : vector<106x8xf32>
    %101 = tpu.matmul %98, %100, %cst_94 {dimension_numbers = #tpu.dot_dimension_numbers<[1], [0], [0], [1], [0, 0, 1, 1], [], []>} : vector<106x8xf32>, vector<8x8xf32>, vector<106x8xf32> -> vector<106x8xf32>
    %102 = arith.addf %96, %101 : vector<106x8xf32>
    %c0_95 = arith.constant 0 : index
    %c31 = arith.constant 31 : index
    %c0_96 = arith.constant 0 : index
    %103 = vector.load %arg1[%c0_95, %c31, %c0_96] : memref<1x196x8xf32, #tpu.memory_space<vmem>>, vector<1x106x8xf32>
    %104 = vector.shape_cast %103 : vector<1x106x8xf32> to vector<106x8xf32>
    %c17_97 = arith.constant 17 : index
    %c0_98 = arith.constant 0 : index
    %c0_99 = arith.constant 0 : index
    %105 = vector.load %arg2[%c17_97, %c0_98, %c0_99] : memref<49x8x8xf32, #tpu.memory_space<vmem>>, vector<1x8x8xf32>
    %106 = vector.shape_cast %105 : vector<1x8x8xf32> to vector<8x8xf32>
    %cst_100 = arith.constant dense<0.000000e+00> : vector<106x8xf32>
    %107 = tpu.matmul %104, %106, %cst_100 {dimension_numbers = #tpu.dot_dimension_numbers<[1], [0], [0], [1], [0, 0, 1, 1], [], []>} : vector<106x8xf32>, vector<8x8xf32>, vector<106x8xf32> -> vector<106x8xf32>
    %108 = arith.addf %102, %107 : vector<106x8xf32>
    %c0_101 = arith.constant 0 : index
    %c32 = arith.constant 32 : index
    %c0_102 = arith.constant 0 : index
    %109 = vector.load %arg1[%c0_101, %c32, %c0_102] : memref<1x196x8xf32, #tpu.memory_space<vmem>>, vector<1x106x8xf32>
    %110 = vector.shape_cast %109 : vector<1x106x8xf32> to vector<106x8xf32>
    %c18_103 = arith.constant 18 : index
    %c0_104 = arith.constant 0 : index
    %c0_105 = arith.constant 0 : index
    %111 = vector.load %arg2[%c18_103, %c0_104, %c0_105] : memref<49x8x8xf32, #tpu.memory_space<vmem>>, vector<1x8x8xf32>
    %112 = vector.shape_cast %111 : vector<1x8x8xf32> to vector<8x8xf32>
    %cst_106 = arith.constant dense<0.000000e+00> : vector<106x8xf32>
    %113 = tpu.matmul %110, %112, %cst_106 {dimension_numbers = #tpu.dot_dimension_numbers<[1], [0], [0], [1], [0, 0, 1, 1], [], []>} : vector<106x8xf32>, vector<8x8xf32>, vector<106x8xf32> -> vector<106x8xf32>
    %114 = arith.addf %108, %113 : vector<106x8xf32>
    %c0_107 = arith.constant 0 : index
    %c33 = arith.constant 33 : index
    %c0_108 = arith.constant 0 : index
    %115 = vector.load %arg1[%c0_107, %c33, %c0_108] : memref<1x196x8xf32, #tpu.memory_space<vmem>>, vector<1x106x8xf32>
    %116 = vector.shape_cast %115 : vector<1x106x8xf32> to vector<106x8xf32>
    %c19_109 = arith.constant 19 : index
    %c0_110 = arith.constant 0 : index
    %c0_111 = arith.constant 0 : index
    %117 = vector.load %arg2[%c19_109, %c0_110, %c0_111] : memref<49x8x8xf32, #tpu.memory_space<vmem>>, vector<1x8x8xf32>
    %118 = vector.shape_cast %117 : vector<1x8x8xf32> to vector<8x8xf32>
    %cst_112 = arith.constant dense<0.000000e+00> : vector<106x8xf32>
    %119 = tpu.matmul %116, %118, %cst_112 {dimension_numbers = #tpu.dot_dimension_numbers<[1], [0], [0], [1], [0, 0, 1, 1], [], []>} : vector<106x8xf32>, vector<8x8xf32>, vector<106x8xf32> -> vector<106x8xf32>
    %120 = arith.addf %114, %119 : vector<106x8xf32>
    %c0_113 = arith.constant 0 : index
    %c34 = arith.constant 34 : index
    %c0_114 = arith.constant 0 : index
    %121 = vector.load %arg1[%c0_113, %c34, %c0_114] : memref<1x196x8xf32, #tpu.memory_space<vmem>>, vector<1x106x8xf32>
    %122 = vector.shape_cast %121 : vector<1x106x8xf32> to vector<106x8xf32>
    %c20_115 = arith.constant 20 : index
    %c0_116 = arith.constant 0 : index
    %c0_117 = arith.constant 0 : index
    %123 = vector.load %arg2[%c20_115, %c0_116, %c0_117] : memref<49x8x8xf32, #tpu.memory_space<vmem>>, vector<1x8x8xf32>
    %124 = vector.shape_cast %123 : vector<1x8x8xf32> to vector<8x8xf32>
    %cst_118 = arith.constant dense<0.000000e+00> : vector<106x8xf32>
    %125 = tpu.matmul %122, %124, %cst_118 {dimension_numbers = #tpu.dot_dimension_numbers<[1], [0], [0], [1], [0, 0, 1, 1], [], []>} : vector<106x8xf32>, vector<8x8xf32>, vector<106x8xf32> -> vector<106x8xf32>
    %126 = arith.addf %120, %125 : vector<106x8xf32>
    %c0_119 = arith.constant 0 : index
    %c42 = arith.constant 42 : index
    %c0_120 = arith.constant 0 : index
    %127 = vector.load %arg1[%c0_119, %c42, %c0_120] : memref<1x196x8xf32, #tpu.memory_space<vmem>>, vector<1x106x8xf32>
    %128 = vector.shape_cast %127 : vector<1x106x8xf32> to vector<106x8xf32>
    %c21 = arith.constant 21 : index
    %c0_121 = arith.constant 0 : index
    %c0_122 = arith.constant 0 : index
    %129 = vector.load %arg2[%c21, %c0_121, %c0_122] : memref<49x8x8xf32, #tpu.memory_space<vmem>>, vector<1x8x8xf32>
    %130 = vector.shape_cast %129 : vector<1x8x8xf32> to vector<8x8xf32>
    %cst_123 = arith.constant dense<0.000000e+00> : vector<106x8xf32>
    %131 = tpu.matmul %128, %130, %cst_123 {dimension_numbers = #tpu.dot_dimension_numbers<[1], [0], [0], [1], [0, 0, 1, 1], [], []>} : vector<106x8xf32>, vector<8x8xf32>, vector<106x8xf32> -> vector<106x8xf32>
    %132 = arith.addf %126, %131 : vector<106x8xf32>
    %c0_124 = arith.constant 0 : index
    %c43 = arith.constant 43 : index
    %c0_125 = arith.constant 0 : index
    %133 = vector.load %arg1[%c0_124, %c43, %c0_125] : memref<1x196x8xf32, #tpu.memory_space<vmem>>, vector<1x106x8xf32>
    %134 = vector.shape_cast %133 : vector<1x106x8xf32> to vector<106x8xf32>
    %c22 = arith.constant 22 : index
    %c0_126 = arith.constant 0 : index
    %c0_127 = arith.constant 0 : index
    %135 = vector.load %arg2[%c22, %c0_126, %c0_127] : memref<49x8x8xf32, #tpu.memory_space<vmem>>, vector<1x8x8xf32>
    %136 = vector.shape_cast %135 : vector<1x8x8xf32> to vector<8x8xf32>
    %cst_128 = arith.constant dense<0.000000e+00> : vector<106x8xf32>
    %137 = tpu.matmul %134, %136, %cst_128 {dimension_numbers = #tpu.dot_dimension_numbers<[1], [0], [0], [1], [0, 0, 1, 1], [], []>} : vector<106x8xf32>, vector<8x8xf32>, vector<106x8xf32> -> vector<106x8xf32>
    %138 = arith.addf %132, %137 : vector<106x8xf32>
    %c0_129 = arith.constant 0 : index
    %c44 = arith.constant 44 : index
    %c0_130 = arith.constant 0 : index
    %139 = vector.load %arg1[%c0_129, %c44, %c0_130] : memref<1x196x8xf32, #tpu.memory_space<vmem>>, vector<1x106x8xf32>
    %140 = vector.shape_cast %139 : vector<1x106x8xf32> to vector<106x8xf32>
    %c23 = arith.constant 23 : index
    %c0_131 = arith.constant 0 : index
    %c0_132 = arith.constant 0 : index
    %141 = vector.load %arg2[%c23, %c0_131, %c0_132] : memref<49x8x8xf32, #tpu.memory_space<vmem>>, vector<1x8x8xf32>
    %142 = vector.shape_cast %141 : vector<1x8x8xf32> to vector<8x8xf32>
    %cst_133 = arith.constant dense<0.000000e+00> : vector<106x8xf32>
    %143 = tpu.matmul %140, %142, %cst_133 {dimension_numbers = #tpu.dot_dimension_numbers<[1], [0], [0], [1], [0, 0, 1, 1], [], []>} : vector<106x8xf32>, vector<8x8xf32>, vector<106x8xf32> -> vector<106x8xf32>
    %144 = arith.addf %138, %143 : vector<106x8xf32>
    %c0_134 = arith.constant 0 : index
    %c45 = arith.constant 45 : index
    %c0_135 = arith.constant 0 : index
    %145 = vector.load %arg1[%c0_134, %c45, %c0_135] : memref<1x196x8xf32, #tpu.memory_space<vmem>>, vector<1x106x8xf32>
    %146 = vector.shape_cast %145 : vector<1x106x8xf32> to vector<106x8xf32>
    %c24 = arith.constant 24 : index
    %c0_136 = arith.constant 0 : index
    %c0_137 = arith.constant 0 : index
    %147 = vector.load %arg2[%c24, %c0_136, %c0_137] : memref<49x8x8xf32, #tpu.memory_space<vmem>>, vector<1x8x8xf32>
    %148 = vector.shape_cast %147 : vector<1x8x8xf32> to vector<8x8xf32>
    %cst_138 = arith.constant dense<0.000000e+00> : vector<106x8xf32>
    %149 = tpu.matmul %146, %148, %cst_138 {dimension_numbers = #tpu.dot_dimension_numbers<[1], [0], [0], [1], [0, 0, 1, 1], [], []>} : vector<106x8xf32>, vector<8x8xf32>, vector<106x8xf32> -> vector<106x8xf32>
    %150 = arith.addf %144, %149 : vector<106x8xf32>
    %c0_139 = arith.constant 0 : index
    %c46 = arith.constant 46 : index
    %c0_140 = arith.constant 0 : index
    %151 = vector.load %arg1[%c0_139, %c46, %c0_140] : memref<1x196x8xf32, #tpu.memory_space<vmem>>, vector<1x106x8xf32>
    %152 = vector.shape_cast %151 : vector<1x106x8xf32> to vector<106x8xf32>
    %c25 = arith.constant 25 : index
    %c0_141 = arith.constant 0 : index
    %c0_142 = arith.constant 0 : index
    %153 = vector.load %arg2[%c25, %c0_141, %c0_142] : memref<49x8x8xf32, #tpu.memory_space<vmem>>, vector<1x8x8xf32>
    %154 = vector.shape_cast %153 : vector<1x8x8xf32> to vector<8x8xf32>
    %cst_143 = arith.constant dense<0.000000e+00> : vector<106x8xf32>
    %155 = tpu.matmul %152, %154, %cst_143 {dimension_numbers = #tpu.dot_dimension_numbers<[1], [0], [0], [1], [0, 0, 1, 1], [], []>} : vector<106x8xf32>, vector<8x8xf32>, vector<106x8xf32> -> vector<106x8xf32>
    %156 = arith.addf %150, %155 : vector<106x8xf32>
    %c0_144 = arith.constant 0 : index
    %c47 = arith.constant 47 : index
    %c0_145 = arith.constant 0 : index
    %157 = vector.load %arg1[%c0_144, %c47, %c0_145] : memref<1x196x8xf32, #tpu.memory_space<vmem>>, vector<1x106x8xf32>
    %158 = vector.shape_cast %157 : vector<1x106x8xf32> to vector<106x8xf32>
    %c26 = arith.constant 26 : index
    %c0_146 = arith.constant 0 : index
    %c0_147 = arith.constant 0 : index
    %159 = vector.load %arg2[%c26, %c0_146, %c0_147] : memref<49x8x8xf32, #tpu.memory_space<vmem>>, vector<1x8x8xf32>
    %160 = vector.shape_cast %159 : vector<1x8x8xf32> to vector<8x8xf32>
    %cst_148 = arith.constant dense<0.000000e+00> : vector<106x8xf32>
    %161 = tpu.matmul %158, %160, %cst_148 {dimension_numbers = #tpu.dot_dimension_numbers<[1], [0], [0], [1], [0, 0, 1, 1], [], []>} : vector<106x8xf32>, vector<8x8xf32>, vector<106x8xf32> -> vector<106x8xf32>
    %162 = arith.addf %156, %161 : vector<106x8xf32>
    %c0_149 = arith.constant 0 : index
    %c48 = arith.constant 48 : index
    %c0_150 = arith.constant 0 : index
    %163 = vector.load %arg1[%c0_149, %c48, %c0_150] : memref<1x196x8xf32, #tpu.memory_space<vmem>>, vector<1x106x8xf32>
    %164 = vector.shape_cast %163 : vector<1x106x8xf32> to vector<106x8xf32>
    %c27 = arith.constant 27 : index
    %c0_151 = arith.constant 0 : index
    %c0_152 = arith.constant 0 : index
    %165 = vector.load %arg2[%c27, %c0_151, %c0_152] : memref<49x8x8xf32, #tpu.memory_space<vmem>>, vector<1x8x8xf32>
    %166 = vector.shape_cast %165 : vector<1x8x8xf32> to vector<8x8xf32>
    %cst_153 = arith.constant dense<0.000000e+00> : vector<106x8xf32>
    %167 = tpu.matmul %164, %166, %cst_153 {dimension_numbers = #tpu.dot_dimension_numbers<[1], [0], [0], [1], [0, 0, 1, 1], [], []>} : vector<106x8xf32>, vector<8x8xf32>, vector<106x8xf32> -> vector<106x8xf32>
    %168 = arith.addf %162, %167 : vector<106x8xf32>
    %c0_154 = arith.constant 0 : index
    %c56 = arith.constant 56 : index
    %c0_155 = arith.constant 0 : index
    %169 = vector.load %arg1[%c0_154, %c56, %c0_155] : memref<1x196x8xf32, #tpu.memory_space<vmem>>, vector<1x106x8xf32>
    %170 = vector.shape_cast %169 : vector<1x106x8xf32> to vector<106x8xf32>
    %c28_156 = arith.constant 28 : index
    %c0_157 = arith.constant 0 : index
    %c0_158 = arith.constant 0 : index
    %171 = vector.load %arg2[%c28_156, %c0_157, %c0_158] : memref<49x8x8xf32, #tpu.memory_space<vmem>>, vector<1x8x8xf32>
    %172 = vector.shape_cast %171 : vector<1x8x8xf32> to vector<8x8xf32>
    %cst_159 = arith.constant dense<0.000000e+00> : vector<106x8xf32>
    %173 = tpu.matmul %170, %172, %cst_159 {dimension_numbers = #tpu.dot_dimension_numbers<[1], [0], [0], [1], [0, 0, 1, 1], [], []>} : vector<106x8xf32>, vector<8x8xf32>, vector<106x8xf32> -> vector<106x8xf32>
    %174 = arith.addf %168, %173 : vector<106x8xf32>
    %c0_160 = arith.constant 0 : index
    %c57 = arith.constant 57 : index
    %c0_161 = arith.constant 0 : index
    %175 = vector.load %arg1[%c0_160, %c57, %c0_161] : memref<1x196x8xf32, #tpu.memory_space<vmem>>, vector<1x106x8xf32>
    %176 = vector.shape_cast %175 : vector<1x106x8xf32> to vector<106x8xf32>
    %c29_162 = arith.constant 29 : index
    %c0_163 = arith.constant 0 : index
    %c0_164 = arith.constant 0 : index
    %177 = vector.load %arg2[%c29_162, %c0_163, %c0_164] : memref<49x8x8xf32, #tpu.memory_space<vmem>>, vector<1x8x8xf32>
    %178 = vector.shape_cast %177 : vector<1x8x8xf32> to vector<8x8xf32>
    %cst_165 = arith.constant dense<0.000000e+00> : vector<106x8xf32>
    %179 = tpu.matmul %176, %178, %cst_165 {dimension_numbers = #tpu.dot_dimension_numbers<[1], [0], [0], [1], [0, 0, 1, 1], [], []>} : vector<106x8xf32>, vector<8x8xf32>, vector<106x8xf32> -> vector<106x8xf32>
    %180 = arith.addf %174, %179 : vector<106x8xf32>
    %c0_166 = arith.constant 0 : index
    %c58 = arith.constant 58 : index
    %c0_167 = arith.constant 0 : index
    %181 = vector.load %arg1[%c0_166, %c58, %c0_167] : memref<1x196x8xf32, #tpu.memory_space<vmem>>, vector<1x106x8xf32>
    %182 = vector.shape_cast %181 : vector<1x106x8xf32> to vector<106x8xf32>
    %c30_168 = arith.constant 30 : index
    %c0_169 = arith.constant 0 : index
    %c0_170 = arith.constant 0 : index
    %183 = vector.load %arg2[%c30_168, %c0_169, %c0_170] : memref<49x8x8xf32, #tpu.memory_space<vmem>>, vector<1x8x8xf32>
    %184 = vector.shape_cast %183 : vector<1x8x8xf32> to vector<8x8xf32>
    %cst_171 = arith.constant dense<0.000000e+00> : vector<106x8xf32>
    %185 = tpu.matmul %182, %184, %cst_171 {dimension_numbers = #tpu.dot_dimension_numbers<[1], [0], [0], [1], [0, 0, 1, 1], [], []>} : vector<106x8xf32>, vector<8x8xf32>, vector<106x8xf32> -> vector<106x8xf32>
    %186 = arith.addf %180, %185 : vector<106x8xf32>
    %c0_172 = arith.constant 0 : index
    %c59 = arith.constant 59 : index
    %c0_173 = arith.constant 0 : index
    %187 = vector.load %arg1[%c0_172, %c59, %c0_173] : memref<1x196x8xf32, #tpu.memory_space<vmem>>, vector<1x106x8xf32>
    %188 = vector.shape_cast %187 : vector<1x106x8xf32> to vector<106x8xf32>
    %c31_174 = arith.constant 31 : index
    %c0_175 = arith.constant 0 : index
    %c0_176 = arith.constant 0 : index
    %189 = vector.load %arg2[%c31_174, %c0_175, %c0_176] : memref<49x8x8xf32, #tpu.memory_space<vmem>>, vector<1x8x8xf32>
    %190 = vector.shape_cast %189 : vector<1x8x8xf32> to vector<8x8xf32>
    %cst_177 = arith.constant dense<0.000000e+00> : vector<106x8xf32>
    %191 = tpu.matmul %188, %190, %cst_177 {dimension_numbers = #tpu.dot_dimension_numbers<[1], [0], [0], [1], [0, 0, 1, 1], [], []>} : vector<106x8xf32>, vector<8x8xf32>, vector<106x8xf32> -> vector<106x8xf32>
    %192 = arith.addf %186, %191 : vector<106x8xf32>
    %c0_178 = arith.constant 0 : index
    %c60 = arith.constant 60 : index
    %c0_179 = arith.constant 0 : index
    %193 = vector.load %arg1[%c0_178, %c60, %c0_179] : memref<1x196x8xf32, #tpu.memory_space<vmem>>, vector<1x106x8xf32>
    %194 = vector.shape_cast %193 : vector<1x106x8xf32> to vector<106x8xf32>
    %c32_180 = arith.constant 32 : index
    %c0_181 = arith.constant 0 : index
    %c0_182 = arith.constant 0 : index
    %195 = vector.load %arg2[%c32_180, %c0_181, %c0_182] : memref<49x8x8xf32, #tpu.memory_space<vmem>>, vector<1x8x8xf32>
    %196 = vector.shape_cast %195 : vector<1x8x8xf32> to vector<8x8xf32>
    %cst_183 = arith.constant dense<0.000000e+00> : vector<106x8xf32>
    %197 = tpu.matmul %194, %196, %cst_183 {dimension_numbers = #tpu.dot_dimension_numbers<[1], [0], [0], [1], [0, 0, 1, 1], [], []>} : vector<106x8xf32>, vector<8x8xf32>, vector<106x8xf32> -> vector<106x8xf32>
    %198 = arith.addf %192, %197 : vector<106x8xf32>
    %c0_184 = arith.constant 0 : index
    %c61 = arith.constant 61 : index
    %c0_185 = arith.constant 0 : index
    %199 = vector.load %arg1[%c0_184, %c61, %c0_185] : memref<1x196x8xf32, #tpu.memory_space<vmem>>, vector<1x106x8xf32>
    %200 = vector.shape_cast %199 : vector<1x106x8xf32> to vector<106x8xf32>
    %c33_186 = arith.constant 33 : index
    %c0_187 = arith.constant 0 : index
    %c0_188 = arith.constant 0 : index
    %201 = vector.load %arg2[%c33_186, %c0_187, %c0_188] : memref<49x8x8xf32, #tpu.memory_space<vmem>>, vector<1x8x8xf32>
    %202 = vector.shape_cast %201 : vector<1x8x8xf32> to vector<8x8xf32>
    %cst_189 = arith.constant dense<0.000000e+00> : vector<106x8xf32>
    %203 = tpu.matmul %200, %202, %cst_189 {dimension_numbers = #tpu.dot_dimension_numbers<[1], [0], [0], [1], [0, 0, 1, 1], [], []>} : vector<106x8xf32>, vector<8x8xf32>, vector<106x8xf32> -> vector<106x8xf32>
    %204 = arith.addf %198, %203 : vector<106x8xf32>
    %c0_190 = arith.constant 0 : index
    %c62 = arith.constant 62 : index
    %c0_191 = arith.constant 0 : index
    %205 = vector.load %arg1[%c0_190, %c62, %c0_191] : memref<1x196x8xf32, #tpu.memory_space<vmem>>, vector<1x106x8xf32>
    %206 = vector.shape_cast %205 : vector<1x106x8xf32> to vector<106x8xf32>
    %c34_192 = arith.constant 34 : index
    %c0_193 = arith.constant 0 : index
    %c0_194 = arith.constant 0 : index
    %207 = vector.load %arg2[%c34_192, %c0_193, %c0_194] : memref<49x8x8xf32, #tpu.memory_space<vmem>>, vector<1x8x8xf32>
    %208 = vector.shape_cast %207 : vector<1x8x8xf32> to vector<8x8xf32>
    %cst_195 = arith.constant dense<0.000000e+00> : vector<106x8xf32>
    %209 = tpu.matmul %206, %208, %cst_195 {dimension_numbers = #tpu.dot_dimension_numbers<[1], [0], [0], [1], [0, 0, 1, 1], [], []>} : vector<106x8xf32>, vector<8x8xf32>, vector<106x8xf32> -> vector<106x8xf32>
    %210 = arith.addf %204, %209 : vector<106x8xf32>
    %c0_196 = arith.constant 0 : index
    %c70 = arith.constant 70 : index
    %c0_197 = arith.constant 0 : index
    %211 = vector.load %arg1[%c0_196, %c70, %c0_197] : memref<1x196x8xf32, #tpu.memory_space<vmem>>, vector<1x106x8xf32>
    %212 = vector.shape_cast %211 : vector<1x106x8xf32> to vector<106x8xf32>
    %c35 = arith.constant 35 : index
    %c0_198 = arith.constant 0 : index
    %c0_199 = arith.constant 0 : index
    %213 = vector.load %arg2[%c35, %c0_198, %c0_199] : memref<49x8x8xf32, #tpu.memory_space<vmem>>, vector<1x8x8xf32>
    %214 = vector.shape_cast %213 : vector<1x8x8xf32> to vector<8x8xf32>
    %cst_200 = arith.constant dense<0.000000e+00> : vector<106x8xf32>
    %215 = tpu.matmul %212, %214, %cst_200 {dimension_numbers = #tpu.dot_dimension_numbers<[1], [0], [0], [1], [0, 0, 1, 1], [], []>} : vector<106x8xf32>, vector<8x8xf32>, vector<106x8xf32> -> vector<106x8xf32>
    %216 = arith.addf %210, %215 : vector<106x8xf32>
    %c0_201 = arith.constant 0 : index
    %c71 = arith.constant 71 : index
    %c0_202 = arith.constant 0 : index
    %217 = vector.load %arg1[%c0_201, %c71, %c0_202] : memref<1x196x8xf32, #tpu.memory_space<vmem>>, vector<1x106x8xf32>
    %218 = vector.shape_cast %217 : vector<1x106x8xf32> to vector<106x8xf32>
    %c36 = arith.constant 36 : index
    %c0_203 = arith.constant 0 : index
    %c0_204 = arith.constant 0 : index
    %219 = vector.load %arg2[%c36, %c0_203, %c0_204] : memref<49x8x8xf32, #tpu.memory_space<vmem>>, vector<1x8x8xf32>
    %220 = vector.shape_cast %219 : vector<1x8x8xf32> to vector<8x8xf32>
    %cst_205 = arith.constant dense<0.000000e+00> : vector<106x8xf32>
    %221 = tpu.matmul %218, %220, %cst_205 {dimension_numbers = #tpu.dot_dimension_numbers<[1], [0], [0], [1], [0, 0, 1, 1], [], []>} : vector<106x8xf32>, vector<8x8xf32>, vector<106x8xf32> -> vector<106x8xf32>
    %222 = arith.addf %216, %221 : vector<106x8xf32>
    %c0_206 = arith.constant 0 : index
    %c72 = arith.constant 72 : index
    %c0_207 = arith.constant 0 : index
    %223 = vector.load %arg1[%c0_206, %c72, %c0_207] : memref<1x196x8xf32, #tpu.memory_space<vmem>>, vector<1x106x8xf32>
    %224 = vector.shape_cast %223 : vector<1x106x8xf32> to vector<106x8xf32>
    %c37 = arith.constant 37 : index
    %c0_208 = arith.constant 0 : index
    %c0_209 = arith.constant 0 : index
    %225 = vector.load %arg2[%c37, %c0_208, %c0_209] : memref<49x8x8xf32, #tpu.memory_space<vmem>>, vector<1x8x8xf32>
    %226 = vector.shape_cast %225 : vector<1x8x8xf32> to vector<8x8xf32>
    %cst_210 = arith.constant dense<0.000000e+00> : vector<106x8xf32>
    %227 = tpu.matmul %224, %226, %cst_210 {dimension_numbers = #tpu.dot_dimension_numbers<[1], [0], [0], [1], [0, 0, 1, 1], [], []>} : vector<106x8xf32>, vector<8x8xf32>, vector<106x8xf32> -> vector<106x8xf32>
    %228 = arith.addf %222, %227 : vector<106x8xf32>
    %c0_211 = arith.constant 0 : index
    %c73 = arith.constant 73 : index
    %c0_212 = arith.constant 0 : index
    %229 = vector.load %arg1[%c0_211, %c73, %c0_212] : memref<1x196x8xf32, #tpu.memory_space<vmem>>, vector<1x106x8xf32>
    %230 = vector.shape_cast %229 : vector<1x106x8xf32> to vector<106x8xf32>
    %c38 = arith.constant 38 : index
    %c0_213 = arith.constant 0 : index
    %c0_214 = arith.constant 0 : index
    %231 = vector.load %arg2[%c38, %c0_213, %c0_214] : memref<49x8x8xf32, #tpu.memory_space<vmem>>, vector<1x8x8xf32>
    %232 = vector.shape_cast %231 : vector<1x8x8xf32> to vector<8x8xf32>
    %cst_215 = arith.constant dense<0.000000e+00> : vector<106x8xf32>
    %233 = tpu.matmul %230, %232, %cst_215 {dimension_numbers = #tpu.dot_dimension_numbers<[1], [0], [0], [1], [0, 0, 1, 1], [], []>} : vector<106x8xf32>, vector<8x8xf32>, vector<106x8xf32> -> vector<106x8xf32>
    %234 = arith.addf %228, %233 : vector<106x8xf32>
    %c0_216 = arith.constant 0 : index
    %c74 = arith.constant 74 : index
    %c0_217 = arith.constant 0 : index
    %235 = vector.load %arg1[%c0_216, %c74, %c0_217] : memref<1x196x8xf32, #tpu.memory_space<vmem>>, vector<1x106x8xf32>
    %236 = vector.shape_cast %235 : vector<1x106x8xf32> to vector<106x8xf32>
    %c39 = arith.constant 39 : index
    %c0_218 = arith.constant 0 : index
    %c0_219 = arith.constant 0 : index
    %237 = vector.load %arg2[%c39, %c0_218, %c0_219] : memref<49x8x8xf32, #tpu.memory_space<vmem>>, vector<1x8x8xf32>
    %238 = vector.shape_cast %237 : vector<1x8x8xf32> to vector<8x8xf32>
    %cst_220 = arith.constant dense<0.000000e+00> : vector<106x8xf32>
    %239 = tpu.matmul %236, %238, %cst_220 {dimension_numbers = #tpu.dot_dimension_numbers<[1], [0], [0], [1], [0, 0, 1, 1], [], []>} : vector<106x8xf32>, vector<8x8xf32>, vector<106x8xf32> -> vector<106x8xf32>
    %240 = arith.addf %234, %239 : vector<106x8xf32>
    %c0_221 = arith.constant 0 : index
    %c75 = arith.constant 75 : index
    %c0_222 = arith.constant 0 : index
    %241 = vector.load %arg1[%c0_221, %c75, %c0_222] : memref<1x196x8xf32, #tpu.memory_space<vmem>>, vector<1x106x8xf32>
    %242 = vector.shape_cast %241 : vector<1x106x8xf32> to vector<106x8xf32>
    %c40 = arith.constant 40 : index
    %c0_223 = arith.constant 0 : index
    %c0_224 = arith.constant 0 : index
    %243 = vector.load %arg2[%c40, %c0_223, %c0_224] : memref<49x8x8xf32, #tpu.memory_space<vmem>>, vector<1x8x8xf32>
    %244 = vector.shape_cast %243 : vector<1x8x8xf32> to vector<8x8xf32>
    %cst_225 = arith.constant dense<0.000000e+00> : vector<106x8xf32>
    %245 = tpu.matmul %242, %244, %cst_225 {dimension_numbers = #tpu.dot_dimension_numbers<[1], [0], [0], [1], [0, 0, 1, 1], [], []>} : vector<106x8xf32>, vector<8x8xf32>, vector<106x8xf32> -> vector<106x8xf32>
    %246 = arith.addf %240, %245 : vector<106x8xf32>
    %c0_226 = arith.constant 0 : index
    %c76 = arith.constant 76 : index
    %c0_227 = arith.constant 0 : index
    %247 = vector.load %arg1[%c0_226, %c76, %c0_227] : memref<1x196x8xf32, #tpu.memory_space<vmem>>, vector<1x106x8xf32>
    %248 = vector.shape_cast %247 : vector<1x106x8xf32> to vector<106x8xf32>
    %c41 = arith.constant 41 : index
    %c0_228 = arith.constant 0 : index
    %c0_229 = arith.constant 0 : index
    %249 = vector.load %arg2[%c41, %c0_228, %c0_229] : memref<49x8x8xf32, #tpu.memory_space<vmem>>, vector<1x8x8xf32>
    %250 = vector.shape_cast %249 : vector<1x8x8xf32> to vector<8x8xf32>
    %cst_230 = arith.constant dense<0.000000e+00> : vector<106x8xf32>
    %251 = tpu.matmul %248, %250, %cst_230 {dimension_numbers = #tpu.dot_dimension_numbers<[1], [0], [0], [1], [0, 0, 1, 1], [], []>} : vector<106x8xf32>, vector<8x8xf32>, vector<106x8xf32> -> vector<106x8xf32>
    %252 = arith.addf %246, %251 : vector<106x8xf32>
    %c0_231 = arith.constant 0 : index
    %c84 = arith.constant 84 : index
    %c0_232 = arith.constant 0 : index
    %253 = vector.load %arg1[%c0_231, %c84, %c0_232] : memref<1x196x8xf32, #tpu.memory_space<vmem>>, vector<1x106x8xf32>
    %254 = vector.shape_cast %253 : vector<1x106x8xf32> to vector<106x8xf32>
    %c42_233 = arith.constant 42 : index
    %c0_234 = arith.constant 0 : index
    %c0_235 = arith.constant 0 : index
    %255 = vector.load %arg2[%c42_233, %c0_234, %c0_235] : memref<49x8x8xf32, #tpu.memory_space<vmem>>, vector<1x8x8xf32>
    %256 = vector.shape_cast %255 : vector<1x8x8xf32> to vector<8x8xf32>
    %cst_236 = arith.constant dense<0.000000e+00> : vector<106x8xf32>
    %257 = tpu.matmul %254, %256, %cst_236 {dimension_numbers = #tpu.dot_dimension_numbers<[1], [0], [0], [1], [0, 0, 1, 1], [], []>} : vector<106x8xf32>, vector<8x8xf32>, vector<106x8xf32> -> vector<106x8xf32>
    %258 = arith.addf %252, %257 : vector<106x8xf32>
    %c0_237 = arith.constant 0 : index
    %c85 = arith.constant 85 : index
    %c0_238 = arith.constant 0 : index
    %259 = vector.load %arg1[%c0_237, %c85, %c0_238] : memref<1x196x8xf32, #tpu.memory_space<vmem>>, vector<1x106x8xf32>
    %260 = vector.shape_cast %259 : vector<1x106x8xf32> to vector<106x8xf32>
    %c43_239 = arith.constant 43 : index
    %c0_240 = arith.constant 0 : index
    %c0_241 = arith.constant 0 : index
    %261 = vector.load %arg2[%c43_239, %c0_240, %c0_241] : memref<49x8x8xf32, #tpu.memory_space<vmem>>, vector<1x8x8xf32>
    %262 = vector.shape_cast %261 : vector<1x8x8xf32> to vector<8x8xf32>
    %cst_242 = arith.constant dense<0.000000e+00> : vector<106x8xf32>
    %263 = tpu.matmul %260, %262, %cst_242 {dimension_numbers = #tpu.dot_dimension_numbers<[1], [0], [0], [1], [0, 0, 1, 1], [], []>} : vector<106x8xf32>, vector<8x8xf32>, vector<106x8xf32> -> vector<106x8xf32>
    %264 = arith.addf %258, %263 : vector<106x8xf32>
    %c0_243 = arith.constant 0 : index
    %c86 = arith.constant 86 : index
    %c0_244 = arith.constant 0 : index
    %265 = vector.load %arg1[%c0_243, %c86, %c0_244] : memref<1x196x8xf32, #tpu.memory_space<vmem>>, vector<1x106x8xf32>
    %266 = vector.shape_cast %265 : vector<1x106x8xf32> to vector<106x8xf32>
    %c44_245 = arith.constant 44 : index
    %c0_246 = arith.constant 0 : index
    %c0_247 = arith.constant 0 : index
    %267 = vector.load %arg2[%c44_245, %c0_246, %c0_247] : memref<49x8x8xf32, #tpu.memory_space<vmem>>, vector<1x8x8xf32>
    %268 = vector.shape_cast %267 : vector<1x8x8xf32> to vector<8x8xf32>
    %cst_248 = arith.constant dense<0.000000e+00> : vector<106x8xf32>
    %269 = tpu.matmul %266, %268, %cst_248 {dimension_numbers = #tpu.dot_dimension_numbers<[1], [0], [0], [1], [0, 0, 1, 1], [], []>} : vector<106x8xf32>, vector<8x8xf32>, vector<106x8xf32> -> vector<106x8xf32>
    %270 = arith.addf %264, %269 : vector<106x8xf32>
    %c0_249 = arith.constant 0 : index
    %c87 = arith.constant 87 : index
    %c0_250 = arith.constant 0 : index
    %271 = vector.load %arg1[%c0_249, %c87, %c0_250] : memref<1x196x8xf32, #tpu.memory_space<vmem>>, vector<1x106x8xf32>
    %272 = vector.shape_cast %271 : vector<1x106x8xf32> to vector<106x8xf32>
    %c45_251 = arith.constant 45 : index
    %c0_252 = arith.constant 0 : index
    %c0_253 = arith.constant 0 : index
    %273 = vector.load %arg2[%c45_251, %c0_252, %c0_253] : memref<49x8x8xf32, #tpu.memory_space<vmem>>, vector<1x8x8xf32>
    %274 = vector.shape_cast %273 : vector<1x8x8xf32> to vector<8x8xf32>
    %cst_254 = arith.constant dense<0.000000e+00> : vector<106x8xf32>
    %275 = tpu.matmul %272, %274, %cst_254 {dimension_numbers = #tpu.dot_dimension_numbers<[1], [0], [0], [1], [0, 0, 1, 1], [], []>} : vector<106x8xf32>, vector<8x8xf32>, vector<106x8xf32> -> vector<106x8xf32>
    %276 = arith.addf %270, %275 : vector<106x8xf32>
    %c0_255 = arith.constant 0 : index
    %c88 = arith.constant 88 : index
    %c0_256 = arith.constant 0 : index
    %277 = vector.load %arg1[%c0_255, %c88, %c0_256] : memref<1x196x8xf32, #tpu.memory_space<vmem>>, vector<1x106x8xf32>
    %278 = vector.shape_cast %277 : vector<1x106x8xf32> to vector<106x8xf32>
    %c46_257 = arith.constant 46 : index
    %c0_258 = arith.constant 0 : index
    %c0_259 = arith.constant 0 : index
    %279 = vector.load %arg2[%c46_257, %c0_258, %c0_259] : memref<49x8x8xf32, #tpu.memory_space<vmem>>, vector<1x8x8xf32>
    %280 = vector.shape_cast %279 : vector<1x8x8xf32> to vector<8x8xf32>
    %cst_260 = arith.constant dense<0.000000e+00> : vector<106x8xf32>
    %281 = tpu.matmul %278, %280, %cst_260 {dimension_numbers = #tpu.dot_dimension_numbers<[1], [0], [0], [1], [0, 0, 1, 1], [], []>} : vector<106x8xf32>, vector<8x8xf32>, vector<106x8xf32> -> vector<106x8xf32>
    %282 = arith.addf %276, %281 : vector<106x8xf32>
    %c0_261 = arith.constant 0 : index
    %c89 = arith.constant 89 : index
    %c0_262 = arith.constant 0 : index
    %283 = vector.load %arg1[%c0_261, %c89, %c0_262] : memref<1x196x8xf32, #tpu.memory_space<vmem>>, vector<1x106x8xf32>
    %284 = vector.shape_cast %283 : vector<1x106x8xf32> to vector<106x8xf32>
    %c47_263 = arith.constant 47 : index
    %c0_264 = arith.constant 0 : index
    %c0_265 = arith.constant 0 : index
    %285 = vector.load %arg2[%c47_263, %c0_264, %c0_265] : memref<49x8x8xf32, #tpu.memory_space<vmem>>, vector<1x8x8xf32>
    %286 = vector.shape_cast %285 : vector<1x8x8xf32> to vector<8x8xf32>
    %cst_266 = arith.constant dense<0.000000e+00> : vector<106x8xf32>
    %287 = tpu.matmul %284, %286, %cst_266 {dimension_numbers = #tpu.dot_dimension_numbers<[1], [0], [0], [1], [0, 0, 1, 1], [], []>} : vector<106x8xf32>, vector<8x8xf32>, vector<106x8xf32> -> vector<106x8xf32>
    %288 = arith.addf %282, %287 : vector<106x8xf32>
    %c0_267 = arith.constant 0 : index
    %c90 = arith.constant 90 : index
    %c0_268 = arith.constant 0 : index
    %289 = vector.load %arg1[%c0_267, %c90, %c0_268] : memref<1x196x8xf32, #tpu.memory_space<vmem>>, vector<1x106x8xf32>
    %290 = vector.shape_cast %289 : vector<1x106x8xf32> to vector<106x8xf32>
    %c48_269 = arith.constant 48 : index
    %c0_270 = arith.constant 0 : index
    %c0_271 = arith.constant 0 : index
    %291 = vector.load %arg2[%c48_269, %c0_270, %c0_271] : memref<49x8x8xf32, #tpu.memory_space<vmem>>, vector<1x8x8xf32>
    %292 = vector.shape_cast %291 : vector<1x8x8xf32> to vector<8x8xf32>
    %cst_272 = arith.constant dense<0.000000e+00> : vector<106x8xf32>
    %293 = tpu.matmul %290, %292, %cst_272 {dimension_numbers = #tpu.dot_dimension_numbers<[1], [0], [0], [1], [0, 0, 1, 1], [], []>} : vector<106x8xf32>, vector<8x8xf32>, vector<106x8xf32> -> vector<106x8xf32>
    %294 = arith.addf %288, %293 : vector<106x8xf32>
    %c0_273 = arith.constant 0 : index
    %c0_274 = arith.constant 0 : index
    %295 = vector.load %arg3[%c0_273, %c0_274] : memref<1x8xf32, #tpu.memory_space<vmem>>, vector<1x8xf32>
    %296 = vector.broadcast %295 : vector<1x8xf32> to vector<106x8xf32>
    %297 = arith.addf %294, %296 : vector<106x8xf32>
    %c0_275 = arith.constant 0 : index
    %c0_276 = arith.constant 0 : index
    %c0_277 = arith.constant 0 : index
    %298 = vector.load %arg4[%c0_275, %c0_276, %c0_277] : memref<1x106x8xf32, #tpu.memory_space<vmem>>, vector<1x106x8xf32>
    %299 = vector.shape_cast %298 : vector<1x106x8xf32> to vector<106x8xf32>
    %300 = vector.shape_cast %297 : vector<106x8xf32> to vector<1x106x8xf32>
    tpu.vector_store %arg4[%c0_275, %c0_276, %c0_277], %300 {strides = array<i32>} : memref<1x106x8xf32, #tpu.memory_space<vmem>>, vector<1x106x8xf32>,
    return
  }
  func.func @transform_0(%arg0: i32) -> (i32, i32, i32) {
    %c0_i32 = arith.constant 0 : i32
    %c0_i32_0 = arith.constant 0 : i32
    %c0_i32_1 = arith.constant 0 : i32
    return %arg0, %c0_i32, %c0_i32_0 : i32, i32, i32
  }
  func.func @transform_1(%arg0: i32) -> (i32, i32, i32) {
    %c0_i32 = arith.constant 0 : i32
    %c0_i32_0 = arith.constant 0 : i32
    %c0_i32_1 = arith.constant 0 : i32
    %c0_i32_2 = arith.constant 0 : i32
    return %c0_i32, %c0_i32_0, %c0_i32_1 : i32, i32, i32
  }
  func.func @transform_2(%arg0: i32) -> (i32, i32) {
    %c0_i32 = arith.constant 0 : i32
    %c0_i32_0 = arith.constant 0 : i32
    %c0_i32_1 = arith.constant 0 : i32
    return %c0_i32, %c0_i32_0 : i32, i32
  }
  func.func @transform_3(%arg0: i32) -> (i32, i32, i32) {
    %c0_i32 = arith.constant 0 : i32
    %c0_i32_0 = arith.constant 0 : i32
    %c0_i32_1 = arith.constant 0 : i32
    return %arg0, %c0_i32, %c0_i32_0 : i32, i32, i32
  }
}

module attributes {stable_mosaic.version = 11 : i64} {
  func.func @kernel(%arg0: i32, %arg1: memref<1x64x8xf32, #tpu.memory_space<vmem>>, %arg2: memref<25x8x8xf32, #tpu.memory_space<vmem>>, %arg3: memref<1x8xf32, #tpu.memory_space<vmem>>, %arg4: memref<1x28x8xf32, #tpu.memory_space<vmem>>) attributes {dimension_semantics = [#tpu.dimension_semantics<parallel>], iteration_bounds = array<i64: 2>, scalar_prefetch = 0 : i64, scratch_operands = 0 : i64, tpu.core_type = #tpu.core_type<tc>, window_params = [{transform_indices = @transform_0, window_bounds = array<i64: 1, 64, 8>}, {pipeline_mode = #tpu.pipeline_mode<synchronous>, transform_indices = @transform_1, window_bounds = array<i64: 25, 8, 8>}, {pipeline_mode = #tpu.pipeline_mode<synchronous>, transform_indices = @transform_2, window_bounds = array<i64: 1, 8>}, {transform_indices = @transform_3, window_bounds = array<i64: 1, 28, 8>}]} {
    %cst = arith.constant 0.000000e+00 : f32
    %0 = vector.broadcast %cst : f32 to vector<28x8xf32>
    %c0 = arith.constant 0 : index
    %c0_0 = arith.constant 0 : index
    %c0_1 = arith.constant 0 : index
    %1 = vector.load %arg1[%c0, %c0_0, %c0_1] : memref<1x64x8xf32, #tpu.memory_space<vmem>>, vector<1x28x8xf32>
    %2 = vector.shape_cast %1 : vector<1x28x8xf32> to vector<28x8xf32>
    %c0_2 = arith.constant 0 : index
    %c0_3 = arith.constant 0 : index
    %c0_4 = arith.constant 0 : index
    %3 = vector.load %arg2[%c0_2, %c0_3, %c0_4] : memref<25x8x8xf32, #tpu.memory_space<vmem>>, vector<1x8x8xf32>
    %4 = vector.shape_cast %3 : vector<1x8x8xf32> to vector<8x8xf32>
    %cst_5 = arith.constant dense<0.000000e+00> : vector<28x8xf32>
    %5 = tpu.matmul %2, %4, %cst_5 {dimension_numbers = #tpu.dot_dimension_numbers<[1], [0], [0], [1], [0, 0, 1, 1], [], []>} : vector<28x8xf32>, vector<8x8xf32>, vector<28x8xf32> -> vector<28x8xf32>
    %6 = arith.addf %0, %5 : vector<28x8xf32>
    %c0_6 = arith.constant 0 : index
    %c1 = arith.constant 1 : index
    %c0_7 = arith.constant 0 : index
    %7 = vector.load %arg1[%c0_6, %c1, %c0_7] : memref<1x64x8xf32, #tpu.memory_space<vmem>>, vector<1x28x8xf32>
    %8 = vector.shape_cast %7 : vector<1x28x8xf32> to vector<28x8xf32>
    %c1_8 = arith.constant 1 : index
    %c0_9 = arith.constant 0 : index
    %c0_10 = arith.constant 0 : index
    %9 = vector.load %arg2[%c1_8, %c0_9, %c0_10] : memref<25x8x8xf32, #tpu.memory_space<vmem>>, vector<1x8x8xf32>
    %10 = vector.shape_cast %9 : vector<1x8x8xf32> to vector<8x8xf32>
    %cst_11 = arith.constant dense<0.000000e+00> : vector<28x8xf32>
    %11 = tpu.matmul %8, %10, %cst_11 {dimension_numbers = #tpu.dot_dimension_numbers<[1], [0], [0], [1], [0, 0, 1, 1], [], []>} : vector<28x8xf32>, vector<8x8xf32>, vector<28x8xf32> -> vector<28x8xf32>
    %12 = arith.addf %6, %11 : vector<28x8xf32>
    %c0_12 = arith.constant 0 : index
    %c2 = arith.constant 2 : index
    %c0_13 = arith.constant 0 : index
    %13 = vector.load %arg1[%c0_12, %c2, %c0_13] : memref<1x64x8xf32, #tpu.memory_space<vmem>>, vector<1x28x8xf32>
    %14 = vector.shape_cast %13 : vector<1x28x8xf32> to vector<28x8xf32>
    %c2_14 = arith.constant 2 : index
    %c0_15 = arith.constant 0 : index
    %c0_16 = arith.constant 0 : index
    %15 = vector.load %arg2[%c2_14, %c0_15, %c0_16] : memref<25x8x8xf32, #tpu.memory_space<vmem>>, vector<1x8x8xf32>
    %16 = vector.shape_cast %15 : vector<1x8x8xf32> to vector<8x8xf32>
    %cst_17 = arith.constant dense<0.000000e+00> : vector<28x8xf32>
    %17 = tpu.matmul %14, %16, %cst_17 {dimension_numbers = #tpu.dot_dimension_numbers<[1], [0], [0], [1], [0, 0, 1, 1], [], []>} : vector<28x8xf32>, vector<8x8xf32>, vector<28x8xf32> -> vector<28x8xf32>
    %18 = arith.addf %12, %17 : vector<28x8xf32>
    %c0_18 = arith.constant 0 : index
    %c3 = arith.constant 3 : index
    %c0_19 = arith.constant 0 : index
    %19 = vector.load %arg1[%c0_18, %c3, %c0_19] : memref<1x64x8xf32, #tpu.memory_space<vmem>>, vector<1x28x8xf32>
    %20 = vector.shape_cast %19 : vector<1x28x8xf32> to vector<28x8xf32>
    %c3_20 = arith.constant 3 : index
    %c0_21 = arith.constant 0 : index
    %c0_22 = arith.constant 0 : index
    %21 = vector.load %arg2[%c3_20, %c0_21, %c0_22] : memref<25x8x8xf32, #tpu.memory_space<vmem>>, vector<1x8x8xf32>
    %22 = vector.shape_cast %21 : vector<1x8x8xf32> to vector<8x8xf32>
    %cst_23 = arith.constant dense<0.000000e+00> : vector<28x8xf32>
    %23 = tpu.matmul %20, %22, %cst_23 {dimension_numbers = #tpu.dot_dimension_numbers<[1], [0], [0], [1], [0, 0, 1, 1], [], []>} : vector<28x8xf32>, vector<8x8xf32>, vector<28x8xf32> -> vector<28x8xf32>
    %24 = arith.addf %18, %23 : vector<28x8xf32>
    %c0_24 = arith.constant 0 : index
    %c4 = arith.constant 4 : index
    %c0_25 = arith.constant 0 : index
    %25 = vector.load %arg1[%c0_24, %c4, %c0_25] : memref<1x64x8xf32, #tpu.memory_space<vmem>>, vector<1x28x8xf32>
    %26 = vector.shape_cast %25 : vector<1x28x8xf32> to vector<28x8xf32>
    %c4_26 = arith.constant 4 : index
    %c0_27 = arith.constant 0 : index
    %c0_28 = arith.constant 0 : index
    %27 = vector.load %arg2[%c4_26, %c0_27, %c0_28] : memref<25x8x8xf32, #tpu.memory_space<vmem>>, vector<1x8x8xf32>
    %28 = vector.shape_cast %27 : vector<1x8x8xf32> to vector<8x8xf32>
    %cst_29 = arith.constant dense<0.000000e+00> : vector<28x8xf32>
    %29 = tpu.matmul %26, %28, %cst_29 {dimension_numbers = #tpu.dot_dimension_numbers<[1], [0], [0], [1], [0, 0, 1, 1], [], []>} : vector<28x8xf32>, vector<8x8xf32>, vector<28x8xf32> -> vector<28x8xf32>
    %30 = arith.addf %24, %29 : vector<28x8xf32>
    %c0_30 = arith.constant 0 : index
    %c8 = arith.constant 8 : index
    %c0_31 = arith.constant 0 : index
    %31 = vector.load %arg1[%c0_30, %c8, %c0_31] : memref<1x64x8xf32, #tpu.memory_space<vmem>>, vector<1x28x8xf32>
    %32 = vector.shape_cast %31 : vector<1x28x8xf32> to vector<28x8xf32>
    %c5 = arith.constant 5 : index
    %c0_32 = arith.constant 0 : index
    %c0_33 = arith.constant 0 : index
    %33 = vector.load %arg2[%c5, %c0_32, %c0_33] : memref<25x8x8xf32, #tpu.memory_space<vmem>>, vector<1x8x8xf32>
    %34 = vector.shape_cast %33 : vector<1x8x8xf32> to vector<8x8xf32>
    %cst_34 = arith.constant dense<0.000000e+00> : vector<28x8xf32>
    %35 = tpu.matmul %32, %34, %cst_34 {dimension_numbers = #tpu.dot_dimension_numbers<[1], [0], [0], [1], [0, 0, 1, 1], [], []>} : vector<28x8xf32>, vector<8x8xf32>, vector<28x8xf32> -> vector<28x8xf32>
    %36 = arith.addf %30, %35 : vector<28x8xf32>
    %c0_35 = arith.constant 0 : index
    %c9 = arith.constant 9 : index
    %c0_36 = arith.constant 0 : index
    %37 = vector.load %arg1[%c0_35, %c9, %c0_36] : memref<1x64x8xf32, #tpu.memory_space<vmem>>, vector<1x28x8xf32>
    %38 = vector.shape_cast %37 : vector<1x28x8xf32> to vector<28x8xf32>
    %c6 = arith.constant 6 : index
    %c0_37 = arith.constant 0 : index
    %c0_38 = arith.constant 0 : index
    %39 = vector.load %arg2[%c6, %c0_37, %c0_38] : memref<25x8x8xf32, #tpu.memory_space<vmem>>, vector<1x8x8xf32>
    %40 = vector.shape_cast %39 : vector<1x8x8xf32> to vector<8x8xf32>
    %cst_39 = arith.constant dense<0.000000e+00> : vector<28x8xf32>
    %41 = tpu.matmul %38, %40, %cst_39 {dimension_numbers = #tpu.dot_dimension_numbers<[1], [0], [0], [1], [0, 0, 1, 1], [], []>} : vector<28x8xf32>, vector<8x8xf32>, vector<28x8xf32> -> vector<28x8xf32>
    %42 = arith.addf %36, %41 : vector<28x8xf32>
    %c0_40 = arith.constant 0 : index
    %c10 = arith.constant 10 : index
    %c0_41 = arith.constant 0 : index
    %43 = vector.load %arg1[%c0_40, %c10, %c0_41] : memref<1x64x8xf32, #tpu.memory_space<vmem>>, vector<1x28x8xf32>
    %44 = vector.shape_cast %43 : vector<1x28x8xf32> to vector<28x8xf32>
    %c7 = arith.constant 7 : index
    %c0_42 = arith.constant 0 : index
    %c0_43 = arith.constant 0 : index
    %45 = vector.load %arg2[%c7, %c0_42, %c0_43] : memref<25x8x8xf32, #tpu.memory_space<vmem>>, vector<1x8x8xf32>
    %46 = vector.shape_cast %45 : vector<1x8x8xf32> to vector<8x8xf32>
    %cst_44 = arith.constant dense<0.000000e+00> : vector<28x8xf32>
    %47 = tpu.matmul %44, %46, %cst_44 {dimension_numbers = #tpu.dot_dimension_numbers<[1], [0], [0], [1], [0, 0, 1, 1], [], []>} : vector<28x8xf32>, vector<8x8xf32>, vector<28x8xf32> -> vector<28x8xf32>
    %48 = arith.addf %42, %47 : vector<28x8xf32>
    %c0_45 = arith.constant 0 : index
    %c11 = arith.constant 11 : index
    %c0_46 = arith.constant 0 : index
    %49 = vector.load %arg1[%c0_45, %c11, %c0_46] : memref<1x64x8xf32, #tpu.memory_space<vmem>>, vector<1x28x8xf32>
    %50 = vector.shape_cast %49 : vector<1x28x8xf32> to vector<28x8xf32>
    %c8_47 = arith.constant 8 : index
    %c0_48 = arith.constant 0 : index
    %c0_49 = arith.constant 0 : index
    %51 = vector.load %arg2[%c8_47, %c0_48, %c0_49] : memref<25x8x8xf32, #tpu.memory_space<vmem>>, vector<1x8x8xf32>
    %52 = vector.shape_cast %51 : vector<1x8x8xf32> to vector<8x8xf32>
    %cst_50 = arith.constant dense<0.000000e+00> : vector<28x8xf32>
    %53 = tpu.matmul %50, %52, %cst_50 {dimension_numbers = #tpu.dot_dimension_numbers<[1], [0], [0], [1], [0, 0, 1, 1], [], []>} : vector<28x8xf32>, vector<8x8xf32>, vector<28x8xf32> -> vector<28x8xf32>
    %54 = arith.addf %48, %53 : vector<28x8xf32>
    %c0_51 = arith.constant 0 : index
    %c12 = arith.constant 12 : index
    %c0_52 = arith.constant 0 : index
    %55 = vector.load %arg1[%c0_51, %c12, %c0_52] : memref<1x64x8xf32, #tpu.memory_space<vmem>>, vector<1x28x8xf32>
    %56 = vector.shape_cast %55 : vector<1x28x8xf32> to vector<28x8xf32>
    %c9_53 = arith.constant 9 : index
    %c0_54 = arith.constant 0 : index
    %c0_55 = arith.constant 0 : index
    %57 = vector.load %arg2[%c9_53, %c0_54, %c0_55] : memref<25x8x8xf32, #tpu.memory_space<vmem>>, vector<1x8x8xf32>
    %58 = vector.shape_cast %57 : vector<1x8x8xf32> to vector<8x8xf32>
    %cst_56 = arith.constant dense<0.000000e+00> : vector<28x8xf32>
    %59 = tpu.matmul %56, %58, %cst_56 {dimension_numbers = #tpu.dot_dimension_numbers<[1], [0], [0], [1], [0, 0, 1, 1], [], []>} : vector<28x8xf32>, vector<8x8xf32>, vector<28x8xf32> -> vector<28x8xf32>
    %60 = arith.addf %54, %59 : vector<28x8xf32>
    %c0_57 = arith.constant 0 : index
    %c16 = arith.constant 16 : index
    %c0_58 = arith.constant 0 : index
    %61 = vector.load %arg1[%c0_57, %c16, %c0_58] : memref<1x64x8xf32, #tpu.memory_space<vmem>>, vector<1x28x8xf32>
    %62 = vector.shape_cast %61 : vector<1x28x8xf32> to vector<28x8xf32>
    %c10_59 = arith.constant 10 : index
    %c0_60 = arith.constant 0 : index
    %c0_61 = arith.constant 0 : index
    %63 = vector.load %arg2[%c10_59, %c0_60, %c0_61] : memref<25x8x8xf32, #tpu.memory_space<vmem>>, vector<1x8x8xf32>
    %64 = vector.shape_cast %63 : vector<1x8x8xf32> to vector<8x8xf32>
    %cst_62 = arith.constant dense<0.000000e+00> : vector<28x8xf32>
    %65 = tpu.matmul %62, %64, %cst_62 {dimension_numbers = #tpu.dot_dimension_numbers<[1], [0], [0], [1], [0, 0, 1, 1], [], []>} : vector<28x8xf32>, vector<8x8xf32>, vector<28x8xf32> -> vector<28x8xf32>
    %66 = arith.addf %60, %65 : vector<28x8xf32>
    %c0_63 = arith.constant 0 : index
    %c17 = arith.constant 17 : index
    %c0_64 = arith.constant 0 : index
    %67 = vector.load %arg1[%c0_63, %c17, %c0_64] : memref<1x64x8xf32, #tpu.memory_space<vmem>>, vector<1x28x8xf32>
    %68 = vector.shape_cast %67 : vector<1x28x8xf32> to vector<28x8xf32>
    %c11_65 = arith.constant 11 : index
    %c0_66 = arith.constant 0 : index
    %c0_67 = arith.constant 0 : index
    %69 = vector.load %arg2[%c11_65, %c0_66, %c0_67] : memref<25x8x8xf32, #tpu.memory_space<vmem>>, vector<1x8x8xf32>
    %70 = vector.shape_cast %69 : vector<1x8x8xf32> to vector<8x8xf32>
    %cst_68 = arith.constant dense<0.000000e+00> : vector<28x8xf32>
    %71 = tpu.matmul %68, %70, %cst_68 {dimension_numbers = #tpu.dot_dimension_numbers<[1], [0], [0], [1], [0, 0, 1, 1], [], []>} : vector<28x8xf32>, vector<8x8xf32>, vector<28x8xf32> -> vector<28x8xf32>
    %72 = arith.addf %66, %71 : vector<28x8xf32>
    %c0_69 = arith.constant 0 : index
    %c18 = arith.constant 18 : index
    %c0_70 = arith.constant 0 : index
    %73 = vector.load %arg1[%c0_69, %c18, %c0_70] : memref<1x64x8xf32, #tpu.memory_space<vmem>>, vector<1x28x8xf32>
    %74 = vector.shape_cast %73 : vector<1x28x8xf32> to vector<28x8xf32>
    %c12_71 = arith.constant 12 : index
    %c0_72 = arith.constant 0 : index
    %c0_73 = arith.constant 0 : index
    %75 = vector.load %arg2[%c12_71, %c0_72, %c0_73] : memref<25x8x8xf32, #tpu.memory_space<vmem>>, vector<1x8x8xf32>
    %76 = vector.shape_cast %75 : vector<1x8x8xf32> to vector<8x8xf32>
    %cst_74 = arith.constant dense<0.000000e+00> : vector<28x8xf32>
    %77 = tpu.matmul %74, %76, %cst_74 {dimension_numbers = #tpu.dot_dimension_numbers<[1], [0], [0], [1], [0, 0, 1, 1], [], []>} : vector<28x8xf32>, vector<8x8xf32>, vector<28x8xf32> -> vector<28x8xf32>
    %78 = arith.addf %72, %77 : vector<28x8xf32>
    %c0_75 = arith.constant 0 : index
    %c19 = arith.constant 19 : index
    %c0_76 = arith.constant 0 : index
    %79 = vector.load %arg1[%c0_75, %c19, %c0_76] : memref<1x64x8xf32, #tpu.memory_space<vmem>>, vector<1x28x8xf32>
    %80 = vector.shape_cast %79 : vector<1x28x8xf32> to vector<28x8xf32>
    %c13 = arith.constant 13 : index
    %c0_77 = arith.constant 0 : index
    %c0_78 = arith.constant 0 : index
    %81 = vector.load %arg2[%c13, %c0_77, %c0_78] : memref<25x8x8xf32, #tpu.memory_space<vmem>>, vector<1x8x8xf32>
    %82 = vector.shape_cast %81 : vector<1x8x8xf32> to vector<8x8xf32>
    %cst_79 = arith.constant dense<0.000000e+00> : vector<28x8xf32>
    %83 = tpu.matmul %80, %82, %cst_79 {dimension_numbers = #tpu.dot_dimension_numbers<[1], [0], [0], [1], [0, 0, 1, 1], [], []>} : vector<28x8xf32>, vector<8x8xf32>, vector<28x8xf32> -> vector<28x8xf32>
    %84 = arith.addf %78, %83 : vector<28x8xf32>
    %c0_80 = arith.constant 0 : index
    %c20 = arith.constant 20 : index
    %c0_81 = arith.constant 0 : index
    %85 = vector.load %arg1[%c0_80, %c20, %c0_81] : memref<1x64x8xf32, #tpu.memory_space<vmem>>, vector<1x28x8xf32>
    %86 = vector.shape_cast %85 : vector<1x28x8xf32> to vector<28x8xf32>
    %c14 = arith.constant 14 : index
    %c0_82 = arith.constant 0 : index
    %c0_83 = arith.constant 0 : index
    %87 = vector.load %arg2[%c14, %c0_82, %c0_83] : memref<25x8x8xf32, #tpu.memory_space<vmem>>, vector<1x8x8xf32>
    %88 = vector.shape_cast %87 : vector<1x8x8xf32> to vector<8x8xf32>
    %cst_84 = arith.constant dense<0.000000e+00> : vector<28x8xf32>
    %89 = tpu.matmul %86, %88, %cst_84 {dimension_numbers = #tpu.dot_dimension_numbers<[1], [0], [0], [1], [0, 0, 1, 1], [], []>} : vector<28x8xf32>, vector<8x8xf32>, vector<28x8xf32> -> vector<28x8xf32>
    %90 = arith.addf %84, %89 : vector<28x8xf32>
    %c0_85 = arith.constant 0 : index
    %c24 = arith.constant 24 : index
    %c0_86 = arith.constant 0 : index
    %91 = vector.load %arg1[%c0_85, %c24, %c0_86] : memref<1x64x8xf32, #tpu.memory_space<vmem>>, vector<1x28x8xf32>
    %92 = vector.shape_cast %91 : vector<1x28x8xf32> to vector<28x8xf32>
    %c15 = arith.constant 15 : index
    %c0_87 = arith.constant 0 : index
    %c0_88 = arith.constant 0 : index
    %93 = vector.load %arg2[%c15, %c0_87, %c0_88] : memref<25x8x8xf32, #tpu.memory_space<vmem>>, vector<1x8x8xf32>
    %94 = vector.shape_cast %93 : vector<1x8x8xf32> to vector<8x8xf32>
    %cst_89 = arith.constant dense<0.000000e+00> : vector<28x8xf32>
    %95 = tpu.matmul %92, %94, %cst_89 {dimension_numbers = #tpu.dot_dimension_numbers<[1], [0], [0], [1], [0, 0, 1, 1], [], []>} : vector<28x8xf32>, vector<8x8xf32>, vector<28x8xf32> -> vector<28x8xf32>
    %96 = arith.addf %90, %95 : vector<28x8xf32>
    %c0_90 = arith.constant 0 : index
    %c25 = arith.constant 25 : index
    %c0_91 = arith.constant 0 : index
    %97 = vector.load %arg1[%c0_90, %c25, %c0_91] : memref<1x64x8xf32, #tpu.memory_space<vmem>>, vector<1x28x8xf32>
    %98 = vector.shape_cast %97 : vector<1x28x8xf32> to vector<28x8xf32>
    %c16_92 = arith.constant 16 : index
    %c0_93 = arith.constant 0 : index
    %c0_94 = arith.constant 0 : index
    %99 = vector.load %arg2[%c16_92, %c0_93, %c0_94] : memref<25x8x8xf32, #tpu.memory_space<vmem>>, vector<1x8x8xf32>
    %100 = vector.shape_cast %99 : vector<1x8x8xf32> to vector<8x8xf32>
    %cst_95 = arith.constant dense<0.000000e+00> : vector<28x8xf32>
    %101 = tpu.matmul %98, %100, %cst_95 {dimension_numbers = #tpu.dot_dimension_numbers<[1], [0], [0], [1], [0, 0, 1, 1], [], []>} : vector<28x8xf32>, vector<8x8xf32>, vector<28x8xf32> -> vector<28x8xf32>
    %102 = arith.addf %96, %101 : vector<28x8xf32>
    %c0_96 = arith.constant 0 : index
    %c26 = arith.constant 26 : index
    %c0_97 = arith.constant 0 : index
    %103 = vector.load %arg1[%c0_96, %c26, %c0_97] : memref<1x64x8xf32, #tpu.memory_space<vmem>>, vector<1x28x8xf32>
    %104 = vector.shape_cast %103 : vector<1x28x8xf32> to vector<28x8xf32>
    %c17_98 = arith.constant 17 : index
    %c0_99 = arith.constant 0 : index
    %c0_100 = arith.constant 0 : index
    %105 = vector.load %arg2[%c17_98, %c0_99, %c0_100] : memref<25x8x8xf32, #tpu.memory_space<vmem>>, vector<1x8x8xf32>
    %106 = vector.shape_cast %105 : vector<1x8x8xf32> to vector<8x8xf32>
    %cst_101 = arith.constant dense<0.000000e+00> : vector<28x8xf32>
    %107 = tpu.matmul %104, %106, %cst_101 {dimension_numbers = #tpu.dot_dimension_numbers<[1], [0], [0], [1], [0, 0, 1, 1], [], []>} : vector<28x8xf32>, vector<8x8xf32>, vector<28x8xf32> -> vector<28x8xf32>
    %108 = arith.addf %102, %107 : vector<28x8xf32>
    %c0_102 = arith.constant 0 : index
    %c27 = arith.constant 27 : index
    %c0_103 = arith.constant 0 : index
    %109 = vector.load %arg1[%c0_102, %c27, %c0_103] : memref<1x64x8xf32, #tpu.memory_space<vmem>>, vector<1x28x8xf32>
    %110 = vector.shape_cast %109 : vector<1x28x8xf32> to vector<28x8xf32>
    %c18_104 = arith.constant 18 : index
    %c0_105 = arith.constant 0 : index
    %c0_106 = arith.constant 0 : index
    %111 = vector.load %arg2[%c18_104, %c0_105, %c0_106] : memref<25x8x8xf32, #tpu.memory_space<vmem>>, vector<1x8x8xf32>
    %112 = vector.shape_cast %111 : vector<1x8x8xf32> to vector<8x8xf32>
    %cst_107 = arith.constant dense<0.000000e+00> : vector<28x8xf32>
    %113 = tpu.matmul %110, %112, %cst_107 {dimension_numbers = #tpu.dot_dimension_numbers<[1], [0], [0], [1], [0, 0, 1, 1], [], []>} : vector<28x8xf32>, vector<8x8xf32>, vector<28x8xf32> -> vector<28x8xf32>
    %114 = arith.addf %108, %113 : vector<28x8xf32>
    %c0_108 = arith.constant 0 : index
    %c28 = arith.constant 28 : index
    %c0_109 = arith.constant 0 : index
    %115 = vector.load %arg1[%c0_108, %c28, %c0_109] : memref<1x64x8xf32, #tpu.memory_space<vmem>>, vector<1x28x8xf32>
    %116 = vector.shape_cast %115 : vector<1x28x8xf32> to vector<28x8xf32>
    %c19_110 = arith.constant 19 : index
    %c0_111 = arith.constant 0 : index
    %c0_112 = arith.constant 0 : index
    %117 = vector.load %arg2[%c19_110, %c0_111, %c0_112] : memref<25x8x8xf32, #tpu.memory_space<vmem>>, vector<1x8x8xf32>
    %118 = vector.shape_cast %117 : vector<1x8x8xf32> to vector<8x8xf32>
    %cst_113 = arith.constant dense<0.000000e+00> : vector<28x8xf32>
    %119 = tpu.matmul %116, %118, %cst_113 {dimension_numbers = #tpu.dot_dimension_numbers<[1], [0], [0], [1], [0, 0, 1, 1], [], []>} : vector<28x8xf32>, vector<8x8xf32>, vector<28x8xf32> -> vector<28x8xf32>
    %120 = arith.addf %114, %119 : vector<28x8xf32>
    %c0_114 = arith.constant 0 : index
    %c32 = arith.constant 32 : index
    %c0_115 = arith.constant 0 : index
    %121 = vector.load %arg1[%c0_114, %c32, %c0_115] : memref<1x64x8xf32, #tpu.memory_space<vmem>>, vector<1x28x8xf32>
    %122 = vector.shape_cast %121 : vector<1x28x8xf32> to vector<28x8xf32>
    %c20_116 = arith.constant 20 : index
    %c0_117 = arith.constant 0 : index
    %c0_118 = arith.constant 0 : index
    %123 = vector.load %arg2[%c20_116, %c0_117, %c0_118] : memref<25x8x8xf32, #tpu.memory_space<vmem>>, vector<1x8x8xf32>
    %124 = vector.shape_cast %123 : vector<1x8x8xf32> to vector<8x8xf32>
    %cst_119 = arith.constant dense<0.000000e+00> : vector<28x8xf32>
    %125 = tpu.matmul %122, %124, %cst_119 {dimension_numbers = #tpu.dot_dimension_numbers<[1], [0], [0], [1], [0, 0, 1, 1], [], []>} : vector<28x8xf32>, vector<8x8xf32>, vector<28x8xf32> -> vector<28x8xf32>
    %126 = arith.addf %120, %125 : vector<28x8xf32>
    %c0_120 = arith.constant 0 : index
    %c33 = arith.constant 33 : index
    %c0_121 = arith.constant 0 : index
    %127 = vector.load %arg1[%c0_120, %c33, %c0_121] : memref<1x64x8xf32, #tpu.memory_space<vmem>>, vector<1x28x8xf32>
    %128 = vector.shape_cast %127 : vector<1x28x8xf32> to vector<28x8xf32>
    %c21 = arith.constant 21 : index
    %c0_122 = arith.constant 0 : index
    %c0_123 = arith.constant 0 : index
    %129 = vector.load %arg2[%c21, %c0_122, %c0_123] : memref<25x8x8xf32, #tpu.memory_space<vmem>>, vector<1x8x8xf32>
    %130 = vector.shape_cast %129 : vector<1x8x8xf32> to vector<8x8xf32>
    %cst_124 = arith.constant dense<0.000000e+00> : vector<28x8xf32>
    %131 = tpu.matmul %128, %130, %cst_124 {dimension_numbers = #tpu.dot_dimension_numbers<[1], [0], [0], [1], [0, 0, 1, 1], [], []>} : vector<28x8xf32>, vector<8x8xf32>, vector<28x8xf32> -> vector<28x8xf32>
    %132 = arith.addf %126, %131 : vector<28x8xf32>
    %c0_125 = arith.constant 0 : index
    %c34 = arith.constant 34 : index
    %c0_126 = arith.constant 0 : index
    %133 = vector.load %arg1[%c0_125, %c34, %c0_126] : memref<1x64x8xf32, #tpu.memory_space<vmem>>, vector<1x28x8xf32>
    %134 = vector.shape_cast %133 : vector<1x28x8xf32> to vector<28x8xf32>
    %c22 = arith.constant 22 : index
    %c0_127 = arith.constant 0 : index
    %c0_128 = arith.constant 0 : index
    %135 = vector.load %arg2[%c22, %c0_127, %c0_128] : memref<25x8x8xf32, #tpu.memory_space<vmem>>, vector<1x8x8xf32>
    %136 = vector.shape_cast %135 : vector<1x8x8xf32> to vector<8x8xf32>
    %cst_129 = arith.constant dense<0.000000e+00> : vector<28x8xf32>
    %137 = tpu.matmul %134, %136, %cst_129 {dimension_numbers = #tpu.dot_dimension_numbers<[1], [0], [0], [1], [0, 0, 1, 1], [], []>} : vector<28x8xf32>, vector<8x8xf32>, vector<28x8xf32> -> vector<28x8xf32>
    %138 = arith.addf %132, %137 : vector<28x8xf32>
    %c0_130 = arith.constant 0 : index
    %c35 = arith.constant 35 : index
    %c0_131 = arith.constant 0 : index
    %139 = vector.load %arg1[%c0_130, %c35, %c0_131] : memref<1x64x8xf32, #tpu.memory_space<vmem>>, vector<1x28x8xf32>
    %140 = vector.shape_cast %139 : vector<1x28x8xf32> to vector<28x8xf32>
    %c23 = arith.constant 23 : index
    %c0_132 = arith.constant 0 : index
    %c0_133 = arith.constant 0 : index
    %141 = vector.load %arg2[%c23, %c0_132, %c0_133] : memref<25x8x8xf32, #tpu.memory_space<vmem>>, vector<1x8x8xf32>
    %142 = vector.shape_cast %141 : vector<1x8x8xf32> to vector<8x8xf32>
    %cst_134 = arith.constant dense<0.000000e+00> : vector<28x8xf32>
    %143 = tpu.matmul %140, %142, %cst_134 {dimension_numbers = #tpu.dot_dimension_numbers<[1], [0], [0], [1], [0, 0, 1, 1], [], []>} : vector<28x8xf32>, vector<8x8xf32>, vector<28x8xf32> -> vector<28x8xf32>
    %144 = arith.addf %138, %143 : vector<28x8xf32>
    %c0_135 = arith.constant 0 : index
    %c36 = arith.constant 36 : index
    %c0_136 = arith.constant 0 : index
    %145 = vector.load %arg1[%c0_135, %c36, %c0_136] : memref<1x64x8xf32, #tpu.memory_space<vmem>>, vector<1x28x8xf32>
    %146 = vector.shape_cast %145 : vector<1x28x8xf32> to vector<28x8xf32>
    %c24_137 = arith.constant 24 : index
    %c0_138 = arith.constant 0 : index
    %c0_139 = arith.constant 0 : index
    %147 = vector.load %arg2[%c24_137, %c0_138, %c0_139] : memref<25x8x8xf32, #tpu.memory_space<vmem>>, vector<1x8x8xf32>
    %148 = vector.shape_cast %147 : vector<1x8x8xf32> to vector<8x8xf32>
    %cst_140 = arith.constant dense<0.000000e+00> : vector<28x8xf32>
    %149 = tpu.matmul %146, %148, %cst_140 {dimension_numbers = #tpu.dot_dimension_numbers<[1], [0], [0], [1], [0, 0, 1, 1], [], []>} : vector<28x8xf32>, vector<8x8xf32>, vector<28x8xf32> -> vector<28x8xf32>
    %150 = arith.addf %144, %149 : vector<28x8xf32>
    %c0_141 = arith.constant 0 : index
    %c0_142 = arith.constant 0 : index
    %151 = vector.load %arg3[%c0_141, %c0_142] : memref<1x8xf32, #tpu.memory_space<vmem>>, vector<1x8xf32>
    %152 = vector.broadcast %151 : vector<1x8xf32> to vector<28x8xf32>
    %153 = arith.addf %150, %152 : vector<28x8xf32>
    %c0_143 = arith.constant 0 : index
    %c0_144 = arith.constant 0 : index
    %c0_145 = arith.constant 0 : index
    %154 = vector.load %arg4[%c0_143, %c0_144, %c0_145] : memref<1x28x8xf32, #tpu.memory_space<vmem>>, vector<1x28x8xf32>
    %155 = vector.shape_cast %154 : vector<1x28x8xf32> to vector<28x8xf32>
    %156 = vector.shape_cast %153 : vector<28x8xf32> to vector<1x28x8xf32>
    tpu.vector_store %arg4[%c0_143, %c0_144, %c0_145], %156 {strides = array<i32>} : memref<1x28x8xf32, #tpu.memory_space<vmem>>, vector<1x28x8xf32>,
    return
  }
  func.func @transform_0(%arg0: i32) -> (i32, i32, i32) {
    %c0_i32 = arith.constant 0 : i32
    %c0_i32_0 = arith.constant 0 : i32
    %c0_i32_1 = arith.constant 0 : i32
    return %arg0, %c0_i32, %c0_i32_0 : i32, i32, i32
  }
  func.func @transform_1(%arg0: i32) -> (i32, i32, i32) {
    %c0_i32 = arith.constant 0 : i32
    %c0_i32_0 = arith.constant 0 : i32
    %c0_i32_1 = arith.constant 0 : i32
    %c0_i32_2 = arith.constant 0 : i32
    return %c0_i32, %c0_i32_0, %c0_i32_1 : i32, i32, i32
  }
  func.func @transform_2(%arg0: i32) -> (i32, i32) {
    %c0_i32 = arith.constant 0 : i32
    %c0_i32_0 = arith.constant 0 : i32
    %c0_i32_1 = arith.constant 0 : i32
    return %c0_i32, %c0_i32_0 : i32, i32
  }
  func.func @transform_3(%arg0: i32) -> (i32, i32, i32) {
    %c0_i32 = arith.constant 0 : i32
    %c0_i32_0 = arith.constant 0 : i32
    %c0_i32_1 = arith.constant 0 : i32
    return %arg0, %c0_i32, %c0_i32_0 : i32, i32, i32
  }
}

module attributes {stable_mosaic.version = 11 : i64} {
  func.func @kernel(%arg0: i32, %arg1: memref<1x16x8xf32, #tpu.memory_space<vmem>>, %arg2: memref<9x8x8xf32, #tpu.memory_space<vmem>>, %arg3: memref<1x8xf32, #tpu.memory_space<vmem>>, %arg4: memref<1x6x8xf32, #tpu.memory_space<vmem>>) attributes {dimension_semantics = [#tpu.dimension_semantics<parallel>], iteration_bounds = array<i64: 2>, scalar_prefetch = 0 : i64, scratch_operands = 0 : i64, tpu.core_type = #tpu.core_type<tc>, window_params = [{transform_indices = @transform_0, window_bounds = array<i64: 1, 16, 8>}, {pipeline_mode = #tpu.pipeline_mode<synchronous>, transform_indices = @transform_1, window_bounds = array<i64: 9, 8, 8>}, {pipeline_mode = #tpu.pipeline_mode<synchronous>, transform_indices = @transform_2, window_bounds = array<i64: 1, 8>}, {transform_indices = @transform_3, window_bounds = array<i64: 1, 6, 8>}]} {
    %cst = arith.constant 0.000000e+00 : f32
    %0 = vector.broadcast %cst : f32 to vector<6x8xf32>
    %c0 = arith.constant 0 : index
    %c0_0 = arith.constant 0 : index
    %c0_1 = arith.constant 0 : index
    %1 = vector.load %arg1[%c0, %c0_0, %c0_1] : memref<1x16x8xf32, #tpu.memory_space<vmem>>, vector<1x6x8xf32>
    %2 = vector.shape_cast %1 : vector<1x6x8xf32> to vector<6x8xf32>
    %c0_2 = arith.constant 0 : index
    %c0_3 = arith.constant 0 : index
    %c0_4 = arith.constant 0 : index
    %3 = vector.load %arg2[%c0_2, %c0_3, %c0_4] : memref<9x8x8xf32, #tpu.memory_space<vmem>>, vector<1x8x8xf32>
    %4 = vector.shape_cast %3 : vector<1x8x8xf32> to vector<8x8xf32>
    %cst_5 = arith.constant dense<0.000000e+00> : vector<6x8xf32>
    %5 = tpu.matmul %2, %4, %cst_5 {dimension_numbers = #tpu.dot_dimension_numbers<[1], [0], [0], [1], [0, 0, 1, 1], [], []>} : vector<6x8xf32>, vector<8x8xf32>, vector<6x8xf32> -> vector<6x8xf32>
    %6 = arith.addf %0, %5 : vector<6x8xf32>
    %c0_6 = arith.constant 0 : index
    %c1 = arith.constant 1 : index
    %c0_7 = arith.constant 0 : index
    %7 = vector.load %arg1[%c0_6, %c1, %c0_7] : memref<1x16x8xf32, #tpu.memory_space<vmem>>, vector<1x6x8xf32>
    %8 = vector.shape_cast %7 : vector<1x6x8xf32> to vector<6x8xf32>
    %c1_8 = arith.constant 1 : index
    %c0_9 = arith.constant 0 : index
    %c0_10 = arith.constant 0 : index
    %9 = vector.load %arg2[%c1_8, %c0_9, %c0_10] : memref<9x8x8xf32, #tpu.memory_space<vmem>>, vector<1x8x8xf32>
    %10 = vector.shape_cast %9 : vector<1x8x8xf32> to vector<8x8xf32>
    %cst_11 = arith.constant dense<0.000000e+00> : vector<6x8xf32>
    %11 = tpu.matmul %8, %10, %cst_11 {dimension_numbers = #tpu.dot_dimension_numbers<[1], [0], [0], [1], [0, 0, 1, 1], [], []>} : vector<6x8xf32>, vector<8x8xf32>, vector<6x8xf32> -> vector<6x8xf32>
    %12 = arith.addf %6, %11 : vector<6x8xf32>
    %c0_12 = arith.constant 0 : index
    %c2 = arith.constant 2 : index
    %c0_13 = arith.constant 0 : index
    %13 = vector.load %arg1[%c0_12, %c2, %c0_13] : memref<1x16x8xf32, #tpu.memory_space<vmem>>, vector<1x6x8xf32>
    %14 = vector.shape_cast %13 : vector<1x6x8xf32> to vector<6x8xf32>
    %c2_14 = arith.constant 2 : index
    %c0_15 = arith.constant 0 : index
    %c0_16 = arith.constant 0 : index
    %15 = vector.load %arg2[%c2_14, %c0_15, %c0_16] : memref<9x8x8xf32, #tpu.memory_space<vmem>>, vector<1x8x8xf32>
    %16 = vector.shape_cast %15 : vector<1x8x8xf32> to vector<8x8xf32>
    %cst_17 = arith.constant dense<0.000000e+00> : vector<6x8xf32>
    %17 = tpu.matmul %14, %16, %cst_17 {dimension_numbers = #tpu.dot_dimension_numbers<[1], [0], [0], [1], [0, 0, 1, 1], [], []>} : vector<6x8xf32>, vector<8x8xf32>, vector<6x8xf32> -> vector<6x8xf32>
    %18 = arith.addf %12, %17 : vector<6x8xf32>
    %c0_18 = arith.constant 0 : index
    %c4 = arith.constant 4 : index
    %c0_19 = arith.constant 0 : index
    %19 = vector.load %arg1[%c0_18, %c4, %c0_19] : memref<1x16x8xf32, #tpu.memory_space<vmem>>, vector<1x6x8xf32>
    %20 = vector.shape_cast %19 : vector<1x6x8xf32> to vector<6x8xf32>
    %c3 = arith.constant 3 : index
    %c0_20 = arith.constant 0 : index
    %c0_21 = arith.constant 0 : index
    %21 = vector.load %arg2[%c3, %c0_20, %c0_21] : memref<9x8x8xf32, #tpu.memory_space<vmem>>, vector<1x8x8xf32>
    %22 = vector.shape_cast %21 : vector<1x8x8xf32> to vector<8x8xf32>
    %cst_22 = arith.constant dense<0.000000e+00> : vector<6x8xf32>
    %23 = tpu.matmul %20, %22, %cst_22 {dimension_numbers = #tpu.dot_dimension_numbers<[1], [0], [0], [1], [0, 0, 1, 1], [], []>} : vector<6x8xf32>, vector<8x8xf32>, vector<6x8xf32> -> vector<6x8xf32>
    %24 = arith.addf %18, %23 : vector<6x8xf32>
    %c0_23 = arith.constant 0 : index
    %c5 = arith.constant 5 : index
    %c0_24 = arith.constant 0 : index
    %25 = vector.load %arg1[%c0_23, %c5, %c0_24] : memref<1x16x8xf32, #tpu.memory_space<vmem>>, vector<1x6x8xf32>
    %26 = vector.shape_cast %25 : vector<1x6x8xf32> to vector<6x8xf32>
    %c4_25 = arith.constant 4 : index
    %c0_26 = arith.constant 0 : index
    %c0_27 = arith.constant 0 : index
    %27 = vector.load %arg2[%c4_25, %c0_26, %c0_27] : memref<9x8x8xf32, #tpu.memory_space<vmem>>, vector<1x8x8xf32>
    %28 = vector.shape_cast %27 : vector<1x8x8xf32> to vector<8x8xf32>
    %cst_28 = arith.constant dense<0.000000e+00> : vector<6x8xf32>
    %29 = tpu.matmul %26, %28, %cst_28 {dimension_numbers = #tpu.dot_dimension_numbers<[1], [0], [0], [1], [0, 0, 1, 1], [], []>} : vector<6x8xf32>, vector<8x8xf32>, vector<6x8xf32> -> vector<6x8xf32>
    %30 = arith.addf %24, %29 : vector<6x8xf32>
    %c0_29 = arith.constant 0 : index
    %c6 = arith.constant 6 : index
    %c0_30 = arith.constant 0 : index
    %31 = vector.load %arg1[%c0_29, %c6, %c0_30] : memref<1x16x8xf32, #tpu.memory_space<vmem>>, vector<1x6x8xf32>
    %32 = vector.shape_cast %31 : vector<1x6x8xf32> to vector<6x8xf32>
    %c5_31 = arith.constant 5 : index
    %c0_32 = arith.constant 0 : index
    %c0_33 = arith.constant 0 : index
    %33 = vector.load %arg2[%c5_31, %c0_32, %c0_33] : memref<9x8x8xf32, #tpu.memory_space<vmem>>, vector<1x8x8xf32>
    %34 = vector.shape_cast %33 : vector<1x8x8xf32> to vector<8x8xf32>
    %cst_34 = arith.constant dense<0.000000e+00> : vector<6x8xf32>
    %35 = tpu.matmul %32, %34, %cst_34 {dimension_numbers = #tpu.dot_dimension_numbers<[1], [0], [0], [1], [0, 0, 1, 1], [], []>} : vector<6x8xf32>, vector<8x8xf32>, vector<6x8xf32> -> vector<6x8xf32>
    %36 = arith.addf %30, %35 : vector<6x8xf32>
    %c0_35 = arith.constant 0 : index
    %c8 = arith.constant 8 : index
    %c0_36 = arith.constant 0 : index
    %37 = vector.load %arg1[%c0_35, %c8, %c0_36] : memref<1x16x8xf32, #tpu.memory_space<vmem>>, vector<1x6x8xf32>
    %38 = vector.shape_cast %37 : vector<1x6x8xf32> to vector<6x8xf32>
    %c6_37 = arith.constant 6 : index
    %c0_38 = arith.constant 0 : index
    %c0_39 = arith.constant 0 : index
    %39 = vector.load %arg2[%c6_37, %c0_38, %c0_39] : memref<9x8x8xf32, #tpu.memory_space<vmem>>, vector<1x8x8xf32>
    %40 = vector.shape_cast %39 : vector<1x8x8xf32> to vector<8x8xf32>
    %cst_40 = arith.constant dense<0.000000e+00> : vector<6x8xf32>
    %41 = tpu.matmul %38, %40, %cst_40 {dimension_numbers = #tpu.dot_dimension_numbers<[1], [0], [0], [1], [0, 0, 1, 1], [], []>} : vector<6x8xf32>, vector<8x8xf32>, vector<6x8xf32> -> vector<6x8xf32>
    %42 = arith.addf %36, %41 : vector<6x8xf32>
    %c0_41 = arith.constant 0 : index
    %c9 = arith.constant 9 : index
    %c0_42 = arith.constant 0 : index
    %43 = vector.load %arg1[%c0_41, %c9, %c0_42] : memref<1x16x8xf32, #tpu.memory_space<vmem>>, vector<1x6x8xf32>
    %44 = vector.shape_cast %43 : vector<1x6x8xf32> to vector<6x8xf32>
    %c7 = arith.constant 7 : index
    %c0_43 = arith.constant 0 : index
    %c0_44 = arith.constant 0 : index
    %45 = vector.load %arg2[%c7, %c0_43, %c0_44] : memref<9x8x8xf32, #tpu.memory_space<vmem>>, vector<1x8x8xf32>
    %46 = vector.shape_cast %45 : vector<1x8x8xf32> to vector<8x8xf32>
    %cst_45 = arith.constant dense<0.000000e+00> : vector<6x8xf32>
    %47 = tpu.matmul %44, %46, %cst_45 {dimension_numbers = #tpu.dot_dimension_numbers<[1], [0], [0], [1], [0, 0, 1, 1], [], []>} : vector<6x8xf32>, vector<8x8xf32>, vector<6x8xf32> -> vector<6x8xf32>
    %48 = arith.addf %42, %47 : vector<6x8xf32>
    %c0_46 = arith.constant 0 : index
    %c10 = arith.constant 10 : index
    %c0_47 = arith.constant 0 : index
    %49 = vector.load %arg1[%c0_46, %c10, %c0_47] : memref<1x16x8xf32, #tpu.memory_space<vmem>>, vector<1x6x8xf32>
    %50 = vector.shape_cast %49 : vector<1x6x8xf32> to vector<6x8xf32>
    %c8_48 = arith.constant 8 : index
    %c0_49 = arith.constant 0 : index
    %c0_50 = arith.constant 0 : index
    %51 = vector.load %arg2[%c8_48, %c0_49, %c0_50] : memref<9x8x8xf32, #tpu.memory_space<vmem>>, vector<1x8x8xf32>
    %52 = vector.shape_cast %51 : vector<1x8x8xf32> to vector<8x8xf32>
    %cst_51 = arith.constant dense<0.000000e+00> : vector<6x8xf32>
    %53 = tpu.matmul %50, %52, %cst_51 {dimension_numbers = #tpu.dot_dimension_numbers<[1], [0], [0], [1], [0, 0, 1, 1], [], []>} : vector<6x8xf32>, vector<8x8xf32>, vector<6x8xf32> -> vector<6x8xf32>
    %54 = arith.addf %48, %53 : vector<6x8xf32>
    %c0_52 = arith.constant 0 : index
    %c0_53 = arith.constant 0 : index
    %55 = vector.load %arg3[%c0_52, %c0_53] : memref<1x8xf32, #tpu.memory_space<vmem>>, vector<1x8xf32>
    %56 = vector.broadcast %55 : vector<1x8xf32> to vector<6x8xf32>
    %57 = arith.addf %54, %56 : vector<6x8xf32>
    %c0_54 = arith.constant 0 : index
    %c0_55 = arith.constant 0 : index
    %c0_56 = arith.constant 0 : index
    %58 = vector.load %arg4[%c0_54, %c0_55, %c0_56] : memref<1x6x8xf32, #tpu.memory_space<vmem>>, vector<1x6x8xf32>
    %59 = vector.shape_cast %58 : vector<1x6x8xf32> to vector<6x8xf32>
    %60 = vector.shape_cast %57 : vector<6x8xf32> to vector<1x6x8xf32>
    tpu.vector_store %arg4[%c0_54, %c0_55, %c0_56], %60 {strides = array<i32>} : memref<1x6x8xf32, #tpu.memory_space<vmem>>, vector<1x6x8xf32>,
    return
  }
  func.func @transform_0(%arg0: i32) -> (i32, i32, i32) {
    %c0_i32 = arith.constant 0 : i32
    %c0_i32_0 = arith.constant 0 : i32
    %c0_i32_1 = arith.constant 0 : i32
    return %arg0, %c0_i32, %c0_i32_0 : i32, i32, i32
  }
  func.func @transform_1(%arg0: i32) -> (i32, i32, i32) {
    %c0_i32 = arith.constant 0 : i32
    %c0_i32_0 = arith.constant 0 : i32
    %c0_i32_1 = arith.constant 0 : i32
    %c0_i32_2 = arith.constant 0 : i32
    return %c0_i32, %c0_i32_0, %c0_i32_1 : i32, i32, i32
  }
  func.func @transform_2(%arg0: i32) -> (i32, i32) {
    %c0_i32 = arith.constant 0 : i32
    %c0_i32_0 = arith.constant 0 : i32
    %c0_i32_1 = arith.constant 0 : i32
    return %c0_i32, %c0_i32_0 : i32, i32
  }
  func.func @transform_3(%arg0: i32) -> (i32, i32, i32) {
    %c0_i32 = arith.constant 0 : i32
    %c0_i32_0 = arith.constant 0 : i32
    %c0_i32_1 = arith.constant 0 : i32
    return %arg0, %c0_i32, %c0_i32_0 : i32, i32, i32
  }
}

module attributes {stable_mosaic.version = 11 : i64} {
  func.func @kernel(%arg0: i32, %arg1: memref<1x256x8xf32, #tpu.memory_space<vmem>>, %arg2: memref<1x8x8xf32, #tpu.memory_space<vmem>>, %arg3: memref<1x8xf32, #tpu.memory_space<vmem>>, %arg4: memref<1x256x8xf32, #tpu.memory_space<vmem>>) attributes {dimension_semantics = [#tpu.dimension_semantics<parallel>], iteration_bounds = array<i64: 2>, scalar_prefetch = 0 : i64, scratch_operands = 0 : i64, tpu.core_type = #tpu.core_type<tc>, window_params = [{transform_indices = @transform_0, window_bounds = array<i64: 1, 256, 8>}, {pipeline_mode = #tpu.pipeline_mode<synchronous>, transform_indices = @transform_1, window_bounds = array<i64: 1, 8, 8>}, {pipeline_mode = #tpu.pipeline_mode<synchronous>, transform_indices = @transform_2, window_bounds = array<i64: 1, 8>}, {transform_indices = @transform_3, window_bounds = array<i64: 1, 256, 8>}]} {
    %cst = arith.constant 0.000000e+00 : f32
    %0 = vector.broadcast %cst : f32 to vector<256x8xf32>
    %c0 = arith.constant 0 : index
    %c0_0 = arith.constant 0 : index
    %c0_1 = arith.constant 0 : index
    %1 = vector.load %arg1[%c0, %c0_0, %c0_1] : memref<1x256x8xf32, #tpu.memory_space<vmem>>, vector<1x256x8xf32>
    %2 = vector.shape_cast %1 : vector<1x256x8xf32> to vector<256x8xf32>
    %c0_2 = arith.constant 0 : index
    %c0_3 = arith.constant 0 : index
    %c0_4 = arith.constant 0 : index
    %3 = vector.load %arg2[%c0_2, %c0_3, %c0_4] : memref<1x8x8xf32, #tpu.memory_space<vmem>>, vector<1x8x8xf32>
    %4 = vector.shape_cast %3 : vector<1x8x8xf32> to vector<8x8xf32>
    %cst_5 = arith.constant dense<0.000000e+00> : vector<256x8xf32>
    %5 = tpu.matmul %2, %4, %cst_5 {dimension_numbers = #tpu.dot_dimension_numbers<[1], [0], [0], [1], [0, 0, 1, 1], [], []>} : vector<256x8xf32>, vector<8x8xf32>, vector<256x8xf32> -> vector<256x8xf32>
    %6 = arith.addf %0, %5 : vector<256x8xf32>
    %c0_6 = arith.constant 0 : index
    %c0_7 = arith.constant 0 : index
    %7 = vector.load %arg3[%c0_6, %c0_7] : memref<1x8xf32, #tpu.memory_space<vmem>>, vector<1x8xf32>
    %8 = vector.broadcast %7 : vector<1x8xf32> to vector<256x8xf32>
    %9 = arith.addf %6, %8 : vector<256x8xf32>
    %c0_8 = arith.constant 0 : index
    %c0_9 = arith.constant 0 : index
    %c0_10 = arith.constant 0 : index
    %10 = vector.load %arg4[%c0_8, %c0_9, %c0_10] : memref<1x256x8xf32, #tpu.memory_space<vmem>>, vector<1x256x8xf32>
    %11 = vector.shape_cast %10 : vector<1x256x8xf32> to vector<256x8xf32>
    %12 = vector.shape_cast %9 : vector<256x8xf32> to vector<1x256x8xf32>
    tpu.vector_store %arg4[%c0_8, %c0_9, %c0_10], %12 {strides = array<i32>} : memref<1x256x8xf32, #tpu.memory_space<vmem>>, vector<1x256x8xf32>,
    return
  }
  func.func @transform_0(%arg0: i32) -> (i32, i32, i32) {
    %c0_i32 = arith.constant 0 : i32
    %c0_i32_0 = arith.constant 0 : i32
    %c0_i32_1 = arith.constant 0 : i32
    return %arg0, %c0_i32, %c0_i32_0 : i32, i32, i32
  }
  func.func @transform_1(%arg0: i32) -> (i32, i32, i32) {
    %c0_i32 = arith.constant 0 : i32
    %c0_i32_0 = arith.constant 0 : i32
    %c0_i32_1 = arith.constant 0 : i32
    %c0_i32_2 = arith.constant 0 : i32
    return %c0_i32, %c0_i32_0, %c0_i32_1 : i32, i32, i32
  }
  func.func @transform_2(%arg0: i32) -> (i32, i32) {
    %c0_i32 = arith.constant 0 : i32
    %c0_i32_0 = arith.constant 0 : i32
    %c0_i32_1 = arith.constant 0 : i32
    return %c0_i32, %c0_i32_0 : i32, i32
  }
  func.func @transform_3(%arg0: i32) -> (i32, i32, i32) {
    %c0_i32 = arith.constant 0 : i32
    %c0_i32_0 = arith.constant 0 : i32
    %c0_i32_1 = arith.constant 0 : i32
    return %arg0, %c0_i32, %c0_i32_0 : i32, i32, i32
  }
}

module attributes {stable_mosaic.version = 11 : i64} {
  func.func @_fuse_kernel(%arg0: i32, %arg1: memref<1x256x8xf32, #tpu.memory_space<vmem>>, %arg2: memref<1x256x8xf32, #tpu.memory_space<vmem>>, %arg3: memref<1x1x8xf32, #tpu.memory_space<vmem>>, %arg4: memref<1x256x8xf32, #tpu.memory_space<vmem>>) attributes {dimension_semantics = [#tpu.dimension_semantics<parallel>], iteration_bounds = array<i64: 2>, scalar_prefetch = 0 : i64, scratch_operands = 0 : i64, tpu.core_type = #tpu.core_type<tc>, window_params = [{transform_indices = @transform_0, window_bounds = array<i64: 1, 256, 8>}, {transform_indices = @transform_1, window_bounds = array<i64: 1, 256, 8>}, {transform_indices = @transform_2, window_bounds = array<i64: 1, 1, 8>}, {transform_indices = @transform_3, window_bounds = array<i64: 1, 256, 8>}]} {
    %c0 = arith.constant 0 : index
    %c0_0 = arith.constant 0 : index
    %c0_1 = arith.constant 0 : index
    %0 = vector.load %arg1[%c0, %c0_0, %c0_1] : memref<1x256x8xf32, #tpu.memory_space<vmem>>, vector<1x256x8xf32>
    %1 = vector.shape_cast %0 : vector<1x256x8xf32> to vector<256x8xf32>
    %c0_2 = arith.constant 0 : index
    %c0_3 = arith.constant 0 : index
    %c0_4 = arith.constant 0 : index
    %2 = vector.load %arg2[%c0_2, %c0_3, %c0_4] : memref<1x256x8xf32, #tpu.memory_space<vmem>>, vector<1x256x8xf32>
    %3 = vector.shape_cast %2 : vector<1x256x8xf32> to vector<256x8xf32>
    %c0_5 = arith.constant 0 : index
    %c0_6 = arith.constant 0 : index
    %c0_7 = arith.constant 0 : index
    %4 = vector.load %arg3[%c0_5, %c0_6, %c0_7] : memref<1x1x8xf32, #tpu.memory_space<vmem>>, vector<1x1x8xf32>
    %5 = vector.shape_cast %4 : vector<1x1x8xf32> to vector<1x8xf32>
    %6 = arith.mulf %1, %3 : vector<256x8xf32>
    %7 = vector.broadcast %5 : vector<1x8xf32> to vector<256x8xf32>
    %8 = arith.addf %6, %7 : vector<256x8xf32>
    %c0_8 = arith.constant 0 : index
    %c0_9 = arith.constant 0 : index
    %c0_10 = arith.constant 0 : index
    %9 = vector.load %arg4[%c0_8, %c0_9, %c0_10] : memref<1x256x8xf32, #tpu.memory_space<vmem>>, vector<1x256x8xf32>
    %10 = vector.shape_cast %9 : vector<1x256x8xf32> to vector<256x8xf32>
    %11 = vector.shape_cast %8 : vector<256x8xf32> to vector<1x256x8xf32>
    tpu.vector_store %arg4[%c0_8, %c0_9, %c0_10], %11 {strides = array<i32>} : memref<1x256x8xf32, #tpu.memory_space<vmem>>, vector<1x256x8xf32>,
    return
  }
  func.func @transform_0(%arg0: i32) -> (i32, i32, i32) {
    %c0_i32 = arith.constant 0 : i32
    %c0_i32_0 = arith.constant 0 : i32
    %c0_i32_1 = arith.constant 0 : i32
    return %arg0, %c0_i32, %c0_i32_0 : i32, i32, i32
  }
  func.func @transform_1(%arg0: i32) -> (i32, i32, i32) {
    %c0_i32 = arith.constant 0 : i32
    %c0_i32_0 = arith.constant 0 : i32
    %c0_i32_1 = arith.constant 0 : i32
    return %arg0, %c0_i32, %c0_i32_0 : i32, i32, i32
  }
  func.func @transform_2(%arg0: i32) -> (i32, i32, i32) {
    %c0_i32 = arith.constant 0 : i32
    %c0_i32_0 = arith.constant 0 : i32
    %c0_i32_1 = arith.constant 0 : i32
    return %arg0, %c0_i32, %c0_i32_0 : i32, i32, i32
  }
  func.func @transform_3(%arg0: i32) -> (i32, i32, i32) {
    %c0_i32 = arith.constant 0 : i32
    %c0_i32_0 = arith.constant 0 : i32
    %c0_i32_1 = arith.constant 0 : i32
    return %arg0, %c0_i32, %c0_i32_0 : i32, i32, i32
  }
}

</mosaic_0001>

<bundles_post_ra>
// kernel: fpa_forward_pallas.10
= control target key start
LH: loop header
LB: loop body
LE: loop exit
PB: predicated region body
PF: predicated region fallthrough
CT: control target
= control target key end

     0   :  { %s1055_s12 = smov 0   ;;  %s1135_s0 = inlined_call_operand.vmem [shape: f32[2,16,8], index: 0, kind: input, shape index: {}]   ;;  %s1136_s1 = inlined_call_operand.vmem [shape: f32[9,8,8], index: 1, kind: input, shape index: {}]   ;;  %s1137_s2 = inlined_call_operand.vmem [shape: f32[1,8], index: 2, kind: input, shape index: {}]   ;;  %s1138_s3 = inlined_call_operand.vmem [shape: f32[2,6,8], index: 3, kind: output, shape index: {}]  }
   0x1 LB: > { %s923_s13 = sadd.s32 4294967295, %s1031_s12   ;;  %p927_p0 = scmp.ge.s32.totalorder %s1031_s12, 1  ;;  %s1031_s12 = sphi %s1055_s12, %s13_s12  }
   0x2   : > { %p137_p1 = scmp.lt.s32.totalorder %s1031_s12, 3 }
   0x4   : > { %p138_p2 = pnand %p927_p0, %p137_p1 }
   0x5   : > { %p160_p3 = scmp.lt.s32.totalorder (!%p138_p2), %s923_s13, 1 }
   0x6   : > { %141 = sbr.rel (%p138_p2) target bundleno = 230 (0xe6), region = 32 }
   0xb   : > { %v931_v0 = vld [vmem:[%s1136_s1 + $0x8] sm:$0xff]  ;;  %v170_v1 = vld [vmem:[%s1136_s1] sm:$0xff]  ;;  %v1033_v2 = vmov 0.0   ;;  %vm1034_vm0 = vmmov 0   ;;  %s1140_s13 = smov (!%p160_p3, %s923_s13), 1  ;;  %vm174_vm1 = vcmask 64512  }
   0xc   : > { %970 = vmatprep.subr.mxu0 %v1033_v2  ;;  %975 = vmatprep.subr.mxu1 %v1033_v2  ;;  %s951_s18 = sshll.u32 %s1140_s13, 4  ;;  %v934_v3 = vld [vmem:[%s1136_s1 + $0x10] sm:$0xff]  ;;  %v936_v4 = vld [vmem:[%s1136_s1 + $0x18] sm:$0xff]  ;;  %v938_v9 = vld [vmem:[%s1136_s1 + $0x20] sm:$0xff]  ;;  %s930_s9 = sshll.u32 %s1140_s13, 3  ;;  %vm868_vm2 = vcmask 62464  }
   0xd   : > { %971 = vmatpush3.msra.mxu0 %v931_v0  ;;  %972 = vmatprep.mubr.msk.f32.mxu0 %vm1034_vm0, %v1033_v2  ;;  %s1077_s21 = scalar_lea.vmem %s1135_s0, %s951_s18  ;;  %v940_v10 = vld [vmem:[%s1136_s1 + $0x28] sm:$0xff]  ;;  %v942_v13 = vld [vmem:[%s1136_s1 + $0x30] sm:$0xff]  ;;  %v944_v14 = vld [vmem:[%s1136_s1 + $0x38] sm:$0xff]  ;;  %s168_s16 = scalar_lea.vmem %s1138_s3, %s930_s9 }
   0xe   : > { %976 = vmatpush3.msra.mxu1 %v170_v1  ;;  %977 = vmatprep.mubr.msk.f32.mxu1 %vm1034_vm0, %v1033_v2  ;;  %v171_v5 = vld [vmem:[%s1077_s21 + $0x1] sm:$0x3f]  ;;  %v629_v15 = vld [vmem:[%s1077_s21 + $0x8] sm:$0x3f]  ;;  %v948_v43 = vld [vmem:[%s1137_s2] ss:$0 sm:$0xff] }
   0xf   : > { %980 = vmatprep.subr.mxu0 %v1033_v2  ;;  %985 = vmatprep.subr.mxu1 %v1033_v2  ;;  %v169_v6 = vld [vmem:[%s1077_s21] sm:$0x3f]  ;;  %v552_v12 = vld [vmem:[%s1077_s21 + $0x6] sm:$0x3f] }
  0x10   : > { %973 = vmatmul.mubr.msk.f32.vlgmr.msra.gmra.mxu0 %vm174_vm1, %v171_v5  ;;  %978 = vmatmul.mubr.msk.f32.vlgmr.msra.gmra.mxu1 %vm174_vm1, %v169_v6  ;;  %v321_v7 = vld [vmem:[%s1077_s21 + $0x2] sm:$0x3f]  ;;  %v706_v16 = vld [vmem:[%s1077_s21 + $0x9] sm:$0x3f] }
  0x11   : > { %981 = vmatpush3.msra.mxu0 %v934_v3  ;;  %986 = vmatpush3.msra.mxu1 %v936_v4  ;;  %v398_v8 = vld [vmem:[%s1077_s21 + $0x4] sm:$0x3f]  ;;  %v783_v18 = vld [vmem:[%s1077_s21 + $0xa] sm:$0x3f] }
  0x12   : > { %982 = vmatprep.mubr.msk.f32.mxu0 %vm1034_vm0, %v1033_v2  ;;  %987 = vmatprep.mubr.msk.f32.mxu1 %vm1034_vm0, %v1033_v2  ;;  %v475_v11 = vld [vmem:[%s1077_s21 + $0x5] sm:$0x3f] }
  0x13   : > { %990 = vmatprep.subr.mxu0 %v1033_v2  ;;  %995 = vmatprep.subr.mxu1 %v1033_v2  ;;  %v946_v17 = vld [vmem:[%s1136_s1 + $0x40] sm:$0xff] }
  0x14   : > { %983 = vmatmul.mubr.msk.f32.vlgmr.msra.gmra.mxu0 %vm174_vm1, %v321_v7  ;;  %988 = vmatmul.mubr.msk.f32.vlgmr.msra.gmra.mxu1 %vm174_vm1, %v398_v8 }
  0x15   : > { %991 = vmatpush3.msra.mxu0 %v938_v9  ;;  %996 = vmatpush3.msra.mxu1 %v940_v10 }
  0x16   : > { %992 = vmatprep.mubr.msk.f32.mxu0 %vm1034_vm0, %v1033_v2  ;;  %997 = vmatprep.mubr.msk.f32.mxu1 %vm1034_vm0, %v1033_v2 }
  0x17   : > { %1000 = vmatprep.subr.mxu0 %v1033_v2  ;;  %1005 = vmatprep.subr.mxu1 %v1033_v2 }
  0x18   : > { %993 = vmatmul.mubr.msk.f32.vlgmr.msra.gmra.mxu0 %vm174_vm1, %v475_v11  ;;  %998 = vmatmul.mubr.msk.f32.vlgmr.msra.gmra.mxu1 %vm174_vm1, %v552_v12 }
  0x19   : > { %1001 = vmatpush3.msra.mxu0 %v942_v13  ;;  %1006 = vmatpush3.msra.mxu1 %v944_v14 }
  0x1a   : > { %1002 = vmatprep.mubr.msk.f32.mxu0 %vm1034_vm0, %v1033_v2  ;;  %1007 = vmatprep.mubr.msk.f32.mxu1 %vm1034_vm0, %v1033_v2 }
  0x1b   : > { %1010 = vmatprep.subr.mxu0 %v1033_v2 }
  0x1c   : > { %1003 = vmatmul.mubr.msk.f32.vlgmr.msra.gmra.mxu0 %vm174_vm1, %v629_v15  ;;  %1008 = vmatmul.mubr.msk.f32.vlgmr.msra.gmra.mxu1 %vm174_vm1, %v706_v16 }
  0x1d   : > { %1011 = vmatpush3.msra.mxu0 %v946_v17  ;;  %1012 = vmatprep.mubr.msk.f32.mxu0 %vm1034_vm0, %v1033_v2 }
  0x20   : > { %1013 = vmatmul.mubr.msk.f32.vlgmr.msra.gmra.mxu0 %vm174_vm1, %v783_v18 }
  0xd0   : > { %v244_v19 = vpop.f32.mrf.mxu0  ;;  %v317_v20 = vpop.f32.mrf.mxu1 }
  0xd1   : > { %v318_v23 = vadd.f32 %v317_v20, %v244_v19 }
  0xd2   : > { %v974_v21 = vpop.f32.mrf.mxu0  ;;  %v979_v22 = vpop.f32.mrf.mxu1 }
  0xd4   : > { %v393_v24 = vpop.f32.mrf.mxu0  ;;  %v470_v25 = vpop.f32.mrf.mxu1 }
  0xd5   : > { %v397_v26 = vadd.f32 %v393_v24, %v318_v23 }
  0xd6   : > { %v984_v27 = vpop.f32.mrf.mxu0  ;;  %v989_v28 = vpop.f32.mrf.mxu1 }
  0xd7   : > { %v474_v29 = vadd.f32 %v470_v25, %v397_v26 }
  0xd8   : > { %v547_v30 = vpop.f32.mrf.mxu0  ;;  %v624_v31 = vpop.f32.mrf.mxu1 }
  0xd9   : > { %v551_v32 = vadd.f32 %v547_v30, %v474_v29 }
  0xda   : > { %v994_v33 = vpop.f32.mrf.mxu0  ;;  %v999_v34 = vpop.f32.mrf.mxu1 }
  0xdb   : > { %v628_v35 = vadd.f32 %v624_v31, %v551_v32 }
  0xdc   : > { %v701_v36 = vpop.f32.mrf.mxu0  ;;  %v778_v37 = vpop.f32.mrf.mxu1 }
  0xdd   : > { %v705_v38 = vadd.f32 %v701_v36, %v628_v35 }
  0xde   : > { %v1004_v39 = vpop.f32.mrf.mxu0  ;;  %v1009_v40 = vpop.f32.mrf.mxu1 }
  0xdf   : > { %v782_v41 = vadd.f32 %v778_v37, %v705_v38 }
  0xe0   : > { %v855_v42 = vpop.f32.mrf.mxu0 }
  0xe1   : > { %v859_v44 = vadd.f32 %v855_v42, %v782_v41 }
  0xe2   : > { %v1014_v45 = vpop.f32.mrf.mxu0 }
  0xe3   : > { %v867_v46 = vadd.f32 %v948_v43, %v859_v44 }
  0xe5   : > { %869 = vst.msk [vmem:[%s168_s16] sm:$0x3f] %vm868_vm2, %v867_v46 }
  0xe6 PF: > { %s13_s12 = sadd.s32 1, %s1031_s12  }
  0xe7   : > { %p10_p4 = scmp.ge.s32.totalorder %s13_s12, 4  }
  0xe9   :  { %12 = sbr.rel (!%p10_p4) target bundleno = 1 (0x1), region = 70 }

// kernel: fpa_forward_pallas.9
= control target key start
LH: loop header
LB: loop body
LE: loop exit
PB: predicated region body
PF: predicated region fallthrough
CT: control target
= control target key end

     0   :  { %s3410_s12 = smov 0   ;;  %s3749_s0 = inlined_call_operand.vmem [shape: f32[2,64,8], index: 0, kind: input, shape index: {}]   ;;  %s3750_s1 = inlined_call_operand.vmem [shape: f32[25,8,8], index: 1, kind: input, shape index: {}]   ;;  %s3751_s2 = inlined_call_operand.vmem [shape: f32[1,8], index: 2, kind: input, shape index: {}]   ;;  %s3752_s3 = inlined_call_operand.vmem [shape: f32[2,28,8], index: 3, kind: output, shape index: {}]  }
   0x1 LB: > { %s2909_s13 = sadd.s32 4294967295, %s3388_s12   ;;  %p2913_p0 = scmp.ge.s32.totalorder %s3388_s12, 1  ;;  %s3388_s12 = sphi %s3410_s12, %s13_s12  }
   0x2   : > { %p137_p1 = scmp.lt.s32.totalorder %s3388_s12, 3 }
   0x4   : > { %p138_p2 = pnand %p2913_p0, %p137_p1 }
   0x5   : > { %p161_p3 = scmp.lt.s32.totalorder (!%p138_p2), %s2909_s13, 1 }
   0x6   : > { %141 = sbr.rel (%p138_p2) target bundleno = 314 (0x13a), region = 32 }
   0xb   : > { %v2918_v0 = vld [vmem:[%s3750_s1 + $0x8] sm:$0xff]  ;;  %v175_v1 = vld [vmem:[%s3750_s1] sm:$0xff]  ;;  %v2927_v2 = vld [vmem:[%s3750_s1 + $0x10] sm:$0xff]  ;;  %s3754_s13 = smov (!%p161_p3, %s2909_s13), 1  ;;  %vm182_vm0 = vcmask 64512   ;;  %vm2852_vm1 = vcmask 60416  }
   0xc   : > { %3372 = vmatprep.subr.mxu1 %v2918_v0  ;;  %3172 = vmatprep.subr.mxu0 %v2918_v0  ;;  %s3045_s20 = sshll.u32 %s3754_s13, 6  ;;  %v2932_v9 = vld [vmem:[%s3750_s1 + $0x18] sm:$0xff]  ;;  %v2937_v10 = vld [vmem:[%s3750_s1 + $0x20] sm:$0xff]  ;;  %v2942_v15 = vld [vmem:[%s3750_s1 + $0x28] sm:$0xff] }
   0xd   : > { %3373 = vmatpush3.msra.mxu1 %v2918_v0  ;;  %3173 = vmatpush3.msra.mxu0 %v2918_v0  ;;  %s3433_s23 = scalar_lea.vmem %s3749_s0, %s3045_s20  ;;  %v2947_v16 = vld [vmem:[%s3750_s1 + $0x30] sm:$0xff]  ;;  %v2952_v25 = vld [vmem:[%s3750_s1 + $0x38] sm:$0xff]  ;;  %v2957_v26 = vld [vmem:[%s3750_s1 + $0x40] sm:$0xff] }
   0xe   : > { %3180 = vmatprep.subr.mxu1 %v175_v1  ;;  %3188 = vmatprep.subr.mxu0 %v2927_v2  ;;  %v176_v3 = vld [vmem:[%s3433_s23 + $0x1] sm:$0xff]  ;;  %v3437_v4 = vld [vmem:[%s3433_s23 + $0x11] sm:$0xff]  ;;  %v177_v5 = vld [vmem:[%s3433_s23 + $0x9] sm:$0xff] }
   0xf   : > { %3174 = vmatprep.mubr.msk.f32.mxu0 %vm182_vm0, %v176_v3  ;;  %3177 = vmatprep.mubr.msk.f32.mxu1 %vm182_vm0, %v3437_v4  ;;  %v179_v6 = vld [vmem:[%s3433_s23 + $0x19] sm:$0xf]  ;;  %v171_v7 = vld [vmem:[%s3433_s23] sm:$0xff]  ;;  %v172_v11 = vld [vmem:[%s3433_s23 + $0x8] sm:$0xff] }
  0x10   : > { %v377_v8 = vld [vmem:[%s3433_s23 + $0x2] sm:$0xff]  ;;  %3175 = vmatmul.mubr.msk.f32.vlgmr.msra.gmra.mxu0 %vm182_vm0, %v177_v5  ;;  %3178 = vmatmul.mubr.msk.f32.vlgmr.msra.gmra.mxu1 %vm182_vm0, %v179_v6  ;;  %v378_v12 = vld [vmem:[%s3433_s23 + $0xa] sm:$0xff]  ;;  %v3462_v14 = vld [vmem:[%s3433_s23 + $0x12] sm:$0xff] }
  0x11   : > { %3181 = vmatpush3.msra.mxu1 %v175_v1  ;;  %3189 = vmatpush3.msra.mxu0 %v2927_v2  ;;  %v3459_v13 = vld [vmem:[%s3433_s23 + $0x10] sm:$0xff]  ;;  %v174_v17 = vld [vmem:[%s3433_s23 + $0x18] sm:$0xf]  ;;  %v484_v19 = vld [vmem:[%s3433_s23 + $0x3] sm:$0xff] }
  0x12   : > { %3182 = vmatprep.mubr.msk.f32.mxu1 %vm182_vm0, %v171_v7  ;;  %3190 = vmatprep.mubr.msk.f32.mxu0 %vm182_vm0, %v377_v8  ;;  %v380_v18 = vld [vmem:[%s3433_s23 + $0x1a] sm:$0xf]  ;;  %v591_v20 = vld [vmem:[%s3433_s23 + $0x4] sm:$0xff]  ;;  %v592_v22 = vld [vmem:[%s3433_s23 + $0xc] sm:$0xff] }
  0x13   : > { %3196 = vmatprep.subr.mxu1 %v2932_v9  ;;  %3204 = vmatprep.subr.mxu0 %v2937_v10  ;;  %v485_v21 = vld [vmem:[%s3433_s23 + $0xb] sm:$0xff]  ;;  %v3487_v23 = vld [vmem:[%s3433_s23 + $0x13] sm:$0xff]  ;;  %v487_v27 = vld [vmem:[%s3433_s23 + $0x1b] sm:$0xf] }
  0x14   : > { %3183 = vmatmul.mubr.msk.f32.vlgmr.msra.gmra.mxu1 %vm182_vm0, %v172_v11  ;;  %3191 = vmatmul.mubr.msk.f32.vlgmr.msra.gmra.mxu0 %vm182_vm0, %v378_v12  ;;  %v3490_v24 = vld [vmem:[%s3433_s23 + $0x14] sm:$0xff]  ;;  %v594_v28 = vld [vmem:[%s3433_s23 + $0x1c] sm:$0xf]  ;;  %v2962_v31 = vld [vmem:[%s3750_s1 + $0x48] sm:$0xff] }
  0x15   : > { %3197 = vmatpush3.msra.mxu1 %v2932_v9  ;;  %3205 = vmatpush3.msra.mxu0 %v2937_v10  ;;  %v3511_v29 = vld [vmem:[%s3433_s23 + $0x18] sm:$0xff]  ;;  %v2967_v32 = vld [vmem:[%s3750_s1 + $0x50] sm:$0xff]  ;;  %v701_v33 = vld [vmem:[%s3433_s23 + $0x20] sm:$0xf] }
  0x16   : > { %3185 = vmatprep.mubr.msk.f32.mxu1 %vm182_vm0, %v3459_v13  ;;  %3193 = vmatprep.mubr.msk.f32.mxu0 %vm182_vm0, %v3462_v14  ;;  %v3514_v30 = vld [vmem:[%s3433_s23 + $0x19] sm:$0xff]  ;;  %v808_v34 = vld [vmem:[%s3433_s23 + $0x21] sm:$0xf]  ;;  %v2982_v43 = vld [vmem:[%s3750_s1 + $0x68] sm:$0xff] }
  0x17   : > { %3212 = vmatprep.subr.mxu1 %v2942_v15  ;;  %3220 = vmatprep.subr.mxu0 %v2947_v16  ;;  %v3537_v35 = vld [vmem:[%s3433_s23 + $0x1a] sm:$0xff]  ;;  %v915_v39 = vld [vmem:[%s3433_s23 + $0x22] sm:$0xf]  ;;  %v2987_v44 = vld [vmem:[%s3750_s1 + $0x70] sm:$0xff] }
  0x18   : > { %3186 = vmatmul.mubr.msk.f32.gmra.mxu1 %vm182_vm0, %v174_v17  ;;  %3194 = vmatmul.mubr.msk.f32.gmra.mxu0 %vm182_vm0, %v380_v18  ;;  %v3540_v36 = vld [vmem:[%s3433_s23 + $0x1b] sm:$0xff]  ;;  %v1022_v40 = vld [vmem:[%s3433_s23 + $0x23] sm:$0xf]  ;;  %v1236_v46 = vld [vmem:[%s3433_s23 + $0x28] sm:$0xf] }
  0x19   : > { %3198 = vmatprep.mubr.msk.f32.mxu1 %vm182_vm0, %v484_v19  ;;  %3206 = vmatprep.mubr.msk.f32.mxu0 %vm182_vm0, %v591_v20  ;;  %v2972_v37 = vld [vmem:[%s3750_s1 + $0x58] sm:$0xff]  ;;  %v2977_v38 = vld [vmem:[%s3750_s1 + $0x60] sm:$0xff]  ;;  %v1343_v51 = vld [vmem:[%s3433_s23 + $0x29] sm:$0xf] }
  0x1a   : > { %v3564_v41 = vld [vmem:[%s3433_s23 + $0x1c] sm:$0xff]  ;;  %v1129_v45 = vld [vmem:[%s3433_s23 + $0x24] sm:$0xf]  ;;  %v1450_v52 = vld [vmem:[%s3433_s23 + $0x2a] sm:$0xf] }
  0x1b   : > { %v3567_v42 = vld [vmem:[%s3433_s23 + $0x20] sm:$0xff]  ;;  %v2992_v49 = vld [vmem:[%s3750_s1 + $0x78] sm:$0xff]  ;;  %v3002_v55 = vld [vmem:[%s3750_s1 + $0x88] sm:$0xff] }
  0x1c   : > { %3199 = vmatmul.mubr.msk.f32.vlgmr.msra.gmra.mxu1 %vm182_vm0, %v485_v21  ;;  %3207 = vmatmul.mubr.msk.f32.vlgmr.msra.gmra.mxu0 %vm182_vm0, %v592_v22  ;;  %v3592_v47 = vld [vmem:[%s3433_s23 + $0x21] sm:$0xff]  ;;  %v3007_v56 = vld [vmem:[%s3750_s1 + $0x90] sm:$0xff]  ;;  %v1557_v57 = vld [vmem:[%s3433_s23 + $0x2b] sm:$0xf] }
  0x1d   : > { %3213 = vmatpush3.msra.mxu1 %v2942_v15  ;;  %3221 = vmatpush3.msra.mxu0 %v2947_v16  ;;  %v3595_v48 = vld [vmem:[%s3433_s23 + $0x22] sm:$0xff]  ;;  %v1664_v58 = vld [vmem:[%s3433_s23 + $0x2c] sm:$0xf]  ;;  %v3012_v61 = vld [vmem:[%s3750_s1 + $0x98] sm:$0xff] }
  0x1e   : > { %3201 = vmatprep.mubr.msk.f32.mxu1 %vm182_vm0, %v3487_v23  ;;  %3209 = vmatprep.mubr.msk.f32.mxu0 %vm182_vm0, %v3490_v24  ;;  %v2997_v50 = vld [vmem:[%s3750_s1 + $0x80] sm:$0xff]  ;;  %v1770_v59 = vld [vmem:[%s3433_s23 + $0x28] sm:$0xff]  ;;  %v1771_v63 = vld [vmem:[%s3433_s23 + $0x30] sm:$0xf] }
  0x1f   : > { %3228 = vmatprep.subr.mxu1 %v2952_v25  ;;  %3236 = vmatprep.subr.mxu0 %v2957_v26  ;;  %v3620_v53 = vld [vmem:[%s3433_s23 + $0x23] sm:$0xff]  ;;  %v1878_v0 = vld [vmem:[%s3433_s23 + $0x31] sm:$0xf]  ;;  %v3032_v9 = vld [vmem:[%s3750_s1 + $0xb8] sm:$0xff] }
  0x20   : > { %3202 = vmatmul.mubr.msk.f32.gmra.mxu1 %vm182_vm0, %v487_v27  ;;  %3210 = vmatmul.mubr.msk.f32.gmra.mxu0 %vm182_vm0, %v594_v28  ;;  %v3623_v54 = vld [vmem:[%s3433_s23 + $0x24] sm:$0xff]  ;;  %v2092_v6 = vld [vmem:[%s3433_s23 + $0x33] sm:$0xf]  ;;  %v2413_v15 = vld [vmem:[%s3433_s23 + $0x39] sm:$0xf] }
  0x21   : > { %3214 = vmatprep.mubr.msk.f32.mxu1 %vm182_vm0, %v172_v11  ;;  %3222 = vmatprep.mubr.msk.f32.mxu0 %vm182_vm0, %v177_v5  ;;  %v1877_v60 = vld [vmem:[%s3433_s23 + $0x29] sm:$0xff]  ;;  %v3017_v62 = vld [vmem:[%s3750_s1 + $0xa0] sm:$0xff]  ;;  %v1985_v5 = vld [vmem:[%s3433_s23 + $0x32] sm:$0xf] }
  0x22   : > { %v1984_v1 = vld [vmem:[%s3433_s23 + $0x2a] sm:$0xff]  ;;  %v3037_v10 = vld [vmem:[%s3750_s1 + $0xc0] sm:$0xff]  ;;  %v2199_v11 = vld [vmem:[%s3433_s23 + $0x34] sm:$0xf] }
  0x23   : > { %v2091_v2 = vld [vmem:[%s3433_s23 + $0x2b] sm:$0xff]  ;;  %v2520_v16 = vld [vmem:[%s3433_s23 + $0x3a] sm:$0xf] }
  0x24   : > { %3215 = vmatmul.mubr.msk.f32.vlgmr.msra.gmra.mxu1 %vm182_vm0, %v3459_v13  ;;  %3223 = vmatmul.mubr.msk.f32.vlgmr.msra.gmra.mxu0 %vm182_vm0, %v3437_v4  ;;  %v3022_v3 = vld [vmem:[%s3750_s1 + $0xa8] sm:$0xff]  ;;  %v2305_v8 = vld [vmem:[%s3433_s23 + $0x30] sm:$0xff]  ;;  %v2627_v19 = vld [vmem:[%s3433_s23 + $0x3b] sm:$0xf] }
  0x25   : > { %3229 = vmatpush3.msra.mxu1 %v2952_v25  ;;  %3237 = vmatpush3.msra.mxu0 %v2957_v26  ;;  %v2198_v7 = vld [vmem:[%s3433_s23 + $0x2c] sm:$0xff]  ;;  %v2733_v18 = vld [vmem:[%s3433_s23 + $0x34] sm:$0xff]  ;;  %v2734_v20 = vld [vmem:[%s3433_s23 + $0x3c] sm:$0xf] }
  0x26   : > { %3217 = vmatprep.mubr.msk.f32.mxu1 %vm182_vm0, %v3511_v29  ;;  %3225 = vmatprep.mubr.msk.f32.mxu0 %vm182_vm0, %v3514_v30  ;;  %v2626_v17 = vld [vmem:[%s3433_s23 + $0x33] sm:$0xff] }
  0x27   : > { %3244 = vmatprep.subr.mxu1 %v2962_v31  ;;  %3252 = vmatprep.subr.mxu0 %v2967_v32 }
  0x28   : > { %3218 = vmatmul.mubr.msk.f32.gmra.mxu1 %vm182_vm0, %v701_v33  ;;  %3226 = vmatmul.mubr.msk.f32.gmra.mxu0 %vm182_vm0, %v808_v34 }
  0x29   : > { %3230 = vmatprep.mubr.msk.f32.mxu1 %vm182_vm0, %v378_v12  ;;  %3238 = vmatprep.mubr.msk.f32.mxu0 %vm182_vm0, %v485_v21  ;;  %v2306_v12 = vld [vmem:[%s3433_s23 + $0x38] sm:$0xf] }
  0x2c   : > { %3231 = vmatmul.mubr.msk.f32.vlgmr.msra.gmra.mxu1 %vm182_vm0, %v3462_v14  ;;  %3239 = vmatmul.mubr.msk.f32.vlgmr.msra.gmra.mxu0 %vm182_vm0, %v3487_v23 }
  0x2d   : > { %3245 = vmatpush3.msra.mxu1 %v2962_v31  ;;  %3253 = vmatpush3.msra.mxu0 %v2967_v32 }
  0x2e   : > { %3233 = vmatprep.mubr.msk.f32.mxu1 %vm182_vm0, %v3537_v35  ;;  %3241 = vmatprep.mubr.msk.f32.mxu0 %vm182_vm0, %v3540_v36 }
  0x2f   : > { %3260 = vmatprep.subr.mxu1 %v2972_v37  ;;  %3268 = vmatprep.subr.mxu0 %v2977_v38 }
  0x30   : > { %3234 = vmatmul.mubr.msk.f32.gmra.mxu1 %vm182_vm0, %v915_v39  ;;  %3242 = vmatmul.mubr.msk.f32.gmra.mxu0 %vm182_vm0, %v1022_v40 }
  0x31   : > { %3246 = vmatprep.mubr.msk.f32.mxu1 %vm182_vm0, %v592_v22  ;;  %3254 = vmatprep.mubr.msk.f32.mxu0 %vm182_vm0, %v3459_v13  ;;  %v2412_v13 = vld [vmem:[%s3433_s23 + $0x31] sm:$0xff] }
  0x34   : > { %3247 = vmatmul.mubr.msk.f32.vlgmr.msra.gmra.mxu1 %vm182_vm0, %v3490_v24  ;;  %3255 = vmatmul.mubr.msk.f32.vlgmr.msra.gmra.mxu0 %vm182_vm0, %v3511_v29 }
  0x35   : > { %3261 = vmatpush3.msra.mxu1 %v2972_v37  ;;  %3269 = vmatpush3.msra.mxu0 %v2977_v38 }
  0x36   : > { %3249 = vmatprep.mubr.msk.f32.mxu1 %vm182_vm0, %v3564_v41  ;;  %3257 = vmatprep.mubr.msk.f32.mxu0 %vm182_vm0, %v3567_v42 }
  0x37   : > { %3276 = vmatprep.subr.mxu1 %v2982_v43  ;;  %3284 = vmatprep.subr.mxu0 %v2987_v44 }
  0x38   : > { %3250 = vmatmul.mubr.msk.f32.gmra.mxu1 %vm182_vm0, %v1129_v45  ;;  %3258 = vmatmul.mubr.msk.f32.gmra.mxu0 %vm182_vm0, %v1236_v46 }
  0x39   : > { %3262 = vmatprep.mubr.msk.f32.mxu1 %vm182_vm0, %v3437_v4  ;;  %3270 = vmatprep.mubr.msk.f32.mxu0 %vm182_vm0, %v3462_v14  ;;  %v3027_v4 = vld [vmem:[%s3750_s1 + $0xb0] sm:$0xff] }
  0x3a   : > { %v2519_v14 = vld [vmem:[%s3433_s23 + $0x32] sm:$0xff]  ;;  %s3046_s23 = sshll.u32 %s3754_s13, 5 }
  0x3b   : > { %s170_s24 = scalar_lea.vmem %s3752_s3, %s3046_s23 }
  0x3c   : > { %3263 = vmatmul.mubr.msk.f32.vlgmr.msra.gmra.mxu1 %vm182_vm0, %v3514_v30  ;;  %3271 = vmatmul.mubr.msk.f32.vlgmr.msra.gmra.mxu0 %vm182_vm0, %v3537_v35 }
  0x3d   : > { %3277 = vmatpush3.msra.mxu1 %v2982_v43  ;;  %3285 = vmatpush3.msra.mxu0 %v2987_v44 }
  0x3e   : > { %3265 = vmatprep.mubr.msk.f32.mxu1 %vm182_vm0, %v3592_v47  ;;  %3273 = vmatprep.mubr.msk.f32.mxu0 %vm182_vm0, %v3595_v48 }
  0x3f   : > { %3292 = vmatprep.subr.mxu1 %v2992_v49  ;;  %3300 = vmatprep.subr.mxu0 %v2997_v50 }
  0x40   : > { %3266 = vmatmul.mubr.msk.f32.gmra.mxu1 %vm182_vm0, %v1343_v51  ;;  %3274 = vmatmul.mubr.msk.f32.gmra.mxu0 %vm182_vm0, %v1450_v52 }
  0x41   : > { %3278 = vmatprep.mubr.msk.f32.mxu1 %vm182_vm0, %v3487_v23  ;;  %3286 = vmatprep.mubr.msk.f32.mxu0 %vm182_vm0, %v3490_v24 }
  0x44   : > { %3279 = vmatmul.mubr.msk.f32.vlgmr.msra.gmra.mxu1 %vm182_vm0, %v3540_v36  ;;  %3287 = vmatmul.mubr.msk.f32.vlgmr.msra.gmra.mxu0 %vm182_vm0, %v3564_v41 }
  0x45   : > { %3293 = vmatpush3.msra.mxu1 %v2992_v49  ;;  %3301 = vmatpush3.msra.mxu0 %v2997_v50 }
  0x46   : > { %3281 = vmatprep.mubr.msk.f32.mxu1 %vm182_vm0, %v3620_v53  ;;  %3289 = vmatprep.mubr.msk.f32.mxu0 %vm182_vm0, %v3623_v54 }
  0x47   : > { %3308 = vmatprep.subr.mxu1 %v3002_v55  ;;  %3316 = vmatprep.subr.mxu0 %v3007_v56 }
  0x48   : > { %3282 = vmatmul.mubr.msk.f32.gmra.mxu1 %vm182_vm0, %v1557_v57  ;;  %3290 = vmatmul.mubr.msk.f32.gmra.mxu0 %vm182_vm0, %v1664_v58 }
  0x49   : > { %3294 = vmatprep.mubr.msk.f32.mxu1 %vm182_vm0, %v3511_v29  ;;  %3302 = vmatprep.mubr.msk.f32.mxu0 %vm182_vm0, %v3514_v30 }
  0x4c   : > { %3295 = vmatmul.mubr.msk.f32.vlgmr.msra.gmra.mxu1 %vm182_vm0, %v3567_v42  ;;  %3303 = vmatmul.mubr.msk.f32.vlgmr.msra.gmra.mxu0 %vm182_vm0, %v3592_v47 }
  0x4d   : > { %3309 = vmatpush3.msra.mxu1 %v3002_v55  ;;  %3317 = vmatpush3.msra.mxu0 %v3007_v56 }
  0x4e   : > { %3297 = vmatprep.mubr.msk.f32.mxu1 %vm182_vm0, %v1770_v59  ;;  %3305 = vmatprep.mubr.msk.f32.mxu0 %vm182_vm0, %v1877_v60 }
  0x4f   : > { %3324 = vmatprep.subr.mxu1 %v3012_v61  ;;  %3332 = vmatprep.subr.mxu0 %v3017_v62 }
  0x50   : > { %3298 = vmatmul.mubr.msk.f32.gmra.mxu1 %vm182_vm0, %v1771_v63  ;;  %3306 = vmatmul.mubr.msk.f32.gmra.mxu0 %vm182_vm0, %v1878_v0 }
  0x51   : > { %3310 = vmatprep.mubr.msk.f32.mxu1 %vm182_vm0, %v3537_v35  ;;  %3318 = vmatprep.mubr.msk.f32.mxu0 %vm182_vm0, %v3540_v36 }
  0x54   : > { %3311 = vmatmul.mubr.msk.f32.vlgmr.msra.gmra.mxu1 %vm182_vm0, %v3595_v48  ;;  %3319 = vmatmul.mubr.msk.f32.vlgmr.msra.gmra.mxu0 %vm182_vm0, %v3620_v53 }
  0x55   : > { %3325 = vmatpush3.msra.mxu1 %v3012_v61  ;;  %3333 = vmatpush3.msra.mxu0 %v3017_v62 }
  0x56   : > { %3313 = vmatprep.mubr.msk.f32.mxu1 %vm182_vm0, %v1984_v1  ;;  %3321 = vmatprep.mubr.msk.f32.mxu0 %vm182_vm0, %v2091_v2 }
  0x57   : > { %3340 = vmatprep.subr.mxu1 %v3022_v3  ;;  %3348 = vmatprep.subr.mxu0 %v3027_v4 }
  0x58   : > { %3314 = vmatmul.mubr.msk.f32.gmra.mxu1 %vm182_vm0, %v1985_v5  ;;  %3322 = vmatmul.mubr.msk.f32.gmra.mxu0 %vm182_vm0, %v2092_v6 }
  0x59   : > { %3326 = vmatprep.mubr.msk.f32.mxu1 %vm182_vm0, %v3564_v41  ;;  %3334 = vmatprep.mubr.msk.f32.mxu0 %vm182_vm0, %v3567_v42 }
  0x5c   : > { %3327 = vmatmul.mubr.msk.f32.vlgmr.msra.gmra.mxu1 %vm182_vm0, %v3623_v54  ;;  %3335 = vmatmul.mubr.msk.f32.vlgmr.msra.gmra.mxu0 %vm182_vm0, %v1770_v59 }
  0x5d   : > { %3341 = vmatpush3.msra.mxu1 %v3022_v3  ;;  %3349 = vmatpush3.msra.mxu0 %v3027_v4 }
  0x5e   : > { %3329 = vmatprep.mubr.msk.f32.mxu1 %vm182_vm0, %v2198_v7  ;;  %3337 = vmatprep.mubr.msk.f32.mxu0 %vm182_vm0, %v2305_v8 }
  0x5f   : > { %3356 = vmatprep.subr.mxu1 %v3032_v9  ;;  %3364 = vmatprep.subr.mxu0 %v3037_v10 }
  0x60   : > { %3330 = vmatmul.mubr.msk.f32.gmra.mxu1 %vm182_vm0, %v2199_v11  ;;  %3338 = vmatmul.mubr.msk.f32.gmra.mxu0 %vm182_vm0, %v2306_v12 }
  0x61   : > { %3342 = vmatprep.mubr.msk.f32.mxu1 %vm182_vm0, %v3592_v47  ;;  %3350 = vmatprep.mubr.msk.f32.mxu0 %vm182_vm0, %v3595_v48 }
  0x64   : > { %3343 = vmatmul.mubr.msk.f32.vlgmr.msra.gmra.mxu1 %vm182_vm0, %v1877_v60  ;;  %3351 = vmatmul.mubr.msk.f32.vlgmr.msra.gmra.mxu0 %vm182_vm0, %v1984_v1 }
  0x65   : > { %3357 = vmatpush3.msra.mxu1 %v3032_v9  ;;  %3365 = vmatpush3.msra.mxu0 %v3037_v10 }
  0x66   : > { %3345 = vmatprep.mubr.msk.f32.mxu1 %vm182_vm0, %v2412_v13  ;;  %3353 = vmatprep.mubr.msk.f32.mxu0 %vm182_vm0, %v2519_v14 }
  0x68   : > { %3346 = vmatmul.mubr.msk.f32.gmra.mxu1 %vm182_vm0, %v2413_v15  ;;  %3354 = vmatmul.mubr.msk.f32.gmra.mxu0 %vm182_vm0, %v2520_v16 }
  0x69   : > { %3358 = vmatprep.mubr.msk.f32.mxu1 %vm182_vm0, %v3620_v53  ;;  %3366 = vmatprep.mubr.msk.f32.mxu0 %vm182_vm0, %v3623_v54 }
  0x6c   : > { %3359 = vmatmul.mubr.msk.f32.vlgmr.msra.gmra.mxu1 %vm182_vm0, %v2091_v2  ;;  %3367 = vmatmul.mubr.msk.f32.vlgmr.msra.gmra.mxu0 %vm182_vm0, %v2198_v7 }
  0x6d   : > { %3361 = vmatprep.mubr.msk.f32.mxu1 %vm182_vm0, %v2626_v17  ;;  %3369 = vmatprep.mubr.msk.f32.mxu0 %vm182_vm0, %v2733_v18 }
  0x70   : > { %3362 = vmatmul.mubr.msk.f32.gmra.mxu1 %vm182_vm0, %v2627_v19  ;;  %3370 = vmatmul.mubr.msk.f32.gmra.mxu0 %vm182_vm0, %v2734_v20 }
  0xd0   : > { %v3176_v21 = vpop.f32.mrf.mxu0  ;;  %v3179_v22 = vpop.f32.mrf.mxu1 }
  0xd2   : > { %v261_v23 = vpop.f32.mrf.mxu0  ;;  %v271_v24 = vpop.f32.mrf.mxu1 }
  0xd4   : > { %v3184_v25 = vpop.f32.mrf.mxu1  ;;  %v3192_v26 = vpop.f32.mrf.mxu0 }
  0xd5   : > { %v364_v49 = vadd.f32 %v3184_v25, %v3176_v21 }
  0xd6   : > { %v358_v27 = vpop.f32.mrf.mxu1  ;;  %v461_v28 = vpop.f32.mrf.mxu0 }
  0xd7   : > { %v359_v52 = vadd.f32 %v358_v27, %v261_v23  ;;  %v481_v55 = vadd.f32 %v3192_v26, %v364_v49 }
  0xd8   : > { %v3187_v29 = vpop.f32.mrf.mxu1  ;;  %v3195_v30 = vpop.f32.mrf.mxu0 }
  0xd9   : > { %v374_v56 = vadd.f32 %v3187_v29, %v3179_v22  ;;  %v480_v59 = vadd.f32 %v461_v28, %v359_v52 }
  0xda   : > { %v368_v31 = vpop.f32.mrf.mxu1  ;;  %v471_v32 = vpop.f32.mrf.mxu0 }
  0xdb   : > { %v369_v60 = vadd.f32 %v368_v31, %v271_v24  ;;  %v483_v0 = vadd.f32 %v3195_v30, %v374_v56 }
  0xdc   : > { %v3200_v33 = vpop.f32.mrf.mxu1  ;;  %v3208_v34 = vpop.f32.mrf.mxu0 }
  0xdd   : > { %v588_v61 = vadd.f32 %v3200_v33, %v481_v55  ;;  %v482_v4 = vadd.f32 %v471_v32, %v369_v60 }
  0xde   : > { %v568_v35 = vpop.f32.mrf.mxu1  ;;  %v675_v36 = vpop.f32.mrf.mxu0 }
  0xdf   : > { %v587_v1 = vadd.f32 %v568_v35, %v480_v59  ;;  %v695_v5 = vadd.f32 %v3208_v34, %v588_v61 }
  0xe0   : > { %v3203_v37 = vpop.f32.mrf.mxu1  ;;  %v3211_v38 = vpop.f32.mrf.mxu0 }
  0xe1   : > { %v590_v6 = vadd.f32 %v3203_v37, %v483_v0  ;;  %v694_v9 = vadd.f32 %v675_v36, %v587_v1 }
  0xe2   : > { %v578_v39 = vpop.f32.mrf.mxu1  ;;  %v685_v40 = vpop.f32.mrf.mxu0 }
  0xe3   : > { %v589_v10 = vadd.f32 %v578_v39, %v482_v4  ;;  %v697_v14 = vadd.f32 %v3211_v38, %v590_v6 }
  0xe4   : > { %v3216_v41 = vpop.f32.mrf.mxu1  ;;  %v3224_v42 = vpop.f32.mrf.mxu0 }
  0xe5   : > { %v802_v11 = vadd.f32 %v3216_v41, %v695_v5  ;;  %v696_v18 = vadd.f32 %v685_v40, %v589_v10 }
  0xe6   : > { %v782_v43 = vpop.f32.mrf.mxu1  ;;  %v889_v44 = vpop.f32.mrf.mxu0 }
  0xe7   : > { %v801_v15 = vadd.f32 %v782_v43, %v694_v9  ;;  %v909_v19 = vadd.f32 %v3224_v42, %v802_v11 }
  0xe8   : > { %v3219_v45 = vpop.f32.mrf.mxu1  ;;  %v3227_v46 = vpop.f32.mrf.mxu0 }
  0xe9   : > { %v804_v20 = vadd.f32 %v3219_v45, %v697_v14  ;;  %v908_v23 = vadd.f32 %v889_v44, %v801_v15 }
  0xea   : > { %v792_v47 = vpop.f32.mrf.mxu1  ;;  %v899_v48 = vpop.f32.mrf.mxu0 }
  0xeb   : > { %v803_v24 = vadd.f32 %v792_v47, %v696_v18  ;;  %v911_v28 = vadd.f32 %v3227_v46, %v804_v20 }
  0xec   : > { %v3232_v50 = vpop.f32.mrf.mxu1  ;;  %v3240_v51 = vpop.f32.mrf.mxu0 }
  0xed   : > { %v1016_v25 = vadd.f32 %v3232_v50, %v909_v19  ;;  %v910_v32 = vadd.f32 %v899_v48, %v803_v24 }
  0xee   : > { %v996_v53 = vpop.f32.mrf.mxu1  ;;  %v1103_v54 = vpop.f32.mrf.mxu0 }
  0xef   : > { %v1015_v29 = vadd.f32 %v996_v53, %v908_v23  ;;  %v1123_v33 = vadd.f32 %v3240_v51, %v1016_v25 }
  0xf0   : > { %v3235_v57 = vpop.f32.mrf.mxu1  ;;  %v3243_v58 = vpop.f32.mrf.mxu0 }
  0xf1   : > { %v1018_v34 = vadd.f32 %v3235_v57, %v911_v28  ;;  %v1122_v37 = vadd.f32 %v1103_v54, %v1015_v29 }
  0xf2   : > { %v1006_v62 = vpop.f32.mrf.mxu1  ;;  %v1113_v63 = vpop.f32.mrf.mxu0 }
  0xf3   : > { %v1017_v38 = vadd.f32 %v1006_v62, %v910_v32  ;;  %v1125_v42 = vadd.f32 %v3243_v58, %v1018_v34 }
  0xf4   : > { %v3248_v2 = vpop.f32.mrf.mxu1  ;;  %v3256_v3 = vpop.f32.mrf.mxu0 }
  0xf5   : > { %v1230_v39 = vadd.f32 %v3248_v2, %v1123_v33  ;;  %v1124_v47 = vadd.f32 %v1113_v63, %v1017_v38 }
  0xf6   : > { %v1210_v7 = vpop.f32.mrf.mxu1  ;;  %v1317_v8 = vpop.f32.mrf.mxu0 }
  0xf7   : > { %v1229_v43 = vadd.f32 %v1210_v7, %v1122_v37  ;;  %v1337_v49 = vadd.f32 %v3256_v3, %v1230_v39 }
  0xf8   : > { %v3251_v12 = vpop.f32.mrf.mxu1  ;;  %v3259_v13 = vpop.f32.mrf.mxu0 }
  0xf9   : > { %v1232_v46 = vadd.f32 %v3251_v12, %v1125_v42  ;;  %v1336_v53 = vadd.f32 %v1317_v8, %v1229_v43 }
  0xfa   : > { %v1220_v16 = vpop.f32.mrf.mxu1  ;;  %v1327_v17 = vpop.f32.mrf.mxu0 }
  0xfb   : > { %v1231_v48 = vadd.f32 %v1220_v16, %v1124_v47  ;;  %v1339_v57 = vadd.f32 %v3259_v13, %v1232_v46 }
  0xfc   : > { %v3264_v21 = vpop.f32.mrf.mxu1  ;;  %v3272_v22 = vpop.f32.mrf.mxu0 }
  0xfd   : > { %v1444_v51 = vadd.f32 %v3264_v21, %v1337_v49  ;;  %v1338_v61 = vadd.f32 %v1327_v17, %v1231_v48 }
  0xfe   : > { %v1424_v26 = vpop.f32.mrf.mxu1  ;;  %v1531_v27 = vpop.f32.mrf.mxu0 }
  0xff   : > { %v1443_v54 = vadd.f32 %v1424_v26, %v1336_v53  ;;  %v1551_v62 = vadd.f32 %v3272_v22, %v1444_v51 }
 0x100   : > { %v3267_v30 = vpop.f32.mrf.mxu1  ;;  %v3275_v31 = vpop.f32.mrf.mxu0 }
 0x101   : > { %v1446_v58 = vadd.f32 %v3267_v30, %v1339_v57  ;;  %v1550_v2 = vadd.f32 %v1531_v27, %v1443_v54 }
 0x102   : > { %v1434_v35 = vpop.f32.mrf.mxu1  ;;  %v1541_v36 = vpop.f32.mrf.mxu0 }
 0x103   : > { %v1445_v63 = vadd.f32 %v1434_v35, %v1338_v61  ;;  %v1553_v6 = vadd.f32 %v3275_v31, %v1446_v58 }
 0x104   : > { %v3280_v40 = vpop.f32.mrf.mxu1  ;;  %v3288_v41 = vpop.f32.mrf.mxu0 }
 0x105   : > { %v1658_v3 = vadd.f32 %v3280_v40, %v1551_v62  ;;  %v1552_v10 = vadd.f32 %v1541_v36, %v1445_v63 }
 0x106   : > { %v1638_v44 = vpop.f32.mrf.mxu1  ;;  %v1745_v45 = vpop.f32.mrf.mxu0 }
 0x107   : > { %v1657_v7 = vadd.f32 %v1638_v44, %v1550_v2  ;;  %v1765_v11 = vadd.f32 %v3288_v41, %v1658_v3 }
 0x108   : > { %v3283_v50 = vpop.f32.mrf.mxu1  ;;  %v3291_v52 = vpop.f32.mrf.mxu0 }
 0x109   : > { %v1660_v12 = vadd.f32 %v3283_v50, %v1553_v6  ;;  %v1764_v15 = vadd.f32 %v1745_v45, %v1657_v7 }
 0x10a   : > { %v1648_v55 = vpop.f32.mrf.mxu1  ;;  %v1755_v56 = vpop.f32.mrf.mxu0 }
 0x10b   : > { %v1659_v16 = vadd.f32 %v1648_v55, %v1552_v10  ;;  %v1767_v20 = vadd.f32 %v3291_v52, %v1660_v12  ;;  %v3042_v10 = vld [vmem:[%s3751_s2] ss:$0 sm:$0xff] }
 0x10c   : > { %v3296_v59 = vpop.f32.mrf.mxu1  ;;  %v3304_v60 = vpop.f32.mrf.mxu0 }
 0x10d   : > { %v1872_v17 = vadd.f32 %v3296_v59, %v1765_v11  ;;  %v1766_v24 = vadd.f32 %v1755_v56, %v1659_v16 }
 0x10e   : > { %v1852_v0 = vpop.f32.mrf.mxu1  ;;  %v1959_v1 = vpop.f32.mrf.mxu0 }
 0x10f   : > { %v1871_v21 = vadd.f32 %v1852_v0, %v1764_v15  ;;  %v1979_v25 = vadd.f32 %v3304_v60, %v1872_v17 }
 0x110   : > { %v3299_v4 = vpop.f32.mrf.mxu1  ;;  %v3307_v5 = vpop.f32.mrf.mxu0 }
 0x111   : > { %v1874_v26 = vadd.f32 %v3299_v4, %v1767_v20  ;;  %v1978_v29 = vadd.f32 %v1959_v1, %v1871_v21 }
 0x112   : > { %v1862_v8 = vpop.f32.mrf.mxu1  ;;  %v1969_v9 = vpop.f32.mrf.mxu0 }
 0x113   : > { %v1873_v30 = vadd.f32 %v1862_v8, %v1766_v24  ;;  %v1981_v34 = vadd.f32 %v3307_v5, %v1874_v26 }
 0x114   : > { %v3312_v13 = vpop.f32.mrf.mxu1  ;;  %v3320_v14 = vpop.f32.mrf.mxu0 }
 0x115   : > { %v2086_v31 = vadd.f32 %v3312_v13, %v1979_v25  ;;  %v1980_v38 = vadd.f32 %v1969_v9, %v1873_v30 }
 0x116   : > { %v2066_v18 = vpop.f32.mrf.mxu1  ;;  %v2173_v19 = vpop.f32.mrf.mxu0 }
 0x117   : > { %v2085_v35 = vadd.f32 %v2066_v18, %v1978_v29  ;;  %v2193_v39 = vadd.f32 %v3320_v14, %v2086_v31 }
 0x118   : > { %v3315_v22 = vpop.f32.mrf.mxu1  ;;  %v3323_v23 = vpop.f32.mrf.mxu0 }
 0x119   : > { %v2088_v40 = vadd.f32 %v3315_v22, %v1981_v34  ;;  %v2192_v43 = vadd.f32 %v2173_v19, %v2085_v35 }
 0x11a   : > { %v2076_v27 = vpop.f32.mrf.mxu1  ;;  %v2183_v28 = vpop.f32.mrf.mxu0 }
 0x11b   : > { %v2087_v44 = vadd.f32 %v2076_v27, %v1980_v38  ;;  %v2195_v46 = vadd.f32 %v3323_v23, %v2088_v40 }
 0x11c   : > { %v3328_v32 = vpop.f32.mrf.mxu1  ;;  %v3336_v33 = vpop.f32.mrf.mxu0 }
 0x11d   : > { %v2300_v45 = vadd.f32 %v3328_v32, %v2193_v39  ;;  %v2194_v48 = vadd.f32 %v2183_v28, %v2087_v44 }
 0x11e   : > { %v2280_v36 = vpop.f32.mrf.mxu1  ;;  %v2387_v37 = vpop.f32.mrf.mxu0 }
 0x11f   : > { %v2299_v50 = vadd.f32 %v2280_v36, %v2192_v43  ;;  %v2407_v51 = vadd.f32 %v3336_v33, %v2300_v45 }
 0x120   : > { %v3331_v41 = vpop.f32.mrf.mxu1  ;;  %v3339_v42 = vpop.f32.mrf.mxu0 }
 0x121   : > { %v2302_v55 = vadd.f32 %v3331_v41, %v2195_v46  ;;  %v2406_v54 = vadd.f32 %v2387_v37, %v2299_v50 }
 0x122   : > { %v2290_v47 = vpop.f32.mrf.mxu1  ;;  %v2397_v49 = vpop.f32.mrf.mxu0 }
 0x123   : > { %v2301_v59 = vadd.f32 %v2290_v47, %v2194_v48  ;;  %v2409_v58 = vadd.f32 %v3339_v42, %v2302_v55 }
 0x124   : > { %v3344_v52 = vpop.f32.mrf.mxu1  ;;  %v3352_v53 = vpop.f32.mrf.mxu0 }
 0x125   : > { %v2514_v60 = vadd.f32 %v3344_v52, %v2407_v51  ;;  %v2408_v63 = vadd.f32 %v2397_v49, %v2301_v59 }
 0x126   : > { %v2494_v56 = vpop.f32.mrf.mxu1  ;;  %v2601_v57 = vpop.f32.mrf.mxu0 }
 0x127   : > { %v2513_v0 = vadd.f32 %v2494_v56, %v2406_v54  ;;  %v2621_v3 = vadd.f32 %v3352_v53, %v2514_v60 }
 0x128   : > { %v3347_v61 = vpop.f32.mrf.mxu1  ;;  %v3355_v62 = vpop.f32.mrf.mxu0 }
 0x129   : > { %v2516_v4 = vadd.f32 %v3347_v61, %v2409_v58  ;;  %v2620_v7 = vadd.f32 %v2601_v57, %v2513_v0 }
 0x12a   : > { %v2504_v1 = vpop.f32.mrf.mxu1  ;;  %v2611_v2 = vpop.f32.mrf.mxu0 }
 0x12b   : > { %v2515_v8 = vadd.f32 %v2504_v1, %v2408_v63  ;;  %v2623_v13 = vadd.f32 %v3355_v62, %v2516_v4 }
 0x12c   : > { %v3360_v5 = vpop.f32.mrf.mxu1  ;;  %v3368_v6 = vpop.f32.mrf.mxu0 }
 0x12d   : > { %v2728_v9 = vadd.f32 %v3360_v5, %v2621_v3  ;;  %v2622_v18 = vadd.f32 %v2611_v2, %v2515_v8 }
 0x12e   : > { %v2708_v11 = vpop.f32.mrf.mxu1  ;;  %v2815_v12 = vpop.f32.mrf.mxu0 }
 0x12f   : > { %v2835_v14 = vadd.f32 %v3368_v6, %v2728_v9  ;;  %v2727_v15 = vadd.f32 %v2708_v11, %v2620_v7 }
 0x130   : > { %v3363_v16 = vpop.f32.mrf.mxu1  ;;  %v3371_v17 = vpop.f32.mrf.mxu0 }
 0x131   : > { %v2846_v19 = vadd.f32 %v3042_v10, %v2835_v14  ;;  %v2834_v20 = vadd.f32 %v2815_v12, %v2727_v15  ;;  %v2730_v21 = vadd.f32 %v3363_v16, %v2623_v13 }
 0x132   : > { %v2718_v22 = vpop.f32.mrf.mxu1  ;;  %v2825_v26 = vpop.f32.mrf.mxu0 }
 0x133   : > { %2850 = vst.msk [vmem:[%s170_s24 + $0x8] sm:$0xff] %vm182_vm0, %v2846_v19  ;;  %v2845_v23 = vadd.f32 %v3042_v10, %v2834_v20  ;;  %v2837_v24 = vadd.f32 %v3371_v17, %v2730_v21  ;;  %v2729_v25 = vadd.f32 %v2718_v22, %v2622_v18 }
 0x135   : > { %2849 = vst.msk [vmem:[%s170_s24] sm:$0xff] %vm182_vm0, %v2845_v23  ;;  %v2848_v27 = vadd.f32 %v3042_v10, %v2837_v24  ;;  %v2836_v28 = vadd.f32 %v2825_v26, %v2729_v25 }
 0x137   : > { %2853 = vst.msk [vmem:[%s170_s24 + $0x18] sm:$0xf] %vm2852_vm1, %v2848_v27  ;;  %v2847_v29 = vadd.f32 %v3042_v10, %v2836_v28 }
 0x139   : > { %2851 = vst.msk [vmem:[%s170_s24 + $0x10] sm:$0xff] %vm182_vm0, %v2847_v29 }
 0x13a PF: > { %s13_s12 = sadd.s32 1, %s3388_s12  }
 0x13b   : > { %p10_p4 = scmp.ge.s32.totalorder %s13_s12, 4  }
 0x13d   :  { %12 = sbr.rel (!%p10_p4) target bundleno = 1 (0x1), region = 86 }

// kernel: fpa_forward_pallas.11
= control target key start
LH: loop header
LB: loop body
LE: loop exit
PB: predicated region body
PF: predicated region fallthrough
CT: control target
= control target key end

     0   :  { %s787_s12 = smov 0   ;;  %s983_s0 = inlined_call_operand.vmem [shape: f32[2,256,8], index: 0, kind: input, shape index: {}]   ;;  %s984_s1 = inlined_call_operand.vmem [shape: f32[1,8,8], index: 1, kind: input, shape index: {}]   ;;  %s985_s2 = inlined_call_operand.vmem [shape: f32[1,8], index: 2, kind: input, shape index: {}]   ;;  %s986_s3 = inlined_call_operand.vmem [shape: f32[2,256,8], index: 3, kind: output, shape index: {}]  }
   0x1 LB: > { %s620_s13 = sadd.s32 4294967295, %s765_s12   ;;  %p624_p0 = scmp.ge.s32.totalorder %s765_s12, 1  ;;  %s765_s12 = sphi %s787_s12, %s13_s12  }
   0x2   : > { %p137_p1 = scmp.lt.s32.totalorder %s765_s12, 3 }
   0x4   : > { %p138_p2 = pnand %p624_p0, %p137_p1 }
   0x5   : > { %p161_p3 = scmp.lt.s32.totalorder (!%p138_p2), %s620_s13, 1 }
   0x6   : > { %141 = sbr.rel (%p138_p2) target bundleno = 243 (0xf3), region = 32 }
   0xb   : > { %v203_v0 = vld [vmem:[%s984_s1] sm:$0xff]  ;;  %s988_s13 = smov (!%p161_p3, %s620_s13), 1  ;;  %vm211_vm0 = vcmask 64512  }
   0xc   : > { %699 = vmatprep.subr.mxu0 %v203_v0  ;;  %749 = vmatprep.subr.mxu1 %v203_v0  ;;  %s664_s16 = sshll.u32 %s988_s13, 8  ;;  %v875_v33 = vld [vmem:[%s985_s2] ss:$0 sm:$0xff] }
   0xd   : > { %700 = vmatpush3.msra.mxu0 %v203_v0  ;;  %750 = vmatpush3.msra.mxu1 %v203_v0  ;;  %s806_s19 = scalar_lea.vmem %s983_s0, %s664_s16  ;;  %s882_s24 = scalar_lea.vmem %s986_s3, %s664_s16 }
   0xe   : > { %v171_v1 = vld [vmem:[%s806_s19] sm:$0xff]  ;;  %v172_v3 = vld [vmem:[%s806_s19 + $0x8] sm:$0xff]  ;;  %v173_v5 = vld [vmem:[%s806_s19 + $0x10] sm:$0xff] }
   0xf   : > { %v187_v2 = vld [vmem:[%s806_s19 + $0x80] sm:$0xff]  ;;  %701 = vmatprep.mubr.msk.f32.mxu0 %vm211_vm0, %v171_v1  ;;  %v188_v4 = vld [vmem:[%s806_s19 + $0x88] sm:$0xff]  ;;  %v189_v6 = vld [vmem:[%s806_s19 + $0x90] sm:$0xff] }
  0x10   : > { %725 = vmatprep.mubr.msk.f32.mxu1 %vm211_vm0, %v187_v2  ;;  %702 = vmatmul.mubr.msk.f32.vlgmr.msra.gmra.mxu0 %vm211_vm0, %v172_v3  ;;  %v174_v7 = vld [vmem:[%s806_s19 + $0x18] sm:$0xff]  ;;  %v175_v9 = vld [vmem:[%s806_s19 + $0x20] sm:$0xff]  ;;  %v176_v11 = vld [vmem:[%s806_s19 + $0x28] sm:$0xff] }
  0x11   : > { %726 = vmatmul.mubr.msk.f32.vlgmr.msra.gmra.mxu1 %vm211_vm0, %v188_v4  ;;  %704 = vmatprep.mubr.msk.f32.mxu0 %vm211_vm0, %v173_v5  ;;  %v190_v8 = vld [vmem:[%s806_s19 + $0x98] sm:$0xff]  ;;  %v191_v10 = vld [vmem:[%s806_s19 + $0xa0] sm:$0xff]  ;;  %v192_v12 = vld [vmem:[%s806_s19 + $0xa8] sm:$0xff] }
  0x12   : > { %728 = vmatprep.mubr.msk.f32.mxu1 %vm211_vm0, %v189_v6  ;;  %v177_v13 = vld [vmem:[%s806_s19 + $0x30] sm:$0xff]  ;;  %v178_v15 = vld [vmem:[%s806_s19 + $0x38] sm:$0xff]  ;;  %v179_v17 = vld [vmem:[%s806_s19 + $0x40] sm:$0xff] }
  0x13   : > { %v193_v14 = vld [vmem:[%s806_s19 + $0xb0] sm:$0xff]  ;;  %v194_v16 = vld [vmem:[%s806_s19 + $0xb8] sm:$0xff]  ;;  %v195_v18 = vld [vmem:[%s806_s19 + $0xc0] sm:$0xff] }
  0x14   : > { %705 = vmatmul.mubr.msk.f32.gmra.mxu0 %vm211_vm0, %v174_v7  ;;  %v180_v19 = vld [vmem:[%s806_s19 + $0x48] sm:$0xff]  ;;  %v181_v21 = vld [vmem:[%s806_s19 + $0x50] sm:$0xff]  ;;  %v182_v23 = vld [vmem:[%s806_s19 + $0x58] sm:$0xff] }
  0x15   : > { %729 = vmatmul.mubr.msk.f32.gmra.mxu1 %vm211_vm0, %v190_v8  ;;  %707 = vmatprep.mubr.msk.f32.mxu0 %vm211_vm0, %v175_v9  ;;  %v196_v20 = vld [vmem:[%s806_s19 + $0xc8] sm:$0xff]  ;;  %v197_v22 = vld [vmem:[%s806_s19 + $0xd0] sm:$0xff]  ;;  %v198_v24 = vld [vmem:[%s806_s19 + $0xd8] sm:$0xff] }
  0x16   : > { %731 = vmatprep.mubr.msk.f32.mxu1 %vm211_vm0, %v191_v10  ;;  %v183_v25 = vld [vmem:[%s806_s19 + $0x60] sm:$0xff]  ;;  %v184_v27 = vld [vmem:[%s806_s19 + $0x68] sm:$0xff]  ;;  %v185_v29 = vld [vmem:[%s806_s19 + $0x70] sm:$0xff] }
  0x17   : > { %v199_v26 = vld [vmem:[%s806_s19 + $0xe0] sm:$0xff]  ;;  %v200_v28 = vld [vmem:[%s806_s19 + $0xe8] sm:$0xff]  ;;  %v201_v30 = vld [vmem:[%s806_s19 + $0xf0] sm:$0xff] }
  0x18   : > { %708 = vmatmul.mubr.msk.f32.gmra.mxu0 %vm211_vm0, %v176_v11  ;;  %v186_v31 = vld [vmem:[%s806_s19 + $0x78] sm:$0xff] }
  0x19   : > { %732 = vmatmul.mubr.msk.f32.gmra.mxu1 %vm211_vm0, %v192_v12  ;;  %710 = vmatprep.mubr.msk.f32.mxu0 %vm211_vm0, %v177_v13  ;;  %v202_v32 = vld [vmem:[%s806_s19 + $0xf8] sm:$0xff] }
  0x1a   : > { %734 = vmatprep.mubr.msk.f32.mxu1 %vm211_vm0, %v193_v14 }
  0x1c   : > { %711 = vmatmul.mubr.msk.f32.gmra.mxu0 %vm211_vm0, %v178_v15 }
  0x1d   : > { %735 = vmatmul.mubr.msk.f32.gmra.mxu1 %vm211_vm0, %v194_v16  ;;  %713 = vmatprep.mubr.msk.f32.mxu0 %vm211_vm0, %v179_v17 }
  0x1e   : > { %737 = vmatprep.mubr.msk.f32.mxu1 %vm211_vm0, %v195_v18 }
  0x20   : > { %714 = vmatmul.mubr.msk.f32.gmra.mxu0 %vm211_vm0, %v180_v19 }
  0x21   : > { %738 = vmatmul.mubr.msk.f32.gmra.mxu1 %vm211_vm0, %v196_v20  ;;  %716 = vmatprep.mubr.msk.f32.mxu0 %vm211_vm0, %v181_v21 }
  0x22   : > { %740 = vmatprep.mubr.msk.f32.mxu1 %vm211_vm0, %v197_v22 }
  0x24   : > { %717 = vmatmul.mubr.msk.f32.gmra.mxu0 %vm211_vm0, %v182_v23 }
  0x25   : > { %741 = vmatmul.mubr.msk.f32.gmra.mxu1 %vm211_vm0, %v198_v24  ;;  %719 = vmatprep.mubr.msk.f32.mxu0 %vm211_vm0, %v183_v25 }
  0x26   : > { %743 = vmatprep.mubr.msk.f32.mxu1 %vm211_vm0, %v199_v26 }
  0x28   : > { %720 = vmatmul.mubr.msk.f32.gmra.mxu0 %vm211_vm0, %v184_v27 }
  0x29   : > { %744 = vmatmul.mubr.msk.f32.gmra.mxu1 %vm211_vm0, %v200_v28  ;;  %722 = vmatprep.mubr.msk.f32.mxu0 %vm211_vm0, %v185_v29 }
  0x2a   : > { %746 = vmatprep.mubr.msk.f32.mxu1 %vm211_vm0, %v201_v30 }
  0x2c   : > { %723 = vmatmul.mubr.msk.f32.gmra.mxu0 %vm211_vm0, %v186_v31 }
  0x2d   : > { %747 = vmatmul.mubr.msk.f32.gmra.mxu1 %vm211_vm0, %v202_v32 }
  0xd0   : > { %v703_v34 = vpop.f32.mrf.mxu0 }
  0xd1   : > { %v727_v35 = vpop.f32.mrf.mxu1  ;;  %v380_v36 = vadd.f32 %v703_v34, %v875_v33 }
  0xd2   : > { %v460_v37 = vadd.f32 %v727_v35, %v875_v33  ;;  %v374_v38 = vpop.f32.mrf.mxu0 }
  0xd3   : > { %v454_v39 = vpop.f32.mrf.mxu1  ;;  %534 = vst.msk [vmem:[%s882_s24 + $0x8] sm:$0xff] %vm211_vm0, %v380_v36  ;;  %v375_v40 = vadd.f32 %v875_v33, %v374_v38 }
  0xd4   : > { %550 = vst.msk [vmem:[%s882_s24 + $0x88] sm:$0xff] %vm211_vm0, %v460_v37  ;;  %v455_v41 = vadd.f32 %v875_v33, %v454_v39  ;;  %v706_v42 = vpop.f32.mrf.mxu0 }
  0xd5   : > { %v730_v43 = vpop.f32.mrf.mxu1  ;;  %533 = vst.msk [vmem:[%s882_s24] sm:$0xff] %vm211_vm0, %v375_v40  ;;  %v390_v44 = vadd.f32 %v706_v42, %v875_v33 }
  0xd6   : > { %549 = vst.msk [vmem:[%s882_s24 + $0x80] sm:$0xff] %vm211_vm0, %v455_v41  ;;  %v470_v45 = vadd.f32 %v730_v43, %v875_v33  ;;  %v384_v46 = vpop.f32.mrf.mxu0 }
  0xd7   : > { %v464_v47 = vpop.f32.mrf.mxu1  ;;  %536 = vst.msk [vmem:[%s882_s24 + $0x18] sm:$0xff] %vm211_vm0, %v390_v44  ;;  %v385_v48 = vadd.f32 %v875_v33, %v384_v46 }
  0xd8   : > { %552 = vst.msk [vmem:[%s882_s24 + $0x98] sm:$0xff] %vm211_vm0, %v470_v45  ;;  %v465_v49 = vadd.f32 %v875_v33, %v464_v47  ;;  %v709_v50 = vpop.f32.mrf.mxu0 }
  0xd9   : > { %v733_v51 = vpop.f32.mrf.mxu1  ;;  %535 = vst.msk [vmem:[%s882_s24 + $0x10] sm:$0xff] %vm211_vm0, %v385_v48  ;;  %v400_v52 = vadd.f32 %v709_v50, %v875_v33 }
  0xda   : > { %551 = vst.msk [vmem:[%s882_s24 + $0x90] sm:$0xff] %vm211_vm0, %v465_v49  ;;  %v480_v53 = vadd.f32 %v733_v51, %v875_v33  ;;  %v394_v54 = vpop.f32.mrf.mxu0 }
  0xdb   : > { %v474_v55 = vpop.f32.mrf.mxu1  ;;  %538 = vst.msk [vmem:[%s882_s24 + $0x28] sm:$0xff] %vm211_vm0, %v400_v52  ;;  %v395_v56 = vadd.f32 %v875_v33, %v394_v54 }
  0xdc   : > { %554 = vst.msk [vmem:[%s882_s24 + $0xa8] sm:$0xff] %vm211_vm0, %v480_v53  ;;  %v475_v57 = vadd.f32 %v875_v33, %v474_v55  ;;  %v712_v58 = vpop.f32.mrf.mxu0 }
  0xdd   : > { %v736_v59 = vpop.f32.mrf.mxu1  ;;  %537 = vst.msk [vmem:[%s882_s24 + $0x20] sm:$0xff] %vm211_vm0, %v395_v56  ;;  %v410_v60 = vadd.f32 %v712_v58, %v875_v33 }
  0xde   : > { %553 = vst.msk [vmem:[%s882_s24 + $0xa0] sm:$0xff] %vm211_vm0, %v475_v57  ;;  %v490_v61 = vadd.f32 %v736_v59, %v875_v33  ;;  %v404_v62 = vpop.f32.mrf.mxu0 }
  0xdf   : > { %v484_v63 = vpop.f32.mrf.mxu1  ;;  %540 = vst.msk [vmem:[%s882_s24 + $0x38] sm:$0xff] %vm211_vm0, %v410_v60  ;;  %v405_v0 = vadd.f32 %v875_v33, %v404_v62 }
  0xe0   : > { %556 = vst.msk [vmem:[%s882_s24 + $0xb8] sm:$0xff] %vm211_vm0, %v490_v61  ;;  %v485_v1 = vadd.f32 %v875_v33, %v484_v63  ;;  %v715_v2 = vpop.f32.mrf.mxu0 }
  0xe1   : > { %v739_v3 = vpop.f32.mrf.mxu1  ;;  %539 = vst.msk [vmem:[%s882_s24 + $0x30] sm:$0xff] %vm211_vm0, %v405_v0  ;;  %v420_v4 = vadd.f32 %v715_v2, %v875_v33 }
  0xe2   : > { %555 = vst.msk [vmem:[%s882_s24 + $0xb0] sm:$0xff] %vm211_vm0, %v485_v1  ;;  %v500_v5 = vadd.f32 %v739_v3, %v875_v33  ;;  %v414_v6 = vpop.f32.mrf.mxu0 }
  0xe3   : > { %v494_v7 = vpop.f32.mrf.mxu1  ;;  %542 = vst.msk [vmem:[%s882_s24 + $0x48] sm:$0xff] %vm211_vm0, %v420_v4  ;;  %v415_v8 = vadd.f32 %v875_v33, %v414_v6 }
  0xe4   : > { %558 = vst.msk [vmem:[%s882_s24 + $0xc8] sm:$0xff] %vm211_vm0, %v500_v5  ;;  %v495_v9 = vadd.f32 %v875_v33, %v494_v7  ;;  %v718_v10 = vpop.f32.mrf.mxu0 }
  0xe5   : > { %v742_v11 = vpop.f32.mrf.mxu1  ;;  %541 = vst.msk [vmem:[%s882_s24 + $0x40] sm:$0xff] %vm211_vm0, %v415_v8  ;;  %v430_v12 = vadd.f32 %v718_v10, %v875_v33 }
  0xe6   : > { %557 = vst.msk [vmem:[%s882_s24 + $0xc0] sm:$0xff] %vm211_vm0, %v495_v9  ;;  %v510_v13 = vadd.f32 %v742_v11, %v875_v33  ;;  %v424_v14 = vpop.f32.mrf.mxu0 }
  0xe7   : > { %v504_v15 = vpop.f32.mrf.mxu1  ;;  %544 = vst.msk [vmem:[%s882_s24 + $0x58] sm:$0xff] %vm211_vm0, %v430_v12  ;;  %v425_v16 = vadd.f32 %v875_v33, %v424_v14 }
  0xe8   : > { %560 = vst.msk [vmem:[%s882_s24 + $0xd8] sm:$0xff] %vm211_vm0, %v510_v13  ;;  %v505_v17 = vadd.f32 %v875_v33, %v504_v15  ;;  %v721_v18 = vpop.f32.mrf.mxu0 }
  0xe9   : > { %v745_v19 = vpop.f32.mrf.mxu1  ;;  %543 = vst.msk [vmem:[%s882_s24 + $0x50] sm:$0xff] %vm211_vm0, %v425_v16  ;;  %v440_v20 = vadd.f32 %v721_v18, %v875_v33 }
  0xea   : > { %559 = vst.msk [vmem:[%s882_s24 + $0xd0] sm:$0xff] %vm211_vm0, %v505_v17  ;;  %v520_v21 = vadd.f32 %v745_v19, %v875_v33  ;;  %v434_v22 = vpop.f32.mrf.mxu0 }
  0xeb   : > { %v514_v23 = vpop.f32.mrf.mxu1  ;;  %546 = vst.msk [vmem:[%s882_s24 + $0x68] sm:$0xff] %vm211_vm0, %v440_v20  ;;  %v435_v24 = vadd.f32 %v875_v33, %v434_v22 }
  0xec   : > { %562 = vst.msk [vmem:[%s882_s24 + $0xe8] sm:$0xff] %vm211_vm0, %v520_v21  ;;  %v515_v25 = vadd.f32 %v875_v33, %v514_v23  ;;  %v724_v26 = vpop.f32.mrf.mxu0 }
  0xed   : > { %v748_v27 = vpop.f32.mrf.mxu1  ;;  %545 = vst.msk [vmem:[%s882_s24 + $0x60] sm:$0xff] %vm211_vm0, %v435_v24  ;;  %v450_v28 = vadd.f32 %v724_v26, %v875_v33 }
  0xee   : > { %561 = vst.msk [vmem:[%s882_s24 + $0xe0] sm:$0xff] %vm211_vm0, %v515_v25  ;;  %v530_v29 = vadd.f32 %v748_v27, %v875_v33  ;;  %v444_v30 = vpop.f32.mrf.mxu0 }
  0xef   : > { %v524_v31 = vpop.f32.mrf.mxu1  ;;  %548 = vst.msk [vmem:[%s882_s24 + $0x78] sm:$0xff] %vm211_vm0, %v450_v28  ;;  %v445_v32 = vadd.f32 %v875_v33, %v444_v30 }
  0xf0   : > { %564 = vst.msk [vmem:[%s882_s24 + $0xf8] sm:$0xff] %vm211_vm0, %v530_v29  ;;  %v525_v34 = vadd.f32 %v875_v33, %v524_v31 }
  0xf1   : > { %547 = vst.msk [vmem:[%s882_s24 + $0x70] sm:$0xff] %vm211_vm0, %v445_v32 }
  0xf2   : > { %563 = vst.msk [vmem:[%s882_s24 + $0xf0] sm:$0xff] %vm211_vm0, %v525_v34 }
  0xf3 PF: > { %s13_s12 = sadd.s32 1, %s765_s12  }
  0xf4   : > { %p10_p4 = scmp.ge.s32.totalorder %s13_s12, 4  }
  0xf6   :  { %12 = sbr.rel (!%p10_p4) target bundleno = 1 (0x1), region = 62 }

// kernel: fpa_forward_pallas.15
= control target key start
LH: loop header
LB: loop body
LE: loop exit
PB: predicated region body
PF: predicated region fallthrough
CT: control target
= control target key end

     0   :  { %s502_s12 = smov 0   ;;  %s693_s0 = inlined_call_operand.vmem [shape: f32[2,256,8], index: 0, kind: input, shape index: {}]   ;;  %s694_s1 = inlined_call_operand.vmem [shape: f32[2,256,8], index: 1, kind: input, shape index: {}]   ;;  %s695_s2 = inlined_call_operand.vmem [shape: f32[2,1,8], index: 2, kind: input, shape index: {}]   ;;  %s696_s3 = inlined_call_operand.vmem [shape: f32[2,256,8], index: 3, kind: output, shape index: {}]  }
   0x1 LB: > { %s449_s13 = sadd.s32 4294967295, %s480_s12   ;;  %p453_p0 = scmp.ge.s32.totalorder %s480_s12, 1  ;;  %s480_s12 = sphi %s502_s12, %s13_s12  }
   0x2   : > { %p155_p1 = scmp.lt.s32.totalorder %s480_s12, 3 }
   0x4   : > { %p156_p2 = pnand %p453_p0, %p155_p1 }
   0x5   : > { %p187_p3 = scmp.lt.s32.totalorder (!%p156_p2), %s449_s13, 1 }
   0x6   : > { %159 = sbr.rel (%p156_p2) target bundleno = 43 (0x2b), region = 32 }
   0xb   : > { %s698_s13 = smov (!%p187_p3, %s449_s13), 1  ;;  %vm340_vm0 = vcmask 64512  }
   0xc   : > { %s463_s14 = sshll.u32 %s698_s13, 8  ;;  %s199_s17 = scalar_lea.vmem %s695_s2, %s698_s13 }
   0xd   : > { %s516_s20 = scalar_lea.vmem %s693_s0, %s463_s14  ;;  %s521_s23 = scalar_lea.vmem %s694_s1, %s463_s14  ;;  %v523_v0 = vld [vmem:[%s199_s17] ss:$0 sm:$0xff] }
   0xe   : > { %v205_v1 = vld [vmem:[%s516_s20] sm:$0xff]  ;;  %v206_v3 = vld [vmem:[%s516_s20 + $0x8] sm:$0xff]  ;;  %v207_v6 = vld [vmem:[%s516_s20 + $0x10] sm:$0xff]  ;;  %s534_s26 = scalar_lea.vmem %s696_s3, %s463_s14 }
   0xf   : > { %v237_v2 = vld [vmem:[%s521_s23] sm:$0xff]  ;;  %v238_v5 = vld [vmem:[%s521_s23 + $0x8] sm:$0xff]  ;;  %v239_v7 = vld [vmem:[%s521_s23 + $0x10] sm:$0xff] }
  0x10   : > { %v270_v4 = vmul.f32 %v237_v2, %v205_v1  ;;  %v271_v8 = vmul.f32 %v238_v5, %v206_v3  ;;  %v272_v9 = vmul.f32 %v239_v7, %v207_v6  ;;  %v208_v10 = vld [vmem:[%s516_s20 + $0x18] sm:$0xff]  ;;  %v209_v12 = vld [vmem:[%s516_s20 + $0x20] sm:$0xff]  ;;  %v210_v16 = vld [vmem:[%s516_s20 + $0x28] sm:$0xff] }
  0x11   : > { %v240_v11 = vld [vmem:[%s521_s23 + $0x18] sm:$0xff]  ;;  %v241_v15 = vld [vmem:[%s521_s23 + $0x20] sm:$0xff]  ;;  %v242_v17 = vld [vmem:[%s521_s23 + $0x28] sm:$0xff] }
  0x12   : > { %v308_v13 = vadd.f32 %v523_v0, %v270_v4  ;;  %v273_v14 = vmul.f32 %v240_v11, %v208_v10  ;;  %v309_v18 = vadd.f32 %v523_v0, %v271_v8  ;;  %v310_v19 = vadd.f32 %v523_v0, %v272_v9  ;;  %v211_v22 = vld [vmem:[%s516_s20 + $0x30] sm:$0xff]  ;;  %v212_v24 = vld [vmem:[%s516_s20 + $0x38] sm:$0xff]  ;;  %v213_v28 = vld [vmem:[%s516_s20 + $0x40] sm:$0xff] }
  0x13   : > { %v274_v20 = vmul.f32 %v241_v15, %v209_v12  ;;  %v275_v21 = vmul.f32 %v242_v17, %v210_v16  ;;  %v243_v23 = vld [vmem:[%s521_s23 + $0x30] sm:$0xff]  ;;  %v244_v27 = vld [vmem:[%s521_s23 + $0x38] sm:$0xff]  ;;  %v245_v29 = vld [vmem:[%s521_s23 + $0x40] sm:$0xff] }
  0x14   : > { %341 = vst.msk [vmem:[%s534_s26] sm:$0xff] %vm340_vm0, %v308_v13  ;;  %v311_v25 = vadd.f32 %v523_v0, %v273_v14  ;;  %v276_v26 = vmul.f32 %v243_v23, %v211_v22  ;;  %342 = vst.msk [vmem:[%s534_s26 + $0x8] sm:$0xff] %vm340_vm0, %v309_v18  ;;  %v277_v32 = vmul.f32 %v244_v27, %v212_v24  ;;  %v214_v34 = vld [vmem:[%s516_s20 + $0x48] sm:$0xff]  ;;  %v215_v36 = vld [vmem:[%s516_s20 + $0x50] sm:$0xff] }
  0x15   : > { %343 = vst.msk [vmem:[%s534_s26 + $0x10] sm:$0xff] %vm340_vm0, %v310_v19  ;;  %v312_v30 = vadd.f32 %v523_v0, %v274_v20  ;;  %v313_v31 = vadd.f32 %v523_v0, %v275_v21  ;;  %v278_v33 = vmul.f32 %v245_v29, %v213_v28  ;;  %v246_v35 = vld [vmem:[%s521_s23 + $0x48] sm:$0xff]  ;;  %v247_v39 = vld [vmem:[%s521_s23 + $0x50] sm:$0xff]  ;;  %v216_v40 = vld [vmem:[%s516_s20 + $0x58] sm:$0xff] }
  0x16   : > { %344 = vst.msk [vmem:[%s534_s26 + $0x18] sm:$0xff] %vm340_vm0, %v311_v25  ;;  %v314_v37 = vadd.f32 %v523_v0, %v276_v26  ;;  %v279_v38 = vmul.f32 %v246_v35, %v214_v34  ;;  %v248_v41 = vld [vmem:[%s521_s23 + $0x58] sm:$0xff]  ;;  %v315_v42 = vadd.f32 %v523_v0, %v277_v32  ;;  %v280_v44 = vmul.f32 %v247_v39, %v215_v36  ;;  %v217_v46 = vld [vmem:[%s516_s20 + $0x60] sm:$0xff]  ;;  %v218_v48 = vld [vmem:[%s516_s20 + $0x68] sm:$0xff] }
  0x17   : > { %345 = vst.msk [vmem:[%s534_s26 + $0x20] sm:$0xff] %vm340_vm0, %v312_v30  ;;  %346 = vst.msk [vmem:[%s534_s26 + $0x28] sm:$0xff] %vm340_vm0, %v313_v31  ;;  %v316_v43 = vadd.f32 %v523_v0, %v278_v33  ;;  %v281_v45 = vmul.f32 %v248_v41, %v216_v40  ;;  %v249_v47 = vld [vmem:[%s521_s23 + $0x60] sm:$0xff]  ;;  %v250_v51 = vld [vmem:[%s521_s23 + $0x68] sm:$0xff] }
  0x18   : > { %347 = vst.msk [vmem:[%s534_s26 + $0x30] sm:$0xff] %vm340_vm0, %v314_v37  ;;  %v317_v49 = vadd.f32 %v523_v0, %v279_v38  ;;  %v282_v50 = vmul.f32 %v249_v47, %v217_v46  ;;  %v219_v52 = vld [vmem:[%s516_s20 + $0x70] sm:$0xff]  ;;  %348 = vst.msk [vmem:[%s534_s26 + $0x38] sm:$0xff] %vm340_vm0, %v315_v42  ;;  %v318_v54 = vadd.f32 %v523_v0, %v280_v44  ;;  %v220_v58 = vld [vmem:[%s516_s20 + $0x78] sm:$0xff] }
  0x19   : > { %v251_v53 = vld [vmem:[%s521_s23 + $0x70] sm:$0xff]  ;;  %349 = vst.msk [vmem:[%s534_s26 + $0x40] sm:$0xff] %vm340_vm0, %v316_v43  ;;  %v319_v55 = vadd.f32 %v523_v0, %v281_v45  ;;  %v283_v56 = vmul.f32 %v250_v51, %v218_v48  ;;  %v252_v59 = vld [vmem:[%s521_s23 + $0x78] sm:$0xff]  ;;  %v221_v60 = vld [vmem:[%s516_s20 + $0x80] sm:$0xff] }
  0x1a   : > { %v284_v57 = vmul.f32 %v251_v53, %v219_v52  ;;  %350 = vst.msk [vmem:[%s534_s26 + $0x48] sm:$0xff] %vm340_vm0, %v317_v49  ;;  %v320_v61 = vadd.f32 %v523_v0, %v282_v50  ;;  %v285_v62 = vmul.f32 %v252_v59, %v220_v58  ;;  %v253_v63 = vld [vmem:[%s521_s23 + $0x80] sm:$0xff]  ;;  %v222_v1 = vld [vmem:[%s516_s20 + $0x88] sm:$0xff]  ;;  %351 = vst.msk [vmem:[%s534_s26 + $0x50] sm:$0xff] %vm340_vm0, %v318_v54 }
  0x1b   : > { %v254_v2 = vld [vmem:[%s521_s23 + $0x88] sm:$0xff]  ;;  %352 = vst.msk [vmem:[%s534_s26 + $0x58] sm:$0xff] %vm340_vm0, %v319_v55  ;;  %v321_v3 = vadd.f32 %v523_v0, %v283_v56  ;;  %v286_v5 = vmul.f32 %v253_v63, %v221_v60  ;;  %v223_v7 = vld [vmem:[%s516_s20 + $0x90] sm:$0xff]  ;;  %v224_v9 = vld [vmem:[%s516_s20 + $0x98] sm:$0xff] }
  0x1c   : > { %v322_v4 = vadd.f32 %v523_v0, %v284_v57  ;;  %v287_v6 = vmul.f32 %v254_v2, %v222_v1  ;;  %v255_v8 = vld [vmem:[%s521_s23 + $0x90] sm:$0xff]  ;;  %353 = vst.msk [vmem:[%s534_s26 + $0x60] sm:$0xff] %vm340_vm0, %v320_v61  ;;  %v323_v10 = vadd.f32 %v523_v0, %v285_v62  ;;  %v256_v12 = vld [vmem:[%s521_s23 + $0x98] sm:$0xff]  ;;  %v225_v13 = vld [vmem:[%s516_s20 + $0xa0] sm:$0xff] }
  0x1d   : > { %v288_v11 = vmul.f32 %v255_v8, %v223_v7  ;;  %v257_v14 = vld [vmem:[%s521_s23 + $0xa0] sm:$0xff]  ;;  %354 = vst.msk [vmem:[%s534_s26 + $0x68] sm:$0xff] %vm340_vm0, %v321_v3  ;;  %v324_v15 = vadd.f32 %v523_v0, %v286_v5  ;;  %v289_v17 = vmul.f32 %v256_v12, %v224_v9  ;;  %v226_v19 = vld [vmem:[%s516_s20 + $0xa8] sm:$0xff]  ;;  %v227_v21 = vld [vmem:[%s516_s20 + $0xb0] sm:$0xff] }
  0x1e   : > { %355 = vst.msk [vmem:[%s534_s26 + $0x70] sm:$0xff] %vm340_vm0, %v322_v4  ;;  %v325_v16 = vadd.f32 %v523_v0, %v287_v6  ;;  %v290_v18 = vmul.f32 %v257_v14, %v225_v13  ;;  %v258_v20 = vld [vmem:[%s521_s23 + $0xa8] sm:$0xff]  ;;  %356 = vst.msk [vmem:[%s534_s26 + $0x78] sm:$0xff] %vm340_vm0, %v323_v10  ;;  %v259_v24 = vld [vmem:[%s521_s23 + $0xb0] sm:$0xff] }
  0x1f   : > { %v326_v22 = vadd.f32 %v523_v0, %v288_v11  ;;  %v291_v23 = vmul.f32 %v258_v20, %v226_v19  ;;  %v228_v25 = vld [vmem:[%s516_s20 + $0xb8] sm:$0xff]  ;;  %357 = vst.msk [vmem:[%s534_s26 + $0x80] sm:$0xff] %vm340_vm0, %v324_v15  ;;  %v327_v27 = vadd.f32 %v523_v0, %v289_v17  ;;  %v292_v29 = vmul.f32 %v259_v24, %v227_v21  ;;  %v229_v31 = vld [vmem:[%s516_s20 + $0xc0] sm:$0xff]  ;;  %v230_v33 = vld [vmem:[%s516_s20 + $0xc8] sm:$0xff] }
  0x20   : > { %v260_v26 = vld [vmem:[%s521_s23 + $0xb8] sm:$0xff]  ;;  %358 = vst.msk [vmem:[%s534_s26 + $0x88] sm:$0xff] %vm340_vm0, %v325_v16  ;;  %v328_v28 = vadd.f32 %v523_v0, %v290_v18  ;;  %v261_v32 = vld [vmem:[%s521_s23 + $0xc0] sm:$0xff]  ;;  %v262_v36 = vld [vmem:[%s521_s23 + $0xc8] sm:$0xff] }
  0x21   : > { %v293_v30 = vmul.f32 %v260_v26, %v228_v25  ;;  %359 = vst.msk [vmem:[%s534_s26 + $0x90] sm:$0xff] %vm340_vm0, %v326_v22  ;;  %v329_v34 = vadd.f32 %v523_v0, %v291_v23  ;;  %v294_v35 = vmul.f32 %v261_v32, %v229_v31  ;;  %v231_v37 = vld [vmem:[%s516_s20 + $0xd0] sm:$0xff]  ;;  %360 = vst.msk [vmem:[%s534_s26 + $0x98] sm:$0xff] %vm340_vm0, %v327_v27  ;;  %v232_v43 = vld [vmem:[%s516_s20 + $0xd8] sm:$0xff] }
  0x22   : > { %v263_v38 = vld [vmem:[%s521_s23 + $0xd0] sm:$0xff]  ;;  %361 = vst.msk [vmem:[%s534_s26 + $0xa0] sm:$0xff] %vm340_vm0, %v328_v28  ;;  %v330_v39 = vadd.f32 %v523_v0, %v292_v29  ;;  %v295_v41 = vmul.f32 %v262_v36, %v230_v33  ;;  %v264_v44 = vld [vmem:[%s521_s23 + $0xd8] sm:$0xff]  ;;  %v233_v45 = vld [vmem:[%s516_s20 + $0xe0] sm:$0xff] }
  0x23   : > { %v331_v40 = vadd.f32 %v523_v0, %v293_v30  ;;  %v296_v42 = vmul.f32 %v263_v38, %v231_v37  ;;  %362 = vst.msk [vmem:[%s534_s26 + $0xa8] sm:$0xff] %vm340_vm0, %v329_v34  ;;  %v332_v46 = vadd.f32 %v523_v0, %v294_v35  ;;  %v297_v47 = vmul.f32 %v264_v44, %v232_v43  ;;  %v265_v48 = vld [vmem:[%s521_s23 + $0xe0] sm:$0xff]  ;;  %v234_v49 = vld [vmem:[%s516_s20 + $0xe8] sm:$0xff]  ;;  %v235_v55 = vld [vmem:[%s516_s20 + $0xf0] sm:$0xff] }
  0x24   : > { %v266_v50 = vld [vmem:[%s521_s23 + $0xe8] sm:$0xff]  ;;  %363 = vst.msk [vmem:[%s534_s26 + $0xb0] sm:$0xff] %vm340_vm0, %v330_v39  ;;  %v333_v51 = vadd.f32 %v523_v0, %v295_v41  ;;  %v298_v53 = vmul.f32 %v265_v48, %v233_v45  ;;  %v267_v56 = vld [vmem:[%s521_s23 + $0xf0] sm:$0xff]  ;;  %v236_v57 = vld [vmem:[%s516_s20 + $0xf8] sm:$0xff] }
  0x25   : > { %364 = vst.msk [vmem:[%s534_s26 + $0xb8] sm:$0xff] %vm340_vm0, %v331_v40  ;;  %v334_v52 = vadd.f32 %v523_v0, %v296_v42  ;;  %v299_v54 = vmul.f32 %v266_v50, %v234_v49  ;;  %365 = vst.msk [vmem:[%s534_s26 + $0xc0] sm:$0xff] %vm340_vm0, %v332_v46  ;;  %v335_v58 = vadd.f32 %v523_v0, %v297_v47  ;;  %v268_v60 = vld [vmem:[%s521_s23 + $0xf8] sm:$0xff] }
  0x26   : > { %v300_v59 = vmul.f32 %v267_v56, %v235_v55  ;;  %366 = vst.msk [vmem:[%s534_s26 + $0xc8] sm:$0xff] %vm340_vm0, %v333_v51  ;;  %v336_v61 = vadd.f32 %v523_v0, %v298_v53  ;;  %v301_v63 = vmul.f32 %v268_v60, %v236_v57 }
  0x27   : > { %367 = vst.msk [vmem:[%s534_s26 + $0xd0] sm:$0xff] %vm340_vm0, %v334_v52  ;;  %v337_v62 = vadd.f32 %v523_v0, %v299_v54  ;;  %368 = vst.msk [vmem:[%s534_s26 + $0xd8] sm:$0xff] %vm340_vm0, %v335_v58 }
  0x28   : > { %v338_v1 = vadd.f32 %v523_v0, %v300_v59  ;;  %369 = vst.msk [vmem:[%s534_s26 + $0xe0] sm:$0xff] %vm340_vm0, %v336_v61  ;;  %v339_v2 = vadd.f32 %v523_v0, %v301_v63 }
  0x29   : > { %370 = vst.msk [vmem:[%s534_s26 + $0xe8] sm:$0xff] %vm340_vm0, %v337_v62 }
  0x2a   : > { %371 = vst.msk [vmem:[%s534_s26 + $0xf0] sm:$0xff] %vm340_vm0, %v338_v1  ;;  %372 = vst.msk [vmem:[%s534_s26 + $0xf8] sm:$0xff] %vm340_vm0, %v339_v2 }
  0x2b PF: > { %s13_s12 = sadd.s32 1, %s480_s12  }
  0x2c   : > { %p10_p4 = scmp.ge.s32.totalorder %s13_s12, 4  }
  0x2e   :  { %12 = sbr.rel (!%p10_p4) target bundleno = 1 (0x1), region = 68 }

// kernel: fpa_forward_pallas.8
= control target key start
LH: loop header
LB: loop body
LE: loop exit
PB: predicated region body
PF: predicated region fallthrough
CT: control target
= control target key end

     0   :  { %s13023_s12 = smov 0   ;;  %s16160_s0 = inlined_call_operand.vmem [shape: f32[2,196,8], index: 0, kind: input, shape index: {}]   ;;  %s16161_s1 = inlined_call_operand.vmem [shape: f32[49,8,8], index: 1, kind: input, shape index: {}]   ;;  %s16162_s2 = inlined_call_operand.vmem [shape: f32[1,8], index: 2, kind: input, shape index: {}]   ;;  %s16163_s3 = inlined_call_operand.vmem [shape: f32[2,106,8], index: 3, kind: output, shape index: {}]  }
   0x1 LB: > { %s10377_s13 = sadd.s32 4294967295, %s13001_s12   ;;  %p10381_p0 = scmp.ge.s32.totalorder %s13001_s12, 1  ;;  %s13001_s12 = sphi %s13023_s12, %s13_s12  }
   0x2   : > { %p137_p1 = scmp.lt.s32.totalorder %s13001_s12, 3 }
   0x4   : > { %p138_p2 = pnand %p10381_p0, %p137_p1 }
   0x6   : > { %141 = sbr.rel (%p138_p2) target bundleno = 903 (0x387), region = 32 }
   0xb   : > { %v10384_v0 = vld [vmem:[%s16161_s1 + $0x8] sm:$0xff]  ;;  %p161_p3 = scmp.lt.s32.totalorder %s10377_s13, 1  ;;  %v10413_v1 = vld [vmem:[%s16161_s1 + $0x10] sm:$0xff]  ;;  %v185_v2 = vld [vmem:[%s16161_s1] sm:$0xff]  ;;  %vm202_vm0 = vcmask 64512   ;;  %vm10320_vm1 = vcmask 58368  }
   0xc   : > { %11856 = vmatprep.subr.mxu0 %v10384_v0  ;;  %12983 = vmatprep.subr.mxu1 %v10384_v0  ;;  %v10428_v9 = vld [vmem:[%s16161_s1 + $0x18] sm:$0xff]  ;;  %v10443_v10 = vld [vmem:[%s16161_s1 + $0x20] sm:$0xff]  ;;  %v13123_v23 = vld [vmem:[%s16161_s1 + $0x28] sm:$0xff] }
   0xd   : > { %11857 = vmatpush3.msra.mxu0 %v10384_v0  ;;  %12984 = vmatpush3.msra.mxu1 %v10384_v0  ;;  %s16291_s13 = smov (!%p161_p3, %s10377_s13), 1  ;;  %v13145_v28 = vld [vmem:[%s16161_s1 + $0x30] sm:$0xff]  ;;  %v13258_v53 = vld [vmem:[%s16161_s1 + $0x38] sm:$0xff]  ;;  %v13280_v58 = vld [vmem:[%s16161_s1 + $0x40] sm:$0xff] }
   0xe   : > { %11902 = vmatprep.subr.mxu0 %v10413_v1  ;;  %11879 = vmatprep.subr.mxu1 %v185_v2  ;;  %s12985_s20 = smul.u32 200, %s16291_s13 }
  0x10   : > { %s13046_s23 = scalar_lea.vmem %s16160_s0, %s12985_s20 }
  0x11   : > { %v186_v3 = vld [vmem:[%s13046_s23 + $0x1] sm:$0xff]  ;;  %v187_v5 = vld [vmem:[%s13046_s23 + $0x9] sm:$0xff]  ;;  %v13060_v7 = vld [vmem:[%s13046_s23 + $0x11] sm:$0xff] }
  0x12   : > { %v13050_v4 = vld [vmem:[%s13046_s23 + $0x41] sm:$0xff]  ;;  %11858 = vmatprep.mubr.msk.f32.mxu0 %vm202_vm0, %v186_v3  ;;  %v13057_v6 = vld [vmem:[%s13046_s23 + $0x49] sm:$0xff]  ;;  %v13063_v8 = vld [vmem:[%s13046_s23 + $0x51] sm:$0xff] }
  0x13   : > { %11870 = vmatprep.mubr.msk.f32.mxu1 %vm202_vm0, %v13050_v4  ;;  %11859 = vmatmul.mubr.msk.f32.vlgmr.msra.gmra.mxu0 %vm202_vm0, %v187_v5  ;;  %v13075_v11 = vld [vmem:[%s13046_s23 + $0x19] sm:$0xff]  ;;  %v13085_v13 = vld [vmem:[%s13046_s23 + $0x21] sm:$0xff]  ;;  %v13099_v15 = vld [vmem:[%s13046_s23 + $0x29] sm:$0xff] }
  0x14   : > { %11871 = vmatmul.mubr.msk.f32.vlgmr.msra.gmra.mxu1 %vm202_vm0, %v13057_v6  ;;  %11903 = vmatpush3.msra.mxu0 %v10413_v1  ;;  %v13078_v12 = vld [vmem:[%s13046_s23 + $0x59] sm:$0xff]  ;;  %v13088_v14 = vld [vmem:[%s13046_s23 + $0x61] sm:$0xff]  ;;  %v199_v16 = vld [vmem:[%s13046_s23 + $0x69] sm:$0x3] }
  0x15   : > { %11880 = vmatpush3.msra.mxu1 %v185_v2  ;;  %11861 = vmatprep.mubr.msk.f32.mxu0 %vm202_vm0, %v13060_v7  ;;  %v13103_v17 = vld [vmem:[%s13046_s23 + $0x31] sm:$0xff]  ;;  %v171_v18 = vld [vmem:[%s13046_s23] sm:$0xff]  ;;  %v172_v20 = vld [vmem:[%s13046_s23 + $0x8] sm:$0xff] }
  0x16   : > { %11873 = vmatprep.mubr.msk.f32.mxu1 %vm202_vm0, %v13063_v8  ;;  %11925 = vmatprep.subr.mxu1 %v10428_v9  ;;  %v13113_v19 = vld [vmem:[%s13046_s23 + $0x39] sm:$0xff]  ;;  %v13117_v21 = vld [vmem:[%s13046_s23 + $0x10] sm:$0xff]  ;;  %v557_v22 = vld [vmem:[%s13046_s23 + $0x2] sm:$0xff] }
  0x17   : > { %11948 = vmatprep.subr.mxu0 %v10443_v10  ;;  %11862 = vmatmul.mubr.msk.f32.gmra.mxu0 %vm202_vm0, %v13075_v11  ;;  %v13131_v24 = vld [vmem:[%s13046_s23 + $0x18] sm:$0xff]  ;;  %v558_v25 = vld [vmem:[%s13046_s23 + $0xa] sm:$0xff]  ;;  %v13136_v26 = vld [vmem:[%s13046_s23 + $0x20] sm:$0xff] }
  0x18   : > { %11874 = vmatmul.mubr.msk.f32.gmra.mxu1 %vm202_vm0, %v13078_v12  ;;  %11864 = vmatprep.mubr.msk.f32.mxu0 %vm202_vm0, %v13085_v13  ;;  %v13140_v27 = vld [vmem:[%s13046_s23 + $0x12] sm:$0xff]  ;;  %v13153_v29 = vld [vmem:[%s13046_s23 + $0x28] sm:$0xff]  ;;  %v13156_v30 = vld [vmem:[%s13046_s23 + $0x1a] sm:$0xff] }
  0x19   : > { %11876 = vmatprep.mubr.msk.f32.mxu1 %vm202_vm0, %v13088_v14  ;;  %v13161_v31 = vld [vmem:[%s13046_s23 + $0x30] sm:$0xff]  ;;  %v13164_v32 = vld [vmem:[%s13046_s23 + $0x22] sm:$0xff]  ;;  %v13176_v33 = vld [vmem:[%s13046_s23 + $0x38] sm:$0xff] }
  0x1a   : > { %v13179_v34 = vld [vmem:[%s13046_s23 + $0x2a] sm:$0xff]  ;;  %v13182_v35 = vld [vmem:[%s13046_s23 + $0x40] sm:$0xff]  ;;  %v13185_v36 = vld [vmem:[%s13046_s23 + $0x32] sm:$0xff] }
  0x1b   : > { %11865 = vmatmul.mubr.msk.f32.gmra.mxu0 %vm202_vm0, %v13099_v15  ;;  %v13196_v37 = vld [vmem:[%s13046_s23 + $0x48] sm:$0xff]  ;;  %v13199_v38 = vld [vmem:[%s13046_s23 + $0x3a] sm:$0xff]  ;;  %v13202_v39 = vld [vmem:[%s13046_s23 + $0x50] sm:$0xff] }
  0x1c   : > { %11877 = vmatmul.mubr.msk.f32.gmra.mxu1 %vm202_vm0, %v199_v16  ;;  %11867 = vmatprep.mubr.msk.f32.mxu0 %vm202_vm0, %v13103_v17  ;;  %v13205_v40 = vld [vmem:[%s13046_s23 + $0x42] sm:$0xff]  ;;  %v13216_v41 = vld [vmem:[%s13046_s23 + $0x58] sm:$0xff]  ;;  %v13219_v42 = vld [vmem:[%s13046_s23 + $0x4a] sm:$0xff] }
  0x1d   : > { %11881 = vmatprep.mubr.msk.f32.mxu1 %vm202_vm0, %v171_v18  ;;  %v13222_v43 = vld [vmem:[%s13046_s23 + $0x60] sm:$0xff]  ;;  %v13225_v44 = vld [vmem:[%s13046_s23 + $0x52] sm:$0xff]  ;;  %v184_v45 = vld [vmem:[%s13046_s23 + $0x68] sm:$0x3] }
  0x1e   : > { %v13237_v46 = vld [vmem:[%s13046_s23 + $0x5a] sm:$0xff]  ;;  %v13240_v47 = vld [vmem:[%s13046_s23 + $0x62] sm:$0xff]  ;;  %v570_v49 = vld [vmem:[%s13046_s23 + $0x6a] sm:$0x3] }
  0x1f   : > { %11868 = vmatmul.mubr.msk.f32.gmra.mxu0 %vm202_vm0, %v13113_v19  ;;  %v764_v48 = vld [vmem:[%s13046_s23 + $0x3] sm:$0xff]  ;;  %v765_v50 = vld [vmem:[%s13046_s23 + $0xb] sm:$0xff]  ;;  %v13252_v51 = vld [vmem:[%s13046_s23 + $0x13] sm:$0xff] }
  0x20   : > { %11882 = vmatmul.mubr.msk.f32.vlgmr.msra.gmra.mxu1 %vm202_vm0, %v172_v20  ;;  %11904 = vmatprep.mubr.msk.f32.mxu0 %vm202_vm0, %v557_v22  ;;  %v971_v52 = vld [vmem:[%s13046_s23 + $0x4] sm:$0xff]  ;;  %v13266_v54 = vld [vmem:[%s13046_s23 + $0x1b] sm:$0xff]  ;;  %v972_v55 = vld [vmem:[%s13046_s23 + $0xc] sm:$0xff] }
  0x21   : > { %11926 = vmatpush3.msra.mxu1 %v10428_v9  ;;  %11884 = vmatprep.mubr.msk.f32.mxu1 %vm202_vm0, %v13117_v21  ;;  %v13271_v56 = vld [vmem:[%s13046_s23 + $0x23] sm:$0xff]  ;;  %v13275_v57 = vld [vmem:[%s13046_s23 + $0x14] sm:$0xff]  ;;  %v13289_v59 = vld [vmem:[%s13046_s23 + $0x2b] sm:$0xff] }
  0x22   : > { %11971 = vmatprep.subr.mxu1 %v13123_v23  ;;  %v13292_v60 = vld [vmem:[%s13046_s23 + $0x1c] sm:$0xff]  ;;  %v13297_v61 = vld [vmem:[%s13046_s23 + $0x33] sm:$0xff]  ;;  %v13300_v62 = vld [vmem:[%s13046_s23 + $0x24] sm:$0xff] }
  0x23   : > { %11905 = vmatmul.mubr.msk.f32.vlgmr.msra.gmra.mxu0 %vm202_vm0, %v558_v25  ;;  %16202 = vst [vmem:[#allocation2_spill] sm:$0xff] %v13292_v60  ;;  %16203 = vst [vmem:[#allocation3_spill] sm:$0xff] %v13300_v62  ;;  %v13312_v63 = vld [vmem:[%s13046_s23 + $0x3b] sm:$0xff]  ;;  %v13315_v0 = vld [vmem:[%s13046_s23 + $0x2c] sm:$0xff] }
  0x24   : > { %11885 = vmatmul.mubr.msk.f32.gmra.mxu1 %vm202_vm0, %v13131_v24  ;;  %11949 = vmatpush3.msra.mxu0 %v10443_v10  ;;  %16204 = vst [vmem:[#allocation4_spill] sm:$0xff] %v13315_v0  ;;  %v13318_v1 = vld [vmem:[%s13046_s23 + $0x43] sm:$0xff]  ;;  %v13321_v2 = vld [vmem:[%s13046_s23 + $0x34] sm:$0xff]  ;;  %v13332_v3 = vld [vmem:[%s13046_s23 + $0x4b] sm:$0xff] }
  0x25   : > { %11887 = vmatprep.mubr.msk.f32.mxu1 %vm202_vm0, %v13136_v26  ;;  %11907 = vmatprep.mubr.msk.f32.mxu0 %vm202_vm0, %v13140_v27  ;;  %16205 = vst [vmem:[#allocation5_spill] sm:$0xff] %v13321_v2  ;;  %v13335_v5 = vld [vmem:[%s13046_s23 + $0x3c] sm:$0xff]  ;;  %v13338_v9 = vld [vmem:[%s13046_s23 + $0x53] sm:$0xff]  ;;  %v13341_v10 = vld [vmem:[%s13046_s23 + $0x44] sm:$0xff] }
  0x26   : > { %11994 = vmatprep.subr.mxu0 %v13145_v28  ;;  %16206 = vst [vmem:[#allocation6_spill] sm:$0xff] %v13335_v5  ;;  %16207 = vst [vmem:[#allocation7_spill] sm:$0xff] %v13341_v10  ;;  %v13352_v16 = vld [vmem:[%s13046_s23 + $0x5b] sm:$0xff]  ;;  %v13355_v18 = vld [vmem:[%s13046_s23 + $0x4c] sm:$0xff] }
  0x27   : > { %11908 = vmatmul.mubr.msk.f32.gmra.mxu0 %vm202_vm0, %v13156_v30  ;;  %16208 = vst [vmem:[#allocation8_spill] sm:$0xff] %v13355_v18  ;;  %v13358_v20 = vld [vmem:[%s13046_s23 + $0x63] sm:$0xff]  ;;  %v13361_v22 = vld [vmem:[%s13046_s23 + $0x54] sm:$0xff] }
  0x28   : > { %11888 = vmatmul.mubr.msk.f32.gmra.mxu1 %vm202_vm0, %v13153_v29  ;;  %11910 = vmatprep.mubr.msk.f32.mxu0 %vm202_vm0, %v13164_v32  ;;  %16209 = vst [vmem:[#allocation9_spill] sm:$0xff] %v13361_v22  ;;  %v13373_v25 = vld [vmem:[%s13046_s23 + $0x5c] sm:$0xff] }
  0x29   : > { %11890 = vmatprep.mubr.msk.f32.mxu1 %vm202_vm0, %v13161_v31  ;;  %16210 = vst [vmem:[#allocation10_spill] sm:$0xff] %v13373_v25 }
  0x2b   : > { %11911 = vmatmul.mubr.msk.f32.gmra.mxu0 %vm202_vm0, %v13179_v34 }
  0x2c   : > { %11891 = vmatmul.mubr.msk.f32.gmra.mxu1 %vm202_vm0, %v13176_v33  ;;  %11913 = vmatprep.mubr.msk.f32.mxu0 %vm202_vm0, %v13185_v36 }
  0x2d   : > { %11893 = vmatprep.mubr.msk.f32.mxu1 %vm202_vm0, %v13182_v35 }
  0x2f   : > { %11914 = vmatmul.mubr.msk.f32.gmra.mxu0 %vm202_vm0, %v13199_v38 }
  0x30   : > { %11894 = vmatmul.mubr.msk.f32.gmra.mxu1 %vm202_vm0, %v13196_v37  ;;  %11916 = vmatprep.mubr.msk.f32.mxu0 %vm202_vm0, %v13205_v40 }
  0x31   : > { %11896 = vmatprep.mubr.msk.f32.mxu1 %vm202_vm0, %v13202_v39 }
  0x33   : > { %11917 = vmatmul.mubr.msk.f32.gmra.mxu0 %vm202_vm0, %v13219_v42 }
  0x34   : > { %11897 = vmatmul.mubr.msk.f32.gmra.mxu1 %vm202_vm0, %v13216_v41  ;;  %11919 = vmatprep.mubr.msk.f32.mxu0 %vm202_vm0, %v13225_v44 }
  0x35   : > { %11899 = vmatprep.mubr.msk.f32.mxu1 %vm202_vm0, %v13222_v43 }
  0x37   : > { %11920 = vmatmul.mubr.msk.f32.gmra.mxu0 %vm202_vm0, %v13237_v46 }
  0x38   : > { %11900 = vmatmul.mubr.msk.f32.gmra.mxu1 %vm202_vm0, %v184_v45  ;;  %11922 = vmatprep.mubr.msk.f32.mxu0 %vm202_vm0, %v13240_v47  ;;  %v1178_v45 = vld [vmem:[%s13046_s23 + $0x5] sm:$0xff] }
  0x39   : > { %11927 = vmatprep.mubr.msk.f32.mxu1 %vm202_vm0, %v764_v48  ;;  %v984_v48 = vld [vmem:[%s13046_s23 + $0x6c] sm:$0x3] }
  0x3b   : > { %11923 = vmatmul.mubr.msk.f32.gmra.mxu0 %vm202_vm0, %v570_v49  ;;  %v1179_v49 = vld [vmem:[%s13046_s23 + $0xd] sm:$0xff] }
  0x3c   : > { %11928 = vmatmul.mubr.msk.f32.vlgmr.msra.gmra.mxu1 %vm202_vm0, %v765_v50  ;;  %11950 = vmatprep.mubr.msk.f32.mxu0 %vm202_vm0, %v971_v52  ;;  %v1180_v50 = vld [vmem:[%s13046_s23 + $0x15] sm:$0xff]  ;;  %v1385_v52 = vld [vmem:[%s13046_s23 + $0x6] sm:$0xff] }
  0x3d   : > { %11972 = vmatpush3.msra.mxu1 %v13123_v23  ;;  %11930 = vmatprep.mubr.msk.f32.mxu1 %vm202_vm0, %v13252_v51  ;;  %v777_v23 = vld [vmem:[%s13046_s23 + $0x6b] sm:$0x3] }
  0x3e   : > { %12017 = vmatprep.subr.mxu1 %v13258_v53 }
  0x3f   : > { %11951 = vmatmul.mubr.msk.f32.vlgmr.msra.gmra.mxu0 %vm202_vm0, %v972_v55  ;;  %v10518_v55 = vld [vmem:[%s16161_s1 + $0x48] sm:$0xff] }
  0x40   : > { %11931 = vmatmul.mubr.msk.f32.gmra.mxu1 %vm202_vm0, %v13266_v54  ;;  %11995 = vmatpush3.msra.mxu0 %v13145_v28  ;;  %v13376_v28 = vld [vmem:[%s13046_s23 + $0x64] sm:$0xff] }
  0x41   : > { %11933 = vmatprep.mubr.msk.f32.mxu1 %vm202_vm0, %v13271_v56  ;;  %11953 = vmatprep.mubr.msk.f32.mxu0 %vm202_vm0, %v13275_v57  ;;  %16211 = vst [vmem:[#allocation11_spill] sm:$0xff] %v13376_v28 }
  0x42   : > { %12040 = vmatprep.subr.mxu0 %v13280_v58 }
  0x43   : > { %11954 = vmatmul.mubr.msk.f32.gmra.mxu0 %vm202_vm0, %v13292_v60  ;;  %v10563_v60 = vld [vmem:[%s16161_s1 + $0x60] sm:$0xff] }
  0x44   : > { %11934 = vmatmul.mubr.msk.f32.gmra.mxu1 %vm202_vm0, %v13289_v59  ;;  %11956 = vmatprep.mubr.msk.f32.mxu0 %vm202_vm0, %v13300_v62  ;;  %v10548_v62 = vld [vmem:[%s16161_s1 + $0x58] sm:$0xff] }
  0x45   : > { %11936 = vmatprep.mubr.msk.f32.mxu1 %vm202_vm0, %v13297_v61 }
  0x47   : > { %11957 = vmatmul.mubr.msk.f32.gmra.mxu0 %vm202_vm0, %v13315_v0  ;;  %v13500_v0 = vld [vmem:[%s13046_s23 + $0x66] sm:$0xff] }
  0x48   : > { %11937 = vmatmul.mubr.msk.f32.gmra.mxu1 %vm202_vm0, %v13312_v63  ;;  %11959 = vmatprep.mubr.msk.f32.mxu0 %vm202_vm0, %v13321_v2  ;;  %v13485_v2 = vld [vmem:[%s13046_s23 + $0x56] sm:$0xff] }
  0x49   : > { %11939 = vmatprep.mubr.msk.f32.mxu1 %vm202_vm0, %v13318_v1 }
  0x4b   : > { %11960 = vmatmul.mubr.msk.f32.gmra.mxu0 %vm202_vm0, %v13335_v5  ;;  %v13482_v5 = vld [vmem:[%s13046_s23 + $0x65] sm:$0xff] }
  0x4c   : > { %11940 = vmatmul.mubr.msk.f32.gmra.mxu1 %vm202_vm0, %v13332_v3  ;;  %11962 = vmatprep.mubr.msk.f32.mxu0 %vm202_vm0, %v13341_v10  ;;  %v13465_v10 = vld [vmem:[%s13046_s23 + $0x46] sm:$0xff]  ;;  %16221 = vst [vmem:[#allocation21_spill] sm:$0xff] %v13482_v5 }
  0x4d   : > { %11942 = vmatprep.mubr.msk.f32.mxu1 %vm202_vm0, %v13338_v9 }
  0x4f   : > { %11963 = vmatmul.mubr.msk.f32.gmra.mxu0 %vm202_vm0, %v13355_v18  ;;  %v13462_v18 = vld [vmem:[%s13046_s23 + $0x55] sm:$0xff] }
  0x50   : > { %11943 = vmatmul.mubr.msk.f32.gmra.mxu1 %vm202_vm0, %v13352_v16  ;;  %11965 = vmatprep.mubr.msk.f32.mxu0 %vm202_vm0, %v13361_v22  ;;  %v13445_v22 = vld [vmem:[%s13046_s23 + $0x36] sm:$0xff]  ;;  %16219 = vst [vmem:[#allocation19_spill] sm:$0xff] %v13462_v18 }
  0x51   : > { %11945 = vmatprep.mubr.msk.f32.mxu1 %vm202_vm0, %v13358_v20 }
  0x53   : > { %11966 = vmatmul.mubr.msk.f32.gmra.mxu0 %vm202_vm0, %v13373_v25  ;;  %v1387_v25 = vld [vmem:[%s13046_s23 + $0x16] sm:$0xff] }
  0x54   : > { %11946 = vmatmul.mubr.msk.f32.gmra.mxu1 %vm202_vm0, %v777_v23  ;;  %11968 = vmatprep.mubr.msk.f32.mxu0 %vm202_vm0, %v13376_v28  ;;  %v13397_v23 = vld [vmem:[%s13046_s23 + $0x1d] sm:$0xff]  ;;  %v13402_v28 = vld [vmem:[%s13046_s23 + $0x25] sm:$0xff] }
  0x55   : > { %11973 = vmatprep.mubr.msk.f32.mxu1 %vm202_vm0, %v1178_v45  ;;  %16212 = vst [vmem:[#allocation12_spill] sm:$0xff] %v13397_v23  ;;  %v1386_v45 = vld [vmem:[%s13046_s23 + $0xe] sm:$0xff]  ;;  %16213 = vst [vmem:[#allocation13_spill] sm:$0xff] %v13402_v28 }
  0x57   : > { %11969 = vmatmul.mubr.msk.f32.gmra.mxu0 %vm202_vm0, %v984_v48  ;;  %v10533_v48 = vld [vmem:[%s16161_s1 + $0x50] sm:$0xff] }
  0x58   : > { %11974 = vmatmul.mubr.msk.f32.vlgmr.msra.gmra.mxu1 %vm202_vm0, %v1179_v49  ;;  %11996 = vmatprep.mubr.msk.f32.mxu0 %vm202_vm0, %v1385_v52  ;;  %v13418_v49 = vld [vmem:[%s13046_s23 + $0x1e] sm:$0xff]  ;;  %v13425_v52 = vld [vmem:[%s13046_s23 + $0x26] sm:$0xff] }
  0x59   : > { %12018 = vmatpush3.msra.mxu1 %v13258_v53  ;;  %11976 = vmatprep.mubr.msk.f32.mxu1 %vm202_vm0, %v1180_v50  ;;  %v13415_v53 = vld [vmem:[%s13046_s23 + $0x2d] sm:$0xff]  ;;  %v13422_v50 = vld [vmem:[%s13046_s23 + $0x35] sm:$0xff] }
  0x5a   : > { %12063 = vmatprep.subr.mxu1 %v10518_v55  ;;  %16214 = vst [vmem:[#allocation14_spill] sm:$0xff] %v13415_v53  ;;  %16215 = vst [vmem:[#allocation15_spill] sm:$0xff] %v13422_v50 }
  0x5b   : > { %11997 = vmatmul.mubr.msk.f32.vlgmr.msra.gmra.mxu0 %vm202_vm0, %v1386_v45 }
  0x5c   : > { %11977 = vmatmul.mubr.msk.f32.gmra.mxu1 %vm202_vm0, %v13397_v23  ;;  %12041 = vmatpush3.msra.mxu0 %v13280_v58  ;;  %v13436_v58 = vld [vmem:[%s13046_s23 + $0x3d] sm:$0xff]  ;;  %v13442_v23 = vld [vmem:[%s13046_s23 + $0x45] sm:$0xff] }
  0x5d   : > { %11979 = vmatprep.mubr.msk.f32.mxu1 %vm202_vm0, %v13402_v28  ;;  %11999 = vmatprep.mubr.msk.f32.mxu0 %vm202_vm0, %v1387_v25  ;;  %16216 = vst [vmem:[#allocation16_spill] sm:$0xff] %v13436_v58  ;;  %v13439_v28 = vld [vmem:[%s13046_s23 + $0x2e] sm:$0xff]  ;;  %16217 = vst [vmem:[#allocation17_spill] sm:$0xff] %v13442_v23 }
  0x5e   : > { %12086 = vmatprep.subr.mxu0 %v10533_v48 }
  0x5f   : > { %12000 = vmatmul.mubr.msk.f32.gmra.mxu0 %vm202_vm0, %v13418_v49 }
  0x60   : > { %11980 = vmatmul.mubr.msk.f32.gmra.mxu1 %vm202_vm0, %v13415_v53  ;;  %12002 = vmatprep.mubr.msk.f32.mxu0 %vm202_vm0, %v13425_v52  ;;  %v13459_v53 = vld [vmem:[%s13046_s23 + $0x3e] sm:$0xff] }
  0x61   : > { %11982 = vmatprep.mubr.msk.f32.mxu1 %vm202_vm0, %v13422_v50  ;;  %v13456_v50 = vld [vmem:[%s13046_s23 + $0x4d] sm:$0xff] }
  0x62   : > { %16218 = vst [vmem:[#allocation18_spill] sm:$0xff] %v13456_v50 }
  0x63   : > { %12003 = vmatmul.mubr.msk.f32.gmra.mxu0 %vm202_vm0, %v13439_v28 }
  0x64   : > { %11983 = vmatmul.mubr.msk.f32.gmra.mxu1 %vm202_vm0, %v13436_v58  ;;  %12005 = vmatprep.mubr.msk.f32.mxu0 %vm202_vm0, %v13445_v22  ;;  %v13479_v58 = vld [vmem:[%s13046_s23 + $0x4e] sm:$0xff] }
  0x65   : > { %11985 = vmatprep.mubr.msk.f32.mxu1 %vm202_vm0, %v13442_v23  ;;  %v13476_v23 = vld [vmem:[%s13046_s23 + $0x5d] sm:$0xff] }
  0x66   : > { %16220 = vst [vmem:[#allocation20_spill] sm:$0xff] %v13476_v23 }
  0x67   : > { %12006 = vmatmul.mubr.msk.f32.gmra.mxu0 %vm202_vm0, %v13459_v53 }
  0x68   : > { %11986 = vmatmul.mubr.msk.f32.gmra.mxu1 %vm202_vm0, %v13456_v50  ;;  %12008 = vmatprep.mubr.msk.f32.mxu0 %vm202_vm0, %v13465_v10  ;;  %v13497_v50 = vld [vmem:[%s13046_s23 + $0x5e] sm:$0xff] }
  0x69   : > { %11988 = vmatprep.mubr.msk.f32.mxu1 %vm202_vm0, %v13462_v18  ;;  %v1191_v18 = vld [vmem:[%s13046_s23 + $0x6d] sm:$0x3] }
  0x6b   : > { %12009 = vmatmul.mubr.msk.f32.gmra.mxu0 %vm202_vm0, %v13479_v58 }
  0x6c   : > { %11989 = vmatmul.mubr.msk.f32.gmra.mxu1 %vm202_vm0, %v13476_v23  ;;  %12011 = vmatprep.mubr.msk.f32.mxu0 %vm202_vm0, %v13485_v2  ;;  %v1799_v23 = vld [vmem:[%s13046_s23 + $0xf] sm:$0xff] }
  0x6d   : > { %11991 = vmatprep.mubr.msk.f32.mxu1 %vm202_vm0, %v13482_v5  ;;  %v1398_v5 = vld [vmem:[%s13046_s23 + $0x6e] sm:$0x3] }
  0x6f   : > { %12012 = vmatmul.mubr.msk.f32.gmra.mxu0 %vm202_vm0, %v13497_v50 }
  0x70   : > { %11992 = vmatmul.mubr.msk.f32.gmra.mxu1 %vm202_vm0, %v1191_v18  ;;  %12014 = vmatprep.mubr.msk.f32.mxu0 %vm202_vm0, %v13500_v0  ;;  %v1800_v18 = vld [vmem:[%s13046_s23 + $0x17] sm:$0xff] }
  0x71   : > { %12019 = vmatprep.mubr.msk.f32.mxu1 %vm202_vm0, %v1386_v45  ;;  %v13520_v45 = vld [vmem:[%s13046_s23 + $0x1f] sm:$0xff] }
  0x73   : > { %12015 = vmatmul.mubr.msk.f32.gmra.mxu0 %vm202_vm0, %v1398_v5  ;;  %v13531_v5 = vld [vmem:[%s13046_s23 + $0x27] sm:$0xff] }
  0x74   : > { %12020 = vmatmul.mubr.msk.f32.vlgmr.msra.gmra.mxu1 %vm202_vm0, %v1387_v25  ;;  %12042 = vmatprep.mubr.msk.f32.mxu0 %vm202_vm0, %v1799_v23  ;;  %16222 = vst [vmem:[#allocation22_spill] sm:$0xff] %v13531_v5  ;;  %v13536_v25 = vld [vmem:[%s13046_s23 + $0x2f] sm:$0xff]  ;;  %v13550_v23 = vld [vmem:[%s13046_s23 + $0x3f] sm:$0xff] }
  0x75   : > { %12064 = vmatpush3.msra.mxu1 %v10518_v55  ;;  %12022 = vmatprep.mubr.msk.f32.mxu1 %vm202_vm0, %v13418_v49  ;;  %16223 = vst [vmem:[#allocation23_spill] sm:$0xff] %v13536_v25  ;;  %v13547_v55 = vld [vmem:[%s13046_s23 + $0x37] sm:$0xff]  ;;  %16225 = vst [vmem:[#allocation25_spill] sm:$0xff] %v13550_v23 }
  0x76   : > { %12109 = vmatprep.subr.mxu1 %v10548_v62  ;;  %16224 = vst [vmem:[#allocation24_spill] sm:$0xff] %v13547_v55 }
  0x77   : > { %12043 = vmatmul.mubr.msk.f32.vlgmr.msra.gmra.mxu0 %vm202_vm0, %v1800_v18  ;;  %v13564_v18 = vld [vmem:[%s13046_s23 + $0x4f] sm:$0xff] }
  0x78   : > { %12023 = vmatmul.mubr.msk.f32.gmra.mxu1 %vm202_vm0, %v13425_v52  ;;  %12087 = vmatpush3.msra.mxu0 %v10533_v48  ;;  %v13561_v48 = vld [vmem:[%s13046_s23 + $0x47] sm:$0xff]  ;;  %16227 = vst [vmem:[#allocation27_spill] sm:$0xff] %v13564_v18 }
  0x79   : > { %12025 = vmatprep.mubr.msk.f32.mxu1 %vm202_vm0, %v13439_v28  ;;  %12045 = vmatprep.mubr.msk.f32.mxu0 %vm202_vm0, %v13520_v45  ;;  %16226 = vst [vmem:[#allocation26_spill] sm:$0xff] %v13561_v48 }
  0x7a   : > { %12132 = vmatprep.subr.mxu0 %v10563_v60 }
  0x7b   : > { %12046 = vmatmul.mubr.msk.f32.gmra.mxu0 %vm202_vm0, %v13531_v5  ;;  %v13596_v5 = vld [vmem:[%s13046_s23 + $0x6f] sm:$0xff] }
  0x7c   : > { %12026 = vmatmul.mubr.msk.f32.gmra.mxu1 %vm202_vm0, %v13445_v22  ;;  %12048 = vmatprep.mubr.msk.f32.mxu0 %vm202_vm0, %v13536_v25  ;;  %v13581_v25 = vld [vmem:[%s13046_s23 + $0x5f] sm:$0xff] }
  0x7d   : > { %12028 = vmatprep.mubr.msk.f32.mxu1 %vm202_vm0, %v13459_v53  ;;  %16229 = vst [vmem:[#allocation29_spill] sm:$0xff] %v13581_v25 }
  0x7f   : > { %12049 = vmatmul.mubr.msk.f32.gmra.mxu0 %vm202_vm0, %v13547_v55  ;;  %v13575_v55 = vld [vmem:[%s13046_s23 + $0x57] sm:$0xff] }
  0x80   : > { %12029 = vmatmul.mubr.msk.f32.gmra.mxu1 %vm202_vm0, %v13465_v10  ;;  %12051 = vmatprep.mubr.msk.f32.mxu0 %vm202_vm0, %v13550_v23  ;;  %16228 = vst [vmem:[#allocation28_spill] sm:$0xff] %v13575_v55  ;;  %v13578_v23 = vld [vmem:[%s13046_s23 + $0x6e] sm:$0xff] }
  0x81   : > { %12031 = vmatprep.mubr.msk.f32.mxu1 %vm202_vm0, %v13479_v58 }
  0x83   : > { %12052 = vmatmul.mubr.msk.f32.gmra.mxu0 %vm202_vm0, %v13561_v48  ;;  %v1605_v48 = vld [vmem:[%s13046_s23 + $0x76] sm:$0x3] }
  0x84   : > { %12032 = vmatmul.mubr.msk.f32.gmra.mxu1 %vm202_vm0, %v13485_v2  ;;  %12054 = vmatprep.mubr.msk.f32.mxu0 %vm202_vm0, %v13564_v18  ;;  %v13593_v18 = vld [vmem:[%s13046_s23 + $0x67] sm:$0xff] }
  0x85   : > { %12034 = vmatprep.mubr.msk.f32.mxu1 %vm202_vm0, %v13497_v50 }
  0x87   : > { %12055 = vmatmul.mubr.msk.f32.gmra.mxu0 %vm202_vm0, %v13575_v55  ;;  %v1812_v55 = vld [vmem:[%s13046_s23 + $0x77] sm:$0x3] }
  0x88   : > { %12035 = vmatmul.mubr.msk.f32.gmra.mxu1 %vm202_vm0, %v13500_v0  ;;  %12057 = vmatprep.mubr.msk.f32.mxu0 %vm202_vm0, %v13581_v25  ;;  %v10578_v25 = vld [vmem:[%s16161_s1 + $0x68] sm:$0xff] }
  0x89   : > { %12037 = vmatprep.mubr.msk.f32.mxu1 %vm202_vm0, %v13578_v23 }
  0x8b   : > { %12058 = vmatmul.mubr.msk.f32.gmra.mxu0 %vm202_vm0, %v13593_v18 }
  0x8c   : > { %12038 = vmatmul.mubr.msk.f32.gmra.mxu1 %vm202_vm0, %v1605_v48  ;;  %12060 = vmatprep.mubr.msk.f32.mxu0 %vm202_vm0, %v13596_v5 }
  0x8d   : > { %12065 = vmatprep.mubr.msk.f32.mxu1 %vm202_vm0, %v13117_v21  ;;  %v10593_v21 = vld [vmem:[%s16161_s1 + $0x70] sm:$0xff] }
  0x8f   : > { %12061 = vmatmul.mubr.msk.f32.gmra.mxu0 %vm202_vm0, %v1812_v55 }
  0x90   : > { %12066 = vmatmul.mubr.msk.f32.vlgmr.msra.gmra.mxu1 %vm202_vm0, %v13131_v24  ;;  %12088 = vmatprep.mubr.msk.f32.mxu0 %vm202_vm0, %v13060_v7  ;;  %v13652_v7 = vld [vmem:[%s13046_s23 + $0x68] sm:$0xff] }
  0x91   : > { %12110 = vmatpush3.msra.mxu1 %v10548_v62  ;;  %12068 = vmatprep.mubr.msk.f32.mxu1 %vm202_vm0, %v13136_v26  ;;  %v2638_v24 = vld [vmem:[%s13046_s23 + $0x6b] sm:$0xff]  ;;  %v2639_v26 = vld [vmem:[%s13046_s23 + $0x73] sm:$0xff] }
  0x92   : > { %12155 = vmatprep.subr.mxu1 %v10578_v25 }
  0x93   : > { %12089 = vmatmul.mubr.msk.f32.vlgmr.msra.gmra.mxu0 %vm202_vm0, %v13075_v11  ;;  %v13655_v11 = vld [vmem:[%s13046_s23 + $0x70] sm:$0xff] }
  0x94   : > { %12069 = vmatmul.mubr.msk.f32.gmra.mxu1 %vm202_vm0, %v13153_v29  ;;  %12133 = vmatpush3.msra.mxu0 %v10563_v60  ;;  %v13751_v29 = vld [vmem:[%s16161_s1 + $0x88] sm:$0xff] }
  0x95   : > { %12071 = vmatprep.mubr.msk.f32.mxu1 %vm202_vm0, %v13161_v31  ;;  %12091 = vmatprep.mubr.msk.f32.mxu0 %vm202_vm0, %v13085_v13  ;;  %v10608_v13 = vld [vmem:[%s16161_s1 + $0x78] sm:$0xff]  ;;  %v16231_v31 = vld [vmem:[#allocation3_spill] sm:$0xff] }
  0x96   : > { %12178 = vmatprep.subr.mxu0 %v10593_v21 }
  0x97   : > { %12092 = vmatmul.mubr.msk.f32.gmra.mxu0 %vm202_vm0, %v13099_v15  ;;  %v13726_v15 = vld [vmem:[%s13046_s23 + $0x6a] sm:$0xff] }
  0x98   : > { %12072 = vmatmul.mubr.msk.f32.gmra.mxu1 %vm202_vm0, %v13176_v33  ;;  %12094 = vmatprep.mubr.msk.f32.mxu0 %vm202_vm0, %v13103_v17  ;;  %v13729_v17 = vld [vmem:[%s13046_s23 + $0x72] sm:$0xff] }
  0x99   : > { %12074 = vmatprep.mubr.msk.f32.mxu1 %vm202_vm0, %v13182_v35  ;;  %v16232_v33 = vld [vmem:[#allocation4_spill] sm:$0xff]  ;;  %v16234_v35 = vld [vmem:[#allocation6_spill] sm:$0xff] }
  0x9b   : > { %12095 = vmatmul.mubr.msk.f32.gmra.mxu0 %vm202_vm0, %v13113_v19  ;;  %v2433_v19 = vld [vmem:[%s13046_s23 + $0x7a] sm:$0x3] }
  0x9c   : > { %12075 = vmatmul.mubr.msk.f32.gmra.mxu1 %vm202_vm0, %v13196_v37  ;;  %12097 = vmatprep.mubr.msk.f32.mxu0 %vm202_vm0, %v13050_v4  ;;  %v2019_v4 = vld [vmem:[%s13046_s23 + $0x78] sm:$0x3] }
  0x9d   : > { %12077 = vmatprep.mubr.msk.f32.mxu1 %vm202_vm0, %v13202_v39  ;;  %v16236_v39 = vld [vmem:[#allocation8_spill] sm:$0xff] }
  0x9f   : > { %12098 = vmatmul.mubr.msk.f32.gmra.mxu0 %vm202_vm0, %v13057_v6  ;;  %v13667_v6 = vld [vmem:[%s13046_s23 + $0x69] sm:$0xff] }
  0xa0   : > { %12078 = vmatmul.mubr.msk.f32.gmra.mxu1 %vm202_vm0, %v13216_v41  ;;  %12100 = vmatprep.mubr.msk.f32.mxu0 %vm202_vm0, %v13063_v8  ;;  %v13670_v8 = vld [vmem:[%s13046_s23 + $0x71] sm:$0xff] }
  0xa1   : > { %12080 = vmatprep.mubr.msk.f32.mxu1 %vm202_vm0, %v13222_v43 }
  0xa3   : > { %12101 = vmatmul.mubr.msk.f32.gmra.mxu0 %vm202_vm0, %v13078_v12  ;;  %v2226_v12 = vld [vmem:[%s13046_s23 + $0x79] sm:$0x3] }
  0xa4   : > { %12081 = vmatmul.mubr.msk.f32.gmra.mxu1 %vm202_vm0, %v13652_v7  ;;  %12103 = vmatprep.mubr.msk.f32.mxu0 %vm202_vm0, %v13088_v14  ;;  %v10623_v14 = vld [vmem:[%s16161_s1 + $0x80] sm:$0xff] }
  0xa5   : > { %12083 = vmatprep.mubr.msk.f32.mxu1 %vm202_vm0, %v13655_v11 }
  0xa7   : > { %12104 = vmatmul.mubr.msk.f32.gmra.mxu0 %vm202_vm0, %v13667_v6 }
  0xa8   : > { %12084 = vmatmul.mubr.msk.f32.gmra.mxu1 %vm202_vm0, %v2019_v4  ;;  %12106 = vmatprep.mubr.msk.f32.mxu0 %vm202_vm0, %v13670_v8  ;;  %v13829_v4 = vld [vmem:[%s16161_s1 + $0x98] sm:$0xff] }
  0xa9   : > { %12111 = vmatprep.mubr.msk.f32.mxu1 %vm202_vm0, %v13140_v27  ;;  %v2640_v27 = vld [vmem:[%s13046_s23 + $0x7b] sm:$0x3] }
  0xab   : > { %12107 = vmatmul.mubr.msk.f32.gmra.mxu0 %vm202_vm0, %v2226_v12 }
  0xac   : > { %12112 = vmatmul.mubr.msk.f32.vlgmr.msra.gmra.mxu1 %vm202_vm0, %v13156_v30  ;;  %12134 = vmatprep.mubr.msk.f32.mxu0 %vm202_vm0, %v13252_v51  ;;  %v16230_v30 = vld [vmem:[#allocation2_spill] sm:$0xff]  ;;  %v2845_v51 = vld [vmem:[%s13046_s23 + $0x6c] sm:$0xff] }
  0xad   : > { %12156 = vmatpush3.msra.mxu1 %v10578_v25  ;;  %12114 = vmatprep.mubr.msk.f32.mxu1 %vm202_vm0, %v13164_v32  ;;  %v13764_v32 = vld [vmem:[%s16161_s1 + $0x90] sm:$0xff]  ;;  %v3054_v25 = vld [vmem:[%s13046_s23 + $0x84] sm:$0x3] }
  0xae   : > { %12201 = vmatprep.subr.mxu1 %v10608_v13 }
  0xaf   : > { %12135 = vmatmul.mubr.msk.f32.vlgmr.msra.gmra.mxu0 %vm202_vm0, %v13266_v54 }
  0xb0   : > { %12115 = vmatmul.mubr.msk.f32.gmra.mxu1 %vm202_vm0, %v13179_v34  ;;  %12179 = vmatpush3.msra.mxu0 %v10593_v21  ;;  %v16233_v34 = vld [vmem:[#allocation5_spill] sm:$0xff] }
  0xb1   : > { %12117 = vmatprep.mubr.msk.f32.mxu1 %vm202_vm0, %v13185_v36  ;;  %12137 = vmatprep.mubr.msk.f32.mxu0 %vm202_vm0, %v13271_v56  ;;  %v16235_v36 = vld [vmem:[#allocation7_spill] sm:$0xff] }
  0xb2   : > { %12224 = vmatprep.subr.mxu0 %v10623_v14 }
  0xb3   : > { %12138 = vmatmul.mubr.msk.f32.gmra.mxu0 %vm202_vm0, %v13289_v59 }
  0xb4   : > { %12118 = vmatmul.mubr.msk.f32.gmra.mxu1 %vm202_vm0, %v13199_v38  ;;  %12140 = vmatprep.mubr.msk.f32.mxu0 %vm202_vm0, %v13297_v61  ;;  %v2847_v61 = vld [vmem:[%s13046_s23 + $0x7c] sm:$0x3] }
  0xb5   : > { %12120 = vmatprep.mubr.msk.f32.mxu1 %vm202_vm0, %v13205_v40  ;;  %v16237_v40 = vld [vmem:[#allocation9_spill] sm:$0xff] }
  0xb7   : > { %12141 = vmatmul.mubr.msk.f32.gmra.mxu0 %vm202_vm0, %v13312_v63 }
  0xb8   : > { %12121 = vmatmul.mubr.msk.f32.gmra.mxu1 %vm202_vm0, %v13219_v42  ;;  %12143 = vmatprep.mubr.msk.f32.mxu0 %vm202_vm0, %v13318_v1  ;;  %v3053_v1 = vld [vmem:[%s13046_s23 + $0x7c] sm:$0xff] }
  0xb9   : > { %12123 = vmatprep.mubr.msk.f32.mxu1 %vm202_vm0, %v13225_v44 }
  0xbb   : > { %12144 = vmatmul.mubr.msk.f32.gmra.mxu0 %vm202_vm0, %v13332_v3 }
  0xbc   : > { %12124 = vmatmul.mubr.msk.f32.gmra.mxu1 %vm202_vm0, %v13237_v46  ;;  %12146 = vmatprep.mubr.msk.f32.mxu0 %vm202_vm0, %v13338_v9  ;;  %v16238_v46 = vld [vmem:[#allocation10_spill] sm:$0xff] }
  0xbd   : > { %12126 = vmatprep.mubr.msk.f32.mxu1 %vm202_vm0, %v13240_v47  ;;  %v16239_v47 = vld [vmem:[#allocation11_spill] sm:$0xff] }
  0xbf   : > { %12147 = vmatmul.mubr.msk.f32.gmra.mxu0 %vm202_vm0, %v13352_v16 }
  0xc0   : > { %12127 = vmatmul.mubr.msk.f32.gmra.mxu1 %vm202_vm0, %v13726_v15  ;;  %12149 = vmatprep.mubr.msk.f32.mxu0 %vm202_vm0, %v13358_v20  ;;  %v16240_v20 = vld [vmem:[#allocation12_spill] sm:$0xff] }
  0xc1   : > { %12129 = vmatprep.mubr.msk.f32.mxu1 %vm202_vm0, %v13729_v17 }
  0xc3   : > { %12150 = vmatmul.mubr.msk.f32.gmra.mxu0 %vm202_vm0, %v2638_v24 }
  0xc4   : > { %12130 = vmatmul.mubr.msk.f32.gmra.mxu1 %vm202_vm0, %v2433_v19  ;;  %12152 = vmatprep.mubr.msk.f32.mxu0 %vm202_vm0, %v2639_v26  ;;  %v16242_v26 = vld [vmem:[#allocation14_spill] sm:$0xff] }
  0xc5   : > { %12157 = vmatprep.mubr.msk.f32.mxu1 %vm202_vm0, %v13275_v57  ;;  %v2846_v57 = vld [vmem:[%s13046_s23 + $0x74] sm:$0xff] }
  0xc7   : > { %12153 = vmatmul.mubr.msk.f32.gmra.mxu0 %vm202_vm0, %v2640_v27 }
  0xc8   : > { %12158 = vmatmul.mubr.msk.f32.vlgmr.msra.gmra.mxu1 %vm202_vm0, %v16230_v30  ;;  %12180 = vmatprep.mubr.msk.f32.mxu0 %vm202_vm0, %v16230_v30 }
  0xc9   : > { %12202 = vmatpush3.msra.mxu1 %v10608_v13  ;;  %12160 = vmatprep.mubr.msk.f32.mxu1 %vm202_vm0, %v16231_v31 }
  0xca   : > { %12247 = vmatprep.subr.mxu1 %v13751_v29 }
  0xcb   : > { %12181 = vmatmul.mubr.msk.f32.vlgmr.msra.gmra.mxu0 %vm202_vm0, %v16231_v31 }
  0xcc   : > { %12161 = vmatmul.mubr.msk.f32.gmra.mxu1 %vm202_vm0, %v16232_v33  ;;  %12225 = vmatpush3.msra.mxu0 %v10623_v14  ;;  %v16241_v14 = vld [vmem:[#allocation13_spill] sm:$0xff] }
  0xcd   : > { %12163 = vmatprep.mubr.msk.f32.mxu1 %vm202_vm0, %v16233_v34  ;;  %12183 = vmatprep.mubr.msk.f32.mxu0 %vm202_vm0, %v16232_v33 }
  0xce   : > { %12270 = vmatprep.subr.mxu0 %v13764_v32 }
  0xcf   : > { %12184 = vmatmul.mubr.msk.f32.gmra.mxu0 %vm202_vm0, %v16233_v34  ;;  %v13847_v34 = vld [vmem:[%s16161_s1 + $0xa0] sm:$0xff] }
  0xd0   : > { %12164 = vmatmul.mubr.msk.f32.gmra.mxu1 %vm202_vm0, %v16234_v35  ;;  %12186 = vmatprep.mubr.msk.f32.mxu0 %vm202_vm0, %v16234_v35 }
  0xd1   : > { %12166 = vmatprep.mubr.msk.f32.mxu1 %vm202_vm0, %v16235_v36 }
  0xd3   : > { %v11860_v37 = vpop.f32.mrf.mxu0  ;;  %12187 = vmatmul.mubr.msk.f32.gmra.mxu0 %vm202_vm0, %v16235_v36  ;;  %v16243_v36 = vld [vmem:[#allocation15_spill] sm:$0xff] }
  0xd4   : > { %v13783_v38 = vpop.f32.mrf.mxu1  ;;  %12167 = vmatmul.mubr.msk.f32.gmra.mxu1 %vm202_vm0, %v16236_v39  ;;  %12189 = vmatprep.mubr.msk.f32.mxu0 %vm202_vm0, %v16236_v39  ;;  %v16244_v39 = vld [vmem:[#allocation16_spill] sm:$0xff] }
  0xd5   : > { %12169 = vmatprep.mubr.msk.f32.mxu1 %vm202_vm0, %v16237_v40  ;;  %v311_v41 = vpop.f32.mrf.mxu0 }
  0xd6   : > { %v13793_v42 = vpop.f32.mrf.mxu1 }
  0xd7   : > { %v11863_v43 = vpop.f32.mrf.mxu0  ;;  %12190 = vmatmul.mubr.msk.f32.gmra.mxu0 %vm202_vm0, %v16237_v40 }
  0xd8   : > { %v13795_v44 = vpop.f32.mrf.mxu1  ;;  %12170 = vmatmul.mubr.msk.f32.gmra.mxu1 %vm202_vm0, %v16238_v46  ;;  %12192 = vmatprep.mubr.msk.f32.mxu0 %vm202_vm0, %v16238_v46 }
  0xd9   : > { %12172 = vmatprep.mubr.msk.f32.mxu1 %vm202_vm0, %v16239_v47  ;;  %v321_v54 = vpop.f32.mrf.mxu0 }
  0xda   : > { %v13806_v56 = vpop.f32.mrf.mxu1 }
  0xdb   : > { %v11866_v59 = vpop.f32.mrf.mxu0  ;;  %12193 = vmatmul.mubr.msk.f32.gmra.mxu0 %vm202_vm0, %v16239_v47 }
  0xdc   : > { %v13809_v60 = vpop.f32.mrf.mxu1  ;;  %12173 = vmatmul.mubr.msk.f32.gmra.mxu1 %vm202_vm0, %v2845_v51  ;;  %12195 = vmatprep.mubr.msk.f32.mxu0 %vm202_vm0, %v2845_v51  ;;  %v16245_v51 = vld [vmem:[#allocation17_spill] sm:$0xff] }
  0xdd   : > { %12175 = vmatprep.mubr.msk.f32.mxu1 %vm202_vm0, %v2846_v57  ;;  %v331_v62 = vpop.f32.mrf.mxu0 }
  0xde   : > { %v13817_v63 = vpop.f32.mrf.mxu1 }
  0xdf   : > { %v11869_v3 = vpop.f32.mrf.mxu0  ;;  %12196 = vmatmul.mubr.msk.f32.gmra.mxu0 %vm202_vm0, %v2846_v57  ;;  %v16246_v57 = vld [vmem:[#allocation18_spill] sm:$0xff] }
  0xe0   : > { %v11883_v9 = vpop.f32.mrf.mxu1  ;;  %12176 = vmatmul.mubr.msk.f32.gmra.mxu1 %vm202_vm0, %v2847_v61  ;;  %12198 = vmatprep.mubr.msk.f32.mxu0 %vm202_vm0, %v3053_v1 }
  0xe1   : > { %v494_v16 = vadd.f32 %v11883_v9, %v11860_v37  ;;  %12203 = vmatprep.mubr.msk.f32.mxu1 %vm202_vm0, %v16240_v20  ;;  %v341_v55 = vpop.f32.mrf.mxu0  ;;  %v16248_v20 = vld [vmem:[#allocation20_spill] sm:$0xff] }
  0xe2   : > { %v488_v48 = vpop.f32.mrf.mxu1 }
  0xe3   : > { %v489_v21 = vadd.f32 %v488_v48, %v311_v41  ;;  %v11906_v13 = vpop.f32.mrf.mxu0  ;;  %12199 = vmatmul.mubr.msk.f32.gmra.mxu0 %vm202_vm0, %v3054_v25 }
  0xe4   : > { %v11886_v12 = vpop.f32.mrf.mxu1  ;;  %12204 = vmatmul.mubr.msk.f32.vlgmr.msra.gmra.mxu1 %vm202_vm0, %v16241_v14  ;;  %v13834_v24 = vadd.f32 %v11906_v13, %v494_v16  ;;  %12226 = vmatprep.mubr.msk.f32.mxu0 %vm202_vm0, %v13418_v49  ;;  %v16247_v16 = vld [vmem:[#allocation19_spill] sm:$0xff] }
  0xe5   : > { %v504_v19 = vadd.f32 %v11886_v12, %v11863_v43  ;;  %12248 = vmatpush3.msra.mxu1 %v13751_v29  ;;  %12206 = vmatprep.mubr.msk.f32.mxu1 %vm202_vm0, %v16242_v26  ;;  %v681_v30 = vpop.f32.mrf.mxu0  ;;  %v16249_v12 = vld [vmem:[#allocation21_spill] sm:$0xff] }
  0xe6   : > { %v498_v27 = vpop.f32.mrf.mxu1  ;;  %12293 = vmatprep.subr.mxu1 %v13829_v4  ;;  %v13842_v33 = vadd.f32 %v681_v30, %v489_v21  ;;  %v13907_v26 = vld [vmem:[%s13046_s23 + $0x7d] sm:$0xff] }
  0xe7   : > { %v499_v31 = vadd.f32 %v498_v27, %v321_v54  ;;  %v11909_v29 = vpop.f32.mrf.mxu0  ;;  %12227 = vmatmul.mubr.msk.f32.vlgmr.msra.gmra.mxu0 %vm202_vm0, %v13425_v52 }
  0xe8   : > { %v11889_v35 = vpop.f32.mrf.mxu1  ;;  %12207 = vmatmul.mubr.msk.f32.gmra.mxu1 %vm202_vm0, %v16243_v36  ;;  %v13853_v49 = vadd.f32 %v11909_v29, %v504_v19  ;;  %12271 = vmatpush3.msra.mxu0 %v13764_v32 }
  0xe9   : > { %v514_v37 = vadd.f32 %v11889_v35, %v11866_v59  ;;  %12209 = vmatprep.mubr.msk.f32.mxu1 %vm202_vm0, %v16244_v39  ;;  %v691_v41 = vpop.f32.mrf.mxu0  ;;  %12229 = vmatprep.mubr.msk.f32.mxu0 %vm202_vm0, %v13439_v28  ;;  %v3466_v35 = vld [vmem:[%s13046_s23 + $0x76] sm:$0xff] }
  0xea   : > { %v508_v40 = vpop.f32.mrf.mxu1  ;;  %12316 = vmatprep.subr.mxu0 %v13847_v34  ;;  %v13861_v46 = vadd.f32 %v691_v41, %v499_v31 }
  0xeb   : > { %v509_v43 = vadd.f32 %v508_v40, %v331_v62  ;;  %v11912_v52 = vpop.f32.mrf.mxu0  ;;  %12230 = vmatmul.mubr.msk.f32.gmra.mxu0 %vm202_vm0, %v13445_v22 }
  0xec   : > { %v11892_v47 = vpop.f32.mrf.mxu1  ;;  %12210 = vmatmul.mubr.msk.f32.gmra.mxu1 %vm202_vm0, %v16245_v51  ;;  %v13867_v54 = vadd.f32 %v11912_v52, %v514_v37  ;;  %12232 = vmatprep.mubr.msk.f32.mxu0 %vm202_vm0, %v13459_v53  ;;  %v3467_v37 = vld [vmem:[%s13046_s23 + $0x7e] sm:$0xff] }
  0xed   : > { %v524_v32 = vadd.f32 %v11892_v47, %v11869_v3  ;;  %12212 = vmatprep.mubr.msk.f32.mxu1 %vm202_vm0, %v16246_v57  ;;  %v701_v59 = vpop.f32.mrf.mxu0  ;;  %v13945_v57 = vld [vmem:[%s16161_s1 + $0xa8] sm:$0xff] }
  0xee   : > { %v518_v28 = vpop.f32.mrf.mxu1  ;;  %v13873_v62 = vadd.f32 %v701_v59, %v509_v43  ;;  %v3468_v43 = vld [vmem:[%s13046_s23 + $0x86] sm:$0x3] }
  0xef   : > { %v519_v61 = vadd.f32 %v518_v28, %v341_v55  ;;  %v11915_v9 = vpop.f32.mrf.mxu0  ;;  %12233 = vmatmul.mubr.msk.f32.gmra.mxu0 %vm202_vm0, %v13465_v10  ;;  %v13887_v55 = vld [vmem:[%s13046_s23 + $0x6d] sm:$0xff] }
  0xf0   : > { %v11895_v1 = vpop.f32.mrf.mxu1  ;;  %12213 = vmatmul.mubr.msk.f32.gmra.mxu1 %vm202_vm0, %v16247_v16  ;;  %v13880_v3 = vadd.f32 %v11915_v9, %v524_v32  ;;  %12235 = vmatprep.mubr.msk.f32.mxu0 %vm202_vm0, %v13479_v58  ;;  %v3869_v32 = vld [vmem:[%s13046_s23 + $0x20] sm:$0xff] }
  0xf1   : > { %v534_v22 = vadd.f32 %v11895_v1, %v13783_v38  ;;  %12215 = vmatprep.mubr.msk.f32.mxu1 %vm202_vm0, %v16248_v20  ;;  %v711_v25 = vpop.f32.mrf.mxu0  ;;  %v3870_v1 = vld [vmem:[%s13046_s23 + $0x28] sm:$0xff] }
  0xf2   : > { %v528_v53 = vpop.f32.mrf.mxu1  ;;  %v13890_v21 = vadd.f32 %v711_v25, %v519_v61 }
  0xf3   : > { %v529_v48 = vadd.f32 %v528_v53, %v13793_v42  ;;  %v11918_v38 = vpop.f32.mrf.mxu0  ;;  %12236 = vmatmul.mubr.msk.f32.gmra.mxu0 %vm202_vm0, %v13485_v2  ;;  %v13904_v42 = vld [vmem:[%s13046_s23 + $0x75] sm:$0xff] }
  0xf4   : > { %v11898_v10 = vpop.f32.mrf.mxu1  ;;  %12216 = vmatmul.mubr.msk.f32.gmra.mxu1 %vm202_vm0, %v16249_v12  ;;  %v13897_v58 = vadd.f32 %v11918_v38, %v534_v22  ;;  %12238 = vmatprep.mubr.msk.f32.mxu0 %vm202_vm0, %v13497_v50  ;;  %v3872_v12 = vld [vmem:[%s13046_s23 + $0x38] sm:$0xff] }
  0xf5   : > { %v544_v13 = vadd.f32 %v11898_v10, %v13795_v44  ;;  %12218 = vmatprep.mubr.msk.f32.mxu1 %vm202_vm0, %v13887_v55  ;;  %v721_v19 = vpop.f32.mrf.mxu0 }
  0xf6   : > { %v538_v14 = vpop.f32.mrf.mxu1  ;;  %v13910_v44 = vadd.f32 %v721_v19, %v529_v48  ;;  %v16252_v48 = vld [vmem:[#allocation24_spill] sm:$0xff]  ;;  %v3873_v19 = vld [vmem:[%s13046_s23 + $0x40] sm:$0xff] }
  0xf7   : > { %v539_v2 = vadd.f32 %v538_v14, %v13806_v56  ;;  %v11921_v30 = vpop.f32.mrf.mxu0  ;;  %12239 = vmatmul.mubr.msk.f32.gmra.mxu0 %vm202_vm0, %v13500_v0  ;;  %v3261_v56 = vld [vmem:[%s13046_s23 + $0x85] sm:$0x3] }
  0xf8   : > { %v11901_v27 = vpop.f32.mrf.mxu1  ;;  %12219 = vmatmul.mubr.msk.f32.gmra.mxu1 %vm202_vm0, %v13904_v42  ;;  %v13917_v31 = vadd.f32 %v11921_v30, %v544_v13  ;;  %12241 = vmatprep.mubr.msk.f32.mxu0 %vm202_vm0, %v13578_v23 }
  0xf9   : > { %v554_v50 = vadd.f32 %v11901_v27, %v13809_v60  ;;  %12221 = vmatprep.mubr.msk.f32.mxu1 %vm202_vm0, %v13907_v26  ;;  %v731_v36 = vpop.f32.mrf.mxu0 }
  0xfa   : > { %v548_v29 = vpop.f32.mrf.mxu1  ;;  %v13927_v0 = vadd.f32 %v731_v36, %v539_v2 }
  0xfb   : > { %v549_v39 = vadd.f32 %v548_v29, %v13817_v63  ;;  %v11924_v60 = vpop.f32.mrf.mxu0  ;;  %12242 = vmatmul.mubr.msk.f32.gmra.mxu0 %vm202_vm0, %v3466_v35  ;;  %v16255_v35 = vld [vmem:[#allocation27_spill] sm:$0xff] }
  0xfc   : > { %v11929_v40 = vpop.f32.mrf.mxu1  ;;  %12222 = vmatmul.mubr.msk.f32.gmra.mxu1 %vm202_vm0, %v3261_v56  ;;  %v13931_v41 = vadd.f32 %v11924_v60, %v554_v50  ;;  %12244 = vmatprep.mubr.msk.f32.mxu0 %vm202_vm0, %v3467_v37  ;;  %v3875_v37 = vld [vmem:[%s13046_s23 + $0x50] sm:$0xff] }
  0xfd   : > { %v958_v23 = vadd.f32 %v11929_v40, %v13834_v24  ;;  %12249 = vmatprep.mubr.msk.f32.mxu1 %vm202_vm0, %v13520_v45  ;;  %v741_v63 = vpop.f32.mrf.mxu0  ;;  %v16250_v45 = vld [vmem:[#allocation22_spill] sm:$0xff] }
  0xfe   : > { %v888_v47 = vpop.f32.mrf.mxu1  ;;  %v13938_v52 = vadd.f32 %v741_v63, %v549_v39 }
  0xff   : > { %v957_v51 = vadd.f32 %v888_v47, %v13842_v33  ;;  %v11952_v28 = vpop.f32.mrf.mxu0  ;;  %12245 = vmatmul.mubr.msk.f32.gmra.mxu0 %vm202_vm0, %v3468_v43  ;;  %v16251_v33 = vld [vmem:[#allocation23_spill] sm:$0xff]  ;;  %v16257_v47 = vld [vmem:[#allocation29_spill] sm:$0xff] }
 0x100   : > { %v11932_v24 = vpop.f32.mrf.mxu1  ;;  %12250 = vmatmul.mubr.msk.f32.vlgmr.msra.gmra.mxu1 %vm202_vm0, %v16250_v45  ;;  %v13951_v61 = vadd.f32 %v11952_v28, %v958_v23  ;;  %12272 = vmatprep.mubr.msk.f32.mxu0 %vm202_vm0, %v3869_v32 }
 0x101   : > { %v960_v59 = vadd.f32 %v11932_v24, %v13853_v49  ;;  %12294 = vmatpush3.msra.mxu1 %v13829_v4  ;;  %12252 = vmatprep.mubr.msk.f32.mxu1 %vm202_vm0, %v16251_v33  ;;  %v1095_v16 = vpop.f32.mrf.mxu0  ;;  %v3871_v49 = vld [vmem:[%s13046_s23 + $0x30] sm:$0xff]  ;;  %v3877_v24 = vld [vmem:[%s13046_s23 + $0x60] sm:$0xff] }
 0x102   : > { %v898_v9 = vpop.f32.mrf.mxu1  ;;  %12339 = vmatprep.subr.mxu1 %v13945_v57  ;;  %v13960_v20 = vadd.f32 %v1095_v16, %v957_v51  ;;  %v13966_v4 = vld [vmem:[%s16161_s1 + $0xb0] sm:$0xff] }
 0x103   : > { %v959_v22 = vadd.f32 %v898_v9, %v13861_v46  ;;  %v11955_v25 = vpop.f32.mrf.mxu0  ;;  %12273 = vmatmul.mubr.msk.f32.vlgmr.msra.gmra.mxu0 %vm202_vm0, %v3870_v1  ;;  %v16253_v46 = vld [vmem:[#allocation25_spill] sm:$0xff] }
 0x104   : > { %v11935_v53 = vpop.f32.mrf.mxu1  ;;  %12253 = vmatmul.mubr.msk.f32.gmra.mxu1 %vm202_vm0, %v16252_v48  ;;  %v13972_v38 = vadd.f32 %v11955_v25, %v960_v59  ;;  %12317 = vmatpush3.msra.mxu0 %v13847_v34  ;;  %v16254_v34 = vld [vmem:[#allocation26_spill] sm:$0xff]  ;;  %v3880_v48 = vld [vmem:[%s13046_s23 + $0x78] sm:$0xff] }
 0x105   : > { %v962_v10 = vadd.f32 %v11935_v53, %v13867_v54  ;;  %12255 = vmatprep.mubr.msk.f32.mxu1 %vm202_vm0, %v16253_v46  ;;  %v1105_v14 = vpop.f32.mrf.mxu0  ;;  %12275 = vmatprep.mubr.msk.f32.mxu0 %vm202_vm0, %v3871_v49 }
 0x106   : > { %v908_v13 = vpop.f32.mrf.mxu1  ;;  %12362 = vmatprep.subr.mxu0 %v13966_v4  ;;  %v13982_v54 = vadd.f32 %v1105_v14, %v959_v22  ;;  %v14025_v22 = vld [vmem:[%s13046_s23 + $0x7f] sm:$0xff] }
 0x107   : > { %v961_v2 = vadd.f32 %v908_v13, %v13873_v62  ;;  %v11958_v30 = vpop.f32.mrf.mxu0  ;;  %12276 = vmatmul.mubr.msk.f32.gmra.mxu0 %vm202_vm0, %v3872_v12  ;;  %v3874_v62 = vld [vmem:[%s13046_s23 + $0x48] sm:$0xff]  ;;  %v3881_v12 = vld [vmem:[%s13046_s23 + $0x80] sm:$0xff] }
 0x108   : > { %v11938_v27 = vpop.f32.mrf.mxu1  ;;  %12256 = vmatmul.mubr.msk.f32.gmra.mxu1 %vm202_vm0, %v16254_v34  ;;  %v13988_v56 = vadd.f32 %v11958_v30, %v962_v10  ;;  %12278 = vmatprep.mubr.msk.f32.mxu0 %vm202_vm0, %v3873_v19  ;;  %v4076_v13 = vld [vmem:[%s13046_s23 + $0x21] sm:$0xff]  ;;  %v4077_v30 = vld [vmem:[%s13046_s23 + $0x29] sm:$0xff] }
 0x109   : > { %v964_v50 = vadd.f32 %v11938_v27, %v13880_v3  ;;  %12258 = vmatprep.mubr.msk.f32.mxu1 %vm202_vm0, %v16255_v35  ;;  %v1115_v36 = vpop.f32.mrf.mxu0  ;;  %v16256_v3 = vld [vmem:[#allocation28_spill] sm:$0xff]  ;;  %v3882_v27 = vld [vmem:[%s13046_s23 + $0x88] sm:$0x3] }
 0x10a   : > { %v918_v29 = vpop.f32.mrf.mxu1  ;;  %v13996_v60 = vadd.f32 %v1115_v36, %v961_v2 }
 0x10b   : > { %v963_v39 = vadd.f32 %v918_v29, %v13890_v21  ;;  %v11961_v23 = vpop.f32.mrf.mxu0  ;;  %12279 = vmatmul.mubr.msk.f32.gmra.mxu0 %vm202_vm0, %v3874_v62  ;;  %v3876_v21 = vld [vmem:[%s13046_s23 + $0x58] sm:$0xff]  ;;  %v4283_v29 = vld [vmem:[%s13046_s23 + $0x22] sm:$0xff] }
 0x10c   : > { %v11941_v40 = vpop.f32.mrf.mxu1  ;;  %12259 = vmatmul.mubr.msk.f32.gmra.mxu1 %vm202_vm0, %v16256_v3  ;;  %v14002_v63 = vadd.f32 %v11961_v23, %v964_v50  ;;  %12281 = vmatprep.mubr.msk.f32.mxu0 %vm202_vm0, %v3875_v37  ;;  %v4078_v50 = vld [vmem:[%s13046_s23 + $0x31] sm:$0xff] }
 0x10d   : > { %v966_v43 = vadd.f32 %v11941_v40, %v13897_v58  ;;  %12261 = vmatprep.mubr.msk.f32.mxu1 %vm202_vm0, %v16257_v47  ;;  %v1125_v32 = vpop.f32.mrf.mxu0  ;;  %v14076_v23 = vld [vmem:[%s13046_s23 + $0x2a] sm:$0xff]  ;;  %v4080_v47 = vld [vmem:[%s13046_s23 + $0x41] sm:$0xff] }
 0x10e   : > { %v928_v51 = vpop.f32.mrf.mxu1  ;;  %v14010_v45 = vadd.f32 %v1125_v32, %v963_v39 }
 0x10f   : > { %v965_v28 = vadd.f32 %v928_v51, %v13910_v44  ;;  %v11964_v33 = vpop.f32.mrf.mxu0  ;;  %12282 = vmatmul.mubr.msk.f32.gmra.mxu0 %vm202_vm0, %v3876_v21  ;;  %v14022_v44 = vld [vmem:[%s13046_s23 + $0x77] sm:$0xff]  ;;  %v14090_v51 = vld [vmem:[%s16161_s1 + $0xc0] sm:$0xff] }
 0x110   : > { %v11944_v59 = vpop.f32.mrf.mxu1  ;;  %12262 = vmatmul.mubr.msk.f32.gmra.mxu1 %vm202_vm0, %v13593_v18  ;;  %v14016_v1 = vadd.f32 %v11964_v33, %v966_v43  ;;  %12284 = vmatprep.mubr.msk.f32.mxu0 %vm202_vm0, %v3877_v24  ;;  %v14102_v33 = vld [vmem:[%s13046_s23 + $0x3a] sm:$0xff] }
 0x111   : > { %v968_v58 = vadd.f32 %v11944_v59, %v13917_v31  ;;  %12264 = vmatprep.mubr.msk.f32.mxu1 %vm202_vm0, %v13596_v5  ;;  %v1135_v16 = vpop.f32.mrf.mxu0  ;;  %v4081_v59 = vld [vmem:[%s13046_s23 + $0x49] sm:$0xff] }
 0x112   : > { %v938_v9 = vpop.f32.mrf.mxu1  ;;  %v14028_v31 = vadd.f32 %v1135_v16, %v965_v28  ;;  %v4082_v16 = vld [vmem:[%s13046_s23 + $0x51] sm:$0xff] }
 0x113   : > { %v967_v18 = vadd.f32 %v938_v9, %v13927_v0  ;;  %v11967_v53 = vpop.f32.mrf.mxu0  ;;  %12285 = vmatmul.mubr.msk.f32.gmra.mxu0 %vm202_vm0, %v13652_v7  ;;  %v3675_v0 = vld [vmem:[%s13046_s23 + $0x87] sm:$0x3] }
 0x114   : > { %v11947_v49 = vpop.f32.mrf.mxu1  ;;  %12265 = vmatmul.mubr.msk.f32.gmra.mxu1 %vm202_vm0, %v14022_v44  ;;  %v14035_v25 = vadd.f32 %v11967_v53, %v968_v58  ;;  %12287 = vmatprep.mubr.msk.f32.mxu0 %vm202_vm0, %v13655_v11 }
 0x115   : > { %v970_v5 = vadd.f32 %v11947_v49, %v13931_v41  ;;  %12267 = vmatprep.mubr.msk.f32.mxu1 %vm202_vm0, %v14025_v22  ;;  %v1145_v46 = vpop.f32.mrf.mxu0 }
 0x116   : > { %v948_v10 = vpop.f32.mrf.mxu1  ;;  %v14046_v41 = vadd.f32 %v1145_v46, %v967_v18  ;;  %v14108_v18 = vld [vmem:[%s13046_s23 + $0x42] sm:$0xff] }
 0x117   : > { %v969_v7 = vadd.f32 %v948_v10, %v13938_v52  ;;  %v11970_v14 = vpop.f32.mrf.mxu0  ;;  %12288 = vmatmul.mubr.msk.f32.gmra.mxu0 %vm202_vm0, %v3880_v48  ;;  %v4083_v48 = vld [vmem:[%s13046_s23 + $0x59] sm:$0xff] }
 0x118   : > { %v11975_v19 = vpop.f32.mrf.mxu1  ;;  %12268 = vmatmul.mubr.msk.f32.gmra.mxu1 %vm202_vm0, %v3675_v0  ;;  %v14050_v11 = vadd.f32 %v11970_v14, %v970_v5  ;;  %12290 = vmatprep.mubr.msk.f32.mxu0 %vm202_vm0, %v3881_v12  ;;  %v4084_v12 = vld [vmem:[%s13046_s23 + $0x61] sm:$0xff] }
 0x119   : > { %v1372_v2 = vadd.f32 %v11975_v19, %v13951_v61  ;;  %12295 = vmatprep.mubr.msk.f32.mxu1 %vm202_vm0, %v4076_v13  ;;  %v1155_v52 = vpop.f32.mrf.mxu0  ;;  %v14065_v61 = vld [vmem:[%s16161_s1 + $0xb8] sm:$0xff] }
 0x11a   : > { %v1302_v34 = vpop.f32.mrf.mxu1  ;;  %v14058_v35 = vadd.f32 %v1155_v52, %v969_v7  ;;  %v14129_v13 = vld [vmem:[%s13046_s23 + $0x52] sm:$0xff] }
 0x11b   : > { %v1371_v62 = vadd.f32 %v1302_v34, %v13960_v20  ;;  %v11998_v37 = vpop.f32.mrf.mxu0  ;;  %12291 = vmatmul.mubr.msk.f32.gmra.mxu0 %vm202_vm0, %v3882_v27  ;;  %v4079_v20 = vld [vmem:[%s13046_s23 + $0x39] sm:$0xff]  ;;  %v14147_v34 = vld [vmem:[%s13046_s23 + $0x62] sm:$0xff] }
 0x11c   : > { %v11978_v36 = vpop.f32.mrf.mxu1  ;;  %12296 = vmatmul.mubr.msk.f32.vlgmr.msra.gmra.mxu1 %vm202_vm0, %v4077_v30  ;;  %v14070_v40 = vadd.f32 %v11998_v37, %v1372_v2  ;;  %12318 = vmatprep.mubr.msk.f32.mxu0 %vm202_vm0, %v4283_v29 }
 0x11d   : > { %v1374_v39 = vadd.f32 %v11978_v36, %v13972_v38  ;;  %12340 = vmatpush3.msra.mxu1 %v13945_v57  ;;  %12298 = vmatprep.mubr.msk.f32.mxu1 %vm202_vm0, %v4078_v50  ;;  %v1509_v43 = vpop.f32.mrf.mxu0  ;;  %v14085_v57 = vld [vmem:[%s13046_s23 + $0x32] sm:$0xff] }
 0x11e   : > { %v1312_v3 = vpop.f32.mrf.mxu1  ;;  %12385 = vmatprep.subr.mxu1 %v14065_v61  ;;  %v14082_v21 = vadd.f32 %v1509_v43, %v1371_v62 }
 0x11f   : > { %v1373_v38 = vadd.f32 %v1312_v3, %v13982_v54  ;;  %v12001_v24 = vpop.f32.mrf.mxu0  ;;  %12319 = vmatmul.mubr.msk.f32.vlgmr.msra.gmra.mxu0 %vm202_vm0, %v14076_v23 }
 0x120   : > { %v11981_v32 = vpop.f32.mrf.mxu1  ;;  %12299 = vmatmul.mubr.msk.f32.gmra.mxu1 %vm202_vm0, %v4079_v20  ;;  %v14096_v28 = vadd.f32 %v12001_v24, %v1374_v39  ;;  %12363 = vmatpush3.msra.mxu0 %v13966_v4 }
 0x121   : > { %v1376_v54 = vadd.f32 %v11981_v32, %v13988_v56  ;;  %12301 = vmatprep.mubr.msk.f32.mxu1 %vm202_vm0, %v4080_v47  ;;  %v1519_v9 = vpop.f32.mrf.mxu0  ;;  %12321 = vmatprep.mubr.msk.f32.mxu0 %vm202_vm0, %v14085_v57  ;;  %v14179_v32 = vld [vmem:[%s13046_s23 + $0x7a] sm:$0xff] }
 0x122   : > { %v1322_v58 = vpop.f32.mrf.mxu1  ;;  %12408 = vmatprep.subr.mxu0 %v14090_v51  ;;  %v14112_v56 = vadd.f32 %v1519_v9, %v1373_v38 }
 0x123   : > { %v1375_v4 = vadd.f32 %v1322_v58, %v13996_v60  ;;  %v12004_v53 = vpop.f32.mrf.mxu0  ;;  %12322 = vmatmul.mubr.msk.f32.gmra.mxu0 %vm202_vm0, %v14102_v33  ;;  %v14125_v60 = vld [vmem:[%s13046_s23 + $0x4a] sm:$0xff] }
 0x124   : > { %v11984_v49 = vpop.f32.mrf.mxu1  ;;  %12302 = vmatmul.mubr.msk.f32.gmra.mxu1 %vm202_vm0, %v4081_v59  ;;  %v14118_v0 = vadd.f32 %v12004_v53, %v1376_v54  ;;  %12324 = vmatprep.mubr.msk.f32.mxu0 %vm202_vm0, %v14108_v18  ;;  %v14182_v59 = vld [vmem:[%s13046_s23 + $0x82] sm:$0xff] }
 0x125   : > { %v1378_v5 = vadd.f32 %v11984_v49, %v14002_v63  ;;  %12304 = vmatprep.mubr.msk.f32.mxu1 %vm202_vm0, %v4082_v16  ;;  %v1529_v46 = vpop.f32.mrf.mxu0 }
 0x126   : > { %v1332_v10 = vpop.f32.mrf.mxu1  ;;  %v14132_v63 = vadd.f32 %v1529_v46, %v1375_v4 }
 0x127   : > { %v1377_v7 = vadd.f32 %v1332_v10, %v14010_v45  ;;  %v12007_v19 = vpop.f32.mrf.mxu0  ;;  %12325 = vmatmul.mubr.msk.f32.gmra.mxu0 %vm202_vm0, %v14125_v60  ;;  %v14144_v45 = vld [vmem:[%s13046_s23 + $0x5a] sm:$0xff]  ;;  %v14205_v10 = vld [vmem:[%s16161_s1 + $0xc8] sm:$0xff] }
 0x128   : > { %v11987_v14 = vpop.f32.mrf.mxu1  ;;  %12305 = vmatmul.mubr.msk.f32.gmra.mxu1 %vm202_vm0, %v4083_v48  ;;  %v14138_v27 = vadd.f32 %v12007_v19, %v1378_v5  ;;  %12327 = vmatprep.mubr.msk.f32.mxu0 %vm202_vm0, %v14129_v13  ;;  %v4697_v48 = vld [vmem:[%s13046_s23 + $0x2b] sm:$0xff] }
 0x129   : > { %v1380_v2 = vadd.f32 %v11987_v14, %v14016_v1  ;;  %12307 = vmatprep.mubr.msk.f32.mxu1 %vm202_vm0, %v4084_v12  ;;  %v1539_v52 = vpop.f32.mrf.mxu0 }
 0x12a   : > { %v1342_v30 = vpop.f32.mrf.mxu1  ;;  %v14150_v62 = vadd.f32 %v1539_v52, %v1377_v7 }
 0x12b   : > { %v1379_v50 = vadd.f32 %v1342_v30, %v14028_v31  ;;  %v12010_v29 = vpop.f32.mrf.mxu0  ;;  %12328 = vmatmul.mubr.msk.f32.gmra.mxu0 %vm202_vm0, %v14144_v45  ;;  %v4087_v31 = vld [vmem:[%s13046_s23 + $0x79] sm:$0xff] }
 0x12c   : > { %v11990_v1 = vpop.f32.mrf.mxu1  ;;  %12308 = vmatmul.mubr.msk.f32.gmra.mxu1 %vm202_vm0, %v13667_v6  ;;  %v14157_v37 = vadd.f32 %v12010_v29, %v1380_v2  ;;  %12330 = vmatprep.mubr.msk.f32.mxu0 %vm202_vm0, %v14147_v34  ;;  %v4088_v6 = vld [vmem:[%s13046_s23 + $0x81] sm:$0xff]  ;;  %v4701_v29 = vld [vmem:[%s13046_s23 + $0x4b] sm:$0xff] }
 0x12d   : > { %v1382_v36 = vadd.f32 %v11990_v1, %v14035_v25  ;;  %12310 = vmatprep.mubr.msk.f32.mxu1 %vm202_vm0, %v13670_v8  ;;  %v1549_v20 = vpop.f32.mrf.mxu0 }
 0x12e   : > { %v1352_v39 = vpop.f32.mrf.mxu1  ;;  %v14166_v43 = vadd.f32 %v1549_v20, %v1379_v50 }
 0x12f   : > { %v1381_v3 = vadd.f32 %v1352_v39, %v14046_v41  ;;  %v12013_v47 = vpop.f32.mrf.mxu0  ;;  %12331 = vmatmul.mubr.msk.f32.gmra.mxu0 %vm202_vm0, %v13726_v15  ;;  %v4089_v41 = vld [vmem:[%s13046_s23 + $0x89] sm:$0x3] }
 0x130   : > { %v11993_v25 = vpop.f32.mrf.mxu1  ;;  %12311 = vmatmul.mubr.msk.f32.gmra.mxu1 %vm202_vm0, %v4087_v31  ;;  %v14172_v38 = vadd.f32 %v12013_v47, %v1382_v36  ;;  %12333 = vmatprep.mubr.msk.f32.mxu0 %vm202_vm0, %v13729_v17 }
 0x131   : > { %v1384_v8 = vadd.f32 %v11993_v25, %v14050_v11  ;;  %12313 = vmatprep.mubr.msk.f32.mxu1 %vm202_vm0, %v4088_v6  ;;  %v1559_v54 = vpop.f32.mrf.mxu0  ;;  %v14255_v6 = vld [vmem:[%s13046_s23 + $0x6a] sm:$0xff] }
 0x132   : > { %v1362_v24 = vpop.f32.mrf.mxu1  ;;  %v14185_v58 = vadd.f32 %v1559_v54, %v1381_v3 }
 0x133   : > { %v1383_v15 = vadd.f32 %v1362_v24, %v14058_v35  ;;  %v12016_v11 = vpop.f32.mrf.mxu0  ;;  %12334 = vmatmul.mubr.msk.f32.gmra.mxu0 %vm202_vm0, %v14179_v32  ;;  %v4296_v35 = vld [vmem:[%s13046_s23 + $0x8a] sm:$0x3] }
 0x134   : > { %v12021_v9 = vpop.f32.mrf.mxu1  ;;  %12314 = vmatmul.mubr.msk.f32.gmra.mxu1 %vm202_vm0, %v4089_v41  ;;  %v14190_v17 = vadd.f32 %v12016_v11, %v1384_v8  ;;  %12336 = vmatprep.mubr.msk.f32.mxu0 %vm202_vm0, %v14182_v59  ;;  %v4704_v41 = vld [vmem:[%s13046_s23 + $0x63] sm:$0xff] }
 0x135   : > { %v1786_v16 = vadd.f32 %v12021_v9, %v14070_v40  ;;  %12341 = vmatprep.mubr.msk.f32.mxu1 %vm202_vm0, %v14076_v23  ;;  %v1569_v4 = vpop.f32.mrf.mxu0 }
 0x136   : > { %v1716_v49 = vpop.f32.mrf.mxu1  ;;  %v14198_v53 = vadd.f32 %v1569_v4, %v1383_v15 }
 0x137   : > { %v1785_v5 = vadd.f32 %v1716_v49, %v14082_v21  ;;  %v12044_v46 = vpop.f32.mrf.mxu0  ;;  %12337 = vmatmul.mubr.msk.f32.gmra.mxu0 %vm202_vm0, %v4296_v35  ;;  %v4698_v21 = vld [vmem:[%s13046_s23 + $0x33] sm:$0xff] }
 0x138   : > { %v12024_v40 = vpop.f32.mrf.mxu1  ;;  %12342 = vmatmul.mubr.msk.f32.vlgmr.msra.gmra.mxu1 %vm202_vm0, %v14085_v57  ;;  %v14211_v12 = vadd.f32 %v12044_v46, %v1786_v16  ;;  %12364 = vmatprep.mubr.msk.f32.mxu0 %vm202_vm0, %v4697_v48  ;;  %v4707_v48 = vld [vmem:[%s13046_s23 + $0x7b] sm:$0xff] }
 0x139   : > { %v1788_v23 = vadd.f32 %v12024_v40, %v14096_v28  ;;  %12386 = vmatpush3.msra.mxu1 %v14065_v61  ;;  %12344 = vmatprep.mubr.msk.f32.mxu1 %vm202_vm0, %v14102_v33  ;;  %v1923_v14 = vpop.f32.mrf.mxu0  ;;  %v4699_v28 = vld [vmem:[%s13046_s23 + $0x3b] sm:$0xff]  ;;  %v14226_v61 = vld [vmem:[%s16161_s1 + $0xd0] sm:$0xff] }
 0x13a   : > { %v1726_v7 = vpop.f32.mrf.mxu1  ;;  %12431 = vmatprep.subr.mxu1 %v14205_v10  ;;  %v14220_v57 = vadd.f32 %v1923_v14, %v1785_v5  ;;  %v14289_v5 = vld [vmem:[%s13046_s23 + $0x8a] sm:$0xff] }
 0x13b   : > { %v1787_v19 = vadd.f32 %v1726_v7, %v14112_v56  ;;  %v12047_v2 = vpop.f32.mrf.mxu0  ;;  %12365 = vmatmul.mubr.msk.f32.vlgmr.msra.gmra.mxu0 %vm202_vm0, %v4698_v21  ;;  %v4700_v56 = vld [vmem:[%s13046_s23 + $0x43] sm:$0xff]  ;;  %v4503_v7 = vld [vmem:[%s13046_s23 + $0x92] sm:$0x3] }
 0x13c   : > { %v12027_v33 = vpop.f32.mrf.mxu1  ;;  %12345 = vmatmul.mubr.msk.f32.gmra.mxu1 %vm202_vm0, %v14108_v18  ;;  %v14232_v52 = vadd.f32 %v12047_v2, %v1788_v23  ;;  %12409 = vmatpush3.msra.mxu0 %v14090_v51 }
 0x13d   : > { %v1790_v30 = vadd.f32 %v12027_v33, %v14118_v0  ;;  %12347 = vmatprep.mubr.msk.f32.mxu1 %vm202_vm0, %v14125_v60  ;;  %v1933_v1 = vpop.f32.mrf.mxu0  ;;  %12367 = vmatprep.mubr.msk.f32.mxu0 %vm202_vm0, %v4699_v28  ;;  %v4709_v28 = vld [vmem:[%s13046_s23 + $0x8b] sm:$0xff] }
 0x13e   : > { %v1736_v50 = vpop.f32.mrf.mxu1  ;;  %12454 = vmatprep.subr.mxu0 %v14226_v61  ;;  %v14242_v0 = vadd.f32 %v1933_v1, %v1787_v19  ;;  %v4710_v1 = vld [vmem:[%s13046_s23 + $0x93] sm:$0x3] }
 0x13f   : > { %v1789_v18 = vadd.f32 %v1736_v50, %v14132_v63  ;;  %v12050_v51 = vpop.f32.mrf.mxu0  ;;  %12368 = vmatmul.mubr.msk.f32.gmra.mxu0 %vm202_vm0, %v4700_v56  ;;  %v4702_v63 = vld [vmem:[%s13046_s23 + $0x53] sm:$0xff] }
 0x140   : > { %v12030_v36 = vpop.f32.mrf.mxu1  ;;  %12348 = vmatmul.mubr.msk.f32.gmra.mxu1 %vm202_vm0, %v14129_v13  ;;  %v14248_v31 = vadd.f32 %v12050_v51, %v1790_v30  ;;  %12370 = vmatprep.mubr.msk.f32.mxu0 %vm202_vm0, %v4701_v29  ;;  %v4703_v13 = vld [vmem:[%s13046_s23 + $0x5b] sm:$0xff] }
 0x141   : > { %v1792_v60 = vadd.f32 %v12030_v36, %v14138_v27  ;;  %12350 = vmatprep.mubr.msk.f32.mxu1 %vm202_vm0, %v14144_v45  ;;  %v1943_v20 = vpop.f32.mrf.mxu0  ;;  %v4905_v29 = vld [vmem:[%s13046_s23 + $0x34] sm:$0xff]  ;;  %v14321_v36 = vld [vmem:[%s13046_s23 + $0x3c] sm:$0xff] }
 0x142   : > { %v1746_v39 = vpop.f32.mrf.mxu1  ;;  %v14259_v25 = vadd.f32 %v1943_v20, %v1789_v18 }
 0x143   : > { %v1791_v3 = vadd.f32 %v1746_v39, %v14150_v62  ;;  %v12053_v47 = vpop.f32.mrf.mxu0  ;;  %12371 = vmatmul.mubr.msk.f32.gmra.mxu0 %vm202_vm0, %v4702_v63  ;;  %v14271_v62 = vld [vmem:[%s13046_s23 + $0x72] sm:$0xff] }
 0x144   : > { %v12033_v27 = vpop.f32.mrf.mxu1  ;;  %12351 = vmatmul.mubr.msk.f32.gmra.mxu1 %vm202_vm0, %v14147_v34  ;;  %v14265_v8 = vadd.f32 %v12053_v47, %v1792_v60  ;;  %12373 = vmatprep.mubr.msk.f32.mxu0 %vm202_vm0, %v4703_v13  ;;  %v4705_v34 = vld [vmem:[%s13046_s23 + $0x6b] sm:$0xff] }
 0x145   : > { %v1794_v45 = vadd.f32 %v12033_v27, %v14157_v37  ;;  %12353 = vmatprep.mubr.msk.f32.mxu1 %vm202_vm0, %v14255_v6  ;;  %v1953_v54 = vpop.f32.mrf.mxu0  ;;  %v5111_v63 = vld [vmem:[%s13046_s23 + $0x2d] sm:$0xff]  ;;  %v5112_v27 = vld [vmem:[%s13046_s23 + $0x35] sm:$0xff] }
 0x146   : > { %v1756_v24 = vpop.f32.mrf.mxu1  ;;  %v14276_v11 = vadd.f32 %v1953_v54, %v1791_v3  ;;  %v14356_v54 = vld [vmem:[%s16161_s1 + $0xe0] sm:$0xff] }
 0x147   : > { %v1793_v15 = vadd.f32 %v1756_v24, %v14166_v43  ;;  %v12056_v9 = vpop.f32.mrf.mxu0  ;;  %12374 = vmatmul.mubr.msk.f32.gmra.mxu0 %vm202_vm0, %v4704_v41  ;;  %v4706_v43 = vld [vmem:[%s13046_s23 + $0x73] sm:$0xff] }
 0x148   : > { %v12036_v37 = vpop.f32.mrf.mxu1  ;;  %12354 = vmatmul.mubr.msk.f32.gmra.mxu1 %vm202_vm0, %v14271_v62  ;;  %v14282_v35 = vadd.f32 %v12056_v9, %v1794_v45  ;;  %12376 = vmatprep.mubr.msk.f32.mxu0 %vm202_vm0, %v4705_v34  ;;  %v14346_v41 = vld [vmem:[%s13046_s23 + $0x4c] sm:$0xff]  ;;  %v14368_v9 = vld [vmem:[%s13046_s23 + $0x54] sm:$0xff] }
 0x149   : > { %v1796_v16 = vadd.f32 %v12036_v37, %v14172_v38  ;;  %12356 = vmatprep.mubr.msk.f32.mxu1 %vm202_vm0, %v14179_v32  ;;  %v1963_v49 = vpop.f32.mrf.mxu0 }
 0x14a   : > { %v1766_v4 = vpop.f32.mrf.mxu1  ;;  %v14293_v38 = vadd.f32 %v1963_v49, %v1793_v15  ;;  %v14373_v49 = vld [vmem:[%s13046_s23 + $0x5c] sm:$0xff] }
 0x14b   : > { %v1795_v40 = vadd.f32 %v1766_v4, %v14185_v58  ;;  %v12059_v23 = vpop.f32.mrf.mxu0  ;;  %12377 = vmatmul.mubr.msk.f32.gmra.mxu0 %vm202_vm0, %v4706_v43  ;;  %v4708_v58 = vld [vmem:[%s13046_s23 + $0x83] sm:$0xff] }
 0x14c   : > { %v12039_v46 = vpop.f32.mrf.mxu1  ;;  %12357 = vmatmul.mubr.msk.f32.gmra.mxu1 %vm202_vm0, %v14182_v59  ;;  %v14299_v21 = vadd.f32 %v12059_v23, %v1796_v16  ;;  %12379 = vmatprep.mubr.msk.f32.mxu0 %vm202_vm0, %v4707_v48  ;;  %v4904_v59 = vld [vmem:[%s13046_s23 + $0x2c] sm:$0xff] }
 0x14d   : > { %v1798_v32 = vadd.f32 %v12039_v46, %v14190_v17  ;;  %12359 = vmatprep.mubr.msk.f32.mxu1 %vm202_vm0, %v14289_v5  ;;  %v1973_v19 = vpop.f32.mrf.mxu0  ;;  %v5114_v16 = vld [vmem:[%s13046_s23 + $0x45] sm:$0xff]  ;;  %v5115_v48 = vld [vmem:[%s13046_s23 + $0x4d] sm:$0xff] }
 0x14e   : > { %v1776_v14 = vpop.f32.mrf.mxu1  ;;  %v14309_v2 = vadd.f32 %v1973_v19, %v1795_v40  ;;  %v14394_v19 = vld [vmem:[%s13046_s23 + $0x6c] sm:$0xff] }
 0x14f   : > { %v1797_v33 = vadd.f32 %v1776_v14, %v14198_v53  ;;  %v12062_v17 = vpop.f32.mrf.mxu0  ;;  %12380 = vmatmul.mubr.msk.f32.gmra.mxu0 %vm202_vm0, %v4708_v58 }
 0x150   : > { %v12067_v30 = vpop.f32.mrf.mxu1  ;;  %12360 = vmatmul.mubr.msk.f32.gmra.mxu1 %vm202_vm0, %v4503_v7  ;;  %v14313_v56 = vadd.f32 %v12062_v17, %v1798_v32  ;;  %12382 = vmatprep.mubr.msk.f32.mxu0 %vm202_vm0, %v4709_v28  ;;  %v14390_v7 = vld [vmem:[%s13046_s23 + $0x64] sm:$0xff] }
 0x151   : > { %v2200_v50 = vadd.f32 %v12067_v30, %v14211_v12  ;;  %12387 = vmatprep.mubr.msk.f32.mxu1 %vm202_vm0, %v4904_v59  ;;  %v1983_v53 = vpop.f32.mrf.mxu0  ;;  %v14330_v12 = vld [vmem:[%s16161_s1 + $0xd8] sm:$0xff] }
 0x152   : > { %v2130_v18 = vpop.f32.mrf.mxu1  ;;  %v14323_v51 = vadd.f32 %v1983_v53, %v1797_v33  ;;  %v5117_v28 = vld [vmem:[%s13046_s23 + $0x5d] sm:$0xff] }
 0x153   : > { %v2199_v60 = vadd.f32 %v2130_v18, %v14220_v57  ;;  %v12090_v20 = vpop.f32.mrf.mxu0  ;;  %12383 = vmatmul.mubr.msk.f32.gmra.mxu0 %vm202_vm0, %v4710_v1  ;;  %v14341_v57 = vld [vmem:[%s13046_s23 + $0x44] sm:$0xff]  ;;  %v14414_v18 = vld [vmem:[%s13046_s23 + $0x7c] sm:$0xff] }
 0x154   : > { %v12070_v39 = vpop.f32.mrf.mxu1  ;;  %12388 = vmatmul.mubr.msk.f32.vlgmr.msra.gmra.mxu1 %vm202_vm0, %v4905_v29  ;;  %v14335_v3 = vadd.f32 %v12090_v20, %v2200_v50  ;;  %12410 = vmatprep.mubr.msk.f32.mxu0 %vm202_vm0, %v5111_v63  ;;  %v5118_v1 = vld [vmem:[%s13046_s23 + $0x65] sm:$0xff] }
 0x155   : > { %v2202_v13 = vadd.f32 %v12070_v39, %v14232_v52  ;;  %12432 = vmatpush3.msra.mxu1 %v14205_v10  ;;  %12390 = vmatprep.mubr.msk.f32.mxu1 %vm202_vm0, %v14321_v36  ;;  %v2337_v45 = vpop.f32.mrf.mxu0  ;;  %v5113_v10 = vld [vmem:[%s13046_s23 + $0x3d] sm:$0xff] }
 0x156   : > { %v2140_v47 = vpop.f32.mrf.mxu1  ;;  %12477 = vmatprep.subr.mxu1 %v14330_v12  ;;  %v14350_v24 = vadd.f32 %v2337_v45, %v2199_v60  ;;  %v14433_v45 = vld [vmem:[%s13046_s23 + $0x8c] sm:$0xff] }
 0x157   : > { %v2201_v52 = vadd.f32 %v2140_v47, %v14242_v0  ;;  %v12093_v15 = vpop.f32.mrf.mxu0  ;;  %12411 = vmatmul.mubr.msk.f32.vlgmr.msra.gmra.mxu0 %vm202_vm0, %v5112_v27 }
 0x158   : > { %v12073_v34 = vpop.f32.mrf.mxu1  ;;  %12391 = vmatmul.mubr.msk.f32.gmra.mxu1 %vm202_vm0, %v14341_v57  ;;  %v14362_v0 = vadd.f32 %v12093_v15, %v2202_v13  ;;  %12455 = vmatpush3.msra.mxu0 %v14226_v61 }
 0x159   : > { %v2204_v37 = vadd.f32 %v12073_v34, %v14248_v31  ;;  %12393 = vmatprep.mubr.msk.f32.mxu1 %vm202_vm0, %v14346_v41  ;;  %v2347_v4 = vpop.f32.mrf.mxu0  ;;  %12413 = vmatprep.mubr.msk.f32.mxu0 %vm202_vm0, %v5113_v10 }
 0x15a   : > { %v2150_v43 = vpop.f32.mrf.mxu1  ;;  %12500 = vmatprep.subr.mxu0 %v14356_v54  ;;  %v14378_v31 = vadd.f32 %v2347_v4, %v2201_v52  ;;  %v5123_v4 = vld [vmem:[%s13046_s23 + $0x8d] sm:$0xff] }
 0x15b   : > { %v2203_v61 = vadd.f32 %v2150_v43, %v14259_v25  ;;  %v12096_v46 = vpop.f32.mrf.mxu0  ;;  %12414 = vmatmul.mubr.msk.f32.gmra.mxu0 %vm202_vm0, %v5114_v16  ;;  %v5116_v25 = vld [vmem:[%s13046_s23 + $0x55] sm:$0xff] }
 0x15c   : > { %v12076_v40 = vpop.f32.mrf.mxu1  ;;  %12394 = vmatmul.mubr.msk.f32.gmra.mxu1 %vm202_vm0, %v14368_v9  ;;  %v14384_v32 = vadd.f32 %v12096_v46, %v2204_v37  ;;  %12416 = vmatprep.mubr.msk.f32.mxu0 %vm202_vm0, %v5115_v48  ;;  %v5122_v37 = vld [vmem:[%s13046_s23 + $0x85] sm:$0xff]  ;;  %v5318_v48 = vld [vmem:[%s13046_s23 + $0x2e] sm:$0xff] }
 0x15d   : > { %v2206_v23 = vadd.f32 %v12076_v40, %v14265_v8  ;;  %12396 = vmatprep.mubr.msk.f32.mxu1 %vm202_vm0, %v14373_v49  ;;  %v2357_v14 = vpop.f32.mrf.mxu0 }
 0x15e   : > { %v2160_v58 = vpop.f32.mrf.mxu1  ;;  %v14398_v59 = vadd.f32 %v2357_v14, %v2203_v61  ;;  %v14466_v14 = vld [vmem:[%s13046_s23 + $0x3e] sm:$0xff] }
 0x15f   : > { %v2205_v8 = vadd.f32 %v2160_v58, %v14276_v11  ;;  %v12099_v17 = vpop.f32.mrf.mxu0  ;;  %12417 = vmatmul.mubr.msk.f32.gmra.mxu0 %vm202_vm0, %v5116_v25  ;;  %v14410_v11 = vld [vmem:[%s13046_s23 + $0x74] sm:$0xff] }
 0x160   : > { %v12079_v33 = vpop.f32.mrf.mxu1  ;;  %12397 = vmatmul.mubr.msk.f32.gmra.mxu1 %vm202_vm0, %v14390_v7  ;;  %v14404_v50 = vadd.f32 %v12099_v17, %v2206_v23  ;;  %12419 = vmatprep.mubr.msk.f32.mxu0 %vm202_vm0, %v5117_v28  ;;  %v5124_v23 = vld [vmem:[%s13046_s23 + $0x95] sm:$0x3] }
 0x161   : > { %v2208_v30 = vadd.f32 %v12079_v33, %v14282_v35  ;;  %12399 = vmatprep.mubr.msk.f32.mxu1 %vm202_vm0, %v14394_v19  ;;  %v2367_v53 = vpop.f32.mrf.mxu0  ;;  %v5319_v25 = vld [vmem:[%s13046_s23 + $0x36] sm:$0xff] }
 0x162   : > { %v2170_v29 = vpop.f32.mrf.mxu1  ;;  %v14417_v63 = vadd.f32 %v2367_v53, %v2205_v8  ;;  %v5525_v33 = vld [vmem:[%s13046_s23 + $0x2f] sm:$0xff]  ;;  %v5526_v53 = vld [vmem:[%s13046_s23 + $0x37] sm:$0xff] }
 0x163   : > { %v2207_v60 = vadd.f32 %v2170_v29, %v14293_v38  ;;  %v12102_v39 = vpop.f32.mrf.mxu0  ;;  %12420 = vmatmul.mubr.msk.f32.gmra.mxu0 %vm202_vm0, %v5118_v1  ;;  %v14430_v38 = vld [vmem:[%s13046_s23 + $0x84] sm:$0xff] }
 0x164   : > { %v12082_v35 = vpop.f32.mrf.mxu1  ;;  %12400 = vmatmul.mubr.msk.f32.gmra.mxu1 %vm202_vm0, %v14410_v11  ;;  %v14423_v13 = vadd.f32 %v12102_v39, %v2208_v30  ;;  %12422 = vmatprep.mubr.msk.f32.mxu0 %vm202_vm0, %v13887_v55  ;;  %v14491_v39 = vld [vmem:[%s13046_s23 + $0x4e] sm:$0xff] }
 0x165   : > { %v2210_v20 = vadd.f32 %v12082_v35, %v14299_v21  ;;  %12402 = vmatprep.mubr.msk.f32.mxu1 %vm202_vm0, %v14414_v18  ;;  %v2377_v47 = vpop.f32.mrf.mxu0 }
 0x166   : > { %v2180_v27 = vpop.f32.mrf.mxu1  ;;  %v14436_v52 = vadd.f32 %v2377_v47, %v2207_v60 }
 0x167   : > { %v2209_v21 = vadd.f32 %v2180_v27, %v14309_v2  ;;  %v12105_v34 = vpop.f32.mrf.mxu0  ;;  %12423 = vmatmul.mubr.msk.f32.gmra.mxu0 %vm202_vm0, %v13904_v42  ;;  %v4917_v2 = vld [vmem:[%s13046_s23 + $0x94] sm:$0x3] }
 0x168   : > { %v12085_v10 = vpop.f32.mrf.mxu1  ;;  %12403 = vmatmul.mubr.msk.f32.gmra.mxu1 %vm202_vm0, %v14430_v38  ;;  %v14443_v15 = vadd.f32 %v12105_v34, %v2210_v20  ;;  %12425 = vmatprep.mubr.msk.f32.mxu0 %vm202_vm0, %v13907_v26  ;;  %v14501_v27 = vld [vmem:[%s16161_s1 + $0xf0] sm:$0xff] }
 0x169   : > { %v2212_v55 = vadd.f32 %v12085_v10, %v14313_v56  ;;  %12405 = vmatprep.mubr.msk.f32.mxu1 %vm202_vm0, %v14433_v45  ;;  %v2387_v43 = vpop.f32.mrf.mxu0  ;;  %v14513_v34 = vld [vmem:[%s13046_s23 + $0x56] sm:$0xff] }
 0x16a   : > { %v2190_v16 = vpop.f32.mrf.mxu1  ;;  %v14454_v56 = vadd.f32 %v2387_v43, %v2209_v21  ;;  %v5529_v43 = vld [vmem:[%s13046_s23 + $0x4f] sm:$0xff] }
 0x16b   : > { %v2211_v42 = vadd.f32 %v2190_v16, %v14323_v51  ;;  %v12108_v61 = vpop.f32.mrf.mxu0  ;;  %12426 = vmatmul.mubr.msk.f32.gmra.mxu0 %vm202_vm0, %v5122_v37  ;;  %v14518_v16 = vld [vmem:[%s13046_s23 + $0x5e] sm:$0xff] }
 0x16c   : > { %v12113_v40 = vpop.f32.mrf.mxu1  ;;  %12406 = vmatmul.mubr.msk.f32.gmra.mxu1 %vm202_vm0, %v4917_v2  ;;  %v14458_v26 = vadd.f32 %v12108_v61, %v2212_v55  ;;  %12428 = vmatprep.mubr.msk.f32.mxu0 %vm202_vm0, %v5123_v4  ;;  %v5528_v55 = vld [vmem:[%s13046_s23 + $0x47] sm:$0xff] }
 0x16d   : > { %v2614_v46 = vadd.f32 %v12113_v40, %v14335_v3  ;;  %12433 = vmatprep.mubr.msk.f32.mxu1 %vm202_vm0, %v5318_v48  ;;  %v2397_v51 = vpop.f32.mrf.mxu0  ;;  %v14475_v3 = vld [vmem:[%s16161_s1 + $0xe8] sm:$0xff] }
 0x16e   : > { %v2544_v58 = vpop.f32.mrf.mxu1  ;;  %v14468_v28 = vadd.f32 %v2397_v51, %v2211_v42  ;;  %v14535_v40 = vld [vmem:[%s13046_s23 + $0x66] sm:$0xff] }
 0x16f   : > { %v2613_v8 = vadd.f32 %v2544_v58, %v14350_v24  ;;  %v12136_v30 = vpop.f32.mrf.mxu0  ;;  %12429 = vmatmul.mubr.msk.f32.gmra.mxu0 %vm202_vm0, %v5124_v23  ;;  %v14486_v24 = vld [vmem:[%s13046_s23 + $0x46] sm:$0xff] }
 0x170   : > { %v12116_v17 = vpop.f32.mrf.mxu1  ;;  %12434 = vmatmul.mubr.msk.f32.vlgmr.msra.gmra.mxu1 %vm202_vm0, %v5319_v25  ;;  %v14480_v29 = vadd.f32 %v12136_v30, %v2614_v46  ;;  %12456 = vmatprep.mubr.msk.f32.mxu0 %vm202_vm0, %v5525_v33  ;;  %v14539_v25 = vld [vmem:[%s13046_s23 + $0x6e] sm:$0xff]  ;;  %v5531_v51 = vld [vmem:[%s13046_s23 + $0x5f] sm:$0xff] }
 0x171   : > { %v2616_v1 = vadd.f32 %v12116_v17, %v14362_v0  ;;  %12478 = vmatpush3.msra.mxu1 %v14330_v12  ;;  %12436 = vmatprep.mubr.msk.f32.mxu1 %vm202_vm0, %v14466_v14  ;;  %v2751_v35 = vpop.f32.mrf.mxu0  ;;  %v5527_v12 = vld [vmem:[%s13046_s23 + $0x3f] sm:$0xff] }
 0x172   : > { %v2554_v60 = vpop.f32.mrf.mxu1  ;;  %12523 = vmatprep.subr.mxu1 %v14475_v3  ;;  %v14495_v20 = vadd.f32 %v2751_v35, %v2613_v8  ;;  %v14559_v35 = vld [vmem:[%s13046_s23 + $0x7e] sm:$0xff] }
 0x173   : > { %v2615_v0 = vadd.f32 %v2554_v60, %v14378_v31  ;;  %v12139_v21 = vpop.f32.mrf.mxu0  ;;  %12457 = vmatmul.mubr.msk.f32.vlgmr.msra.gmra.mxu0 %vm202_vm0, %v5526_v53 }
 0x174   : > { %v12119_v47 = vpop.f32.mrf.mxu1  ;;  %12437 = vmatmul.mubr.msk.f32.gmra.mxu1 %vm202_vm0, %v14486_v24  ;;  %v14507_v31 = vadd.f32 %v12139_v21, %v2616_v1  ;;  %12501 = vmatpush3.msra.mxu0 %v14356_v54  ;;  %v14555_v1 = vld [vmem:[%s13046_s23 + $0x76] sm:$0xff] }
 0x175   : > { %v2618_v10 = vadd.f32 %v12119_v47, %v14384_v32  ;;  %12439 = vmatprep.mubr.msk.f32.mxu1 %vm202_vm0, %v14491_v39  ;;  %v2761_v37 = vpop.f32.mrf.mxu0  ;;  %12459 = vmatprep.mubr.msk.f32.mxu0 %vm202_vm0, %v5527_v12 }
 0x176   : > { %v2564_v2 = vpop.f32.mrf.mxu1  ;;  %12546 = vmatprep.subr.mxu0 %v14501_v27  ;;  %v14523_v32 = vadd.f32 %v2761_v37, %v2615_v0  ;;  %v5533_v0 = vld [vmem:[%s13046_s23 + $0x6f] sm:$0xff] }
 0x177   : > { %v2617_v54 = vadd.f32 %v2564_v2, %v14398_v59  ;;  %v12142_v48 = vpop.f32.mrf.mxu0  ;;  %12460 = vmatmul.mubr.msk.f32.gmra.mxu0 %vm202_vm0, %v5528_v55  ;;  %v5530_v59 = vld [vmem:[%s13046_s23 + $0x57] sm:$0xff] }
 0x178   : > { %v12122_v4 = vpop.f32.mrf.mxu1  ;;  %12440 = vmatmul.mubr.msk.f32.gmra.mxu1 %vm202_vm0, %v14513_v34  ;;  %v14529_v61 = vadd.f32 %v12142_v48, %v2618_v10  ;;  %12462 = vmatprep.mubr.msk.f32.mxu0 %vm202_vm0, %v5529_v43  ;;  %v14578_v43 = vld [vmem:[%s13046_s23 + $0x8e] sm:$0xff] }
 0x179   : > { %v2620_v42 = vadd.f32 %v12122_v4, %v14404_v50  ;;  %12442 = vmatprep.mubr.msk.f32.mxu1 %vm202_vm0, %v14518_v16  ;;  %v2771_v23 = vpop.f32.mrf.mxu0 }
 0x17a   : > { %v2574_v46 = vpop.f32.mrf.mxu1  ;;  %v14543_v58 = vadd.f32 %v2771_v23, %v2617_v54 }
 0x17b   : > { %v2619_v50 = vadd.f32 %v2574_v46, %v14417_v63  ;;  %v12145_v33 = vpop.f32.mrf.mxu0  ;;  %12463 = vmatmul.mubr.msk.f32.gmra.mxu0 %vm202_vm0, %v5530_v59  ;;  %v5532_v63 = vld [vmem:[%s13046_s23 + $0x67] sm:$0xff] }
 0x17c   : > { %v12125_v8 = vpop.f32.mrf.mxu1  ;;  %12443 = vmatmul.mubr.msk.f32.gmra.mxu1 %vm202_vm0, %v14535_v40  ;;  %v14549_v30 = vadd.f32 %v12145_v33, %v2620_v42  ;;  %12465 = vmatprep.mubr.msk.f32.mxu0 %vm202_vm0, %v5531_v51  ;;  %v5536_v46 = vld [vmem:[%s13046_s23 + $0x87] sm:$0xff] }
 0x17d   : > { %v2622_v17 = vadd.f32 %v12125_v8, %v14423_v13  ;;  %12445 = vmatprep.mubr.msk.f32.mxu1 %vm202_vm0, %v14539_v25  ;;  %v2781_v60 = vpop.f32.mrf.mxu0  ;;  %v5732_v8 = vld [vmem:[%s13046_s23 + $0x30] sm:$0xff] }
 0x17e   : > { %v2584_v53 = vpop.f32.mrf.mxu1  ;;  %v14563_v13 = vadd.f32 %v2781_v60, %v2619_v50  ;;  %v5537_v50 = vld [vmem:[%s13046_s23 + $0x8f] sm:$0xff]  ;;  %v5733_v60 = vld [vmem:[%s13046_s23 + $0x38] sm:$0xff] }
 0x17f   : > { %v2621_v12 = vadd.f32 %v2584_v53, %v14436_v52  ;;  %v12148_v21 = vpop.f32.mrf.mxu0  ;;  %12466 = vmatmul.mubr.msk.f32.gmra.mxu0 %vm202_vm0, %v5532_v63  ;;  %v14575_v52 = vld [vmem:[%s13046_s23 + $0x86] sm:$0xff]  ;;  %v5538_v53 = vld [vmem:[%s13046_s23 + $0x97] sm:$0x3] }
 0x180   : > { %v12128_v47 = vpop.f32.mrf.mxu1  ;;  %12446 = vmatmul.mubr.msk.f32.gmra.mxu1 %vm202_vm0, %v14555_v1  ;;  %v14569_v55 = vadd.f32 %v12148_v21, %v2622_v17  ;;  %12468 = vmatprep.mubr.msk.f32.mxu0 %vm202_vm0, %v5533_v0 }
 0x181   : > { %v2624_v10 = vadd.f32 %v12128_v47, %v14443_v15  ;;  %12448 = vmatprep.mubr.msk.f32.mxu1 %vm202_vm0, %v14559_v35  ;;  %v2791_v37 = vpop.f32.mrf.mxu0 }
 0x182   : > { %v2594_v2 = vpop.f32.mrf.mxu1  ;;  %v14581_v15 = vadd.f32 %v2791_v37, %v2621_v12  ;;  %v5734_v12 = vld [vmem:[%s13046_s23 + $0x40] sm:$0xff] }
 0x183   : > { %v2623_v54 = vadd.f32 %v2594_v2, %v14454_v56  ;;  %v12151_v48 = vpop.f32.mrf.mxu0  ;;  %12469 = vmatmul.mubr.msk.f32.gmra.mxu0 %vm202_vm0, %v14022_v44  ;;  %v5331_v56 = vld [vmem:[%s13046_s23 + $0x96] sm:$0x3] }
 0x184   : > { %v12131_v4 = vpop.f32.mrf.mxu1  ;;  %12449 = vmatmul.mubr.msk.f32.gmra.mxu1 %vm202_vm0, %v14575_v52  ;;  %v14588_v59 = vadd.f32 %v12151_v48, %v2624_v10  ;;  %12471 = vmatprep.mubr.msk.f32.mxu0 %vm202_vm0, %v14025_v22  ;;  %v14617_v10 = vld [vmem:[%s16161_s1 + $0xf8] sm:$0xff] }
 0x185   : > { %v2626_v42 = vadd.f32 %v12131_v4, %v14458_v26  ;;  %12451 = vmatprep.mubr.msk.f32.mxu1 %vm202_vm0, %v14578_v43  ;;  %v2801_v51 = vpop.f32.mrf.mxu0 }
 0x186   : > { %v2604_v23 = vpop.f32.mrf.mxu1  ;;  %v14599_v26 = vadd.f32 %v2801_v51, %v2623_v54 }
 0x187   : > { %v2625_v44 = vadd.f32 %v2604_v23, %v14468_v28  ;;  %v12154_v33 = vpop.f32.mrf.mxu0  ;;  %12472 = vmatmul.mubr.msk.f32.gmra.mxu0 %vm202_vm0, %v5536_v46 }
 0x188   : > { %v12159_v17 = vpop.f32.mrf.mxu1  ;;  %12452 = vmatmul.mubr.msk.f32.gmra.mxu1 %vm202_vm0, %v5331_v56  ;;  %v14603_v22 = vadd.f32 %v12154_v33, %v2626_v42  ;;  %12474 = vmatprep.mubr.msk.f32.mxu0 %vm202_vm0, %v5537_v50  ;;  %v5736_v42 = vld [vmem:[%s13046_s23 + $0x50] sm:$0xff]  ;;  %v5738_v33 = vld [vmem:[%s13046_s23 + $0x60] sm:$0xff] }
 0x189   : > { %v3028_v63 = vadd.f32 %v12159_v17, %v14480_v29  ;;  %12479 = vmatprep.mubr.msk.f32.mxu1 %vm202_vm0, %v5732_v8  ;;  %v2811_v28 = vpop.f32.mrf.mxu0 }
 0x18a   : > { %v2958_v0 = vpop.f32.mrf.mxu1  ;;  %v14611_v47 = vadd.f32 %v2811_v28, %v2625_v44  ;;  %v5739_v28 = vld [vmem:[%s13046_s23 + $0x68] sm:$0xff] }
 0x18b   : > { %v3027_v21 = vadd.f32 %v2958_v0, %v14495_v20  ;;  %v12182_v2 = vpop.f32.mrf.mxu0  ;;  %12475 = vmatmul.mubr.msk.f32.gmra.mxu0 %vm202_vm0, %v5538_v53  ;;  %v5735_v20 = vld [vmem:[%s13046_s23 + $0x48] sm:$0xff] }
 0x18c   : > { %v12162_v29 = vpop.f32.mrf.mxu1  ;;  %12480 = vmatmul.mubr.msk.f32.vlgmr.msra.gmra.mxu1 %vm202_vm0, %v5733_v60  ;;  %v14622_v54 = vadd.f32 %v12182_v2, %v3028_v63  ;;  %12502 = vmatprep.mubr.msk.f32.mxu0 %vm202_vm0, %v5733_v60 }
 0x18d   : > { %v3030_v37 = vadd.f32 %v12162_v29, %v14507_v31  ;;  %12524 = vmatpush3.msra.mxu1 %v14475_v3  ;;  %12482 = vmatprep.mubr.msk.f32.mxu1 %vm202_vm0, %v5734_v12  ;;  %v3165_v48 = vpop.f32.mrf.mxu0  ;;  %v14636_v3 = vld [vmem:[%s16161_s1 + $0x100] sm:$0xff] }
 0x18e   : > { %v2968_v4 = vpop.f32.mrf.mxu1  ;;  %12569 = vmatprep.subr.mxu1 %v14617_v10  ;;  %v14631_v46 = vadd.f32 %v3165_v48, %v3027_v21 }
 0x18f   : > { %v3029_v56 = vadd.f32 %v2968_v4, %v14523_v32  ;;  %v12185_v23 = vpop.f32.mrf.mxu0  ;;  %12503 = vmatmul.mubr.msk.f32.vlgmr.msra.gmra.mxu0 %vm202_vm0, %v5734_v12  ;;  %v5737_v32 = vld [vmem:[%s13046_s23 + $0x58] sm:$0xff]  ;;  %v5740_v12 = vld [vmem:[%s13046_s23 + $0x70] sm:$0xff] }
 0x190   : > { %v12165_v31 = vpop.f32.mrf.mxu1  ;;  %12483 = vmatmul.mubr.msk.f32.gmra.mxu1 %vm202_vm0, %v5735_v20  ;;  %v14641_v50 = vadd.f32 %v12185_v23, %v3030_v37  ;;  %12547 = vmatpush3.msra.mxu0 %v14501_v27  ;;  %v5741_v4 = vld [vmem:[%s13046_s23 + $0x78] sm:$0xff] }
 0x191   : > { %v3032_v51 = vadd.f32 %v12165_v31, %v14529_v61  ;;  %12485 = vmatprep.mubr.msk.f32.mxu1 %vm202_vm0, %v5736_v42  ;;  %v3175_v44 = vpop.f32.mrf.mxu0  ;;  %12505 = vmatprep.mubr.msk.f32.mxu0 %vm202_vm0, %v5735_v20 }
 0x192   : > { %v2978_v8 = vpop.f32.mrf.mxu1  ;;  %12592 = vmatprep.subr.mxu0 %v14636_v3  ;;  %v14650_v63 = vadd.f32 %v3175_v44, %v3029_v56 }
 0x193   : > { %v3031_v17 = vadd.f32 %v2978_v8, %v14543_v58  ;;  %v12188_v53 = vpop.f32.mrf.mxu0  ;;  %12506 = vmatmul.mubr.msk.f32.gmra.mxu0 %vm202_vm0, %v5736_v42  ;;  %v5742_v42 = vld [vmem:[%s13046_s23 + $0x80] sm:$0xff]  ;;  %v5743_v8 = vld [vmem:[%s13046_s23 + $0x88] sm:$0xff] }
 0x194   : > { %v12168_v61 = vpop.f32.mrf.mxu1  ;;  %12486 = vmatmul.mubr.msk.f32.gmra.mxu1 %vm202_vm0, %v5737_v32  ;;  %v14655_v60 = vadd.f32 %v12188_v53, %v3032_v51  ;;  %12508 = vmatprep.mubr.msk.f32.mxu0 %vm202_vm0, %v5737_v32 }
 0x195   : > { %v3034_v27 = vadd.f32 %v12168_v61, %v14549_v30  ;;  %12488 = vmatprep.mubr.msk.f32.mxu1 %vm202_vm0, %v5738_v33  ;;  %v3185_v58 = vpop.f32.mrf.mxu0 }
 0x196   : > { %v2988_v0 = vpop.f32.mrf.mxu1  ;;  %v14662_v29 = vadd.f32 %v3185_v58, %v3031_v17 }
 0x197   : > { %v3033_v21 = vadd.f32 %v2988_v0, %v14563_v13  ;;  %v12191_v37 = vpop.f32.mrf.mxu0  ;;  %12509 = vmatmul.mubr.msk.f32.gmra.mxu0 %vm202_vm0, %v5738_v33  ;;  %v5744_v33 = vld [vmem:[%s13046_s23 + $0x90] sm:$0xff]  ;;  %v5745_v0 = vld [vmem:[%s13046_s23 + $0x98] sm:$0x3] }
 0x198   : > { %v12171_v2 = vpop.f32.mrf.mxu1  ;;  %12489 = vmatmul.mubr.msk.f32.gmra.mxu1 %vm202_vm0, %v5739_v28  ;;  %v14667_v20 = vadd.f32 %v12191_v37, %v3034_v27  ;;  %12511 = vmatprep.mubr.msk.f32.mxu0 %vm202_vm0, %v5739_v28 }
 0x199   : > { %v3036_v30 = vadd.f32 %v12171_v2, %v14569_v55  ;;  %12491 = vmatprep.mubr.msk.f32.mxu1 %vm202_vm0, %v5740_v12  ;;  %v3195_v13 = vpop.f32.mrf.mxu0 }
 0x19a   : > { %v2998_v48 = vpop.f32.mrf.mxu1  ;;  %v14674_v31 = vadd.f32 %v3195_v13, %v3033_v21  ;;  %v6146_v21 = vld [vmem:[%s13046_s23 + $0x39] sm:$0xff] }
 0x19b   : > { %v3035_v56 = vadd.f32 %v2998_v48, %v14581_v15  ;;  %v12194_v51 = vpop.f32.mrf.mxu0  ;;  %12512 = vmatmul.mubr.msk.f32.gmra.mxu0 %vm202_vm0, %v5740_v12  ;;  %v5951_v12 = vld [vmem:[%s13046_s23 + $0x98] sm:$0xff]  ;;  %v5952_v13 = vld [vmem:[%s13046_s23 + $0xa0] sm:$0x3] }
 0x19c   : > { %v12174_v23 = vpop.f32.mrf.mxu1  ;;  %12492 = vmatmul.mubr.msk.f32.gmra.mxu1 %vm202_vm0, %v5741_v4  ;;  %v14679_v32 = vadd.f32 %v12194_v51, %v3036_v30  ;;  %12514 = vmatprep.mubr.msk.f32.mxu0 %vm202_vm0, %v5741_v4 }
 0x19d   : > { %v3038_v55 = vadd.f32 %v12174_v23, %v14588_v59  ;;  %12494 = vmatprep.mubr.msk.f32.mxu1 %vm202_vm0, %v5742_v42  ;;  %v3205_v15 = vpop.f32.mrf.mxu0  ;;  %v14711_v23 = vld [vmem:[%s13046_s23 + $0x49] sm:$0xff] }
 0x19e   : > { %v3008_v44 = vpop.f32.mrf.mxu1  ;;  %v14686_v61 = vadd.f32 %v3205_v15, %v3035_v56 }
 0x19f   : > { %v3037_v17 = vadd.f32 %v3008_v44, %v14599_v26  ;;  %v12197_v27 = vpop.f32.mrf.mxu0  ;;  %12515 = vmatmul.mubr.msk.f32.gmra.mxu0 %vm202_vm0, %v5742_v42  ;;  %v6147_v42 = vld [vmem:[%s13046_s23 + $0x41] sm:$0xff] }
 0x1a0   : > { %v12177_v53 = vpop.f32.mrf.mxu1  ;;  %12495 = vmatmul.mubr.msk.f32.gmra.mxu1 %vm202_vm0, %v5743_v8  ;;  %v14691_v28 = vadd.f32 %v12197_v27, %v3038_v55  ;;  %12517 = vmatprep.mubr.msk.f32.mxu0 %vm202_vm0, %v5743_v8  ;;  %v6353_v8 = vld [vmem:[%s13046_s23 + $0x3a] sm:$0xff] }
 0x1a1   : > { %v3040_v59 = vadd.f32 %v12177_v53, %v14603_v22  ;;  %12497 = vmatprep.mubr.msk.f32.mxu1 %vm202_vm0, %v5744_v33  ;;  %v3215_v58 = vpop.f32.mrf.mxu0  ;;  %v6354_v53 = vld [vmem:[%s13046_s23 + $0x42] sm:$0xff] }
 0x1a2   : > { %v3018_v26 = vpop.f32.mrf.mxu1  ;;  %v14699_v37 = vadd.f32 %v3215_v58, %v3037_v17  ;;  %v14746_v58 = vld [vmem:[%s16161_s1 + $0x110] sm:$0xff] }
 0x1a3   : > { %v3039_v2 = vadd.f32 %v3018_v26, %v14611_v47  ;;  %v12200_v22 = vpop.f32.mrf.mxu0  ;;  %12518 = vmatmul.mubr.msk.f32.gmra.mxu0 %vm202_vm0, %v5744_v33 }
 0x1a4   : > { %v12205_v30 = vpop.f32.mrf.mxu1  ;;  %12498 = vmatmul.mubr.msk.f32.gmra.mxu1 %vm202_vm0, %v5745_v0  ;;  %v14703_v4 = vadd.f32 %v12200_v22, %v3040_v59  ;;  %12520 = vmatprep.mubr.msk.f32.mxu0 %vm202_vm0, %v5951_v12  ;;  %v14736_v0 = vld [vmem:[%s13046_s23 + $0x59] sm:$0xff]  ;;  %v14758_v22 = vld [vmem:[%s13046_s23 + $0x61] sm:$0xff] }
 0x1a5   : > { %v3442_v48 = vadd.f32 %v12205_v30, %v14622_v54  ;;  %12525 = vmatprep.mubr.msk.f32.mxu1 %vm202_vm0, %v6146_v21  ;;  %v3225_v47 = vpop.f32.mrf.mxu0  ;;  %v14720_v54 = vld [vmem:[%s16161_s1 + $0x108] sm:$0xff]  ;;  %v6356_v30 = vld [vmem:[%s13046_s23 + $0x52] sm:$0xff] }
 0x1a6   : > { %v3372_v56 = vpop.f32.mrf.mxu1  ;;  %v14713_v51 = vadd.f32 %v3225_v47, %v3039_v2  ;;  %v6357_v47 = vld [vmem:[%s13046_s23 + $0x5a] sm:$0xff] }
 0x1a7   : > { %v3441_v55 = vadd.f32 %v3372_v56, %v14631_v46  ;;  %v12228_v15 = vpop.f32.mrf.mxu0  ;;  %12521 = vmatmul.mubr.msk.f32.gmra.mxu0 %vm202_vm0, %v5952_v13  ;;  %v14731_v46 = vld [vmem:[%s13046_s23 + $0x51] sm:$0xff] }
 0x1a8   : > { %v12208_v44 = vpop.f32.mrf.mxu1  ;;  %12526 = vmatmul.mubr.msk.f32.vlgmr.msra.gmra.mxu1 %vm202_vm0, %v6147_v42  ;;  %v14725_v17 = vadd.f32 %v12228_v15, %v3442_v48  ;;  %12548 = vmatprep.mubr.msk.f32.mxu0 %vm202_vm0, %v6353_v8  ;;  %v14763_v42 = vld [vmem:[%s13046_s23 + $0x69] sm:$0xff] }
 0x1a9   : > { %v3444_v33 = vadd.f32 %v12208_v44, %v14641_v50  ;;  %12570 = vmatpush3.msra.mxu1 %v14617_v10  ;;  %12528 = vmatprep.mubr.msk.f32.mxu1 %vm202_vm0, %v14711_v23  ;;  %v3579_v59 = vpop.f32.mrf.mxu0  ;;  %v6355_v10 = vld [vmem:[%s13046_s23 + $0x4a] sm:$0xff]  ;;  %v6358_v15 = vld [vmem:[%s13046_s23 + $0x62] sm:$0xff] }
 0x1aa   : > { %v3382_v27 = vpop.f32.mrf.mxu1  ;;  %12615 = vmatprep.subr.mxu1 %v14720_v54  ;;  %v14740_v26 = vadd.f32 %v3579_v59, %v3441_v55 }
 0x1ab   : > { %v3443_v50 = vadd.f32 %v3382_v27, %v14650_v63  ;;  %v12231_v21 = vpop.f32.mrf.mxu0  ;;  %12549 = vmatmul.mubr.msk.f32.vlgmr.msra.gmra.mxu0 %vm202_vm0, %v6354_v53  ;;  %v14784_v27 = vld [vmem:[%s13046_s23 + $0x79] sm:$0xff] }
 0x1ac   : > { %v12211_v12 = vpop.f32.mrf.mxu1  ;;  %12529 = vmatmul.mubr.msk.f32.gmra.mxu1 %vm202_vm0, %v14731_v46  ;;  %v14752_v63 = vadd.f32 %v12231_v21, %v3444_v33  ;;  %12593 = vmatpush3.msra.mxu0 %v14636_v3 }
 0x1ad   : > { %v3446_v2 = vadd.f32 %v12211_v12, %v14655_v60  ;;  %12531 = vmatprep.mubr.msk.f32.mxu1 %vm202_vm0, %v14736_v0  ;;  %v3589_v13 = vpop.f32.mrf.mxu0  ;;  %12551 = vmatprep.mubr.msk.f32.mxu0 %vm202_vm0, %v6355_v10 }
 0x1ae   : > { %v3392_v48 = vpop.f32.mrf.mxu1  ;;  %12638 = vmatprep.subr.mxu0 %v14746_v58  ;;  %v14768_v60 = vadd.f32 %v3589_v13, %v3443_v50  ;;  %v6361_v13 = vld [vmem:[%s13046_s23 + $0x7a] sm:$0xff] }
 0x1af   : > { %v3445_v3 = vadd.f32 %v3392_v48, %v14662_v29  ;;  %v12234_v55 = vpop.f32.mrf.mxu0  ;;  %12552 = vmatmul.mubr.msk.f32.gmra.mxu0 %vm202_vm0, %v6356_v30  ;;  %v14780_v29 = vld [vmem:[%s13046_s23 + $0x71] sm:$0xff]  ;;  %v14803_v48 = vld [vmem:[%s13046_s23 + $0x89] sm:$0xff] }
 0x1b0   : > { %v12214_v56 = vpop.f32.mrf.mxu1  ;;  %12532 = vmatmul.mubr.msk.f32.gmra.mxu1 %vm202_vm0, %v14758_v22  ;;  %v14774_v44 = vadd.f32 %v12234_v55, %v3446_v2  ;;  %12554 = vmatprep.mubr.msk.f32.mxu0 %vm202_vm0, %v6357_v47 }
 0x1b1   : > { %v3448_v8 = vadd.f32 %v12214_v56, %v14667_v20  ;;  %12534 = vmatprep.mubr.msk.f32.mxu1 %vm202_vm0, %v14763_v42  ;;  %v3599_v53 = vpop.f32.mrf.mxu0 }
 0x1b2   : > { %v3402_v33 = vpop.f32.mrf.mxu1  ;;  %v14787_v20 = vadd.f32 %v3599_v53, %v3445_v3  ;;  %v14824_v53 = vld [vmem:[%s13046_s23 + $0x99] sm:$0xff] }
 0x1b3   : > { %v3447_v59 = vadd.f32 %v3402_v33, %v14674_v31  ;;  %v12237_v10 = vpop.f32.mrf.mxu0  ;;  %12555 = vmatmul.mubr.msk.f32.gmra.mxu0 %vm202_vm0, %v6358_v15  ;;  %v14800_v31 = vld [vmem:[%s13046_s23 + $0x81] sm:$0xff] }
 0x1b4   : > { %v12217_v50 = vpop.f32.mrf.mxu1  ;;  %12535 = vmatmul.mubr.msk.f32.gmra.mxu1 %vm202_vm0, %v14780_v29  ;;  %v14793_v21 = vadd.f32 %v12237_v10, %v3448_v8  ;;  %12557 = vmatprep.mubr.msk.f32.mxu0 %vm202_vm0, %v14255_v6  ;;  %v6362_v8 = vld [vmem:[%s13046_s23 + $0x82] sm:$0xff] }
 0x1b5   : > { %v3450_v12 = vadd.f32 %v12217_v50, %v14679_v32  ;;  %12537 = vmatprep.mubr.msk.f32.mxu1 %vm202_vm0, %v14784_v27  ;;  %v3609_v30 = vpop.f32.mrf.mxu0 }
 0x1b6   : > { %v3412_v2 = vpop.f32.mrf.mxu1  ;;  %v14807_v47 = vadd.f32 %v3609_v30, %v3447_v59 }
 0x1b7   : > { %v3449_v32 = vadd.f32 %v3412_v2, %v14686_v61  ;;  %v12240_v56 = vpop.f32.mrf.mxu0  ;;  %12558 = vmatmul.mubr.msk.f32.gmra.mxu0 %vm202_vm0, %v14271_v62  ;;  %v14820_v61 = vld [vmem:[%s13046_s23 + $0x91] sm:$0xff] }
 0x1b8   : > { %v12220_v3 = vpop.f32.mrf.mxu1  ;;  %12538 = vmatmul.mubr.msk.f32.gmra.mxu1 %vm202_vm0, %v14800_v31  ;;  %v14814_v55 = vadd.f32 %v12240_v56, %v3450_v12  ;;  %12560 = vmatprep.mubr.msk.f32.mxu0 %vm202_vm0, %v6361_v13  ;;  %v6364_v2 = vld [vmem:[%s13046_s23 + $0x92] sm:$0xff] }
 0x1b9   : > { %v3452_v6 = vadd.f32 %v12220_v3, %v14691_v28  ;;  %12540 = vmatprep.mubr.msk.f32.mxu1 %vm202_vm0, %v14803_v48  ;;  %v3619_v33 = vpop.f32.mrf.mxu0  ;;  %v6560_v3 = vld [vmem:[%s13046_s23 + $0x3b] sm:$0xff] }
 0x1ba   : > { %v3422_v15 = vpop.f32.mrf.mxu1  ;;  %v14827_v28 = vadd.f32 %v3619_v33, %v3449_v32  ;;  %v6365_v32 = vld [vmem:[%s13046_s23 + $0x9a] sm:$0xff]  ;;  %v6366_v33 = vld [vmem:[%s13046_s23 + $0xa2] sm:$0x3] }
 0x1bb   : > { %v3451_v62 = vadd.f32 %v3422_v15, %v14699_v37  ;;  %v12243_v50 = vpop.f32.mrf.mxu0  ;;  %12561 = vmatmul.mubr.msk.f32.gmra.mxu0 %vm202_vm0, %v6362_v8  ;;  %v6159_v37 = vld [vmem:[%s13046_s23 + $0xa1] sm:$0x3] }
 0x1bc   : > { %v12223_v59 = vpop.f32.mrf.mxu1  ;;  %12541 = vmatmul.mubr.msk.f32.gmra.mxu1 %vm202_vm0, %v14820_v61  ;;  %v14833_v12 = vadd.f32 %v12243_v50, %v3452_v6  ;;  %12563 = vmatprep.mubr.msk.f32.mxu0 %vm202_vm0, %v14289_v5  ;;  %v14856_v50 = vld [vmem:[%s13046_s23 + $0x4b] sm:$0xff] }
 0x1bd   : > { %v3454_v10 = vadd.f32 %v12223_v59, %v14703_v4  ;;  %12543 = vmatprep.mubr.msk.f32.mxu1 %vm202_vm0, %v14824_v53  ;;  %v3629_v13 = vpop.f32.mrf.mxu0  ;;  %v6561_v59 = vld [vmem:[%s13046_s23 + $0x43] sm:$0xff] }
 0x1be   : > { %v3432_v30 = vpop.f32.mrf.mxu1  ;;  %v14844_v4 = vadd.f32 %v3629_v13, %v3451_v62 }
 0x1bf   : > { %v3453_v56 = vadd.f32 %v3432_v30, %v14713_v51  ;;  %v12246_v6 = vpop.f32.mrf.mxu0  ;;  %12564 = vmatmul.mubr.msk.f32.gmra.mxu0 %vm202_vm0, %v6364_v2 }
 0x1c0   : > { %v12251_v8 = vpop.f32.mrf.mxu1  ;;  %12544 = vmatmul.mubr.msk.f32.gmra.mxu1 %vm202_vm0, %v6159_v37  ;;  %v14848_v5 = vadd.f32 %v12246_v6, %v3454_v10  ;;  %12566 = vmatprep.mubr.msk.f32.mxu0 %vm202_vm0, %v6365_v32  ;;  %v14880_v6 = vld [vmem:[%s13046_s23 + $0x5b] sm:$0xff] }
 0x1c1   : > { %v3856_v15 = vadd.f32 %v12251_v8, %v14725_v17  ;;  %12571 = vmatprep.mubr.msk.f32.mxu1 %vm202_vm0, %v6560_v3  ;;  %v3639_v51 = vpop.f32.mrf.mxu0  ;;  %v14864_v17 = vld [vmem:[%s16161_s1 + $0x118] sm:$0xff] }
 0x1c2   : > { %v3786_v62 = vpop.f32.mrf.mxu1  ;;  %v14858_v30 = vadd.f32 %v3639_v51, %v3453_v56 }
 0x1c3   : > { %v3855_v37 = vadd.f32 %v3786_v62, %v14740_v26  ;;  %v12274_v2 = vpop.f32.mrf.mxu0  ;;  %12567 = vmatmul.mubr.msk.f32.gmra.mxu0 %vm202_vm0, %v6366_v33  ;;  %v14875_v26 = vld [vmem:[%s13046_s23 + $0x53] sm:$0xff] }
 0x1c4   : > { %v12254_v10 = vpop.f32.mrf.mxu1  ;;  %12572 = vmatmul.mubr.msk.f32.vlgmr.msra.gmra.mxu1 %vm202_vm0, %v6561_v59  ;;  %v14869_v32 = vadd.f32 %v12274_v2, %v3856_v15  ;;  %12594 = vmatprep.mubr.msk.f32.mxu0 %vm202_vm0, %v14321_v36 }
 0x1c5   : > { %v3858_v13 = vadd.f32 %v12254_v10, %v14752_v63  ;;  %12616 = vmatpush3.msra.mxu1 %v14720_v54  ;;  %12574 = vmatprep.mubr.msk.f32.mxu1 %vm202_vm0, %v14856_v50  ;;  %v3993_v56 = vpop.f32.mrf.mxu0  ;;  %v14889_v54 = vld [vmem:[%s16161_s1 + $0x120] sm:$0xff] }
 0x1c6   : > { %v3796_v3 = vpop.f32.mrf.mxu1  ;;  %12661 = vmatprep.subr.mxu1 %v14864_v17  ;;  %v14884_v8 = vadd.f32 %v3993_v56, %v3855_v37  ;;  %v14907_v37 = vld [vmem:[%s13046_s23 + $0x6b] sm:$0xff]  ;;  %v14928_v56 = vld [vmem:[%s13046_s23 + $0x7b] sm:$0xff] }
 0x1c7   : > { %v3857_v63 = vadd.f32 %v3796_v3, %v14768_v60  ;;  %v12277_v33 = vpop.f32.mrf.mxu0  ;;  %12595 = vmatmul.mubr.msk.f32.vlgmr.msra.gmra.mxu0 %vm202_vm0, %v14341_v57  ;;  %v14902_v60 = vld [vmem:[%s13046_s23 + $0x63] sm:$0xff] }
 0x1c8   : > { %v12257_v15 = vpop.f32.mrf.mxu1  ;;  %12575 = vmatmul.mubr.msk.f32.gmra.mxu1 %vm202_vm0, %v14875_v26  ;;  %v14896_v59 = vadd.f32 %v12277_v33, %v3858_v13  ;;  %12639 = vmatpush3.msra.mxu0 %v14746_v58 }
 0x1c9   : > { %v3860_v36 = vadd.f32 %v12257_v15, %v14774_v44  ;;  %12577 = vmatprep.mubr.msk.f32.mxu1 %vm202_vm0, %v14880_v6  ;;  %v4003_v62 = vpop.f32.mrf.mxu0  ;;  %12597 = vmatprep.mubr.msk.f32.mxu0 %vm202_vm0, %v14346_v41 }
 0x1ca   : > { %v3806_v51 = vpop.f32.mrf.mxu1  ;;  %12684 = vmatprep.subr.mxu0 %v14889_v54  ;;  %v14911_v44 = vadd.f32 %v4003_v62, %v3857_v63  ;;  %v14948_v62 = vld [vmem:[%s13046_s23 + $0x8b] sm:$0xff] }
 0x1cb   : > { %v3859_v57 = vadd.f32 %v3806_v51, %v14787_v20  ;;  %v12280_v10 = vpop.f32.mrf.mxu0  ;;  %12598 = vmatmul.mubr.msk.f32.gmra.mxu0 %vm202_vm0, %v14368_v9  ;;  %v14925_v20 = vld [vmem:[%s13046_s23 + $0x73] sm:$0xff] }
 0x1cc   : > { %v12260_v58 = vpop.f32.mrf.mxu1  ;;  %12578 = vmatmul.mubr.msk.f32.gmra.mxu1 %vm202_vm0, %v14902_v60  ;;  %v14918_v41 = vadd.f32 %v12280_v10, %v3860_v36  ;;  %12600 = vmatprep.mubr.msk.f32.mxu0 %vm202_vm0, %v14373_v49 }
 0x1cd   : > { %v3862_v2 = vadd.f32 %v12260_v58, %v14793_v21  ;;  %12580 = vmatprep.mubr.msk.f32.mxu1 %vm202_vm0, %v14907_v37  ;;  %v4013_v3 = vpop.f32.mrf.mxu0 }
 0x1ce   : > { %v3816_v13 = vpop.f32.mrf.mxu1  ;;  %v14931_v63 = vadd.f32 %v4013_v3, %v3859_v57  ;;  %v14968_v3 = vld [vmem:[%s13046_s23 + $0x9b] sm:$0xff] }
 0x1cf   : > { %v3861_v9 = vadd.f32 %v3816_v13, %v14807_v47  ;;  %v12283_v15 = vpop.f32.mrf.mxu0  ;;  %12601 = vmatmul.mubr.msk.f32.gmra.mxu0 %vm202_vm0, %v14390_v7  ;;  %v14945_v47 = vld [vmem:[%s13046_s23 + $0x83] sm:$0xff] }
 0x1d0   : > { %v12263_v21 = vpop.f32.mrf.mxu1  ;;  %12581 = vmatmul.mubr.msk.f32.gmra.mxu1 %vm202_vm0, %v14925_v20  ;;  %v14938_v33 = vadd.f32 %v12283_v15, %v3862_v2  ;;  %12603 = vmatprep.mubr.msk.f32.mxu0 %vm202_vm0, %v14394_v19 }
 0x1d1   : > { %v3864_v49 = vadd.f32 %v12263_v21, %v14814_v55  ;;  %12583 = vmatprep.mubr.msk.f32.mxu1 %vm202_vm0, %v14928_v56  ;;  %v4023_v51 = vpop.f32.mrf.mxu0 }
 0x1d2   : > { %v3826_v36 = vpop.f32.mrf.mxu1  ;;  %v14951_v57 = vadd.f32 %v4023_v51, %v3861_v9 }
 0x1d3   : > { %v3863_v7 = vadd.f32 %v3826_v36, %v14827_v28  ;;  %v12286_v58 = vpop.f32.mrf.mxu0  ;;  %12604 = vmatmul.mubr.msk.f32.gmra.mxu0 %vm202_vm0, %v14410_v11  ;;  %v14965_v28 = vld [vmem:[%s13046_s23 + $0x93] sm:$0xff] }
 0x1d4   : > { %v12266_v55 = vpop.f32.mrf.mxu1  ;;  %12584 = vmatmul.mubr.msk.f32.gmra.mxu1 %vm202_vm0, %v14945_v47  ;;  %v14958_v10 = vadd.f32 %v12286_v58, %v3864_v49  ;;  %12606 = vmatprep.mubr.msk.f32.mxu0 %vm202_vm0, %v14414_v18  ;;  %v6778_v49 = vld [vmem:[%s13046_s23 + $0x94] sm:$0xff] }
 0x1d5   : > { %v3866_v19 = vadd.f32 %v12266_v55, %v14833_v12  ;;  %12586 = vmatprep.mubr.msk.f32.mxu1 %vm202_vm0, %v14948_v62  ;;  %v4033_v13 = vpop.f32.mrf.mxu0  ;;  %v6974_v55 = vld [vmem:[%s13046_s23 + $0x3d] sm:$0xff] }
 0x1d6   : > { %v3836_v2 = vpop.f32.mrf.mxu1  ;;  %v14971_v12 = vadd.f32 %v4033_v13, %v3863_v7  ;;  %v6779_v7 = vld [vmem:[%s13046_s23 + $0x9c] sm:$0xff]  ;;  %v6780_v13 = vld [vmem:[%s13046_s23 + $0xa4] sm:$0x3] }
 0x1d7   : > { %v3865_v11 = vadd.f32 %v3836_v2, %v14844_v4  ;;  %v12289_v21 = vpop.f32.mrf.mxu0  ;;  %12607 = vmatmul.mubr.msk.f32.gmra.mxu0 %vm202_vm0, %v14430_v38  ;;  %v6573_v4 = vld [vmem:[%s13046_s23 + $0xa3] sm:$0x3] }
 0x1d8   : > { %v12269_v9 = vpop.f32.mrf.mxu1  ;;  %12587 = vmatmul.mubr.msk.f32.gmra.mxu1 %vm202_vm0, %v14965_v28  ;;  %v14978_v15 = vadd.f32 %v12289_v21, %v3866_v19  ;;  %12609 = vmatprep.mubr.msk.f32.mxu0 %vm202_vm0, %v14433_v45  ;;  %v6976_v21 = vld [vmem:[%s13046_s23 + $0x4d] sm:$0xff] }
 0x1d9   : > { %v3868_v18 = vadd.f32 %v12269_v9, %v14848_v5  ;;  %12589 = vmatprep.mubr.msk.f32.mxu1 %vm202_vm0, %v14968_v3  ;;  %v4043_v51 = vpop.f32.mrf.mxu0  ;;  %v6975_v9 = vld [vmem:[%s13046_s23 + $0x45] sm:$0xff] }
 0x1da   : > { %v3846_v36 = vpop.f32.mrf.mxu1  ;;  %v14989_v5 = vadd.f32 %v4043_v51, %v3865_v11 }
 0x1db   : > { %v3867_v38 = vadd.f32 %v3846_v36, %v14858_v30  ;;  %v12292_v58 = vpop.f32.mrf.mxu0  ;;  %12610 = vmatmul.mubr.msk.f32.gmra.mxu0 %vm202_vm0, %v6778_v49 }
 0x1dc   : > { %v12297_v19 = vpop.f32.mrf.mxu1  ;;  %12590 = vmatmul.mubr.msk.f32.gmra.mxu1 %vm202_vm0, %v6573_v4  ;;  %v14993_v45 = vadd.f32 %v12292_v58, %v3868_v18  ;;  %12612 = vmatprep.mubr.msk.f32.mxu0 %vm202_vm0, %v6779_v7  ;;  %v15007_v18 = vld [vmem:[%s16161_s1 + $0x128] sm:$0xff]  ;;  %v6978_v58 = vld [vmem:[%s13046_s23 + $0x5d] sm:$0xff] }
 0x1dd   : > { %v4270_v2 = vadd.f32 %v12297_v19, %v14869_v32  ;;  %12617 = vmatprep.mubr.msk.f32.mxu1 %vm202_vm0, %v6974_v55  ;;  %v4053_v30 = vpop.f32.mrf.mxu0 }
 0x1de   : > { %v4200_v11 = vpop.f32.mrf.mxu1  ;;  %v15001_v36 = vadd.f32 %v4053_v30, %v3867_v38 }
 0x1df   : > { %v4269_v4 = vadd.f32 %v4200_v11, %v14884_v8  ;;  %v12320_v49 = vpop.f32.mrf.mxu0  ;;  %12613 = vmatmul.mubr.msk.f32.gmra.mxu0 %vm202_vm0, %v6780_v13  ;;  %v6977_v8 = vld [vmem:[%s13046_s23 + $0x55] sm:$0xff] }
 0x1e0   : > { %v12300_v32 = vpop.f32.mrf.mxu1  ;;  %12618 = vmatmul.mubr.msk.f32.vlgmr.msra.gmra.mxu1 %vm202_vm0, %v6975_v9  ;;  %v15012_v7 = vadd.f32 %v12320_v49, %v4270_v2  ;;  %12640 = vmatprep.mubr.msk.f32.mxu0 %vm202_vm0, %v14466_v14 }
 0x1e1   : > { %v4272_v51 = vadd.f32 %v12300_v32, %v14896_v59  ;;  %12662 = vmatpush3.msra.mxu1 %v14864_v17  ;;  %12620 = vmatprep.mubr.msk.f32.mxu1 %vm202_vm0, %v6976_v21  ;;  %v4407_v38 = vpop.f32.mrf.mxu0  ;;  %v15027_v17 = vld [vmem:[%s16161_s1 + $0x130] sm:$0xff] }
 0x1e2   : > { %v4210_v55 = vpop.f32.mrf.mxu1  ;;  %12707 = vmatprep.subr.mxu1 %v15007_v18  ;;  %v15022_v59 = vadd.f32 %v4407_v38, %v4269_v4  ;;  %v6980_v21 = vld [vmem:[%s13046_s23 + $0x6d] sm:$0xff] }
 0x1e3   : > { %v4271_v19 = vadd.f32 %v4210_v55, %v14911_v44  ;;  %v12323_v13 = vpop.f32.mrf.mxu0  ;;  %12641 = vmatmul.mubr.msk.f32.vlgmr.msra.gmra.mxu0 %vm202_vm0, %v14486_v24  ;;  %v6979_v44 = vld [vmem:[%s13046_s23 + $0x65] sm:$0xff] }
 0x1e4   : > { %v12303_v2 = vpop.f32.mrf.mxu1  ;;  %12621 = vmatmul.mubr.msk.f32.gmra.mxu1 %vm202_vm0, %v6977_v8  ;;  %v15033_v9 = vadd.f32 %v12323_v13, %v4272_v51  ;;  %12685 = vmatpush3.msra.mxu0 %v14889_v54  ;;  %v6982_v8 = vld [vmem:[%s13046_s23 + $0x7d] sm:$0xff]  ;;  %v6984_v13 = vld [vmem:[%s13046_s23 + $0x8d] sm:$0xff] }
 0x1e5   : > { %v4274_v14 = vadd.f32 %v12303_v2, %v14918_v41  ;;  %12623 = vmatprep.mubr.msk.f32.mxu1 %vm202_vm0, %v6978_v58  ;;  %v4417_v11 = vpop.f32.mrf.mxu0  ;;  %12643 = vmatprep.mubr.msk.f32.mxu0 %vm202_vm0, %v14491_v39  ;;  %v6981_v39 = vld [vmem:[%s13046_s23 + $0x75] sm:$0xff] }
 0x1e6   : > { %v4220_v30 = vpop.f32.mrf.mxu1  ;;  %12730 = vmatprep.subr.mxu0 %v15027_v17  ;;  %v15043_v41 = vadd.f32 %v4417_v11, %v4271_v19 }
 0x1e7   : > { %v4273_v24 = vadd.f32 %v4220_v30, %v14931_v63  ;;  %v12326_v32 = vpop.f32.mrf.mxu0  ;;  %12644 = vmatmul.mubr.msk.f32.gmra.mxu0 %vm202_vm0, %v14513_v34 }
 0x1e8   : > { %v12306_v4 = vpop.f32.mrf.mxu1  ;;  %12624 = vmatmul.mubr.msk.f32.gmra.mxu1 %vm202_vm0, %v6979_v44  ;;  %v15049_v49 = vadd.f32 %v12326_v32, %v4274_v14  ;;  %12646 = vmatprep.mubr.msk.f32.mxu0 %vm202_vm0, %v14518_v16  ;;  %v6983_v16 = vld [vmem:[%s13046_s23 + $0x85] sm:$0xff] }
 0x1e9   : > { %v4276_v54 = vadd.f32 %v12306_v4, %v14938_v33  ;;  %12626 = vmatprep.mubr.msk.f32.mxu1 %vm202_vm0, %v6980_v21  ;;  %v4427_v51 = vpop.f32.mrf.mxu0 }
 0x1ea   : > { %v4230_v63 = vpop.f32.mrf.mxu1  ;;  %v15057_v38 = vadd.f32 %v4427_v51, %v4273_v24  ;;  %v6986_v24 = vld [vmem:[%s13046_s23 + $0x9d] sm:$0xff] }
 0x1eb   : > { %v4275_v55 = vadd.f32 %v4230_v63, %v14951_v57  ;;  %v12329_v58 = vpop.f32.mrf.mxu0  ;;  %12647 = vmatmul.mubr.msk.f32.gmra.mxu0 %vm202_vm0, %v14535_v40 }
 0x1ec   : > { %v12309_v34 = vpop.f32.mrf.mxu1  ;;  %12627 = vmatmul.mubr.msk.f32.gmra.mxu1 %vm202_vm0, %v6981_v39  ;;  %v15063_v19 = vadd.f32 %v12329_v58, %v4276_v54  ;;  %12649 = vmatprep.mubr.msk.f32.mxu0 %vm202_vm0, %v14539_v25  ;;  %v6985_v25 = vld [vmem:[%s13046_s23 + $0x95] sm:$0xff]  ;;  %v6987_v39 = vld [vmem:[%s13046_s23 + $0xa5] sm:$0x3] }
 0x1ed   : > { %v4278_v33 = vadd.f32 %v12309_v34, %v14958_v10  ;;  %12629 = vmatprep.mubr.msk.f32.mxu1 %vm202_vm0, %v6982_v8  ;;  %v4437_v2 = vpop.f32.mrf.mxu0  ;;  %v15101_v8 = vld [vmem:[%s13046_s23 + $0x9e] sm:$0xff] }
 0x1ee   : > { %v4240_v57 = vpop.f32.mrf.mxu1  ;;  %v15071_v44 = vadd.f32 %v4437_v2, %v4275_v55 }
 0x1ef   : > { %v4277_v14 = vadd.f32 %v4240_v57, %v14971_v12  ;;  %v12332_v30 = vpop.f32.mrf.mxu0  ;;  %12650 = vmatmul.mubr.msk.f32.gmra.mxu0 %vm202_vm0, %v14555_v1 }
 0x1f0   : > { %v12312_v40 = vpop.f32.mrf.mxu1  ;;  %12630 = vmatmul.mubr.msk.f32.gmra.mxu1 %vm202_vm0, %v6983_v16  ;;  %v15077_v11 = vadd.f32 %v12332_v30, %v4278_v33  ;;  %12652 = vmatprep.mubr.msk.f32.mxu0 %vm202_vm0, %v14559_v35  ;;  %v7389_v16 = vld [vmem:[%s13046_s23 + $0x4e] sm:$0xff] }
 0x1f1   : > { %v4280_v10 = vadd.f32 %v12312_v40, %v14978_v15  ;;  %12632 = vmatprep.mubr.msk.f32.mxu1 %vm202_vm0, %v6984_v13  ;;  %v4447_v21 = vpop.f32.mrf.mxu0  ;;  %v15119_v13 = vld [vmem:[%s13046_s23 + $0x56] sm:$0xff]  ;;  %v7595_v30 = vld [vmem:[%s13046_s23 + $0x47] sm:$0xff] }
 0x1f2   : > { %v4250_v12 = vpop.f32.mrf.mxu1  ;;  %v15085_v1 = vadd.f32 %v4447_v21, %v4277_v14 }
 0x1f3   : > { %v4279_v4 = vadd.f32 %v4250_v12, %v14989_v5  ;;  %v12335_v32 = vpop.f32.mrf.mxu0  ;;  %12653 = vmatmul.mubr.msk.f32.gmra.mxu0 %vm202_vm0, %v14575_v52  ;;  %v15098_v5 = vld [vmem:[%s13046_s23 + $0x96] sm:$0xff]  ;;  %v7388_v52 = vld [vmem:[%s13046_s23 + $0x46] sm:$0xff] }
 0x1f4   : > { %v12315_v15 = vpop.f32.mrf.mxu1  ;;  %12633 = vmatmul.mubr.msk.f32.gmra.mxu1 %vm202_vm0, %v6985_v25  ;;  %v15091_v54 = vadd.f32 %v12335_v32, %v4280_v10  ;;  %12655 = vmatprep.mubr.msk.f32.mxu0 %vm202_vm0, %v14578_v43  ;;  %v15144_v32 = vld [vmem:[%s13046_s23 + $0x66] sm:$0xff] }
 0x1f5   : > { %v4282_v35 = vadd.f32 %v12315_v15, %v14993_v45  ;;  %12635 = vmatprep.mubr.msk.f32.mxu1 %vm202_vm0, %v6986_v24  ;;  %v4457_v51 = vpop.f32.mrf.mxu0  ;;  %v7596_v24 = vld [vmem:[%s13046_s23 + $0x4f] sm:$0xff] }
 0x1f6   : > { %v4260_v63 = vpop.f32.mrf.mxu1  ;;  %v15105_v55 = vadd.f32 %v4457_v51, %v4279_v4 }
 0x1f7   : > { %v4281_v45 = vadd.f32 %v4260_v63, %v15001_v36  ;;  %v12338_v34 = vpop.f32.mrf.mxu0  ;;  %12656 = vmatmul.mubr.msk.f32.gmra.mxu0 %vm202_vm0, %v15098_v5  ;;  %v7194_v36 = vld [vmem:[%s13046_s23 + $0xa6] sm:$0x3] }
 0x1f8   : > { %v12343_v58 = vpop.f32.mrf.mxu1  ;;  %12636 = vmatmul.mubr.msk.f32.gmra.mxu1 %vm202_vm0, %v6987_v39  ;;  %v15110_v43 = vadd.f32 %v12338_v34, %v4282_v35  ;;  %12658 = vmatprep.mubr.msk.f32.mxu0 %vm202_vm0, %v15101_v8  ;;  %v15154_v39 = vld [vmem:[%s16161_s1 + $0x140] sm:$0xff] }
 0x1f9   : > { %v4684_v33 = vadd.f32 %v12343_v58, %v15012_v7  ;;  %12663 = vmatprep.mubr.msk.f32.mxu1 %vm202_vm0, %v7388_v52  ;;  %v4467_v57 = vpop.f32.mrf.mxu0  ;;  %v15128_v7 = vld [vmem:[%s16161_s1 + $0x138] sm:$0xff] }
 0x1fa   : > { %v4614_v2 = vpop.f32.mrf.mxu1  ;;  %v15121_v14 = vadd.f32 %v4467_v57, %v4281_v45  ;;  %v15166_v45 = vld [vmem:[%s13046_s23 + $0x6e] sm:$0xff]  ;;  %v7598_v34 = vld [vmem:[%s13046_s23 + $0x5f] sm:$0xff] }
 0x1fb   : > { %v4683_v40 = vadd.f32 %v4614_v2, %v15022_v59  ;;  %v12366_v25 = vpop.f32.mrf.mxu0  ;;  %12659 = vmatmul.mubr.msk.f32.gmra.mxu0 %vm202_vm0, %v7194_v36  ;;  %v15139_v59 = vld [vmem:[%s13046_s23 + $0x5e] sm:$0xff]  ;;  %v15171_v36 = vld [vmem:[%s13046_s23 + $0x76] sm:$0xff] }
 0x1fc   : > { %v12346_v10 = vpop.f32.mrf.mxu1  ;;  %12664 = vmatmul.mubr.msk.f32.vlgmr.msra.gmra.mxu1 %vm202_vm0, %v7389_v16  ;;  %v15133_v21 = vadd.f32 %v12366_v25, %v4684_v33  ;;  %12686 = vmatprep.mubr.msk.f32.mxu0 %vm202_vm0, %v7595_v30  ;;  %v7599_v16 = vld [vmem:[%s13046_s23 + $0x67] sm:$0xff] }
 0x1fd   : > { %v4686_v12 = vadd.f32 %v12346_v10, %v15033_v9  ;;  %12708 = vmatpush3.msra.mxu1 %v15007_v18  ;;  %12666 = vmatprep.mubr.msk.f32.mxu1 %vm202_vm0, %v15119_v13  ;;  %v4821_v15 = vpop.f32.mrf.mxu0  ;;  %v7597_v18 = vld [vmem:[%s13046_s23 + $0x57] sm:$0xff] }
 0x1fe   : > { %v4624_v4 = vpop.f32.mrf.mxu1  ;;  %12753 = vmatprep.subr.mxu1 %v15128_v7  ;;  %v15148_v35 = vadd.f32 %v4821_v15, %v4683_v40  ;;  %v15188_v10 = vld [vmem:[%s13046_s23 + $0x7e] sm:$0xff] }
 0x1ff   : > { %v4685_v9 = vadd.f32 %v4624_v4, %v15043_v41  ;;  %v12369_v51 = vpop.f32.mrf.mxu0  ;;  %12687 = vmatmul.mubr.msk.f32.vlgmr.msra.gmra.mxu0 %vm202_vm0, %v7596_v24  ;;  %v15192_v24 = vld [vmem:[%s13046_s23 + $0x86] sm:$0xff]  ;;  %v7601_v4 = vld [vmem:[%s13046_s23 + $0x77] sm:$0xff] }
 0x200   : > { %v12349_v63 = vpop.f32.mrf.mxu1  ;;  %12667 = vmatmul.mubr.msk.f32.gmra.mxu1 %vm202_vm0, %v15139_v59  ;;  %v15160_v41 = vadd.f32 %v12369_v51, %v4686_v12  ;;  %12731 = vmatpush3.msra.mxu0 %v15027_v17 }
 0x201   : > { %v4688_v52 = vadd.f32 %v12349_v63, %v15049_v49  ;;  %12669 = vmatprep.mubr.msk.f32.mxu1 %vm202_vm0, %v15144_v32  ;;  %v4831_v33 = vpop.f32.mrf.mxu0  ;;  %12689 = vmatprep.mubr.msk.f32.mxu0 %vm202_vm0, %v7597_v18 }
 0x202   : > { %v4634_v58 = vpop.f32.mrf.mxu1  ;;  %12776 = vmatprep.subr.mxu0 %v15154_v39  ;;  %v15176_v49 = vadd.f32 %v4831_v33, %v4685_v9  ;;  %v7603_v33 = vld [vmem:[%s13046_s23 + $0x87] sm:$0xff] }
 0x203   : > { %v4687_v17 = vadd.f32 %v4634_v58, %v15057_v38  ;;  %v12372_v2 = vpop.f32.mrf.mxu0  ;;  %12690 = vmatmul.mubr.msk.f32.gmra.mxu0 %vm202_vm0, %v7598_v34  ;;  %v7600_v38 = vld [vmem:[%s13046_s23 + $0x6f] sm:$0xff] }
 0x204   : > { %v12352_v57 = vpop.f32.mrf.mxu1  ;;  %12670 = vmatmul.mubr.msk.f32.gmra.mxu1 %vm202_vm0, %v15166_v45  ;;  %v15182_v30 = vadd.f32 %v12372_v2, %v4688_v52  ;;  %12692 = vmatprep.mubr.msk.f32.mxu0 %vm202_vm0, %v7599_v16  ;;  %v7602_v52 = vld [vmem:[%s13046_s23 + $0x7f] sm:$0xff] }
 0x205   : > { %v4690_v40 = vadd.f32 %v12352_v57, %v15063_v19  ;;  %12672 = vmatprep.mubr.msk.f32.mxu1 %vm202_vm0, %v15171_v36  ;;  %v4841_v12 = vpop.f32.mrf.mxu0 }
 0x206   : > { %v4644_v25 = vpop.f32.mrf.mxu1  ;;  %v15196_v15 = vadd.f32 %v4841_v12, %v4687_v17  ;;  %v15226_v12 = vld [vmem:[%s13046_s23 + $0xa6] sm:$0xff] }
 0x207   : > { %v4689_v19 = vadd.f32 %v4644_v25, %v15071_v44  ;;  %v12375_v18 = vpop.f32.mrf.mxu0  ;;  %12693 = vmatmul.mubr.msk.f32.gmra.mxu0 %vm202_vm0, %v7600_v38  ;;  %v15208_v44 = vld [vmem:[%s13046_s23 + $0x8e] sm:$0xff] }
 0x208   : > { %v12355_v9 = vpop.f32.mrf.mxu1  ;;  %12673 = vmatmul.mubr.msk.f32.gmra.mxu1 %vm202_vm0, %v15188_v10  ;;  %v15202_v51 = vadd.f32 %v12375_v18, %v4690_v40  ;;  %12695 = vmatprep.mubr.msk.f32.mxu0 %vm202_vm0, %v7601_v4  ;;  %v7605_v4 = vld [vmem:[%s13046_s23 + $0x97] sm:$0xff] }
 0x209   : > { %v4692_v63 = vadd.f32 %v12355_v9, %v15077_v11  ;;  %12675 = vmatprep.mubr.msk.f32.mxu1 %vm202_vm0, %v15192_v24  ;;  %v4851_v58 = vpop.f32.mrf.mxu0 }
 0x20a   : > { %v4654_v34 = vpop.f32.mrf.mxu1  ;;  %v15213_v17 = vadd.f32 %v4851_v58, %v4689_v19 }
 0x20b   : > { %v4691_v16 = vadd.f32 %v4654_v34, %v15085_v1  ;;  %v12378_v57 = vpop.f32.mrf.mxu0  ;;  %12696 = vmatmul.mubr.msk.f32.gmra.mxu0 %vm202_vm0, %v7602_v52  ;;  %v7604_v1 = vld [vmem:[%s13046_s23 + $0x8f] sm:$0xff] }
 0x20c   : > { %v12358_v11 = vpop.f32.mrf.mxu1  ;;  %12676 = vmatmul.mubr.msk.f32.gmra.mxu1 %vm202_vm0, %v15208_v44  ;;  %v15219_v40 = vadd.f32 %v12378_v57, %v4692_v63  ;;  %12698 = vmatprep.mubr.msk.f32.mxu0 %vm202_vm0, %v7603_v33  ;;  %v7401_v52 = vld [vmem:[%s13046_s23 + $0xae] sm:$0x3] }
 0x20d   : > { %v4694_v2 = vadd.f32 %v12358_v11, %v15091_v54  ;;  %12678 = vmatprep.mubr.msk.f32.mxu1 %vm202_vm0, %v15098_v5  ;;  %v4861_v25 = vpop.f32.mrf.mxu0  ;;  %v7607_v33 = vld [vmem:[%s13046_s23 + $0xa7] sm:$0xff] }
 0x20e   : > { %v4664_v38 = vpop.f32.mrf.mxu1  ;;  %v15230_v54 = vadd.f32 %v4861_v25, %v4691_v16  ;;  %v7803_v25 = vld [vmem:[%s13046_s23 + $0x50] sm:$0xff] }
 0x20f   : > { %v4693_v19 = vadd.f32 %v4664_v38, %v15105_v55  ;;  %v12381_v18 = vpop.f32.mrf.mxu0  ;;  %12699 = vmatmul.mubr.msk.f32.gmra.mxu0 %vm202_vm0, %v7604_v1  ;;  %v7606_v55 = vld [vmem:[%s13046_s23 + $0x9f] sm:$0xff]  ;;  %v7608_v38 = vld [vmem:[%s13046_s23 + $0xaf] sm:$0x3] }
 0x210   : > { %v12361_v9 = vpop.f32.mrf.mxu1  ;;  %12679 = vmatmul.mubr.msk.f32.gmra.mxu1 %vm202_vm0, %v15101_v8  ;;  %v15236_v63 = vadd.f32 %v12381_v18, %v4694_v2  ;;  %12701 = vmatprep.mubr.msk.f32.mxu0 %vm202_vm0, %v7605_v4  ;;  %v7802_v8 = vld [vmem:[%s13046_s23 + $0x48] sm:$0xff] }
 0x211   : > { %v4696_v5 = vadd.f32 %v12361_v9, %v15110_v43  ;;  %12681 = vmatprep.mubr.msk.f32.mxu1 %vm202_vm0, %v15226_v12  ;;  %v4871_v58 = vpop.f32.mrf.mxu0 }
 0x212   : > { %v4674_v34 = vpop.f32.mrf.mxu1  ;;  %v15246_v11 = vadd.f32 %v4871_v58, %v4693_v19  ;;  %v15258_v19 = vld [vmem:[%s13046_s23 + $0x58] sm:$0xff] }
 0x213   : > { %v4695_v16 = vadd.f32 %v4674_v34, %v15121_v14  ;;  %v12384_v43 = vpop.f32.mrf.mxu0  ;;  %12702 = vmatmul.mubr.msk.f32.gmra.mxu0 %vm202_vm0, %v7606_v55 }
 0x214   : > { %v12389_v57 = vpop.f32.mrf.mxu1  ;;  %12682 = vmatmul.mubr.msk.f32.gmra.mxu1 %vm202_vm0, %v7401_v52  ;;  %v15250_v2 = vadd.f32 %v12384_v43, %v4696_v5  ;;  %12704 = vmatprep.mubr.msk.f32.mxu0 %vm202_vm0, %v7607_v33 }
 0x215   : > { %v5098_v1 = vadd.f32 %v12389_v57, %v15133_v21  ;;  %12709 = vmatprep.mubr.msk.f32.mxu1 %vm202_vm0, %v7802_v8  ;;  %v4881_v14 = vpop.f32.mrf.mxu0  ;;  %v15266_v21 = vld [vmem:[%s16161_s1 + $0x148] sm:$0xff] }
 0x216   : > { %v5028_v4 = vpop.f32.mrf.mxu1  ;;  %v15260_v9 = vadd.f32 %v4881_v14, %v4695_v16  ;;  %v15282_v8 = vld [vmem:[%s13046_s23 + $0x68] sm:$0xff]  ;;  %v15309_v14 = vld [vmem:[%s13046_s23 + $0x78] sm:$0xff] }
 0x217   : > { %v5097_v18 = vadd.f32 %v5028_v4, %v15148_v35  ;;  %v12412_v52 = vpop.f32.mrf.mxu0  ;;  %12705 = vmatmul.mubr.msk.f32.gmra.mxu0 %vm202_vm0, %v7608_v38  ;;  %v15277_v35 = vld [vmem:[%s13046_s23 + $0x60] sm:$0xff] }
 0x218   : > { %v12392_v5 = vpop.f32.mrf.mxu1  ;;  %12710 = vmatmul.mubr.msk.f32.vlgmr.msra.gmra.mxu1 %vm202_vm0, %v7803_v25  ;;  %v15271_v34 = vadd.f32 %v12412_v52, %v5098_v1  ;;  %12732 = vmatprep.mubr.msk.f32.mxu0 %vm202_vm0, %v14711_v23 }
 0x219   : > { %v5100_v55 = vadd.f32 %v12392_v5, %v15160_v41  ;;  %12754 = vmatpush3.msra.mxu1 %v15128_v7  ;;  %12712 = vmatprep.mubr.msk.f32.mxu1 %vm202_vm0, %v15258_v19  ;;  %v5235_v33 = vpop.f32.mrf.mxu0  ;;  %v15291_v7 = vld [vmem:[%s16161_s1 + $0x150] sm:$0xff] }
 0x21a   : > { %v5038_v58 = vpop.f32.mrf.mxu1  ;;  %12799 = vmatprep.subr.mxu1 %v15266_v21  ;;  %v15286_v16 = vadd.f32 %v5235_v33, %v5097_v18 }
 0x21b   : > { %v5099_v41 = vadd.f32 %v5038_v58, %v15176_v49  ;;  %v12415_v57 = vpop.f32.mrf.mxu0  ;;  %12733 = vmatmul.mubr.msk.f32.vlgmr.msra.gmra.mxu0 %vm202_vm0, %v14731_v46  ;;  %v15304_v49 = vld [vmem:[%s13046_s23 + $0x70] sm:$0xff] }
 0x21c   : > { %v12395_v43 = vpop.f32.mrf.mxu1  ;;  %12713 = vmatmul.mubr.msk.f32.gmra.mxu1 %vm202_vm0, %v15277_v35  ;;  %v15298_v1 = vadd.f32 %v12415_v57, %v5100_v55  ;;  %12777 = vmatpush3.msra.mxu0 %v15154_v39  ;;  %v15330_v55 = vld [vmem:[%s13046_s23 + $0x88] sm:$0xff] }
 0x21d   : > { %v5102_v23 = vadd.f32 %v12395_v43, %v15182_v30  ;;  %12715 = vmatprep.mubr.msk.f32.mxu1 %vm202_vm0, %v15282_v8  ;;  %v5245_v25 = vpop.f32.mrf.mxu0  ;;  %12735 = vmatprep.mubr.msk.f32.mxu0 %vm202_vm0, %v14736_v0 }
 0x21e   : > { %v5048_v38 = vpop.f32.mrf.mxu1  ;;  %12822 = vmatprep.subr.mxu0 %v15291_v7  ;;  %v15313_v30 = vadd.f32 %v5245_v25, %v5099_v41 }
 0x21f   : > { %v5101_v46 = vadd.f32 %v5048_v38, %v15196_v15  ;;  %v12418_v4 = vpop.f32.mrf.mxu0  ;;  %12736 = vmatmul.mubr.msk.f32.gmra.mxu0 %vm202_vm0, %v14758_v22  ;;  %v15327_v15 = vld [vmem:[%s13046_s23 + $0x80] sm:$0xff] }
 0x220   : > { %v12398_v39 = vpop.f32.mrf.mxu1  ;;  %12716 = vmatmul.mubr.msk.f32.gmra.mxu1 %vm202_vm0, %v15304_v49  ;;  %v15320_v0 = vadd.f32 %v12418_v4, %v5102_v23  ;;  %12738 = vmatprep.mubr.msk.f32.mxu0 %vm202_vm0, %v14763_v42  ;;  %v15350_v23 = vld [vmem:[%s13046_s23 + $0x98] sm:$0xff] }
 0x221   : > { %v5104_v18 = vadd.f32 %v12398_v39, %v15202_v51  ;;  %12718 = vmatprep.mubr.msk.f32.mxu1 %vm202_vm0, %v15309_v14  ;;  %v5255_v52 = vpop.f32.mrf.mxu0 }
 0x222   : > { %v5058_v5 = vpop.f32.mrf.mxu1  ;;  %v15333_v58 = vadd.f32 %v5255_v52, %v5101_v46 }
 0x223   : > { %v5103_v22 = vadd.f32 %v5058_v5, %v15213_v17  ;;  %v12421_v33 = vpop.f32.mrf.mxu0  ;;  %12739 = vmatmul.mubr.msk.f32.gmra.mxu0 %vm202_vm0, %v14780_v29  ;;  %v15347_v17 = vld [vmem:[%s13046_s23 + $0x90] sm:$0xff] }
 0x224   : > { %v12401_v51 = vpop.f32.mrf.mxu1  ;;  %12719 = vmatmul.mubr.msk.f32.gmra.mxu1 %vm202_vm0, %v15327_v15  ;;  %v15340_v41 = vadd.f32 %v12421_v33, %v5104_v18  ;;  %12741 = vmatprep.mubr.msk.f32.mxu0 %vm202_vm0, %v14784_v27  ;;  %v15370_v18 = vld [vmem:[%s13046_s23 + $0xa8] sm:$0xff] }
 0x225   : > { %v5106_v42 = vadd.f32 %v12401_v51, %v15219_v40  ;;  %12721 = vmatprep.mubr.msk.f32.mxu1 %vm202_vm0, %v15330_v55  ;;  %v5265_v57 = vpop.f32.mrf.mxu0  ;;  %v8020_v51 = vld [vmem:[%s13046_s23 + $0xa1] sm:$0xff] }
 0x226   : > { %v5068_v43 = vpop.f32.mrf.mxu1  ;;  %v15353_v38 = vadd.f32 %v5265_v57, %v5103_v22  ;;  %v8216_v57 = vld [vmem:[%s13046_s23 + $0x4a] sm:$0xff] }
 0x227   : > { %v5105_v29 = vadd.f32 %v5068_v43, %v15230_v54  ;;  %v12424_v25 = vpop.f32.mrf.mxu0  ;;  %12742 = vmatmul.mubr.msk.f32.gmra.mxu0 %vm202_vm0, %v14800_v31  ;;  %v15367_v54 = vld [vmem:[%s13046_s23 + $0xa0] sm:$0xff]  ;;  %v8021_v43 = vld [vmem:[%s13046_s23 + $0xa9] sm:$0xff] }
 0x228   : > { %v12404_v40 = vpop.f32.mrf.mxu1  ;;  %12722 = vmatmul.mubr.msk.f32.gmra.mxu1 %vm202_vm0, %v15347_v17  ;;  %v15360_v46 = vadd.f32 %v12424_v25, %v5106_v42  ;;  %12744 = vmatprep.mubr.msk.f32.mxu0 %vm202_vm0, %v14803_v48 }
 0x229   : > { %v5108_v27 = vadd.f32 %v12404_v40, %v15236_v63  ;;  %12724 = vmatprep.mubr.msk.f32.mxu1 %vm202_vm0, %v15350_v23  ;;  %v5275_v4 = vpop.f32.mrf.mxu0 }
 0x22a   : > { %v5078_v39 = vpop.f32.mrf.mxu1  ;;  %v15373_v63 = vadd.f32 %v5275_v4, %v5105_v29 }
 0x22b   : > { %v5107_v31 = vadd.f32 %v5078_v39, %v15246_v11  ;;  %v12427_v52 = vpop.f32.mrf.mxu0  ;;  %12745 = vmatmul.mubr.msk.f32.gmra.mxu0 %vm202_vm0, %v14820_v61  ;;  %v7815_v11 = vld [vmem:[%s13046_s23 + $0xb0] sm:$0x3]  ;;  %v8217_v39 = vld [vmem:[%s13046_s23 + $0x52] sm:$0xff] }
 0x22c   : > { %v12407_v5 = vpop.f32.mrf.mxu1  ;;  %12725 = vmatmul.mubr.msk.f32.gmra.mxu1 %vm202_vm0, %v15367_v54  ;;  %v15380_v22 = vadd.f32 %v12427_v52, %v5108_v27  ;;  %12747 = vmatprep.mubr.msk.f32.mxu0 %vm202_vm0, %v14824_v53  ;;  %v8022_v27 = vld [vmem:[%s13046_s23 + $0xb1] sm:$0x3] }
 0x22d   : > { %v5110_v48 = vadd.f32 %v12407_v5, %v15250_v2  ;;  %12727 = vmatprep.mubr.msk.f32.mxu1 %vm202_vm0, %v15370_v18  ;;  %v5285_v42 = vpop.f32.mrf.mxu0 }
 0x22e   : > { %v5088_v33 = vpop.f32.mrf.mxu1  ;;  %v15391_v2 = vadd.f32 %v5285_v42, %v5107_v31  ;;  %v15403_v31 = vld [vmem:[%s13046_s23 + $0x5a] sm:$0xff] }
 0x22f   : > { %v5109_v61 = vadd.f32 %v5088_v33, %v15260_v9  ;;  %v12430_v29 = vpop.f32.mrf.mxu0  ;;  %12748 = vmatmul.mubr.msk.f32.gmra.mxu0 %vm202_vm0, %v8020_v51 }
 0x230   : > { %v12435_v40 = vpop.f32.mrf.mxu1  ;;  %12728 = vmatmul.mubr.msk.f32.gmra.mxu1 %vm202_vm0, %v7815_v11  ;;  %v15395_v53 = vadd.f32 %v12430_v29, %v5110_v48  ;;  %12750 = vmatprep.mubr.msk.f32.mxu0 %vm202_vm0, %v8021_v43 }
 0x231   : > { %v5512_v25 = vadd.f32 %v12435_v40, %v15271_v34  ;;  %12755 = vmatprep.mubr.msk.f32.mxu1 %vm202_vm0, %v8216_v57  ;;  %v5295_v9 = vpop.f32.mrf.mxu0  ;;  %v15411_v34 = vld [vmem:[%s16161_s1 + $0x158] sm:$0xff]  ;;  %v15427_v57 = vld [vmem:[%s13046_s23 + $0x6a] sm:$0xff] }
 0x232   : > { %v5442_v4 = vpop.f32.mrf.mxu1  ;;  %v15405_v5 = vadd.f32 %v5295_v9, %v5109_v61  ;;  %v15454_v9 = vld [vmem:[%s13046_s23 + $0x7a] sm:$0xff] }
 0x233   : > { %v5511_v52 = vadd.f32 %v5442_v4, %v15286_v16  ;;  %v12458_v11 = vpop.f32.mrf.mxu0  ;;  %12751 = vmatmul.mubr.msk.f32.gmra.mxu0 %vm202_vm0, %v8022_v27  ;;  %v15422_v16 = vld [vmem:[%s13046_s23 + $0x62] sm:$0xff] }
 0x234   : > { %v12438_v48 = vpop.f32.mrf.mxu1  ;;  %12756 = vmatmul.mubr.msk.f32.vlgmr.msra.gmra.mxu1 %vm202_vm0, %v8217_v39  ;;  %v15416_v33 = vadd.f32 %v12458_v11, %v5512_v25  ;;  %12778 = vmatprep.mubr.msk.f32.mxu0 %vm202_vm0, %v14856_v50 }
 0x235   : > { %v5514_v51 = vadd.f32 %v12438_v48, %v15298_v1  ;;  %12800 = vmatpush3.msra.mxu1 %v15266_v21  ;;  %12758 = vmatprep.mubr.msk.f32.mxu1 %vm202_vm0, %v15403_v31  ;;  %v5649_v43 = vpop.f32.mrf.mxu0  ;;  %v15436_v21 = vld [vmem:[%s16161_s1 + $0x160] sm:$0xff] }
 0x236   : > { %v5452_v42 = vpop.f32.mrf.mxu1  ;;  %12845 = vmatprep.subr.mxu1 %v15411_v34  ;;  %v15431_v61 = vadd.f32 %v5649_v43, %v5511_v52 }
 0x237   : > { %v5513_v1 = vadd.f32 %v5452_v42, %v15313_v30  ;;  %v12461_v40 = vpop.f32.mrf.mxu0  ;;  %12779 = vmatmul.mubr.msk.f32.vlgmr.msra.gmra.mxu0 %vm202_vm0, %v14875_v26  ;;  %v15449_v30 = vld [vmem:[%s13046_s23 + $0x72] sm:$0xff] }
 0x238   : > { %v12441_v29 = vpop.f32.mrf.mxu1  ;;  %12759 = vmatmul.mubr.msk.f32.gmra.mxu1 %vm202_vm0, %v15422_v16  ;;  %v15443_v25 = vadd.f32 %v12461_v40, %v5514_v51  ;;  %12823 = vmatpush3.msra.mxu0 %v15291_v7  ;;  %v15475_v51 = vld [vmem:[%s13046_s23 + $0x8a] sm:$0xff] }
 0x239   : > { %v5516_v50 = vadd.f32 %v12441_v29, %v15320_v0  ;;  %12761 = vmatprep.mubr.msk.f32.mxu1 %vm202_vm0, %v15427_v57  ;;  %v5659_v39 = vpop.f32.mrf.mxu0  ;;  %12781 = vmatprep.mubr.msk.f32.mxu0 %vm202_vm0, %v14880_v6 }
 0x23a   : > { %v5462_v27 = vpop.f32.mrf.mxu1  ;;  %12868 = vmatprep.subr.mxu0 %v15436_v21  ;;  %v15458_v0 = vadd.f32 %v5659_v39, %v5513_v1 }
 0x23b   : > { %v5515_v26 = vadd.f32 %v5462_v27, %v15333_v58  ;;  %v12464_v4 = vpop.f32.mrf.mxu0  ;;  %12782 = vmatmul.mubr.msk.f32.gmra.mxu0 %vm202_vm0, %v14902_v60  ;;  %v15472_v58 = vld [vmem:[%s13046_s23 + $0x82] sm:$0xff] }
 0x23c   : > { %v12444_v7 = vpop.f32.mrf.mxu1  ;;  %12762 = vmatmul.mubr.msk.f32.gmra.mxu1 %vm202_vm0, %v15449_v30  ;;  %v15465_v6 = vadd.f32 %v12464_v4, %v5516_v50  ;;  %12784 = vmatprep.mubr.msk.f32.mxu0 %vm202_vm0, %v14907_v37  ;;  %v15495_v50 = vld [vmem:[%s13046_s23 + $0x9a] sm:$0xff] }
 0x23d   : > { %v5518_v52 = vadd.f32 %v12444_v7, %v15340_v41  ;;  %12764 = vmatprep.mubr.msk.f32.mxu1 %vm202_vm0, %v15454_v9  ;;  %v5669_v11 = vpop.f32.mrf.mxu0 }
 0x23e   : > { %v5472_v48 = vpop.f32.mrf.mxu1  ;;  %v15478_v42 = vadd.f32 %v5669_v11, %v5515_v26 }
 0x23f   : > { %v5517_v60 = vadd.f32 %v5472_v48, %v15353_v38  ;;  %v12467_v43 = vpop.f32.mrf.mxu0  ;;  %12785 = vmatmul.mubr.msk.f32.gmra.mxu0 %vm202_vm0, %v14925_v20  ;;  %v15492_v38 = vld [vmem:[%s13046_s23 + $0x92] sm:$0xff] }
 0x240   : > { %v12447_v41 = vpop.f32.mrf.mxu1  ;;  %12765 = vmatmul.mubr.msk.f32.gmra.mxu1 %vm202_vm0, %v15472_v58  ;;  %v15485_v1 = vadd.f32 %v12467_v43, %v5518_v52  ;;  %12787 = vmatprep.mubr.msk.f32.mxu0 %vm202_vm0, %v14928_v56  ;;  %v15515_v52 = vld [vmem:[%s13046_s23 + $0xaa] sm:$0xff] }
 0x241   : > { %v5520_v37 = vadd.f32 %v12447_v41, %v15360_v46  ;;  %12767 = vmatprep.mubr.msk.f32.mxu1 %vm202_vm0, %v15475_v51  ;;  %v5679_v40 = vpop.f32.mrf.mxu0  ;;  %v8434_v41 = vld [vmem:[%s13046_s23 + $0xa3] sm:$0xff] }
 0x242   : > { %v5482_v29 = vpop.f32.mrf.mxu1  ;;  %v15498_v27 = vadd.f32 %v5679_v40, %v5517_v60  ;;  %v8630_v40 = vld [vmem:[%s13046_s23 + $0x4c] sm:$0xff] }
 0x243   : > { %v5519_v20 = vadd.f32 %v5482_v29, %v15373_v63  ;;  %v12470_v39 = vpop.f32.mrf.mxu0  ;;  %12788 = vmatmul.mubr.msk.f32.gmra.mxu0 %vm202_vm0, %v14945_v47  ;;  %v15512_v63 = vld [vmem:[%s13046_s23 + $0xa2] sm:$0xff]  ;;  %v8435_v29 = vld [vmem:[%s13046_s23 + $0xab] sm:$0xff] }
 0x244   : > { %v12450_v46 = vpop.f32.mrf.mxu1  ;;  %12768 = vmatmul.mubr.msk.f32.gmra.mxu1 %vm202_vm0, %v15492_v38  ;;  %v15505_v26 = vadd.f32 %v12470_v39, %v5520_v37  ;;  %12790 = vmatprep.mubr.msk.f32.mxu0 %vm202_vm0, %v14948_v62 }
 0x245   : > { %v5522_v56 = vadd.f32 %v12450_v46, %v15380_v22  ;;  %12770 = vmatprep.mubr.msk.f32.mxu1 %vm202_vm0, %v15495_v50  ;;  %v5689_v4 = vpop.f32.mrf.mxu0 }
 0x246   : > { %v5492_v7 = vpop.f32.mrf.mxu1  ;;  %v15518_v22 = vadd.f32 %v5689_v4, %v5519_v20 }
 0x247   : > { %v5521_v47 = vadd.f32 %v5492_v7, %v15391_v2  ;;  %v12473_v11 = vpop.f32.mrf.mxu0  ;;  %12791 = vmatmul.mubr.msk.f32.gmra.mxu0 %vm202_vm0, %v14965_v28  ;;  %v8229_v2 = vld [vmem:[%s13046_s23 + $0xb2] sm:$0x3]  ;;  %v8631_v7 = vld [vmem:[%s13046_s23 + $0x54] sm:$0xff] }
 0x248   : > { %v12453_v48 = vpop.f32.mrf.mxu1  ;;  %12771 = vmatmul.mubr.msk.f32.gmra.mxu1 %vm202_vm0, %v15512_v63  ;;  %v15525_v60 = vadd.f32 %v12473_v11, %v5522_v56  ;;  %12793 = vmatprep.mubr.msk.f32.mxu0 %vm202_vm0, %v14968_v3  ;;  %v8436_v56 = vld [vmem:[%s13046_s23 + $0xb3] sm:$0x3] }
 0x249   : > { %v5524_v62 = vadd.f32 %v12453_v48, %v15395_v53  ;;  %12773 = vmatprep.mubr.msk.f32.mxu1 %vm202_vm0, %v15515_v52  ;;  %v5699_v37 = vpop.f32.mrf.mxu0 }
 0x24a   : > { %v5502_v43 = vpop.f32.mrf.mxu1  ;;  %v15536_v53 = vadd.f32 %v5699_v37, %v5521_v47  ;;  %v8632_v47 = vld [vmem:[%s13046_s23 + $0x5c] sm:$0xff] }
 0x24b   : > { %v5523_v28 = vadd.f32 %v5502_v43, %v15405_v5  ;;  %v12476_v20 = vpop.f32.mrf.mxu0  ;;  %12794 = vmatmul.mubr.msk.f32.gmra.mxu0 %vm202_vm0, %v8434_v41 }
 0x24c   : > { %v12481_v46 = vpop.f32.mrf.mxu1  ;;  %12774 = vmatmul.mubr.msk.f32.gmra.mxu1 %vm202_vm0, %v8229_v2  ;;  %v15540_v3 = vadd.f32 %v12476_v20, %v5524_v62  ;;  %12796 = vmatprep.mubr.msk.f32.mxu0 %vm202_vm0, %v8435_v29  ;;  %v15554_v62 = vld [vmem:[%s16161_s1 + $0x168] sm:$0xff] }
 0x24d   : > { %v5926_v39 = vadd.f32 %v12481_v46, %v15416_v33  ;;  %12801 = vmatprep.mubr.msk.f32.mxu1 %vm202_vm0, %v8630_v40  ;;  %v5709_v5 = vpop.f32.mrf.mxu0  ;;  %v8634_v40 = vld [vmem:[%s13046_s23 + $0x6c] sm:$0xff] }
 0x24e   : > { %v5856_v4 = vpop.f32.mrf.mxu1  ;;  %v15548_v48 = vadd.f32 %v5709_v5, %v5523_v28 }
 0x24f   : > { %v5925_v11 = vadd.f32 %v5856_v4, %v15431_v61  ;;  %v12504_v2 = vpop.f32.mrf.mxu0  ;;  %12797 = vmatmul.mubr.msk.f32.gmra.mxu0 %vm202_vm0, %v8436_v56  ;;  %v8633_v61 = vld [vmem:[%s13046_s23 + $0x64] sm:$0xff]  ;;  %v8636_v4 = vld [vmem:[%s13046_s23 + $0x7c] sm:$0xff] }
 0x250   : > { %v12484_v33 = vpop.f32.mrf.mxu1  ;;  %12802 = vmatmul.mubr.msk.f32.vlgmr.msra.gmra.mxu1 %vm202_vm0, %v8631_v7  ;;  %v15559_v43 = vadd.f32 %v12504_v2, %v5926_v39  ;;  %12824 = vmatprep.mubr.msk.f32.mxu0 %vm202_vm0, %v8631_v7 }
 0x251   : > { %v5928_v41 = vadd.f32 %v12484_v33, %v15443_v25  ;;  %12846 = vmatpush3.msra.mxu1 %v15411_v34  ;;  %12804 = vmatprep.mubr.msk.f32.mxu1 %vm202_vm0, %v8632_v47  ;;  %v6063_v29 = vpop.f32.mrf.mxu0  ;;  %v15573_v34 = vld [vmem:[%s16161_s1 + $0x170] sm:$0xff] }
 0x252   : > { %v5866_v37 = vpop.f32.mrf.mxu1  ;;  %12891 = vmatprep.subr.mxu1 %v15554_v62  ;;  %v15568_v20 = vadd.f32 %v6063_v29, %v5925_v11 }
 0x253   : > { %v5927_v28 = vadd.f32 %v5866_v37, %v15458_v0  ;;  %v12507_v46 = vpop.f32.mrf.mxu0  ;;  %12825 = vmatmul.mubr.msk.f32.vlgmr.msra.gmra.mxu0 %vm202_vm0, %v8632_v47  ;;  %v8635_v0 = vld [vmem:[%s13046_s23 + $0x74] sm:$0xff]  ;;  %v8638_v37 = vld [vmem:[%s13046_s23 + $0x8c] sm:$0xff] }
 0x254   : > { %v12487_v25 = vpop.f32.mrf.mxu1  ;;  %12805 = vmatmul.mubr.msk.f32.gmra.mxu1 %vm202_vm0, %v8633_v61  ;;  %v15578_v56 = vadd.f32 %v12507_v46, %v5928_v41  ;;  %12869 = vmatpush3.msra.mxu0 %v15436_v21  ;;  %v8637_v41 = vld [vmem:[%s13046_s23 + $0x84] sm:$0xff] }
 0x255   : > { %v5930_v39 = vadd.f32 %v12487_v25, %v15465_v6  ;;  %12807 = vmatprep.mubr.msk.f32.mxu1 %vm202_vm0, %v8634_v40  ;;  %v6073_v5 = vpop.f32.mrf.mxu0  ;;  %12827 = vmatprep.mubr.msk.f32.mxu0 %vm202_vm0, %v8633_v61 }
 0x256   : > { %v5876_v7 = vpop.f32.mrf.mxu1  ;;  %12914 = vmatprep.subr.mxu0 %v15573_v34  ;;  %v15587_v11 = vadd.f32 %v6073_v5, %v5927_v28 }
 0x257   : > { %v5929_v47 = vadd.f32 %v5876_v7, %v15478_v42  ;;  %v12510_v33 = vpop.f32.mrf.mxu0  ;;  %12828 = vmatmul.mubr.msk.f32.gmra.mxu0 %vm202_vm0, %v8634_v40  ;;  %v8640_v7 = vld [vmem:[%s13046_s23 + $0x9c] sm:$0xff] }
 0x258   : > { %v12490_v6 = vpop.f32.mrf.mxu1  ;;  %12808 = vmatmul.mubr.msk.f32.gmra.mxu1 %vm202_vm0, %v8635_v0  ;;  %v15592_v2 = vadd.f32 %v12510_v33, %v5930_v39  ;;  %12830 = vmatprep.mubr.msk.f32.mxu0 %vm202_vm0, %v8635_v0  ;;  %v8639_v39 = vld [vmem:[%s13046_s23 + $0x94] sm:$0xff] }
 0x259   : > { %v5932_v21 = vadd.f32 %v12490_v6, %v15485_v1  ;;  %12810 = vmatprep.mubr.msk.f32.mxu1 %vm202_vm0, %v8636_v4  ;;  %v6083_v42 = vpop.f32.mrf.mxu0 }
 0x25a   : > { %v5886_v61 = vpop.f32.mrf.mxu1  ;;  %v15599_v28 = vadd.f32 %v6083_v42, %v5929_v47 }
 0x25b   : > { %v5931_v29 = vadd.f32 %v5886_v61, %v15498_v27  ;;  %v12513_v40 = vpop.f32.mrf.mxu0  ;;  %12831 = vmatmul.mubr.msk.f32.gmra.mxu0 %vm202_vm0, %v8636_v4  ;;  %v8642_v61 = vld [vmem:[%s13046_s23 + $0xac] sm:$0xff] }
 0x25c   : > { %v12493_v25 = vpop.f32.mrf.mxu1  ;;  %12811 = vmatmul.mubr.msk.f32.gmra.mxu1 %vm202_vm0, %v8637_v41  ;;  %v15604_v46 = vadd.f32 %v12513_v40, %v5932_v21  ;;  %12833 = vmatprep.mubr.msk.f32.mxu0 %vm202_vm0, %v8637_v41  ;;  %v8641_v21 = vld [vmem:[%s13046_s23 + $0xa4] sm:$0xff] }
 0x25d   : > { %v5934_v1 = vadd.f32 %v12493_v25, %v15505_v26  ;;  %12813 = vmatprep.mubr.msk.f32.mxu1 %vm202_vm0, %v8638_v37  ;;  %v6093_v27 = vpop.f32.mrf.mxu0 }
 0x25e   : > { %v5896_v0 = vpop.f32.mrf.mxu1  ;;  %v15611_v47 = vadd.f32 %v6093_v27, %v5931_v29  ;;  %v9044_v27 = vld [vmem:[%s13046_s23 + $0x55] sm:$0xff] }
 0x25f   : > { %v5933_v5 = vadd.f32 %v5896_v0, %v15518_v22  ;;  %v12516_v4 = vpop.f32.mrf.mxu0  ;;  %12834 = vmatmul.mubr.msk.f32.gmra.mxu0 %vm202_vm0, %v8638_v37  ;;  %v8849_v0 = vld [vmem:[%s13046_s23 + $0xb4] sm:$0xff] }
 0x260   : > { %v12496_v6 = vpop.f32.mrf.mxu1  ;;  %12814 = vmatmul.mubr.msk.f32.gmra.mxu1 %vm202_vm0, %v8639_v39  ;;  %v15616_v33 = vadd.f32 %v12516_v4, %v5934_v1  ;;  %12836 = vmatprep.mubr.msk.f32.mxu0 %vm202_vm0, %v8639_v39  ;;  %v8643_v1 = vld [vmem:[%s13046_s23 + $0xb4] sm:$0x3] }
 0x261   : > { %v5936_v26 = vadd.f32 %v12496_v6, %v15525_v60  ;;  %12816 = vmatprep.mubr.msk.f32.mxu1 %vm202_vm0, %v8640_v7  ;;  %v6103_v22 = vpop.f32.mrf.mxu0 }
 0x262   : > { %v5906_v41 = vpop.f32.mrf.mxu1  ;;  %v15623_v29 = vadd.f32 %v6103_v22, %v5933_v5 }
 0x263   : > { %v5935_v42 = vadd.f32 %v5906_v41, %v15536_v53  ;;  %v12519_v25 = vpop.f32.mrf.mxu0  ;;  %12837 = vmatmul.mubr.msk.f32.gmra.mxu0 %vm202_vm0, %v8640_v7  ;;  %v9045_v41 = vld [vmem:[%s13046_s23 + $0x5d] sm:$0xff] }
 0x264   : > { %v12499_v37 = vpop.f32.mrf.mxu1  ;;  %12817 = vmatmul.mubr.msk.f32.gmra.mxu1 %vm202_vm0, %v8641_v21  ;;  %v15628_v40 = vadd.f32 %v12519_v25, %v5936_v26  ;;  %12839 = vmatprep.mubr.msk.f32.mxu0 %vm202_vm0, %v8641_v21  ;;  %v8850_v21 = vld [vmem:[%s13046_s23 + $0xbc] sm:$0x3] }
 0x265   : > { %v5938_v60 = vadd.f32 %v12499_v37, %v15540_v3  ;;  %12819 = vmatprep.mubr.msk.f32.mxu1 %vm202_vm0, %v8642_v61  ;;  %v6113_v39 = vpop.f32.mrf.mxu0 }
 0x266   : > { %v5916_v53 = vpop.f32.mrf.mxu1  ;;  %v15636_v6 = vadd.f32 %v6113_v39, %v5935_v42  ;;  %v9046_v42 = vld [vmem:[%s13046_s23 + $0x65] sm:$0xff] }
 0x267   : > { %v5937_v5 = vadd.f32 %v5916_v53, %v15548_v48  ;;  %v12522_v7 = vpop.f32.mrf.mxu0  ;;  %12840 = vmatmul.mubr.msk.f32.gmra.mxu0 %vm202_vm0, %v8642_v61  ;;  %v15654_v61 = vld [vmem:[%s16161_s1 + $0x178] sm:$0xff] }
 0x268   : > { %v12527_v3 = vpop.f32.mrf.mxu1  ;;  %12820 = vmatmul.mubr.msk.f32.gmra.mxu1 %vm202_vm0, %v8643_v1  ;;  %v15640_v4 = vadd.f32 %v12522_v7, %v5938_v60  ;;  %12842 = vmatprep.mubr.msk.f32.mxu0 %vm202_vm0, %v8849_v0 }
 0x269   : > { %v6340_v26 = vadd.f32 %v12527_v3, %v15559_v43  ;;  %12847 = vmatprep.mubr.msk.f32.mxu1 %vm202_vm0, %v9044_v27  ;;  %v6123_v48 = vpop.f32.mrf.mxu0  ;;  %v9048_v27 = vld [vmem:[%s13046_s23 + $0x75] sm:$0xff] }
 0x26a   : > { %v6270_v22 = vpop.f32.mrf.mxu1  ;;  %v15648_v37 = vadd.f32 %v6123_v48, %v5937_v5  ;;  %v9050_v48 = vld [vmem:[%s13046_s23 + $0x85] sm:$0xff] }
 0x26b   : > { %v6339_v25 = vadd.f32 %v6270_v22, %v15568_v20  ;;  %v12550_v60 = vpop.f32.mrf.mxu0  ;;  %12843 = vmatmul.mubr.msk.f32.gmra.mxu0 %vm202_vm0, %v8850_v21  ;;  %v9047_v20 = vld [vmem:[%s13046_s23 + $0x6d] sm:$0xff] }
 0x26c   : > { %v12530_v43 = vpop.f32.mrf.mxu1  ;;  %12848 = vmatmul.mubr.msk.f32.vlgmr.msra.gmra.mxu1 %vm202_vm0, %v9045_v41  ;;  %v15659_v53 = vadd.f32 %v12550_v60, %v6340_v26  ;;  %12870 = vmatprep.mubr.msk.f32.mxu0 %vm202_vm0, %v15119_v13  ;;  %v9052_v60 = vld [vmem:[%s13046_s23 + $0x95] sm:$0xff] }
 0x26d   : > { %v6342_v1 = vadd.f32 %v12530_v43, %v15578_v56  ;;  %12892 = vmatpush3.msra.mxu1 %v15554_v62  ;;  %12850 = vmatprep.mubr.msk.f32.mxu1 %vm202_vm0, %v9046_v42  ;;  %v6477_v0 = vpop.f32.mrf.mxu0  ;;  %v15674_v62 = vld [vmem:[%s16161_s1 + $0x180] sm:$0xff] }
 0x26e   : > { %v6280_v39 = vpop.f32.mrf.mxu1  ;;  %12937 = vmatprep.subr.mxu1 %v15654_v61  ;;  %v15669_v56 = vadd.f32 %v6477_v0, %v6339_v25 }
 0x26f   : > { %v6341_v5 = vadd.f32 %v6280_v39, %v15587_v11  ;;  %v12553_v3 = vpop.f32.mrf.mxu0  ;;  %12871 = vmatmul.mubr.msk.f32.vlgmr.msra.gmra.mxu0 %vm202_vm0, %v15139_v59  ;;  %v9049_v11 = vld [vmem:[%s13046_s23 + $0x7d] sm:$0xff] }
 0x270   : > { %v12533_v7 = vpop.f32.mrf.mxu1  ;;  %12851 = vmatmul.mubr.msk.f32.gmra.mxu1 %vm202_vm0, %v9047_v20  ;;  %v15680_v26 = vadd.f32 %v12553_v3, %v6342_v1  ;;  %12915 = vmatpush3.msra.mxu0 %v15573_v34 }
 0x271   : > { %v6344_v13 = vadd.f32 %v12533_v7, %v15592_v2  ;;  %12853 = vmatprep.mubr.msk.f32.mxu1 %vm202_vm0, %v9048_v27  ;;  %v6487_v41 = vpop.f32.mrf.mxu0  ;;  %12873 = vmatprep.mubr.msk.f32.mxu0 %vm202_vm0, %v15144_v32  ;;  %v9051_v32 = vld [vmem:[%s13046_s23 + $0x8d] sm:$0xff]  ;;  %v9259_v7 = vld [vmem:[%s13046_s23 + $0x96] sm:$0xff] }
 0x272   : > { %v6290_v21 = vpop.f32.mrf.mxu1  ;;  %12960 = vmatprep.subr.mxu0 %v15674_v62  ;;  %v15690_v2 = vadd.f32 %v6487_v41, %v6341_v5  ;;  %v9054_v5 = vld [vmem:[%s13046_s23 + $0xa5] sm:$0xff] }
 0x273   : > { %v6343_v59 = vadd.f32 %v6290_v21, %v15599_v28  ;;  %v12556_v42 = vpop.f32.mrf.mxu0  ;;  %12874 = vmatmul.mubr.msk.f32.gmra.mxu0 %vm202_vm0, %v15166_v45  ;;  %v9055_v21 = vld [vmem:[%s13046_s23 + $0xad] sm:$0xff] }
 0x274   : > { %v12536_v22 = vpop.f32.mrf.mxu1  ;;  %12854 = vmatmul.mubr.msk.f32.gmra.mxu1 %vm202_vm0, %v9049_v11  ;;  %v15696_v25 = vadd.f32 %v12556_v42, %v6344_v13  ;;  %12876 = vmatprep.mubr.msk.f32.mxu0 %vm202_vm0, %v15171_v36 }
 0x275   : > { %v6346_v34 = vadd.f32 %v12536_v22, %v15604_v46  ;;  %12856 = vmatprep.mubr.msk.f32.mxu1 %vm202_vm0, %v9050_v48  ;;  %v6497_v43 = vpop.f32.mrf.mxu0 }
 0x276   : > { %v6300_v28 = vpop.f32.mrf.mxu1  ;;  %v15704_v20 = vadd.f32 %v6497_v43, %v6343_v59  ;;  %v9056_v59 = vld [vmem:[%s13046_s23 + $0xb5] sm:$0xff] }
 0x277   : > { %v6345_v1 = vadd.f32 %v6300_v28, %v15611_v47  ;;  %v12559_v46 = vpop.f32.mrf.mxu0  ;;  %12877 = vmatmul.mubr.msk.f32.gmra.mxu0 %vm202_vm0, %v15188_v10  ;;  %v9053_v47 = vld [vmem:[%s13046_s23 + $0x9d] sm:$0xff] }
 0x278   : > { %v12539_v45 = vpop.f32.mrf.mxu1  ;;  %12857 = vmatmul.mubr.msk.f32.gmra.mxu1 %vm202_vm0, %v9051_v32  ;;  %v15710_v36 = vadd.f32 %v12559_v46, %v6346_v34  ;;  %12879 = vmatprep.mubr.msk.f32.mxu0 %vm202_vm0, %v15192_v24  ;;  %v9057_v28 = vld [vmem:[%s13046_s23 + $0xbd] sm:$0x3] }
 0x279   : > { %v6348_v39 = vadd.f32 %v12539_v45, %v15616_v33  ;;  %12859 = vmatprep.mubr.msk.f32.mxu1 %vm202_vm0, %v9052_v60  ;;  %v6507_v27 = vpop.f32.mrf.mxu0  ;;  %v9458_v45 = vld [vmem:[%s13046_s23 + $0x57] sm:$0xff] }
 0x27a   : > { %v6310_v0 = vpop.f32.mrf.mxu1  ;;  %v15719_v10 = vadd.f32 %v6507_v27, %v6345_v1  ;;  %v9263_v1 = vld [vmem:[%s13046_s23 + $0xb6] sm:$0xff]  ;;  %v9264_v27 = vld [vmem:[%s13046_s23 + $0xbe] sm:$0x3] }
 0x27b   : > { %v6347_v3 = vadd.f32 %v6310_v0, %v15623_v29  ;;  %v12562_v13 = vpop.f32.mrf.mxu0  ;;  %12880 = vmatmul.mubr.msk.f32.gmra.mxu0 %vm202_vm0, %v15208_v44  ;;  %v9260_v29 = vld [vmem:[%s13046_s23 + $0x9e] sm:$0xff] }
 0x27c   : > { %v12542_v33 = vpop.f32.mrf.mxu1  ;;  %12860 = vmatmul.mubr.msk.f32.gmra.mxu1 %vm202_vm0, %v9053_v47  ;;  %v15725_v11 = vadd.f32 %v12562_v13, %v6348_v39  ;;  %12882 = vmatprep.mubr.msk.f32.mxu0 %vm202_vm0, %v9259_v7 }
 0x27d   : > { %v6350_v24 = vadd.f32 %v12542_v33, %v15628_v40  ;;  %12862 = vmatprep.mubr.msk.f32.mxu1 %vm202_vm0, %v9054_v5  ;;  %v6517_v48 = vpop.f32.mrf.mxu0  ;;  %v9459_v5 = vld [vmem:[%s13046_s23 + $0x5f] sm:$0xff] }
 0x27e   : > { %v6320_v41 = vpop.f32.mrf.mxu1  ;;  %v15733_v44 = vadd.f32 %v6517_v48, %v6347_v3  ;;  %v9460_v3 = vld [vmem:[%s13046_s23 + $0x67] sm:$0xff] }
 0x27f   : > { %v6349_v22 = vadd.f32 %v6320_v41, %v15636_v6  ;;  %v12565_v42 = vpop.f32.mrf.mxu0  ;;  %12883 = vmatmul.mubr.msk.f32.gmra.mxu0 %vm202_vm0, %v9260_v29  ;;  %v9262_v6 = vld [vmem:[%s13046_s23 + $0xae] sm:$0xff] }
 0x280   : > { %v12545_v40 = vpop.f32.mrf.mxu1  ;;  %12863 = vmatmul.mubr.msk.f32.gmra.mxu1 %vm202_vm0, %v9055_v21  ;;  %v15738_v32 = vadd.f32 %v12565_v42, %v6350_v24  ;;  %12885 = vmatprep.mubr.msk.f32.mxu0 %vm202_vm0, %v15226_v12  ;;  %v9461_v41 = vld [vmem:[%s13046_s23 + $0x6f] sm:$0xff] }
 0x281   : > { %v6352_v34 = vadd.f32 %v12545_v40, %v15640_v4  ;;  %12865 = vmatprep.mubr.msk.f32.mxu1 %vm202_vm0, %v9056_v59  ;;  %v6527_v60 = vpop.f32.mrf.mxu0 }
 0x282   : > { %v6330_v43 = vpop.f32.mrf.mxu1  ;;  %v15748_v39 = vadd.f32 %v6527_v60, %v6349_v22 }
 0x283   : > { %v6351_v46 = vadd.f32 %v6330_v43, %v15648_v37  ;;  %v12568_v4 = vpop.f32.mrf.mxu0  ;;  %12886 = vmatmul.mubr.msk.f32.gmra.mxu0 %vm202_vm0, %v9262_v6  ;;  %v9464_v6 = vld [vmem:[%s13046_s23 + $0x87] sm:$0xff] }
 0x284   : > { %v12573_v47 = vpop.f32.mrf.mxu1  ;;  %12866 = vmatmul.mubr.msk.f32.gmra.mxu1 %vm202_vm0, %v9057_v28  ;;  %v15752_v12 = vadd.f32 %v12568_v4, %v6352_v34  ;;  %12888 = vmatprep.mubr.msk.f32.mxu0 %vm202_vm0, %v9263_v1 }
 0x285   : > { %v6754_v0 = vadd.f32 %v12573_v47, %v15659_v53  ;;  %12893 = vmatprep.mubr.msk.f32.mxu1 %vm202_vm0, %v9458_v45  ;;  %v6537_v37 = vpop.f32.mrf.mxu0 }
 0x286   : > { %v6684_v7 = vpop.f32.mrf.mxu1  ;;  %v15760_v33 = vadd.f32 %v6537_v37, %v6351_v46  ;;  %v9466_v46 = vld [vmem:[%s13046_s23 + $0x97] sm:$0xff]  ;;  %v9468_v37 = vld [vmem:[%s13046_s23 + $0xa7] sm:$0xff] }
 0x287   : > { %v6753_v13 = vadd.f32 %v6684_v7, %v15669_v56  ;;  %v12596_v21 = vpop.f32.mrf.mxu0  ;;  %12889 = vmatmul.mubr.msk.f32.gmra.mxu0 %vm202_vm0, %v9264_v27  ;;  %v9462_v56 = vld [vmem:[%s13046_s23 + $0x77] sm:$0xff] }
 0x288   : > { %v12576_v24 = vpop.f32.mrf.mxu1  ;;  %12894 = vmatmul.mubr.msk.f32.vlgmr.msra.gmra.mxu1 %vm202_vm0, %v9459_v5  ;;  %v15766_v29 = vadd.f32 %v12596_v21, %v6754_v0  ;;  %12916 = vmatprep.mubr.msk.f32.mxu0 %vm202_vm0, %v15258_v19  ;;  %v9463_v19 = vld [vmem:[%s13046_s23 + $0x7f] sm:$0xff] }
 0x289   : > { %v6756_v53 = vadd.f32 %v12576_v24, %v15680_v26  ;;  %12938 = vmatpush3.msra.mxu1 %v15654_v61  ;;  %12896 = vmatprep.mubr.msk.f32.mxu1 %vm202_vm0, %v9460_v3  ;;  %v6891_v59 = vpop.f32.mrf.mxu0 }
 0x28a   : > { %v6694_v48 = vpop.f32.mrf.mxu1  ;;  %v15775_v40 = vadd.f32 %v6891_v59, %v6753_v13 }
 0x28b   : > { %v6755_v22 = vadd.f32 %v6694_v48, %v15690_v2  ;;  %v12599_v42 = vpop.f32.mrf.mxu0  ;;  %12917 = vmatmul.mubr.msk.f32.vlgmr.msra.gmra.mxu0 %vm202_vm0, %v15277_v35 }
 0x28c   : > { %v12579_v26 = vpop.f32.mrf.mxu1  ;;  %12897 = vmatmul.mubr.msk.f32.gmra.mxu1 %vm202_vm0, %v9461_v41  ;;  %v15781_v34 = vadd.f32 %v12599_v42, %v6756_v53  ;;  %12961 = vmatpush3.msra.mxu0 %v15674_v62  ;;  %v9470_v53 = vld [vmem:[%s13046_s23 + $0xb7] sm:$0xff] }
 0x28d   : > { %v6758_v61 = vadd.f32 %v12579_v26, %v15696_v25  ;;  %12899 = vmatprep.mubr.msk.f32.mxu1 %vm202_vm0, %v9462_v56  ;;  %v6901_v28 = vpop.f32.mrf.mxu0  ;;  %12919 = vmatprep.mubr.msk.f32.mxu0 %vm202_vm0, %v15282_v8  ;;  %v9465_v8 = vld [vmem:[%s13046_s23 + $0x8f] sm:$0xff]  ;;  %v9471_v56 = vld [vmem:[%s13046_s23 + $0xbf] sm:$0x3] }
 0x28e   : > { %v6704_v2 = vpop.f32.mrf.mxu1  ;;  %v15790_v35 = vadd.f32 %v6901_v28, %v6755_v22  ;;  %v9677_v42 = vld [vmem:[%s13046_s23 + $0xb8] sm:$0xff] }
 0x28f   : > { %v6757_v43 = vadd.f32 %v6704_v2, %v15704_v20  ;;  %v12602_v60 = vpop.f32.mrf.mxu0  ;;  %12920 = vmatmul.mubr.msk.f32.gmra.mxu0 %vm202_vm0, %v15304_v49 }
 0x290   : > { %v12582_v25 = vpop.f32.mrf.mxu1  ;;  %12900 = vmatmul.mubr.msk.f32.gmra.mxu1 %vm202_vm0, %v9463_v19  ;;  %v15796_v1 = vadd.f32 %v12602_v60, %v6758_v61  ;;  %12922 = vmatprep.mubr.msk.f32.mxu0 %vm202_vm0, %v15309_v14  ;;  %v9467_v14 = vld [vmem:[%s13046_s23 + $0x9f] sm:$0xff]  ;;  %v9874_v60 = vld [vmem:[%s13046_s23 + $0x69] sm:$0xff] }
 0x291   : > { %v6760_v62 = vadd.f32 %v12582_v25, %v15710_v36  ;;  %12902 = vmatprep.mubr.msk.f32.mxu1 %vm202_vm0, %v9464_v6  ;;  %v6911_v45 = vpop.f32.mrf.mxu0  ;;  %v9872_v61 = vld [vmem:[%s13046_s23 + $0x59] sm:$0xff] }
 0x292   : > { %v6714_v20 = vpop.f32.mrf.mxu1  ;;  %v15804_v47 = vadd.f32 %v6911_v45, %v6757_v43  ;;  %v9678_v6 = vld [vmem:[%s13046_s23 + $0xc0] sm:$0x3] }
 0x293   : > { %v6759_v4 = vadd.f32 %v6714_v20, %v15719_v10  ;;  %v12605_v0 = vpop.f32.mrf.mxu0  ;;  %12923 = vmatmul.mubr.msk.f32.gmra.mxu0 %vm202_vm0, %v15327_v15  ;;  %v9873_v43 = vld [vmem:[%s13046_s23 + $0x61] sm:$0xff] }
 0x294   : > { %v12585_v49 = vpop.f32.mrf.mxu1  ;;  %12903 = vmatmul.mubr.msk.f32.gmra.mxu1 %vm202_vm0, %v9465_v8  ;;  %v15810_v27 = vadd.f32 %v12605_v0, %v6760_v62  ;;  %12925 = vmatprep.mubr.msk.f32.mxu0 %vm202_vm0, %v15330_v55  ;;  %v9469_v55 = vld [vmem:[%s13046_s23 + $0xaf] sm:$0xff]  ;;  %v9876_v0 = vld [vmem:[%s13046_s23 + $0x79] sm:$0xff] }
 0x295   : > { %v6762_v36 = vadd.f32 %v12585_v49, %v15725_v11  ;;  %12905 = vmatprep.mubr.msk.f32.mxu1 %vm202_vm0, %v9466_v46  ;;  %v6921_v5 = vpop.f32.mrf.mxu0 }
 0x296   : > { %v6724_v10 = vpop.f32.mrf.mxu1  ;;  %v15818_v3 = vadd.f32 %v6921_v5, %v6759_v4  ;;  %v9875_v4 = vld [vmem:[%s13046_s23 + $0x71] sm:$0xff] }
 0x297   : > { %v6761_v7 = vadd.f32 %v6724_v10, %v15733_v44  ;;  %v12608_v13 = vpop.f32.mrf.mxu0  ;;  %12926 = vmatmul.mubr.msk.f32.gmra.mxu0 %vm202_vm0, %v15347_v17 }
 0x298   : > { %v12588_v15 = vpop.f32.mrf.mxu1  ;;  %12906 = vmatmul.mubr.msk.f32.gmra.mxu1 %vm202_vm0, %v9467_v14  ;;  %v15824_v24 = vadd.f32 %v12608_v13, %v6762_v36  ;;  %12928 = vmatprep.mubr.msk.f32.mxu0 %vm202_vm0, %v15350_v23 }
 0x299   : > { %v6764_v11 = vadd.f32 %v12588_v15, %v15738_v32  ;;  %12908 = vmatprep.mubr.msk.f32.mxu1 %vm202_vm0, %v9468_v37  ;;  %v6931_v21 = vpop.f32.mrf.mxu0  ;;  %v9878_v15 = vld [vmem:[%s13046_s23 + $0x89] sm:$0xff] }
 0x29a   : > { %v6734_v44 = vpop.f32.mrf.mxu1  ;;  %v15832_v17 = vadd.f32 %v6931_v21, %v6761_v7 }
 0x29b   : > { %v6763_v41 = vadd.f32 %v6734_v44, %v15748_v39  ;;  %v12611_v48 = vpop.f32.mrf.mxu0  ;;  %12929 = vmatmul.mubr.msk.f32.gmra.mxu0 %vm202_vm0, %v15367_v54  ;;  %v9676_v39 = vld [vmem:[%s13046_s23 + $0xb0] sm:$0xff] }
 0x29c   : > { %v12591_v32 = vpop.f32.mrf.mxu1  ;;  %12909 = vmatmul.mubr.msk.f32.gmra.mxu1 %vm202_vm0, %v9469_v55  ;;  %v15838_v59 = vadd.f32 %v12611_v48, %v6764_v11  ;;  %12931 = vmatprep.mubr.msk.f32.mxu0 %vm202_vm0, %v15370_v18 }
 0x29d   : > { %v6766_v23 = vadd.f32 %v12591_v32, %v15752_v12  ;;  %12911 = vmatprep.mubr.msk.f32.mxu1 %vm202_vm0, %v9470_v53  ;;  %v6941_v26 = vpop.f32.mrf.mxu0  ;;  %v9880_v53 = vld [vmem:[%s13046_s23 + $0x99] sm:$0xff] }
 0x29e   : > { %v6744_v22 = vpop.f32.mrf.mxu1  ;;  %v15848_v19 = vadd.f32 %v6941_v26, %v6763_v41 }
 0x29f   : > { %v6765_v54 = vadd.f32 %v6744_v22, %v15760_v33  ;;  %v12614_v12 = vpop.f32.mrf.mxu0  ;;  %12932 = vmatmul.mubr.msk.f32.gmra.mxu0 %vm202_vm0, %v9676_v39  ;;  %v9882_v39 = vld [vmem:[%s13046_s23 + $0xa9] sm:$0xff] }
 0x2a0   : > { %v12619_v2 = vpop.f32.mrf.mxu1  ;;  %12912 = vmatmul.mubr.msk.f32.gmra.mxu1 %vm202_vm0, %v9471_v56  ;;  %v15852_v18 = vadd.f32 %v12614_v12, %v6766_v23  ;;  %12934 = vmatprep.mubr.msk.f32.mxu0 %vm202_vm0, %v9677_v42  ;;  %v9884_v12 = vld [vmem:[%s13046_s23 + $0xb9] sm:$0xff] }
 0x2a1   : > { %v7168_v28 = vadd.f32 %v12619_v2, %v15766_v29  ;;  %12939 = vmatprep.mubr.msk.f32.mxu1 %vm202_vm0, %v9872_v61  ;;  %v6951_v33 = vpop.f32.mrf.mxu0 }
 0x2a2   : > { %v7098_v25 = vpop.f32.mrf.mxu1  ;;  %v15860_v62 = vadd.f32 %v6951_v33, %v6765_v54  ;;  %v10090_v33 = vld [vmem:[%s13046_s23 + $0xb2] sm:$0xff] }
 0x2a3   : > { %v7167_v8 = vadd.f32 %v7098_v25, %v15775_v40  ;;  %v12642_v45 = vpop.f32.mrf.mxu0  ;;  %12935 = vmatmul.mubr.msk.f32.gmra.mxu0 %vm202_vm0, %v9678_v6 }
 0x2a4   : > { %v12622_v20 = vpop.f32.mrf.mxu1  ;;  %12940 = vmatmul.mubr.msk.f32.vlgmr.msra.gmra.mxu1 %vm202_vm0, %v9873_v43  ;;  %v15866_v46 = vadd.f32 %v12642_v45, %v7168_v28  ;;  %12962 = vmatprep.mubr.msk.f32.mxu0 %vm202_vm0, %v15403_v31  ;;  %v9877_v31 = vld [vmem:[%s13046_s23 + $0x81] sm:$0xff] }
 0x2a5   : > { %v7170_v29 = vadd.f32 %v12622_v20, %v15781_v34  ;;  %12942 = vmatprep.mubr.msk.f32.mxu1 %vm202_vm0, %v9874_v60  ;;  %v7305_v40 = vpop.f32.mrf.mxu0  ;;  %v10091_v60 = vld [vmem:[%s13046_s23 + $0xba] sm:$0xff] }
 0x2a6   : > { %v7108_v49 = vpop.f32.mrf.mxu1  ;;  %v15874_v14 = vadd.f32 %v7305_v40, %v7167_v8 }
 0x2a7   : > { %v7169_v36 = vadd.f32 %v7108_v49, %v15790_v35  ;;  %v12645_v5 = vpop.f32.mrf.mxu0  ;;  %12963 = vmatmul.mubr.msk.f32.vlgmr.msra.gmra.mxu0 %vm202_vm0, %v15422_v16 }
 0x2a8   : > { %v12625_v10 = vpop.f32.mrf.mxu1  ;;  %12943 = vmatmul.mubr.msk.f32.gmra.mxu1 %vm202_vm0, %v9875_v4  ;;  %v15880_v37 = vadd.f32 %v12645_v5, %v7170_v29  ;;  %12965 = vmatprep.mubr.msk.f32.mxu0 %vm202_vm0, %v15427_v57  ;;  %v9879_v57 = vld [vmem:[%s13046_s23 + $0x91] sm:$0xff] }
 0x2a9   : > { %v7172_v34 = vadd.f32 %v12625_v10, %v15796_v1  ;;  %12945 = vmatprep.mubr.msk.f32.mxu1 %vm202_vm0, %v9876_v0  ;;  %v7315_v7 = vpop.f32.mrf.mxu0 }
 0x2aa   : > { %v7118_v35 = vpop.f32.mrf.mxu1  ;;  %v15888_v11 = vadd.f32 %v7315_v7, %v7169_v36 }
 0x2ab   : > { %v7171_v13 = vadd.f32 %v7118_v35, %v15804_v47  ;;  %v12648_v55 = vpop.f32.mrf.mxu0  ;;  %12966 = vmatmul.mubr.msk.f32.gmra.mxu0 %vm202_vm0, %v15449_v30 }
 0x2ac   : > { %v12628_v16 = vpop.f32.mrf.mxu1  ;;  %12946 = vmatmul.mubr.msk.f32.gmra.mxu1 %vm202_vm0, %v9877_v31  ;;  %v15894_v44 = vadd.f32 %v12648_v55, %v7172_v34  ;;  %12968 = vmatprep.mubr.msk.f32.mxu0 %vm202_vm0, %v15454_v9  ;;  %v9881_v9 = vld [vmem:[%s13046_s23 + $0xa1] sm:$0xff] }
 0x2ad   : > { %v7174_v1 = vadd.f32 %v12628_v16, %v15810_v27  ;;  %12948 = vmatprep.mubr.msk.f32.mxu1 %vm202_vm0, %v9878_v15  ;;  %v7325_v21 = vpop.f32.mrf.mxu0 }
 0x2ae   : > { %v7128_v47 = vpop.f32.mrf.mxu1  ;;  %v15902_v32 = vadd.f32 %v7325_v21, %v7171_v13 }
 0x2af   : > { %v7173_v41 = vadd.f32 %v7128_v47, %v15818_v3  ;;  %v12651_v48 = vpop.f32.mrf.mxu0  ;;  %12969 = vmatmul.mubr.msk.f32.gmra.mxu0 %vm202_vm0, %v15472_v58 }
 0x2b0   : > { %v12631_v30 = vpop.f32.mrf.mxu1  ;;  %12949 = vmatmul.mubr.msk.f32.gmra.mxu1 %vm202_vm0, %v9879_v57  ;;  %v15908_v23 = vadd.f32 %v12651_v48, %v7174_v1  ;;  %12971 = vmatprep.mubr.msk.f32.mxu0 %vm202_vm0, %v15475_v51  ;;  %v9883_v51 = vld [vmem:[%s13046_s23 + $0xb1] sm:$0xff] }
 0x2b1   : > { %v7176_v27 = vadd.f32 %v12631_v30, %v15824_v24  ;;  %12951 = vmatprep.mubr.msk.f32.mxu1 %vm202_vm0, %v9880_v53  ;;  %v7335_v56 = vpop.f32.mrf.mxu0 }
 0x2b2   : > { %v7138_v3 = vpop.f32.mrf.mxu1  ;;  %v15916_v26 = vadd.f32 %v7335_v56, %v7173_v41 }
 0x2b3   : > { %v7175_v22 = vadd.f32 %v7138_v3, %v15832_v17  ;;  %v12654_v42 = vpop.f32.mrf.mxu0  ;;  %12972 = vmatmul.mubr.msk.f32.gmra.mxu0 %vm202_vm0, %v15492_v38 }
 0x2b4   : > { %v12634_v58 = vpop.f32.mrf.mxu1  ;;  %12952 = vmatmul.mubr.msk.f32.gmra.mxu1 %vm202_vm0, %v9881_v9  ;;  %v15922_v61 = vadd.f32 %v12654_v42, %v7176_v27  ;;  %12974 = vmatprep.mubr.msk.f32.mxu0 %vm202_vm0, %v15495_v50  ;;  %v9885_v50 = vld [vmem:[%s13046_s23 + $0xc1] sm:$0x3] }
 0x2b5   : > { %v7178_v24 = vadd.f32 %v12634_v58, %v15838_v59  ;;  %12954 = vmatprep.mubr.msk.f32.mxu1 %vm202_vm0, %v9882_v39  ;;  %v7345_v54 = vpop.f32.mrf.mxu0 }
 0x2b6   : > { %v7148_v17 = vpop.f32.mrf.mxu1  ;;  %v7382_v28 = vadd.f32 %v7345_v54, %v7175_v22 }
 0x2b7   : > { %v7177_v2 = vadd.f32 %v7148_v17, %v15848_v19  ;;  %v12657_v6 = vpop.f32.mrf.mxu0  ;;  %12975 = vmatmul.mubr.msk.f32.gmra.mxu0 %vm202_vm0, %v15512_v63 }
 0x2b8   : > { %v12637_v38 = vpop.f32.mrf.mxu1  ;;  %12955 = vmatmul.mubr.msk.f32.gmra.mxu1 %vm202_vm0, %v9883_v51  ;;  %v7385_v43 = vadd.f32 %v12657_v6, %v7178_v24  ;;  %12977 = vmatprep.mubr.msk.f32.mxu0 %vm202_vm0, %v15515_v52  ;;  %v10092_v52 = vld [vmem:[%s13046_s23 + $0xc2] sm:$0x3]  ;;  %s12986_s23 = smul.u32 112, %s16291_s13 }
 0x2b9   : > { %v7180_v59 = vadd.f32 %v12637_v38, %v15852_v18  ;;  %12957 = vmatprep.mubr.msk.f32.mxu1 %vm202_vm0, %v9884_v12  ;;  %v7355_v25 = vpop.f32.mrf.mxu0 }
 0x2ba   : > { %v7158_v19 = vpop.f32.mrf.mxu1  ;;  %v7384_v20 = vadd.f32 %v7355_v25, %v7177_v2  ;;  %s16075_s22 = scalar_lea.vmem %s16163_s3, %s12986_s23 }
 0x2bb   : > { %v7179_v8 = vadd.f32 %v7158_v19, %v15860_v62  ;;  %v12660_v45 = vpop.f32.mrf.mxu0  ;;  %12978 = vmatmul.mubr.msk.f32.gmra.mxu0 %vm202_vm0, %v10090_v33 }
 0x2bc   : > { %v12665_v29 = vpop.f32.mrf.mxu1  ;;  %12958 = vmatmul.mubr.msk.f32.gmra.mxu1 %vm202_vm0, %v9885_v50  ;;  %v7387_v63 = vadd.f32 %v12660_v45, %v7180_v59  ;;  %12980 = vmatprep.mubr.msk.f32.mxu0 %vm202_vm0, %v10091_v60 }
 0x2bd   : > { %v7582_v18 = vadd.f32 %v12665_v29, %v15866_v46  ;;  %v7365_v4 = vpop.f32.mrf.mxu0 }
 0x2be   : > { %v7512_v49 = vpop.f32.mrf.mxu1  ;;  %v7386_v40 = vadd.f32 %v7365_v4, %v7179_v8 }
 0x2bf   : > { %v7581_v0 = vadd.f32 %v7512_v49, %v15874_v14  ;;  %v12688_v62 = vpop.f32.mrf.mxu0  ;;  %12981 = vmatmul.mubr.msk.f32.gmra.mxu0 %vm202_vm0, %v10092_v52 }
 0x2c0   : > { %v12668_v36 = vpop.f32.mrf.mxu1  ;;  %v7789_v5 = vadd.f32 %v12688_v62, %v7582_v18 }
 0x2c1   : > { %v7584_v10 = vadd.f32 %v12668_v36, %v15880_v37  ;;  %v7719_v31 = vpop.f32.mrf.mxu0 }
 0x2c2   : > { %v7522_v34 = vpop.f32.mrf.mxu1  ;;  %v7788_v46 = vadd.f32 %v7719_v31, %v7581_v0 }
 0x2c3   : > { %v7583_v35 = vadd.f32 %v7522_v34, %v15888_v11  ;;  %v12691_v15 = vpop.f32.mrf.mxu0 }
 0x2c4   : > { %v12671_v7 = vpop.f32.mrf.mxu1  ;;  %v7791_v16 = vadd.f32 %v12691_v15, %v7584_v10 }
 0x2c5   : > { %v7586_v13 = vadd.f32 %v12671_v7, %v15894_v44  ;;  %v7729_v1 = vpop.f32.mrf.mxu0 }
 0x2c6   : > { %v7532_v55 = vpop.f32.mrf.mxu1  ;;  %v7790_v57 = vadd.f32 %v7729_v1, %v7583_v35 }
 0x2c7   : > { %v7585_v14 = vadd.f32 %v7532_v55, %v15902_v32  ;;  %v12694_v21 = vpop.f32.mrf.mxu0 }
 0x2c8   : > { %v12674_v47 = vpop.f32.mrf.mxu1  ;;  %v7793_v53 = vadd.f32 %v12694_v21, %v7586_v13 }
 0x2c9   : > { %v7588_v37 = vadd.f32 %v12674_v47, %v15908_v23  ;;  %v7739_v30 = vpop.f32.mrf.mxu0 }
 0x2ca   : > { %v7542_v41 = vpop.f32.mrf.mxu1  ;;  %v7792_v48 = vadd.f32 %v7739_v30, %v7585_v14 }
 0x2cb   : > { %v7587_v11 = vadd.f32 %v7542_v41, %v15916_v26  ;;  %v12697_v9 = vpop.f32.mrf.mxu0 }
 0x2cc   : > { %v12677_v27 = vpop.f32.mrf.mxu1  ;;  %v7795_v3 = vadd.f32 %v12697_v9, %v7588_v37 }
 0x2cd   : > { %v7590_v44 = vadd.f32 %v12677_v27, %v15922_v61  ;;  %v7749_v39 = vpop.f32.mrf.mxu0 }
 0x2ce   : > { %v7552_v56 = vpop.f32.mrf.mxu1  ;;  %v7794_v32 = vadd.f32 %v7749_v39, %v7587_v11 }
 0x2cf   : > { %v7589_v22 = vadd.f32 %v7552_v56, %v7382_v28  ;;  %v12700_v42 = vpop.f32.mrf.mxu0 }
 0x2d0   : > { %v12680_v58 = vpop.f32.mrf.mxu1  ;;  %v7797_v51 = vadd.f32 %v12700_v42, %v7590_v44 }
 0x2d1   : > { %v7592_v24 = vadd.f32 %v12680_v58, %v7385_v43  ;;  %v7759_v17 = vpop.f32.mrf.mxu0 }
 0x2d2   : > { %v7562_v23 = vpop.f32.mrf.mxu1  ;;  %v7796_v12 = vadd.f32 %v7759_v17, %v7589_v22 }
 0x2d3   : > { %v7591_v54 = vadd.f32 %v7562_v23, %v7384_v20  ;;  %v12703_v26 = vpop.f32.mrf.mxu0 }
 0x2d4   : > { %v12683_v2 = vpop.f32.mrf.mxu1  ;;  %v7799_v6 = vadd.f32 %v12703_v26, %v7592_v24 }
 0x2d5   : > { %v7594_v38 = vadd.f32 %v12683_v2, %v7387_v63  ;;  %v7769_v50 = vpop.f32.mrf.mxu0 }
 0x2d6   : > { %v7572_v59 = vpop.f32.mrf.mxu1  ;;  %v7798_v33 = vadd.f32 %v7769_v50, %v7591_v54 }
 0x2d7   : > { %v7593_v61 = vadd.f32 %v7572_v59, %v7386_v40  ;;  %v12706_v19 = vpop.f32.mrf.mxu0 }
 0x2d8   : > { %v12711_v25 = vpop.f32.mrf.mxu1  ;;  %v7801_v28 = vadd.f32 %v12706_v19, %v7594_v38 }
 0x2d9   : > { %v7996_v60 = vadd.f32 %v12711_v25, %v7789_v5  ;;  %v7779_v8 = vpop.f32.mrf.mxu0 }
 0x2da   : > { %v7926_v45 = vpop.f32.mrf.mxu1  ;;  %v7800_v43 = vadd.f32 %v7779_v8, %v7593_v61 }
 0x2db   : > { %v7995_v29 = vadd.f32 %v7926_v45, %v7788_v46  ;;  %v12734_v52 = vpop.f32.mrf.mxu0 }
 0x2dc   : > { %v12714_v18 = vpop.f32.mrf.mxu1  ;;  %v8203_v4 = vadd.f32 %v12734_v52, %v7996_v60 }
 0x2dd   : > { %v7998_v20 = vadd.f32 %v12714_v18, %v7791_v16  ;;  %v8133_v0 = vpop.f32.mrf.mxu0 }
 0x2de   : > { %v7936_v49 = vpop.f32.mrf.mxu1  ;;  %v8202_v36 = vadd.f32 %v8133_v0, %v7995_v29 }
 0x2df   : > { %v7997_v63 = vadd.f32 %v7936_v49, %v7790_v57  ;;  %v12737_v10 = vpop.f32.mrf.mxu0 }
 0x2e0   : > { %v12717_v62 = vpop.f32.mrf.mxu1  ;;  %v8205_v34 = vadd.f32 %v12737_v10, %v7998_v20 }
 0x2e1   : > { %v8000_v40 = vadd.f32 %v12717_v62, %v7793_v53  ;;  %v8143_v35 = vpop.f32.mrf.mxu0 }
 0x2e2   : > { %v7946_v31 = vpop.f32.mrf.mxu1  ;;  %v8204_v5 = vadd.f32 %v8143_v35, %v7997_v63 }
 0x2e3   : > { %v7999_v7 = vadd.f32 %v7946_v31, %v7792_v48  ;;  %v12740_v13 = vpop.f32.mrf.mxu0 }
 0x2e4   : > { %v12720_v15 = vpop.f32.mrf.mxu1  ;;  %v8207_v46 = vadd.f32 %v12740_v13, %v8000_v40 }
 0x2e5   : > { %v8002_v55 = vadd.f32 %v12720_v15, %v7795_v3  ;;  %v8153_v14 = vpop.f32.mrf.mxu0 }
 0x2e6   : > { %v7956_v1 = vpop.f32.mrf.mxu1  ;;  %v8206_v47 = vadd.f32 %v8153_v14, %v7999_v7 }
 0x2e7   : > { %v8001_v16 = vadd.f32 %v7956_v1, %v7794_v32  ;;  %v12743_v37 = vpop.f32.mrf.mxu0 }
 0x2e8   : > { %v12723_v21 = vpop.f32.mrf.mxu1  ;;  %v8209_v41 = vadd.f32 %v12743_v37, %v8002_v55 }
 0x2e9   : > { %v8004_v57 = vadd.f32 %v12723_v21, %v7797_v51  ;;  %v8163_v11 = vpop.f32.mrf.mxu0 }
 0x2ea   : > { %v7966_v30 = vpop.f32.mrf.mxu1  ;;  %v8208_v27 = vadd.f32 %v8163_v11, %v8001_v16 }
 0x2eb   : > { %v8003_v53 = vadd.f32 %v7966_v30, %v7796_v12  ;;  %v12746_v44 = vpop.f32.mrf.mxu0 }
 0x2ec   : > { %v12726_v9 = vpop.f32.mrf.mxu1  ;;  %v8211_v56 = vadd.f32 %v12746_v44, %v8004_v57 }
 0x2ed   : > { %v8006_v48 = vadd.f32 %v12726_v9, %v7799_v6  ;;  %v8173_v22 = vpop.f32.mrf.mxu0 }
 0x2ee   : > { %v7976_v39 = vpop.f32.mrf.mxu1  ;;  %v8210_v58 = vadd.f32 %v8173_v22, %v8003_v53 }
 0x2ef   : > { %v8005_v3 = vadd.f32 %v7976_v39, %v7798_v33  ;;  %v12749_v24 = vpop.f32.mrf.mxu0 }
 0x2f0   : > { %v12729_v42 = vpop.f32.mrf.mxu1  ;;  %v8213_v23 = vadd.f32 %v12749_v24, %v8006_v48 }
 0x2f1   : > { %v8008_v32 = vadd.f32 %v12729_v42, %v7801_v28  ;;  %v8183_v54 = vpop.f32.mrf.mxu0 }
 0x2f2   : > { %v7986_v17 = vpop.f32.mrf.mxu1  ;;  %v8212_v2 = vadd.f32 %v8183_v54, %v8005_v3 }
 0x2f3   : > { %v8007_v51 = vadd.f32 %v7986_v17, %v7800_v43  ;;  %v12752_v26 = vpop.f32.mrf.mxu0 }
 0x2f4   : > { %v12757_v38 = vpop.f32.mrf.mxu1  ;;  %v8215_v12 = vadd.f32 %v12752_v26, %v8008_v32 }
 0x2f5   : > { %v8410_v59 = vadd.f32 %v12757_v38, %v8203_v4  ;;  %v8193_v50 = vpop.f32.mrf.mxu0 }
 0x2f6   : > { %v8340_v61 = vpop.f32.mrf.mxu1  ;;  %v8214_v6 = vadd.f32 %v8193_v50, %v8007_v51 }
 0x2f7   : > { %v8409_v19 = vadd.f32 %v8340_v61, %v8202_v36  ;;  %v12780_v60 = vpop.f32.mrf.mxu0 }
 0x2f8   : > { %v12760_v25 = vpop.f32.mrf.mxu1  ;;  %v8617_v8 = vadd.f32 %v12780_v60, %v8410_v59 }
 0x2f9   : > { %v8412_v33 = vadd.f32 %v12760_v25, %v8205_v34  ;;  %v8547_v29 = vpop.f32.mrf.mxu0 }
 0x2fa   : > { %v8350_v45 = vpop.f32.mrf.mxu1  ;;  %v8616_v18 = vadd.f32 %v8547_v29, %v8409_v19 }
 0x2fb   : > { %v8411_v28 = vadd.f32 %v8350_v45, %v8204_v5  ;;  %v12783_v20 = vpop.f32.mrf.mxu0 }
 0x2fc   : > { %v12763_v52 = vpop.f32.mrf.mxu1  ;;  %v8619_v49 = vadd.f32 %v12783_v20, %v8412_v33 }
 0x2fd   : > { %v8414_v43 = vadd.f32 %v12763_v52, %v8207_v46  ;;  %v8557_v63 = vpop.f32.mrf.mxu0 }
 0x2fe   : > { %v8360_v0 = vpop.f32.mrf.mxu1  ;;  %v8618_v4 = vadd.f32 %v8557_v63, %v8411_v28 }
 0x2ff   : > { %v8413_v62 = vadd.f32 %v8360_v0, %v8206_v47  ;;  %v12786_v40 = vpop.f32.mrf.mxu0 }
 0x300   : > { %v12766_v10 = vpop.f32.mrf.mxu1  ;;  %v8621_v36 = vadd.f32 %v12786_v40, %v8414_v43 }
 0x301   : > { %v8416_v31 = vadd.f32 %v12766_v10, %v8209_v41  ;;  %v8567_v7 = vpop.f32.mrf.mxu0 }
 0x302   : > { %v8370_v35 = vpop.f32.mrf.mxu1  ;;  %v8620_v15 = vadd.f32 %v8567_v7, %v8413_v62 }
 0x303   : > { %v8415_v34 = vadd.f32 %v8370_v35, %v8208_v27  ;;  %v12789_v55 = vpop.f32.mrf.mxu0 }
 0x304   : > { %v12769_v13 = vpop.f32.mrf.mxu1  ;;  %v8623_v1 = vadd.f32 %v12789_v55, %v8416_v31 }
 0x305   : > { %v8418_v5 = vadd.f32 %v12769_v13, %v8211_v56  ;;  %v8577_v16 = vpop.f32.mrf.mxu0 }
 0x306   : > { %v8380_v14 = vpop.f32.mrf.mxu1  ;;  %v8622_v21 = vadd.f32 %v8577_v16, %v8415_v34 }
 0x307   : > { %v8417_v46 = vadd.f32 %v8380_v14, %v8210_v58  ;;  %v12792_v57 = vpop.f32.mrf.mxu0 }
 0x308   : > { %v12772_v37 = vpop.f32.mrf.mxu1  ;;  %v8625_v30 = vadd.f32 %v12792_v57, %v8418_v5 }
 0x309   : > { %v8420_v47 = vadd.f32 %v12772_v37, %v8213_v23  ;;  %v8587_v53 = vpop.f32.mrf.mxu0 }
 0x30a   : > { %v8390_v11 = vpop.f32.mrf.mxu1  ;;  %v8624_v9 = vadd.f32 %v8587_v53, %v8417_v46 }
 0x30b   : > { %v8419_v41 = vadd.f32 %v8390_v11, %v8212_v2  ;;  %v12795_v48 = vpop.f32.mrf.mxu0 }
 0x30c   : > { %v12775_v44 = vpop.f32.mrf.mxu1  ;;  %v8627_v39 = vadd.f32 %v12795_v48, %v8420_v47 }
 0x30d   : > { %v8422_v27 = vadd.f32 %v12775_v44, %v8215_v12  ;;  %v8597_v3 = vpop.f32.mrf.mxu0 }
 0x30e   : > { %v8400_v22 = vpop.f32.mrf.mxu1  ;;  %v8626_v42 = vadd.f32 %v8597_v3, %v8419_v41 }
 0x30f   : > { %v8421_v56 = vadd.f32 %v8400_v22, %v8214_v6  ;;  %v12798_v24 = vpop.f32.mrf.mxu0 }
 0x310   : > { %v12803_v32 = vpop.f32.mrf.mxu1  ;;  %v8629_v58 = vadd.f32 %v12798_v24, %v8422_v27 }
 0x311   : > { %v8824_v17 = vadd.f32 %v12803_v32, %v8617_v8  ;;  %v8607_v54 = vpop.f32.mrf.mxu0 }
 0x312   : > { %v8754_v51 = vpop.f32.mrf.mxu1  ;;  %v8628_v23 = vadd.f32 %v8607_v54, %v8421_v56 }
 0x313   : > { %v8823_v26 = vadd.f32 %v8754_v51, %v8616_v18  ;;  %v12826_v59 = vpop.f32.mrf.mxu0 }
 0x314   : > { %v12806_v38 = vpop.f32.mrf.mxu1  ;;  %v15955_v50 = vadd.f32 %v12826_v59, %v8824_v17 }
 0x315   : > { %v8826_v2 = vadd.f32 %v12806_v38, %v8619_v49  ;;  %v8961_v12 = vpop.f32.mrf.mxu0 }
 0x316   : > { %v8764_v61 = vpop.f32.mrf.mxu1  ;;  %v15957_v25 = vadd.f32 %v8961_v12, %v8823_v26 }
 0x317   : > { %v8825_v19 = vadd.f32 %v8764_v61, %v8618_v4  ;;  %v12829_v60 = vpop.f32.mrf.mxu0 }
 0x318   : > { %v12809_v6 = vpop.f32.mrf.mxu1  ;;  %v15959_v45 = vadd.f32 %v12829_v60, %v8826_v2 }
 0x319   : > { %v8828_v33 = vadd.f32 %v12809_v6, %v8621_v36  ;;  %v8971_v29 = vpop.f32.mrf.mxu0 }
 0x31a   : > { %v8774_v8 = vpop.f32.mrf.mxu1  ;;  %v15961_v52 = vadd.f32 %v8971_v29, %v8825_v19 }
 0x31b   : > { %v8827_v28 = vadd.f32 %v8774_v8, %v8620_v15  ;;  %v12832_v20 = vpop.f32.mrf.mxu0 }
 0x31c   : > { %v12812_v18 = vpop.f32.mrf.mxu1  ;;  %v15963_v49 = vadd.f32 %v12832_v20, %v8828_v33 }
 0x31d   : > { %v8830_v43 = vadd.f32 %v12812_v18, %v8623_v1  ;;  %v8981_v63 = vpop.f32.mrf.mxu0 }
 0x31e   : > { %v8784_v0 = vpop.f32.mrf.mxu1  ;;  %v15965_v4 = vadd.f32 %v8981_v63, %v8827_v28 }
 0x31f   : > { %v8829_v62 = vadd.f32 %v8784_v0, %v8622_v21  ;;  %v12835_v40 = vpop.f32.mrf.mxu0 }
 0x320   : > { %v12815_v10 = vpop.f32.mrf.mxu1  ;;  %v15967_v36 = vadd.f32 %v12835_v40, %v8830_v43 }
 0x321   : > { %v8832_v31 = vadd.f32 %v12815_v10, %v8625_v30  ;;  %v8991_v7 = vpop.f32.mrf.mxu0 }
 0x322   : > { %v8794_v35 = vpop.f32.mrf.mxu1  ;;  %v15969_v15 = vadd.f32 %v8991_v7, %v8829_v62 }
 0x323   : > { %v8831_v34 = vadd.f32 %v8794_v35, %v8624_v9  ;;  %v12838_v55 = vpop.f32.mrf.mxu0 }
 0x324   : > { %v12818_v13 = vpop.f32.mrf.mxu1  ;;  %v15971_v1 = vadd.f32 %v12838_v55, %v8832_v31 }
 0x325   : > { %v8834_v5 = vadd.f32 %v12818_v13, %v8627_v39  ;;  %v9001_v16 = vpop.f32.mrf.mxu0 }
 0x326   : > { %v8804_v14 = vpop.f32.mrf.mxu1  ;;  %v15973_v21 = vadd.f32 %v9001_v16, %v8831_v34 }
 0x327   : > { %v8833_v46 = vadd.f32 %v8804_v14, %v8626_v42  ;;  %v12841_v57 = vpop.f32.mrf.mxu0 }
 0x328   : > { %v12821_v37 = vpop.f32.mrf.mxu1  ;;  %v15975_v30 = vadd.f32 %v12841_v57, %v8834_v5 }
 0x329   : > { %v8836_v47 = vadd.f32 %v12821_v37, %v8629_v58  ;;  %v9011_v53 = vpop.f32.mrf.mxu0 }
 0x32a   : > { %v8814_v11 = vpop.f32.mrf.mxu1  ;;  %v15977_v9 = vadd.f32 %v9011_v53, %v8833_v46 }
 0x32b   : > { %v8835_v41 = vadd.f32 %v8814_v11, %v8628_v23  ;;  %v12844_v44 = vpop.f32.mrf.mxu0 }
 0x32c   : > { %v12849_v48 = vpop.f32.mrf.mxu1  ;;  %v15979_v27 = vadd.f32 %v12844_v44, %v8836_v47 }
 0x32d   : > { %v9021_v39 = vpop.f32.mrf.mxu0 }
 0x32e   : > { %16258 = vst [vmem:[#allocation2_spill] sm:$0xff] %v15979_v27  ;;  %v9168_v22 = vpop.f32.mrf.mxu1  ;;  %v15981_v3 = vadd.f32 %v9021_v39, %v8835_v41 }
 0x32f   : > { %v12872_v42 = vpop.f32.mrf.mxu0 }
 0x330   : > { %16259 = vst [vmem:[#allocation3_spill] sm:$0xff] %v15981_v3  ;;  %v12852_v56 = vpop.f32.mrf.mxu1  ;;  %v9237_v3 = vadd.f32 %v9168_v22, %v15957_v25 }
 0x331   : > { %v9375_v32 = vpop.f32.mrf.mxu0 }
 0x332   : > { %v9178_v24 = vpop.f32.mrf.mxu1 }
 0x333   : > { %v12875_v17 = vpop.f32.mrf.mxu0 }
 0x334   : > { %v12855_v58 = vpop.f32.mrf.mxu1 }
 0x335   : > { %v9385_v51 = vpop.f32.mrf.mxu0  ;;  %v9242_v25 = vadd.f32 %v12855_v58, %v15963_v49 }
 0x336   : > { %v15983_v54 = vpop.f32.mrf.mxu1 }
 0x337   : > { %v15987_v26 = vpop.f32.mrf.mxu0 }
 0x338   : > { %v15985_v23 = vpop.f32.mrf.mxu1 }
 0x339   : > { %v15991_v59 = vpop.f32.mrf.mxu0 }
 0x33a   : > { %v15989_v38 = vpop.f32.mrf.mxu1 }
 0x33b   : > { %v15995_v61 = vpop.f32.mrf.mxu0 }
 0x33c   : > { %v15993_v2 = vpop.f32.mrf.mxu1 }
 0x33d   : > { %v15999_v19 = vpop.f32.mrf.mxu0 }
 0x33e   : > { %v15997_v12 = vpop.f32.mrf.mxu1 }
 0x33f   : > { %v16003_v60 = vpop.f32.mrf.mxu0 }
 0x340   : > { %v16001_v6 = vpop.f32.mrf.mxu1 }
 0x341   : > { %v16007_v8 = vpop.f32.mrf.mxu0 }
 0x342   : > { %v16005_v33 = vpop.f32.mrf.mxu1 }
 0x343   : > { %v16011_v28 = vpop.f32.mrf.mxu0 }
 0x344   : > { %v16009_v29 = vpop.f32.mrf.mxu1 }
 0x345   : > { %16260 = vst [vmem:[#allocation4_spill] sm:$0xff] %v16009_v29  ;;  %v16015_v20 = vpop.f32.mrf.mxu0 }
 0x346   : > { %v16013_v18 = vpop.f32.mrf.mxu1  ;;  %16262 = vst [vmem:[#allocation6_spill] sm:$0xff] %v16015_v20 }
 0x347   : > { %16261 = vst [vmem:[#allocation5_spill] sm:$0xff] %v16013_v18  ;;  %v16017_v43 = vpop.f32.mrf.mxu0 }
 0x348   : > { %16263 = vst [vmem:[#allocation7_spill] sm:$0xff] %v16017_v43  ;;  %v12895_v0 = vpop.f32.mrf.mxu1 }
 0x349   : > { %v16019_v63 = vpop.f32.mrf.mxu0 }
 0x34a   : > { %16264 = vst [vmem:[#allocation8_spill] sm:$0xff] %v16019_v63  ;;  %v9582_v62 = vpop.f32.mrf.mxu1  ;;  %v9238_v63 = vadd.f32 %v12849_v48, %v15955_v50  ;;  %v9239_v50 = vadd.f32 %v9178_v24, %v15961_v52  ;;  %v16067_v24 = vld [vmem:[%s16162_s2] ss:$0 sm:$0xff] }
 0x34b   : > { %v12918_v40 = vpop.f32.mrf.mxu0 }
 0x34c   : > { %v12898_v10 = vpop.f32.mrf.mxu1  ;;  %v9445_v20 = vadd.f32 %v12872_v42, %v9238_v63  ;;  %v9446_v63 = vadd.f32 %v9385_v51, %v9239_v50  ;;  %v9244_v51 = vadd.f32 %v15985_v23, %v15967_v36 }
 0x34d   : > { %v9789_v35 = vpop.f32.mrf.mxu0 }
 0x34e   : > { %v9592_v31 = vpop.f32.mrf.mxu1  ;;  %v9451_v36 = vadd.f32 %v15995_v61, %v9244_v51 }
 0x34f   : > { %v12921_v34 = vpop.f32.mrf.mxu0  ;;  %v9653_v49 = vadd.f32 %v9592_v31, %v9446_v63 }
 0x350   : > { %v12901_v7 = vpop.f32.mrf.mxu1 }
 0x351   : > { %v9799_v55 = vpop.f32.mrf.mxu0 }
 0x352   : > { %v9602_v13 = vpop.f32.mrf.mxu1 }
 0x353   : > { %v12924_v14 = vpop.f32.mrf.mxu0 }
 0x354   : > { %v16021_v5 = vpop.f32.mrf.mxu1 }
 0x355   : > { %v16025_v46 = vpop.f32.mrf.mxu0 }
 0x356   : > { %v16023_v16 = vpop.f32.mrf.mxu1 }
 0x357   : > { %v16029_v57 = vpop.f32.mrf.mxu0 }
 0x358   : > { %v16027_v37 = vpop.f32.mrf.mxu1 }
 0x359   : > { %v16033_v11 = vpop.f32.mrf.mxu0 }
 0x35a   : > { %v16031_v47 = vpop.f32.mrf.mxu1 }
 0x35b   : > { %16265 = vst [vmem:[#allocation9_spill] sm:$0xff] %v16031_v47  ;;  %v16037_v41 = vpop.f32.mrf.mxu0 }
 0x35c   : > { %v16035_v53 = vpop.f32.mrf.mxu1  ;;  %16267 = vst [vmem:[#allocation11_spill] sm:$0xff] %v16037_v41  ;;  %v9444_v41 = vadd.f32 %v9375_v32, %v9237_v3  ;;  %v9241_v3 = vadd.f32 %v15983_v54, %v15965_v4 }
 0x35d   : > { %16266 = vst [vmem:[#allocation10_spill] sm:$0xff] %v16035_v53  ;;  %v16041_v39 = vpop.f32.mrf.mxu0  ;;  %v9240_v53 = vadd.f32 %v12852_v56, %v15959_v45  ;;  %v9449_v56 = vadd.f32 %v15987_v26, %v9242_v25  ;;  %v9860_v26 = vadd.f32 %v9799_v55, %v9653_v49  ;;  %v9248_v25 = vadd.f32 %v16001_v6, %v15975_v30 }
 0x35e   : > { %v16039_v44 = vpop.f32.mrf.mxu1  ;;  %16269 = vst [vmem:[#allocation13_spill] sm:$0xff] %v16041_v39 }
 0x35f   : > { %16268 = vst [vmem:[#allocation12_spill] sm:$0xff] %v16039_v44  ;;  %v16046_v18 = vpop.f32.mrf.mxu0  ;;  %v9652_v44 = vadd.f32 %v12895_v0, %v9445_v20  ;;  %v9447_v48 = vadd.f32 %v12875_v17, %v9240_v53  ;;  %v9455_v30 = vadd.f32 %v16011_v28, %v9248_v25 }
 0x360   : > { %v16044_v43 = vpop.f32.mrf.mxu1  ;;  %16271 = vst [vmem:[#allocation15_spill] sm:$0xff] %v16046_v18 }
 0x361   : > { %16270 = vst [vmem:[#allocation14_spill] sm:$0xff] %v16044_v43  ;;  %v16051_v27 = vpop.f32.mrf.mxu0  ;;  %v9651_v43 = vadd.f32 %v9582_v62, %v9444_v41  ;;  %v9859_v18 = vadd.f32 %v12918_v40, %v9652_v44  ;;  %v9243_v62 = vadd.f32 %v15989_v38, %v15969_v15  ;;  %v9658_v15 = vadd.f32 %v16021_v5, %v9451_v36  ;;  %v16282_v36 = vld [vmem:[#allocation5_spill] sm:$0xff] }
 0x362   : > { %v16049_v29 = vpop.f32.mrf.mxu1  ;;  %16273 = vst [vmem:[#allocation17_spill] sm:$0xff] %v16051_v27  ;;  %v9245_v44 = vadd.f32 %v15997_v12, %v15973_v21  ;;  %v16274_v6 = vld [vmem:[#allocation9_spill] sm:$0xff] }
 0x363   : > { %16272 = vst [vmem:[#allocation16_spill] sm:$0xff] %v16049_v29  ;;  %v16054_v47 = vpop.f32.mrf.mxu0  ;;  %v9654_v29 = vadd.f32 %v12898_v10, %v9447_v48  ;;  %v9858_v27 = vadd.f32 %v9789_v35, %v9651_v43  ;;  %v9656_v43 = vadd.f32 %v12901_v7, %v9449_v56  ;;  %v9450_v55 = vadd.f32 %v15999_v19, %v9243_v62  ;;  %v16281_v62 = vld [vmem:[#allocation3_spill] sm:$0xff] }
 0x364   : > { %v12941_v39 = vpop.f32.mrf.mxu1  ;;  %v9452_v21 = vadd.f32 %v16007_v8, %v9245_v44 }
 0x365   : > { %v16058_v22 = vpop.f32.mrf.mxu0  ;;  %v10066_v45 = vadd.f32 %v12941_v39, %v9859_v18  ;;  %v9861_v58 = vadd.f32 %v12921_v34, %v9654_v29  ;;  %v9448_v18 = vadd.f32 %v15991_v59, %v9241_v3  ;;  %v9863_v40 = vadd.f32 %v12924_v14, %v9656_v43 }
 0x366   : > { %v9996_v42 = vpop.f32.mrf.mxu1  ;;  %v9246_v34 = vadd.f32 %v15993_v2, %v15971_v1  ;;  %v9657_v2 = vadd.f32 %v16023_v16, %v9450_v55  ;;  %v9865_v39 = vadd.f32 %v16029_v57, %v9658_v15  ;;  %v9247_v3 = vadd.f32 %v16005_v33, %v15977_v9  ;;  %v16279_v33 = vld [vmem:[#allocation10_spill] sm:$0xff] }
 0x367   : > { %v12964_v52 = vpop.f32.mrf.mxu0  ;;  %v10065_v17 = vadd.f32 %v9996_v42, %v9858_v27  ;;  %v9655_v23 = vadd.f32 %v9602_v13, %v9448_v18  ;;  %v9659_v8 = vadd.f32 %v16274_v6, %v9452_v21  ;;  %v16278_v18 = vld [vmem:[#allocation6_spill] sm:$0xff]  ;;  %v9662_v28 = vadd.f32 %v16279_v33, %v9455_v30 }
 0x368   : > { %v12944_v32 = vpop.f32.mrf.mxu1  ;;  %v10273_v20 = vadd.f32 %v12964_v52, %v10066_v45  ;;  %v9453_v1 = vadd.f32 %v16003_v60, %v9246_v34  ;;  %v9864_v42 = vadd.f32 %v16033_v11, %v9657_v2  ;;  %v9454_v9 = vadd.f32 %v16278_v18, %v9247_v3  ;;  %v16285_v34 = vld [vmem:[#allocation15_spill] sm:$0xff] }
 0x369   : > { %v10203_v54 = vpop.f32.mrf.mxu0  ;;  %v10068_v0 = vadd.f32 %v12944_v32, %v9861_v58  ;;  %v9862_v13 = vadd.f32 %v16025_v46, %v9655_v23  ;;  %v16275_v32 = vld [vmem:[#allocation11_spill] sm:$0xff]  ;;  %v9249_v23 = vadd.f32 %v16282_v36, %v16281_v62  ;;  %v9869_v55 = vadd.f32 %v16285_v34, %v9662_v28  ;;  %v16288_v2 = vld [vmem:[#allocation17_spill] sm:$0xff] }
 0x36a   : > { %v10006_v4 = vpop.f32.mrf.mxu1  ;;  %v10294_v29 = vadd.f32 %v16067_v24, %v10273_v20  ;;  %v10272_v27 = vadd.f32 %v10203_v54, %v10065_v17  ;;  %v9660_v12 = vadd.f32 %v16027_v37, %v9453_v1  ;;  %v16276_v17 = vld [vmem:[#allocation2_spill] sm:$0xff]  ;;  %v16277_v20 = vld [vmem:[#allocation4_spill] sm:$0xff]  ;;  %v16280_v54 = vld [vmem:[#allocation13_spill] sm:$0xff] }
 0x36b   : > { %v12967_v10 = vpop.f32.mrf.mxu0  ;;  %v10067_v31 = vadd.f32 %v10006_v4, %v9860_v26  ;;  %v9250_v51 = vadd.f32 %v16277_v20, %v16276_v17  ;;  %v9866_v26 = vadd.f32 %v16280_v54, %v9659_v8 }
 0x36c   : > { %v12947_v59 = vpop.f32.mrf.mxu1  ;;  %10308 = vst.msk [vmem:[%s16075_s22 + $0x8] sm:$0xff] %vm202_vm0, %v10294_v29  ;;  %v10293_v35 = vadd.f32 %v16067_v24, %v10272_v27  ;;  %v10275_v7 = vadd.f32 %v12967_v10, %v10068_v0  ;;  %v9867_v52 = vadd.f32 %v16275_v32, %v9660_v12 }
 0x36d   : > { %v10213_v61 = vpop.f32.mrf.mxu0  ;;  %v10070_v14 = vadd.f32 %v12947_v59, %v9863_v40  ;;  %v16283_v59 = vld [vmem:[#allocation7_spill] sm:$0xff]  ;;  %v16284_v40 = vld [vmem:[#allocation12_spill] sm:$0xff] }
 0x36e   : > { %v10016_v38 = vpop.f32.mrf.mxu1  ;;  %10307 = vst.msk [vmem:[%s16075_s22] sm:$0xff] %vm202_vm0, %v10293_v35  ;;  %v10296_v53 = vadd.f32 %v16067_v24, %v10275_v7  ;;  %v10274_v41 = vadd.f32 %v10213_v61, %v10067_v31  ;;  %v9457_v10 = vadd.f32 %v16283_v59, %v9250_v51  ;;  %v9661_v31 = vadd.f32 %v16284_v40, %v9454_v9 }
 0x36f   : > { %v12970_v5 = vpop.f32.mrf.mxu0  ;;  %v10069_v46 = vadd.f32 %v10016_v38, %v9862_v13  ;;  %v16286_v13 = vld [vmem:[#allocation8_spill] sm:$0xff] }
 0x370   : > { %v12950_v19 = vpop.f32.mrf.mxu1  ;;  %10310 = vst.msk [vmem:[%s16075_s22 + $0x18] sm:$0xff] %vm202_vm0, %v10296_v53  ;;  %v10295_v50 = vadd.f32 %v16067_v24, %v10274_v41  ;;  %v10277_v48 = vadd.f32 %v12970_v5, %v10070_v14  ;;  %v9456_v14 = vadd.f32 %v16286_v13, %v9249_v23  ;;  %v16287_v53 = vld [vmem:[#allocation14_spill] sm:$0xff] }
 0x371   : > { %v10223_v16 = vpop.f32.mrf.mxu0  ;;  %v10072_v57 = vadd.f32 %v12950_v19, %v9865_v39  ;;  %v9664_v41 = vadd.f32 %v16287_v53, %v9457_v10  ;;  %v9868_v19 = vadd.f32 %v16288_v2, %v9661_v31 }
 0x372   : > { %v10026_v60 = vpop.f32.mrf.mxu1  ;;  %10309 = vst.msk [vmem:[%s16075_s22 + $0x10] sm:$0xff] %vm202_vm0, %v10295_v50  ;;  %v10298_v63 = vadd.f32 %v16067_v24, %v10277_v48  ;;  %v10276_v45 = vadd.f32 %v10223_v16, %v10069_v46  ;;  %v16289_v50 = vld [vmem:[#allocation16_spill] sm:$0xff] }
 0x373   : > { %v12973_v37 = vpop.f32.mrf.mxu0  ;;  %v10071_v11 = vadd.f32 %v10026_v60, %v9864_v42  ;;  %v9663_v48 = vadd.f32 %v16289_v50, %v9456_v14  ;;  %v9871_v12 = vadd.f32 %v16054_v47, %v9664_v41 }
 0x374   : > { %v12953_v56 = vpop.f32.mrf.mxu1  ;;  %10312 = vst.msk [vmem:[%s16075_s22 + $0x28] sm:$0xff] %vm202_vm0, %v10298_v63  ;;  %v10297_v49 = vadd.f32 %v16067_v24, %v10276_v45  ;;  %v10279_v58 = vadd.f32 %v12973_v37, %v10072_v57 }
 0x375   : > { %v10233_v4 = vpop.f32.mrf.mxu0  ;;  %v10074_v0 = vadd.f32 %v12953_v56, %v9867_v52  ;;  %v9870_v45 = vadd.f32 %v16058_v22, %v9663_v48 }
 0x376   : > { %v10036_v43 = vpop.f32.mrf.mxu1  ;;  %10311 = vst.msk [vmem:[%s16075_s22 + $0x20] sm:$0xff] %vm202_vm0, %v10297_v49  ;;  %v10300_v29 = vadd.f32 %v16067_v24, %v10279_v58  ;;  %v10278_v27 = vadd.f32 %v10233_v4, %v10071_v11 }
 0x377   : > { %v12976_v7 = vpop.f32.mrf.mxu0  ;;  %v10073_v15 = vadd.f32 %v10036_v43, %v9866_v26 }
 0x378   : > { %v12956_v35 = vpop.f32.mrf.mxu1  ;;  %10314 = vst.msk [vmem:[%s16075_s22 + $0x38] sm:$0xff] %vm202_vm0, %v10300_v29  ;;  %v10299_v38 = vadd.f32 %v16067_v24, %v10278_v27  ;;  %v10281_v61 = vadd.f32 %v12976_v7, %v10074_v0 }
 0x379   : > { %v10243_v1 = vpop.f32.mrf.mxu0  ;;  %v10076_v5 = vadd.f32 %v12956_v35, %v9869_v55 }
 0x37a   : > { %v10046_v44 = vpop.f32.mrf.mxu1  ;;  %10313 = vst.msk [vmem:[%s16075_s22 + $0x30] sm:$0xff] %vm202_vm0, %v10299_v38  ;;  %v10302_v39 = vadd.f32 %v16067_v24, %v10281_v61  ;;  %v10280_v46 = vadd.f32 %v10243_v1, %v10073_v15 }
 0x37b   : > { %v12979_v21 = vpop.f32.mrf.mxu0  ;;  %v10075_v60 = vadd.f32 %v10046_v44, %v9868_v19 }
 0x37c   : > { %v12959_v25 = vpop.f32.mrf.mxu1  ;;  %10316 = vst.msk [vmem:[%s16075_s22 + $0x48] sm:$0xff] %vm202_vm0, %v10302_v39  ;;  %v10301_v16 = vadd.f32 %v16067_v24, %v10280_v46  ;;  %v10283_v42 = vadd.f32 %v12979_v21, %v10076_v5 }
 0x37d   : > { %v10253_v63 = vpop.f32.mrf.mxu0  ;;  %v10078_v3 = vadd.f32 %v12959_v25, %v9871_v12 }
 0x37e   : > { %v10056_v57 = vpop.f32.mrf.mxu1  ;;  %10315 = vst.msk [vmem:[%s16075_s22 + $0x40] sm:$0xff] %vm202_vm0, %v10301_v16  ;;  %v10304_v30 = vadd.f32 %v16067_v24, %v10283_v42  ;;  %v10282_v6 = vadd.f32 %v10253_v63, %v10075_v60 }
 0x37f   : > { %v12982_v47 = vpop.f32.mrf.mxu0  ;;  %v10077_v8 = vadd.f32 %v10056_v57, %v9870_v45 }
 0x380   : > { %10318 = vst.msk [vmem:[%s16075_s22 + $0x58] sm:$0xff] %vm202_vm0, %v10304_v30  ;;  %v10303_v56 = vadd.f32 %v16067_v24, %v10282_v6  ;;  %v10285_v37 = vadd.f32 %v12982_v47, %v10078_v3 }
 0x381   : > { %v10263_v32 = vpop.f32.mrf.mxu0 }
 0x382   : > { %10317 = vst.msk [vmem:[%s16075_s22 + $0x50] sm:$0xff] %vm202_vm0, %v10303_v56  ;;  %v10306_v22 = vadd.f32 %v16067_v24, %v10285_v37  ;;  %v10284_v52 = vadd.f32 %v10263_v32, %v10077_v8 }
 0x384   : > { %10321 = vst.msk [vmem:[%s16075_s22 + $0x68] sm:$0x3] %vm10320_vm1, %v10306_v22  ;;  %v10305_v11 = vadd.f32 %v16067_v24, %v10284_v52 }
 0x386   : > { %10319 = vst.msk [vmem:[%s16075_s22 + $0x60] sm:$0xff] %vm202_vm0, %v10305_v11 }
 0x387 PF: > { %s13_s12 = sadd.s32 1, %s13001_s12  }
 0x388   : > { %p10_p4 = scmp.ge.s32.totalorder %s13_s12, 4  }
 0x38a   :  { %12 = sbr.rel (!%p10_p4) target bundleno = 1 (0x1), region = 110 }

</bundles_post_ra>
